<compile_context>
chip_gen: v7x
topology: tpu7x:2x2x1
jax: 0.10.0
libtpu: 0.0.40
codegen_flags: <defaults>
</compile_context>

<pallas_src>
import functools

import jax
import jax.numpy as jnp
from jax.experimental import pallas as pl
from jax.experimental.pallas import tpu as pltpu

NUM_GROUPS = 32            # GroupNorm32
EPS = 1e-5
MXU_DTYPE = jnp.bfloat16   # MXU operand dtype (accumulation is always f32)


# ----------------------------- in-kernel helpers -----------------------------

def _silu(x):
    return x * jax.nn.sigmoid(x)


def _mxu_dot(a, b):
    # MXU matmul: bf16 operands, f32 accumulation.
    return jnp.dot(a.astype(MXU_DTYPE), b.astype(MXU_DTYPE),
                   preferred_element_type=jnp.float32)


def _group_norm(x, gamma, beta, gavg, *, apply_silu):
    """GroupNorm of one example in token layout (centered, biased variance).

    x: (HW, C) f32; gamma/beta: (1, C); gavg: (C, C) constant block-diagonal
    group-averaging matrix (kept f32 for exact statistics; hoisted out of the kernel).
    """
    n = x.shape[0]
    inv_n = 1.0 / n
    s1 = jnp.sum(x, axis=0, keepdims=True) * inv_n                   # per-channel mean
    mean = jnp.dot(s1, gavg, preferred_element_type=jnp.float32)     # per-group mean
    xc = x - mean
    s2 = jnp.sum(xc * xc, axis=0, keepdims=True) * inv_n             # centered 2nd moment
    var = jnp.dot(s2, gavg, preferred_element_type=jnp.float32)      # per-group variance
    y = xc * jax.lax.rsqrt(var + EPS) * gamma + beta
    return _silu(y) if apply_silu else y


def _conv3x3(h_tok, w_ref, b, pad_ref, H, W):
    """3x3 same-padding conv as 9 shift-and-accumulate MXU matmuls (no im2col buffer).

    h_tok: (HW, Cin) f32.  w_ref: (9, Cin, Cout) bf16 VMEM ref (tap-major, k = dy*3+dx).
    b: (1, Cout) f32.  pad_ref: (H+2, W+2, Cin) VMEM scratch whose 1-wide halo is zero.
    """
    HW, C = h_tok.shape
    cout = w_ref.shape[-1]
    pad_ref[1:H + 1, 1:W + 1, :] = h_tok.reshape(H, W, C)            # interior only; halo stays 0
    acc = jnp.zeros((HW, cout), jnp.float32)
    for k in range(9):                                               # static 9-tap unroll
        dy, dx = k // 3, k % 3
        tap = pad_ref[dy:dy + H, dx:dx + W, :].reshape(HW, C)        # shifted token view
        acc = acc + _mxu_dot(tap, w_ref[k])
    return acc + b


def _residual_block(x_tok, t_, c_, gavg,
                    gn1_g, gn1_b, w1_ref, b1,
                    gn2_g, gn2_b, w2_ref, b2,
                    pad_ref, H, W):
    """norm1 -> SiLU -> conv1 -> norm2 -> FiLM(t_,c_) -> SiLU -> (Dropout=id) -> conv2 -> +x."""
    h = _group_norm(x_tok, gn1_g, gn1_b, gavg, apply_silu=True)
    h = _conv3x3(h, w1_ref, b1, pad_ref, H, W)
    h = _group_norm(h, gn2_g, gn2_b, gavg, apply_silu=False)
    h = _silu(t_ * h + c_)                                           # FiLM, then act2
    h = _conv3x3(h, w2_ref, b2, pad_ref, H, W)                       # Dropout is identity (inference)
    return h + x_tok                                                 # shortcut = Identity (Cin == Cout)


def _attention_block(x_tok, gavg, gn_g, gn_b,
                     qkv_w_ref, qkv_b_ref, proj_w_ref, proj_b,
                     acc_ref, *, n_heads, d_k):
    """Pre-GN multi-head self-attention + residual; output proj folded into the head loop."""
    h = _group_norm(x_tok, gn_g, gn_b, gavg, apply_silu=False)
    h_bf = h.astype(MXU_DTYPE)
    scale = 1.0 / (d_k ** 0.5)
    acc_ref[...] = jnp.zeros_like(acc_ref)

    # TODO(synk): for production diffusion shapes (HW in the thousands) the per-head
    # (HW, HW) score matrix must become flash-style KV tiling (running max/sum over KV
    # tiles that are multiples of 128/256) so VMEM stays O(HW * tile); at these demo
    # shapes a single full-row softmax per head is fine.
    def head_body(hh, carry):
        qkv = _mxu_dot(h_bf, qkv_w_ref[hh]) + qkv_b_ref[hh]          # (HW, 3*d_k) for head hh
        q = qkv[:, :d_k]
        k = qkv[:, d_k:2 * d_k]
        v = qkv[:, 2 * d_k:]
        s = jax.lax.dot_general(q.astype(MXU_DTYPE), k.astype(MXU_DTYPE),
                                (((1,), (1,)), ((), ())),
                                preferred_element_type=jnp.float32) * scale
        s = s - jnp.max(s, axis=-1, keepdims=True)
        p = jnp.exp(s)
        p = p * pl.reciprocal(jnp.sum(p, axis=-1, keepdims=True), approx=True)
        o_h = _mxu_dot(p, v)                                         # (HW, d_k)
        acc_ref[...] += _mxu_dot(o_h, proj_w_ref[hh])                # proj folded per head
        return carry

    jax.lax.fori_loop(0, n_heads, head_body, 0)
    return acc_ref[...] + proj_b + x_tok


# ----------------------------- fused MiddleBlock kernel -----------------------------

def middle_block_kernel(
        x_ref, t1_ref, c1_ref, t2_ref, c2_ref, gavg_ref,
        r1_gn1_g, r1_gn1_b, r1_w1, r1_b1, r1_gn2_g, r1_gn2_b, r1_w2, r1_b2,
        a_gn_g, a_gn_b, a_qkv_w, a_qkv_b, a_proj_w, a_proj_b,
        r2_gn1_g, r2_gn1_b, r2_w1, r2_b1, r2_gn2_g, r2_gn2_b, r2_w2, r2_b2,
        o_ref,
        pad_ref, acc_ref, *, n_heads, d_k, H, W):
    # One batch element per grid step.  x_ref / o_ref: (1, C, HW) (NCHW, spatial flattened).
    C = x_ref.shape[1]
    gavg = gavg_ref[...]

    # Zero only the 1-wide halo of the conv pad scratch; the interior is fully
    # overwritten by every _conv3x3 call.  Done every step (cheap thin strips) rather
    # than under @pl.when(program_id==0) so it stays correct when the batch axis is
    # split across megacore TensorCores ("parallel").
    pad_ref[0:1, :, :] = jnp.zeros((1, W + 2, C), jnp.float32)
    pad_ref[H + 1:H + 2, :, :] = jnp.zeros((1, W + 2, C), jnp.float32)
    pad_ref[1:H + 1, 0:1, :] = jnp.zeros((H, 1, C), jnp.float32)
    pad_ref[1:H + 1, W + 1:W + 2, :] = jnp.zeros((H, 1, C), jnp.float32)

    # NCHW -> token layout once, in VMEM (no HBM transpose round trip).
    x = jnp.transpose(x_ref[0], (1, 0))                              # (HW, C)

    h = _residual_block(x, t1_ref[0], c1_ref[0], gavg,
                        r1_gn1_g[...], r1_gn1_b[...], r1_w1, r1_b1[...],
                        r1_gn2_g[...], r1_gn2_b[...], r1_w2, r1_b2[...],
                        pad_ref, H, W)

    h = _attention_block(h, gavg, a_gn_g[...], a_gn_b[...],
                         a_qkv_w, a_qkv_b, a_proj_w, a_proj_b[...],
                         acc_ref, n_heads=n_heads, d_k=d_k)

    h = _residual_block(h, t2_ref[0], c2_ref[0], gavg,
                        r2_gn1_g[...], r2_gn1_b[...], r2_w1, r2_b1[...],
                        r2_gn2_g[...], r2_gn2_b[...], r2_w2, r2_b2[...],
                        pad_ref, H, W)

    o_ref[0] = jnp.transpose(h, (1, 0))                              # tokens -> (C, HW)


# ----------------------------- wrapper-side helpers -----------------------------

def group_average_matrix(C, num_groups):
    cg = C // num_groups
    gid = jnp.arange(C) // cg
    return (gid[:, None] == gid[None, :]).astype(jnp.float32) / cg   # (C, C), block-diag 1/cg


def _split_qkv_heads(qkv_w, qkv_b, n_heads, d_k):
    """(C,3C)/(1,3C) with [Q|K|V] layout -> per-head (n_heads,C,3*d_k)/(n_heads,1,3*d_k)."""
    C = qkv_w.shape[0]

    def per_head(m):                                                 # (.., C) -> (n_heads, .., d_k)
        return jnp.moveaxis(m.reshape(m.shape[0], n_heads, d_k), 1, 0)

    w = jnp.concatenate([per_head(qkv_w[:, i * C:(i + 1) * C]) for i in range(3)],
                        axis=-1).astype(MXU_DTYPE)                   # (n_heads, C, 3*d_k)
    b = jnp.concatenate([per_head(qkv_b[:, i * C:(i + 1) * C]) for i in range(3)],
                        axis=-1).astype(jnp.float32)                 # (n_heads, 1, 3*d_k)
    return w, b


def _vmem_limit_bytes(B, C, H, W, n_heads, d_k):
    """Rough per-kernel VMEM footprint (weights single-buffered, I/O double-buffered)."""
    HW = H * W
    f32, bf16 = 4, 2
    weights = (C * C * f32                            # gavg
               + 4 * 9 * C * C * bf16                 # 4 conv tap stacks
               + n_heads * C * 3 * d_k * bf16         # qkv weights
               + n_heads * 3 * d_k * f32              # qkv biases
               + n_heads * d_k * C * bf16             # proj weights
               + 24 * C * f32)                        # GN gammas/betas, conv/proj biases
    streamed = 2 * (2 * C * HW * f32 + 4 * C * f32)   # x + out blocks + 4 FiLM vectors (x2 buffers)
    scratch = (H + 2) * (W + 2) * C * f32 + HW * C * f32
    working = HW * HW * f32 + 8 * HW * C * f32 + 4 * HW * 3 * d_k * f32
    est = weights + streamed + scratch + working
    # Never below the v6e/v7x default scoped limit; never above v7x's 64 MiB physical.
    return int(min(max(2 * est, 32 << 20), 64 << 20))


def middle_block(x_nchw, t, c, params, *, n_heads, d_k, single_buffer_weights=True):
    B, C, H, W = x_nchw.shape
    assert C % NUM_GROUPS == 0 and C == n_heads * d_k
    HW = H * W
    p1, pa, p2 = params['res1'], params['attn'], params['res2']

    gavg = group_average_matrix(C, NUM_GROUPS)

    # Hoisted FiLM embeddings: one well-shaped batched (B,T)x(T,C) matmul each instead
    # of M=1 MXU matvecs (and 8 extra weight inputs) inside the kernel.
    def film(e, w, b):
        return (jax.nn.silu(e) @ w + b)[:, None, :]                  # (B, 1, C)

    t1, c1 = film(t, p1['temb_w'], p1['temb_b']), film(c, p1['cemb_w'], p1['cemb_b'])
    t2, c2 = film(t, p2['temb_w'], p2['temb_b']), film(c, p2['cemb_w'], p2['cemb_b'])

    # Keep NCHW in HBM (free reshape only); the layout transpose happens once per
    # example inside the kernel, in VMEM.
    x_tok = x_nchw.reshape(B, C, HW)

    w1a = p1['conv1_w'].reshape(9, C, C).astype(MXU_DTYPE)           # tap-major conv weights
    w1b = p1['conv2_w'].reshape(9, C, C).astype(MXU_DTYPE)
    w2a = p2['conv1_w'].reshape(9, C, C).astype(MXU_DTYPE)
    w2b = p2['conv2_w'].reshape(9, C, C).astype(MXU_DTYPE)

    qkv_w, qkv_b = _split_qkv_heads(pa['qkv_w'], pa['qkv_b'], n_heads, d_k)
    proj_w = pa['proj_w'].reshape(n_heads, d_k, C).astype(MXU_DTYPE)

    def bspec(shape):                                                # batch-varying block
        nd = len(shape)
        return pl.BlockSpec(shape, lambda b, _n=nd: (b,) + (0,) * (_n - 1))

    def cspec(shape):                                                # grid-constant weight block
        nd = len(shape)
        idx = lambda b, _n=nd: (0,) * _n
        if single_buffer_weights:
            # Constant across the grid -> single buffer halves its resident VMEM.
            return pl.BlockSpec(shape, idx, pipeline_mode=pl.Buffered(1))
        return pl.BlockSpec(shape, idx)

    kern = functools.partial(middle_block_kernel, n_heads=n_heads, d_k=d_k, H=H, W=W)

    out = pl.pallas_call(
        kern,
        out_shape=jax.ShapeDtypeStruct((B, C, HW), jnp.float32),
        grid=(B,),
        in_specs=[
            bspec((1, C, HW)),                                       # x (NCHW, spatial flat)
            bspec((1, 1, C)), bspec((1, 1, C)),                      # res1 FiLM t_, c_
            bspec((1, 1, C)), bspec((1, 1, C)),                      # res2 FiLM t_, c_
            cspec((C, C)),                                           # group-average matrix
            cspec((1, C)), cspec((1, C)),                            # res1 gn1 gamma / beta
            cspec((9, C, C)), cspec((1, C)),                         # res1 conv1 w / b
            cspec((1, C)), cspec((1, C)),                            # res1 gn2 gamma / beta
            cspec((9, C, C)), cspec((1, C)),                         # res1 conv2 w / b
            cspec((1, C)), cspec((1, C)),                            # attn gn gamma / beta
            cspec((n_heads, C, 3 * d_k)),                            # qkv w (per-head)
            cspec((n_heads, 1, 3 * d_k)),                            # qkv b (per-head)
            cspec((n_heads, d_k, C)),                                # proj w (per-head)
            cspec((1, C)),                                           # proj b
            cspec((1, C)), cspec((1, C)),                            # res2 gn1 gamma / beta
            cspec((9, C, C)), cspec((1, C)),                         # res2 conv1 w / b
            cspec((1, C)), cspec((1, C)),                            # res2 gn2 gamma / beta
            cspec((9, C, C)), cspec((1, C)),                         # res2 conv2 w / b
        ],
        out_specs=bspec((1, C, HW)),
        scratch_shapes=[pltpu.VMEM((H + 2, W + 2, C), jnp.float32),  # conv zero-halo pad
                        pltpu.VMEM((HW, C), jnp.float32)],           # attention/proj accumulator
        compiler_params=pltpu.CompilerParams(
            dimension_semantics=("parallel",),
            vmem_limit_bytes=_vmem_limit_bytes(B, C, H, W, n_heads, d_k)),
    )(x_tok, t1, c1, t2, c2, gavg,
      p1['gn1_g'], p1['gn1_b'], w1a, p1['conv1_b'],
      p1['gn2_g'], p1['gn2_b'], w1b, p1['conv2_b'],
      pa['gn_g'], pa['gn_b'], qkv_w, qkv_b, proj_w, pa['proj_b'],
      p2['gn1_g'], p2['gn1_b'], w2a, p2['conv1_b'],
      p2['gn2_g'], p2['gn2_b'], w2b, p2['conv2_b'])

    return out.reshape(B, C, H, W)                                   # free reshape (contiguous)


# ----------------------------- deterministic parameters -----------------------------

def _winit(key, shape, scale=0.05):
    return scale * jax.random.normal(key, shape, jnp.float32)


def init_res_params(key, C, T):
    ks = jax.random.split(key, 6)
    return dict(
        gn1_g=jnp.ones((1, C), jnp.float32), gn1_b=jnp.zeros((1, C), jnp.float32),
        conv1_w=_winit(ks[0], (3, 3, C, C)), conv1_b=_winit(ks[1], (1, C)),
        gn2_g=jnp.ones((1, C), jnp.float32), gn2_b=jnp.zeros((1, C), jnp.float32),
        conv2_w=_winit(ks[2], (3, 3, C, C)), conv2_b=_winit(ks[3], (1, C)),
        temb_w=_winit(ks[4], (T, C)), temb_b=jnp.zeros((1, C), jnp.float32),
        cemb_w=_winit(ks[5], (T, C)), cemb_b=jnp.zeros((1, C), jnp.float32),
    )


def init_attn_params(key, C):
    ks = jax.random.split(key, 4)
    return dict(
        gn_g=jnp.ones((1, C), jnp.float32), gn_b=jnp.zeros((1, C), jnp.float32),
        qkv_w=_winit(ks[0], (C, 3 * C)), qkv_b=_winit(ks[1], (1, 3 * C)),
        proj_w=_winit(ks[2], (C, C)), proj_b=_winit(ks[3], (1, C)),
    )


def init_params(key, C, T):
    k1, k2, k3 = jax.random.split(key, 3)
    return dict(res1=init_res_params(k1, C, T),
                attn=init_attn_params(k2, C),
                res2=init_res_params(k3, C, T))


# ----------------------------- main -----------------------------

if __name__ == "__main__":
    B, C, H, W, T = 2, 32, 8, 8, 32          # C divisible by 32 for GroupNorm32
    attn_channels_per_head = 16
    n_heads = C // attn_channels_per_head

    key = jax.random.PRNGKey(0)
    kx, kt, kc, kp = jax.random.split(key, 4)
    x = jax.random.normal(kx, (B, C, H, W), jnp.float32)   # NCHW, like the PyTorch module
    t = jax.random.normal(kt, (B, T), jnp.float32)
    c = jax.random.normal(kc, (B, T), jnp.float32)
    params = init_params(kp, C, T)

    def build(single_buffer):
        return jax.jit(functools.partial(
            middle_block, n_heads=n_heads, d_k=attn_channels_per_head,
            single_buffer_weights=single_buffer))

    try:
        y = jax.block_until_ready(build(True)(x, t, c, params))
    except Exception:
        # Fallback for jax versions that reject pl.Buffered(1) single-buffering.
        y = jax.block_until_ready(build(False)(x, t, c, params))

    assert y.shape == (B, C, H, W) and bool(jnp.all(jnp.isfinite(y)))
    print("KERNEL_OK")
</pallas_src>

<mosaic_0001>
module attributes {stable_mosaic.version = 11 : i64} {
  func.func @middle_block_kernel(%arg0: i32, %arg1: memref<1x32x64xf32, #tpu.memory_space<vmem>>, %arg2: memref<1x1x32xf32, #tpu.memory_space<vmem>>, %arg3: memref<1x1x32xf32, #tpu.memory_space<vmem>>, %arg4: memref<1x1x32xf32, #tpu.memory_space<vmem>>, %arg5: memref<1x1x32xf32, #tpu.memory_space<vmem>>, %arg6: memref<32x32xf32, #tpu.memory_space<vmem>>, %arg7: memref<1x32xf32, #tpu.memory_space<vmem>>, %arg8: memref<1x32xf32, #tpu.memory_space<vmem>>, %arg9: memref<9x32x32xbf16, #tpu.memory_space<vmem>>, %arg10: memref<1x32xf32, #tpu.memory_space<vmem>>, %arg11: memref<1x32xf32, #tpu.memory_space<vmem>>, %arg12: memref<1x32xf32, #tpu.memory_space<vmem>>, %arg13: memref<9x32x32xbf16, #tpu.memory_space<vmem>>, %arg14: memref<1x32xf32, #tpu.memory_space<vmem>>, %arg15: memref<1x32xf32, #tpu.memory_space<vmem>>, %arg16: memref<1x32xf32, #tpu.memory_space<vmem>>, %arg17: memref<2x32x48xbf16, #tpu.memory_space<vmem>>, %arg18: memref<2x1x48xf32, #tpu.memory_space<vmem>>, %arg19: memref<2x16x32xbf16, #tpu.memory_space<vmem>>, %arg20: memref<1x32xf32, #tpu.memory_space<vmem>>, %arg21: memref<1x32xf32, #tpu.memory_space<vmem>>, %arg22: memref<1x32xf32, #tpu.memory_space<vmem>>, %arg23: memref<9x32x32xbf16, #tpu.memory_space<vmem>>, %arg24: memref<1x32xf32, #tpu.memory_space<vmem>>, %arg25: memref<1x32xf32, #tpu.memory_space<vmem>>, %arg26: memref<1x32xf32, #tpu.memory_space<vmem>>, %arg27: memref<9x32x32xbf16, #tpu.memory_space<vmem>>, %arg28: memref<1x32xf32, #tpu.memory_space<vmem>>, %arg29: memref<1x32x64xf32, #tpu.memory_space<vmem>>, %arg30: memref<10x10x32xf32, #tpu.memory_space<vmem>>, %arg31: memref<64x32xf32, #tpu.memory_space<vmem>>) attributes {dimension_semantics = [#tpu.dimension_semantics<parallel>], iteration_bounds = array<i64: 2>, scalar_prefetch = 0 : i64, scratch_operands = 2 : i64, tpu.core_type = #tpu.core_type<tc>, window_params = [{transform_indices = @transform_0, window_bounds = array<i64: 1, 32, 64>}, {transform_indices = @transform_1, window_bounds = array<i64: 1, 1, 32>}, {transform_indices = @transform_2, window_bounds = array<i64: 1, 1, 32>}, {transform_indices = @transform_3, window_bounds = array<i64: 1, 1, 32>}, {transform_indices = @transform_4, window_bounds = array<i64: 1, 1, 32>}, {pipeline_mode = #tpu.pipeline_mode<synchronous>, transform_indices = @transform_5, window_bounds = array<i64: 32, 32>}, {pipeline_mode = #tpu.pipeline_mode<synchronous>, transform_indices = @transform_6, window_bounds = array<i64: 1, 32>}, {pipeline_mode = #tpu.pipeline_mode<synchronous>, transform_indices = @transform_7, window_bounds = array<i64: 1, 32>}, {pipeline_mode = #tpu.pipeline_mode<synchronous>, transform_indices = @transform_8, window_bounds = array<i64: 9, 32, 32>}, {pipeline_mode = #tpu.pipeline_mode<synchronous>, transform_indices = @transform_9, window_bounds = array<i64: 1, 32>}, {pipeline_mode = #tpu.pipeline_mode<synchronous>, transform_indices = @transform_10, window_bounds = array<i64: 1, 32>}, {pipeline_mode = #tpu.pipeline_mode<synchronous>, transform_indices = @transform_11, window_bounds = array<i64: 1, 32>}, {pipeline_mode = #tpu.pipeline_mode<synchronous>, transform_indices = @transform_12, window_bounds = array<i64: 9, 32, 32>}, {pipeline_mode = #tpu.pipeline_mode<synchronous>, transform_indices = @transform_13, window_bounds = array<i64: 1, 32>}, {pipeline_mode = #tpu.pipeline_mode<synchronous>, transform_indices = @transform_14, window_bounds = array<i64: 1, 32>}, {pipeline_mode = #tpu.pipeline_mode<synchronous>, transform_indices = @transform_15, window_bounds = array<i64: 1, 32>}, {pipeline_mode = #tpu.pipeline_mode<synchronous>, transform_indices = @transform_16, window_bounds = array<i64: 2, 32, 48>}, {pipeline_mode = #tpu.pipeline_mode<synchronous>, transform_indices = @transform_17, window_bounds = array<i64: 2, 1, 48>}, {pipeline_mode = #tpu.pipeline_mode<synchronous>, transform_indices = @transform_18, window_bounds = array<i64: 2, 16, 32>}, {pipeline_mode = #tpu.pipeline_mode<synchronous>, transform_indices = @transform_19, window_bounds = array<i64: 1, 32>}, {pipeline_mode = #tpu.pipeline_mode<synchronous>, transform_indices = @transform_20, window_bounds = array<i64: 1, 32>}, {pipeline_mode = #tpu.pipeline_mode<synchronous>, transform_indices = @transform_21, window_bounds = array<i64: 1, 32>}, {pipeline_mode = #tpu.pipeline_mode<synchronous>, transform_indices = @transform_22, window_bounds = array<i64: 9, 32, 32>}, {pipeline_mode = #tpu.pipeline_mode<synchronous>, transform_indices = @transform_23, window_bounds = array<i64: 1, 32>}, {pipeline_mode = #tpu.pipeline_mode<synchronous>, transform_indices = @transform_24, window_bounds = array<i64: 1, 32>}, {pipeline_mode = #tpu.pipeline_mode<synchronous>, transform_indices = @transform_25, window_bounds = array<i64: 1, 32>}, {pipeline_mode = #tpu.pipeline_mode<synchronous>, transform_indices = @transform_26, window_bounds = array<i64: 9, 32, 32>}, {pipeline_mode = #tpu.pipeline_mode<synchronous>, transform_indices = @transform_27, window_bounds = array<i64: 1, 32>}, {transform_indices = @transform_28, window_bounds = array<i64: 1, 32, 64>}]} {
    %c0 = arith.constant 0 : index
    %c0_0 = arith.constant 0 : index
    %0 = vector.load %arg6[%c0, %c0_0] : memref<32x32xf32, #tpu.memory_space<vmem>>, vector<32x32xf32>
    %cst = arith.constant 0.000000e+00 : f32
    %1 = vector.broadcast %cst : f32 to vector<1x10x32xf32>
    %c0_1 = arith.constant 0 : index
    %c0_2 = arith.constant 0 : index
    %c0_3 = arith.constant 0 : index
    %2 = vector.load %arg30[%c0_1, %c0_2, %c0_3] : memref<10x10x32xf32, #tpu.memory_space<vmem>>, vector<1x10x32xf32>
    tpu.vector_store %arg30[%c0_1, %c0_2, %c0_3], %1 {strides = array<i32>} : memref<10x10x32xf32, #tpu.memory_space<vmem>>, vector<1x10x32xf32>,
    %cst_4 = arith.constant 0.000000e+00 : f32
    %3 = vector.broadcast %cst_4 : f32 to vector<1x10x32xf32>
    %c9 = arith.constant 9 : index
    %c0_5 = arith.constant 0 : index
    %c0_6 = arith.constant 0 : index
    %4 = vector.load %arg30[%c9, %c0_5, %c0_6] : memref<10x10x32xf32, #tpu.memory_space<vmem>>, vector<1x10x32xf32>
    tpu.vector_store %arg30[%c9, %c0_5, %c0_6], %3 {strides = array<i32>} : memref<10x10x32xf32, #tpu.memory_space<vmem>>, vector<1x10x32xf32>,
    %cst_7 = arith.constant 0.000000e+00 : f32
    %5 = vector.broadcast %cst_7 : f32 to vector<8x1x32xf32>
    %c1 = arith.constant 1 : index
    %c0_8 = arith.constant 0 : index
    %c0_9 = arith.constant 0 : index
    %6 = vector.load %arg30[%c1, %c0_8, %c0_9] : memref<10x10x32xf32, #tpu.memory_space<vmem>>, vector<8x1x32xf32>
    tpu.vector_store %arg30[%c1, %c0_8, %c0_9], %5 {strides = array<i32>} : memref<10x10x32xf32, #tpu.memory_space<vmem>>, vector<8x1x32xf32>,
    %cst_10 = arith.constant 0.000000e+00 : f32
    %7 = vector.broadcast %cst_10 : f32 to vector<8x1x32xf32>
    %c1_11 = arith.constant 1 : index
    %c9_12 = arith.constant 9 : index
    %c0_13 = arith.constant 0 : index
    %8 = vector.load %arg30[%c1_11, %c9_12, %c0_13] : memref<10x10x32xf32, #tpu.memory_space<vmem>>, vector<8x1x32xf32>
    tpu.vector_store %arg30[%c1_11, %c9_12, %c0_13], %7 {strides = array<i32>} : memref<10x10x32xf32, #tpu.memory_space<vmem>>, vector<8x1x32xf32>,
    %c0_14 = arith.constant 0 : index
    %c0_15 = arith.constant 0 : index
    %c0_16 = arith.constant 0 : index
    %9 = vector.load %arg1[%c0_14, %c0_15, %c0_16] : memref<1x32x64xf32, #tpu.memory_space<vmem>>, vector<1x32x64xf32>
    %10 = vector.shape_cast %9 : vector<1x32x64xf32> to vector<32x64xf32>
    %11 = tpu.transpose %10, [1, 0] : vector<32x64xf32> -> vector<64x32xf32>
    %c0_17 = arith.constant 0 : index
    %c0_18 = arith.constant 0 : index
    %c0_19 = arith.constant 0 : index
    %12 = vector.load %arg2[%c0_17, %c0_18, %c0_19] : memref<1x1x32xf32, #tpu.memory_space<vmem>>, vector<1x1x32xf32>
    %13 = vector.shape_cast %12 : vector<1x1x32xf32> to vector<1x32xf32>
    %c0_20 = arith.constant 0 : index
    %c0_21 = arith.constant 0 : index
    %c0_22 = arith.constant 0 : index
    %14 = vector.load %arg3[%c0_20, %c0_21, %c0_22] : memref<1x1x32xf32, #tpu.memory_space<vmem>>, vector<1x1x32xf32>
    %15 = vector.shape_cast %14 : vector<1x1x32xf32> to vector<1x32xf32>
    %c0_23 = arith.constant 0 : index
    %c0_24 = arith.constant 0 : index
    %16 = vector.load %arg7[%c0_23, %c0_24] : memref<1x32xf32, #tpu.memory_space<vmem>>, vector<1x32xf32>
    %c0_25 = arith.constant 0 : index
    %c0_26 = arith.constant 0 : index
    %17 = vector.load %arg8[%c0_25, %c0_26] : memref<1x32xf32, #tpu.memory_space<vmem>>, vector<1x32xf32>
    %c0_27 = arith.constant 0 : index
    %c0_28 = arith.constant 0 : index
    %18 = vector.load %arg10[%c0_27, %c0_28] : memref<1x32xf32, #tpu.memory_space<vmem>>, vector<1x32xf32>
    %c0_29 = arith.constant 0 : index
    %c0_30 = arith.constant 0 : index
    %19 = vector.load %arg11[%c0_29, %c0_30] : memref<1x32xf32, #tpu.memory_space<vmem>>, vector<1x32xf32>
    %c0_31 = arith.constant 0 : index
    %c0_32 = arith.constant 0 : index
    %20 = vector.load %arg12[%c0_31, %c0_32] : memref<1x32xf32, #tpu.memory_space<vmem>>, vector<1x32xf32>
    %c0_33 = arith.constant 0 : index
    %c0_34 = arith.constant 0 : index
    %21 = vector.load %arg14[%c0_33, %c0_34] : memref<1x32xf32, #tpu.memory_space<vmem>>, vector<1x32xf32>
    %cst_35 = arith.constant dense<0.000000e+00> : vector<32xf32>
    %22 = vector.multi_reduction <add>, %11, %cst_35 [0] : vector<64x32xf32> to vector<32xf32>
    %23 = vector.shape_cast %22 : vector<32xf32> to vector<1x32xf32>
    %cst_36 = arith.constant 1.562500e-02 : f32
    %24 = vector.broadcast %cst_36 : f32 to vector<1x32xf32>
    %25 = arith.mulf %23, %24 : vector<1x32xf32>
    %cst_37 = arith.constant dense<0.000000e+00> : vector<1x32xf32>
    %26 = tpu.matmul %25, %0, %cst_37 {dimension_numbers = #tpu.dot_dimension_numbers<[1], [0], [0], [1], [0, 0, 1, 1], [], []>} : vector<1x32xf32>, vector<32x32xf32>, vector<1x32xf32> -> vector<1x32xf32>
    %27 = vector.broadcast %26 : vector<1x32xf32> to vector<64x32xf32>
    %28 = arith.subf %11, %27 : vector<64x32xf32>
    %29 = arith.mulf %28, %28 : vector<64x32xf32>
    %cst_38 = arith.constant dense<0.000000e+00> : vector<32xf32>
    %30 = vector.multi_reduction <add>, %29, %cst_38 [0] : vector<64x32xf32> to vector<32xf32>
    %31 = vector.shape_cast %30 : vector<32xf32> to vector<1x32xf32>
    %cst_39 = arith.constant 1.562500e-02 : f32
    %32 = vector.broadcast %cst_39 : f32 to vector<1x32xf32>
    %33 = arith.mulf %31, %32 : vector<1x32xf32>
    %cst_40 = arith.constant dense<0.000000e+00> : vector<1x32xf32>
    %34 = tpu.matmul %33, %0, %cst_40 {dimension_numbers = #tpu.dot_dimension_numbers<[1], [0], [0], [1], [0, 0, 1, 1], [], []>} : vector<1x32xf32>, vector<32x32xf32>, vector<1x32xf32> -> vector<1x32xf32>
    %cst_41 = arith.constant 9.99999974E-6 : f32
    %35 = vector.broadcast %cst_41 : f32 to vector<1x32xf32>
    %36 = arith.addf %34, %35 : vector<1x32xf32>
    %37 = math.rsqrt %36 : vector<1x32xf32>
    %38 = vector.broadcast %37 : vector<1x32xf32> to vector<64x32xf32>
    %39 = arith.mulf %28, %38 : vector<64x32xf32>
    %40 = vector.broadcast %16 : vector<1x32xf32> to vector<64x32xf32>
    %41 = arith.mulf %39, %40 : vector<64x32xf32>
    %42 = vector.broadcast %17 : vector<1x32xf32> to vector<64x32xf32>
    %43 = arith.addf %41, %42 : vector<64x32xf32>
    %44 = arith.negf %43 : vector<64x32xf32>
    %45 = math.exp %44 : vector<64x32xf32>
    %cst_42 = arith.constant 1.000000e+00 : f32
    %46 = vector.broadcast %cst_42 : f32 to vector<64x32xf32>
    %47 = arith.addf %46, %45 : vector<64x32xf32>
    %48 = arith.divf %46, %47 : vector<64x32xf32>
    %49 = arith.mulf %43, %48 : vector<64x32xf32>
    %50 = vector.shape_cast %49 : vector<64x32xf32> to vector<8x8x32xf32>
    %c1_43 = arith.constant 1 : index
    %c1_44 = arith.constant 1 : index
    %c0_45 = arith.constant 0 : index
    %51 = vector.load %arg30[%c1_43, %c1_44, %c0_45] : memref<10x10x32xf32, #tpu.memory_space<vmem>>, vector<8x8x32xf32>
    tpu.vector_store %arg30[%c1_43, %c1_44, %c0_45], %50 {strides = array<i32>} : memref<10x10x32xf32, #tpu.memory_space<vmem>>, vector<8x8x32xf32>,
    %cst_46 = arith.constant 0.000000e+00 : f32
    %52 = vector.broadcast %cst_46 : f32 to vector<64x32xf32>
    %c0_47 = arith.constant 0 : index
    %c0_48 = arith.constant 0 : index
    %c0_49 = arith.constant 0 : index
    %53 = vector.load %arg30[%c0_47, %c0_48, %c0_49] : memref<10x10x32xf32, #tpu.memory_space<vmem>>, vector<8x8x32xf32>
    %54 = vector.shape_cast %53 : vector<8x8x32xf32> to vector<64x32xf32>
    %c0_50 = arith.constant 0 : index
    %c0_51 = arith.constant 0 : index
    %c0_52 = arith.constant 0 : index
    %55 = vector.load %arg9[%c0_50, %c0_51, %c0_52] : memref<9x32x32xbf16, #tpu.memory_space<vmem>>, vector<1x32x32xbf16>
    %56 = vector.shape_cast %55 : vector<1x32x32xbf16> to vector<32x32xbf16>
    %57 = arith.truncf %54 : vector<64x32xf32> to vector<64x32xbf16>
    %cst_53 = arith.constant dense<0.000000e+00> : vector<64x32xf32>
    %58 = tpu.matmul %57, %56, %cst_53 {dimension_numbers = #tpu.dot_dimension_numbers<[1], [0], [0], [1], [0, 0, 1, 1], [], []>} : vector<64x32xbf16>, vector<32x32xbf16>, vector<64x32xf32> -> vector<64x32xf32>
    %59 = arith.addf %52, %58 : vector<64x32xf32>
    %c0_54 = arith.constant 0 : index
    %c1_55 = arith.constant 1 : index
    %c0_56 = arith.constant 0 : index
    %60 = vector.load %arg30[%c0_54, %c1_55, %c0_56] : memref<10x10x32xf32, #tpu.memory_space<vmem>>, vector<8x8x32xf32>
    %61 = vector.shape_cast %60 : vector<8x8x32xf32> to vector<64x32xf32>
    %c1_57 = arith.constant 1 : index
    %c0_58 = arith.constant 0 : index
    %c0_59 = arith.constant 0 : index
    %62 = vector.load %arg9[%c1_57, %c0_58, %c0_59] : memref<9x32x32xbf16, #tpu.memory_space<vmem>>, vector<1x32x32xbf16>
    %63 = vector.shape_cast %62 : vector<1x32x32xbf16> to vector<32x32xbf16>
    %64 = arith.truncf %61 : vector<64x32xf32> to vector<64x32xbf16>
    %cst_60 = arith.constant dense<0.000000e+00> : vector<64x32xf32>
    %65 = tpu.matmul %64, %63, %cst_60 {dimension_numbers = #tpu.dot_dimension_numbers<[1], [0], [0], [1], [0, 0, 1, 1], [], []>} : vector<64x32xbf16>, vector<32x32xbf16>, vector<64x32xf32> -> vector<64x32xf32>
    %66 = arith.addf %59, %65 : vector<64x32xf32>
    %c0_61 = arith.constant 0 : index
    %c2 = arith.constant 2 : index
    %c0_62 = arith.constant 0 : index
    %67 = vector.load %arg30[%c0_61, %c2, %c0_62] : memref<10x10x32xf32, #tpu.memory_space<vmem>>, vector<8x8x32xf32>
    %68 = vector.shape_cast %67 : vector<8x8x32xf32> to vector<64x32xf32>
    %c2_63 = arith.constant 2 : index
    %c0_64 = arith.constant 0 : index
    %c0_65 = arith.constant 0 : index
    %69 = vector.load %arg9[%c2_63, %c0_64, %c0_65] : memref<9x32x32xbf16, #tpu.memory_space<vmem>>, vector<1x32x32xbf16>
    %70 = vector.shape_cast %69 : vector<1x32x32xbf16> to vector<32x32xbf16>
    %71 = arith.truncf %68 : vector<64x32xf32> to vector<64x32xbf16>
    %cst_66 = arith.constant dense<0.000000e+00> : vector<64x32xf32>
    %72 = tpu.matmul %71, %70, %cst_66 {dimension_numbers = #tpu.dot_dimension_numbers<[1], [0], [0], [1], [0, 0, 1, 1], [], []>} : vector<64x32xbf16>, vector<32x32xbf16>, vector<64x32xf32> -> vector<64x32xf32>
    %73 = arith.addf %66, %72 : vector<64x32xf32>
    %c1_67 = arith.constant 1 : index
    %c0_68 = arith.constant 0 : index
    %c0_69 = arith.constant 0 : index
    %74 = vector.load %arg30[%c1_67, %c0_68, %c0_69] : memref<10x10x32xf32, #tpu.memory_space<vmem>>, vector<8x8x32xf32>
    %75 = vector.shape_cast %74 : vector<8x8x32xf32> to vector<64x32xf32>
    %c3 = arith.constant 3 : index
    %c0_70 = arith.constant 0 : index
    %c0_71 = arith.constant 0 : index
    %76 = vector.load %arg9[%c3, %c0_70, %c0_71] : memref<9x32x32xbf16, #tpu.memory_space<vmem>>, vector<1x32x32xbf16>
    %77 = vector.shape_cast %76 : vector<1x32x32xbf16> to vector<32x32xbf16>
    %78 = arith.truncf %75 : vector<64x32xf32> to vector<64x32xbf16>
    %cst_72 = arith.constant dense<0.000000e+00> : vector<64x32xf32>
    %79 = tpu.matmul %78, %77, %cst_72 {dimension_numbers = #tpu.dot_dimension_numbers<[1], [0], [0], [1], [0, 0, 1, 1], [], []>} : vector<64x32xbf16>, vector<32x32xbf16>, vector<64x32xf32> -> vector<64x32xf32>
    %80 = arith.addf %73, %79 : vector<64x32xf32>
    %c1_73 = arith.constant 1 : index
    %c1_74 = arith.constant 1 : index
    %c0_75 = arith.constant 0 : index
    %81 = vector.load %arg30[%c1_73, %c1_74, %c0_75] : memref<10x10x32xf32, #tpu.memory_space<vmem>>, vector<8x8x32xf32>
    %82 = vector.shape_cast %81 : vector<8x8x32xf32> to vector<64x32xf32>
    %c4 = arith.constant 4 : index
    %c0_76 = arith.constant 0 : index
    %c0_77 = arith.constant 0 : index
    %83 = vector.load %arg9[%c4, %c0_76, %c0_77] : memref<9x32x32xbf16, #tpu.memory_space<vmem>>, vector<1x32x32xbf16>
    %84 = vector.shape_cast %83 : vector<1x32x32xbf16> to vector<32x32xbf16>
    %85 = arith.truncf %82 : vector<64x32xf32> to vector<64x32xbf16>
    %cst_78 = arith.constant dense<0.000000e+00> : vector<64x32xf32>
    %86 = tpu.matmul %85, %84, %cst_78 {dimension_numbers = #tpu.dot_dimension_numbers<[1], [0], [0], [1], [0, 0, 1, 1], [], []>} : vector<64x32xbf16>, vector<32x32xbf16>, vector<64x32xf32> -> vector<64x32xf32>
    %87 = arith.addf %80, %86 : vector<64x32xf32>
    %c1_79 = arith.constant 1 : index
    %c2_80 = arith.constant 2 : index
    %c0_81 = arith.constant 0 : index
    %88 = vector.load %arg30[%c1_79, %c2_80, %c0_81] : memref<10x10x32xf32, #tpu.memory_space<vmem>>, vector<8x8x32xf32>
    %89 = vector.shape_cast %88 : vector<8x8x32xf32> to vector<64x32xf32>
    %c5 = arith.constant 5 : index
    %c0_82 = arith.constant 0 : index
    %c0_83 = arith.constant 0 : index
    %90 = vector.load %arg9[%c5, %c0_82, %c0_83] : memref<9x32x32xbf16, #tpu.memory_space<vmem>>, vector<1x32x32xbf16>
    %91 = vector.shape_cast %90 : vector<1x32x32xbf16> to vector<32x32xbf16>
    %92 = arith.truncf %89 : vector<64x32xf32> to vector<64x32xbf16>
    %cst_84 = arith.constant dense<0.000000e+00> : vector<64x32xf32>
    %93 = tpu.matmul %92, %91, %cst_84 {dimension_numbers = #tpu.dot_dimension_numbers<[1], [0], [0], [1], [0, 0, 1, 1], [], []>} : vector<64x32xbf16>, vector<32x32xbf16>, vector<64x32xf32> -> vector<64x32xf32>
    %94 = arith.addf %87, %93 : vector<64x32xf32>
    %c2_85 = arith.constant 2 : index
    %c0_86 = arith.constant 0 : index
    %c0_87 = arith.constant 0 : index
    %95 = vector.load %arg30[%c2_85, %c0_86, %c0_87] : memref<10x10x32xf32, #tpu.memory_space<vmem>>, vector<8x8x32xf32>
    %96 = vector.shape_cast %95 : vector<8x8x32xf32> to vector<64x32xf32>
    %c6 = arith.constant 6 : index
    %c0_88 = arith.constant 0 : index
    %c0_89 = arith.constant 0 : index
    %97 = vector.load %arg9[%c6, %c0_88, %c0_89] : memref<9x32x32xbf16, #tpu.memory_space<vmem>>, vector<1x32x32xbf16>
    %98 = vector.shape_cast %97 : vector<1x32x32xbf16> to vector<32x32xbf16>
    %99 = arith.truncf %96 : vector<64x32xf32> to vector<64x32xbf16>
    %cst_90 = arith.constant dense<0.000000e+00> : vector<64x32xf32>
    %100 = tpu.matmul %99, %98, %cst_90 {dimension_numbers = #tpu.dot_dimension_numbers<[1], [0], [0], [1], [0, 0, 1, 1], [], []>} : vector<64x32xbf16>, vector<32x32xbf16>, vector<64x32xf32> -> vector<64x32xf32>
    %101 = arith.addf %94, %100 : vector<64x32xf32>
    %c2_91 = arith.constant 2 : index
    %c1_92 = arith.constant 1 : index
    %c0_93 = arith.constant 0 : index
    %102 = vector.load %arg30[%c2_91, %c1_92, %c0_93] : memref<10x10x32xf32, #tpu.memory_space<vmem>>, vector<8x8x32xf32>
    %103 = vector.shape_cast %102 : vector<8x8x32xf32> to vector<64x32xf32>
    %c7 = arith.constant 7 : index
    %c0_94 = arith.constant 0 : index
    %c0_95 = arith.constant 0 : index
    %104 = vector.load %arg9[%c7, %c0_94, %c0_95] : memref<9x32x32xbf16, #tpu.memory_space<vmem>>, vector<1x32x32xbf16>
    %105 = vector.shape_cast %104 : vector<1x32x32xbf16> to vector<32x32xbf16>
    %106 = arith.truncf %103 : vector<64x32xf32> to vector<64x32xbf16>
    %cst_96 = arith.constant dense<0.000000e+00> : vector<64x32xf32>
    %107 = tpu.matmul %106, %105, %cst_96 {dimension_numbers = #tpu.dot_dimension_numbers<[1], [0], [0], [1], [0, 0, 1, 1], [], []>} : vector<64x32xbf16>, vector<32x32xbf16>, vector<64x32xf32> -> vector<64x32xf32>
    %108 = arith.addf %101, %107 : vector<64x32xf32>
    %c2_97 = arith.constant 2 : index
    %c2_98 = arith.constant 2 : index
    %c0_99 = arith.constant 0 : index
    %109 = vector.load %arg30[%c2_97, %c2_98, %c0_99] : memref<10x10x32xf32, #tpu.memory_space<vmem>>, vector<8x8x32xf32>
    %110 = vector.shape_cast %109 : vector<8x8x32xf32> to vector<64x32xf32>
    %c8 = arith.constant 8 : index
    %c0_100 = arith.constant 0 : index
    %c0_101 = arith.constant 0 : index
    %111 = vector.load %arg9[%c8, %c0_100, %c0_101] : memref<9x32x32xbf16, #tpu.memory_space<vmem>>, vector<1x32x32xbf16>
    %112 = vector.shape_cast %111 : vector<1x32x32xbf16> to vector<32x32xbf16>
    %113 = arith.truncf %110 : vector<64x32xf32> to vector<64x32xbf16>
    %cst_102 = arith.constant dense<0.000000e+00> : vector<64x32xf32>
    %114 = tpu.matmul %113, %112, %cst_102 {dimension_numbers = #tpu.dot_dimension_numbers<[1], [0], [0], [1], [0, 0, 1, 1], [], []>} : vector<64x32xbf16>, vector<32x32xbf16>, vector<64x32xf32> -> vector<64x32xf32>
    %115 = arith.addf %108, %114 : vector<64x32xf32>
    %116 = vector.broadcast %18 : vector<1x32xf32> to vector<64x32xf32>
    %117 = arith.addf %115, %116 : vector<64x32xf32>
    %cst_103 = arith.constant dense<0.000000e+00> : vector<32xf32>
    %118 = vector.multi_reduction <add>, %117, %cst_103 [0] : vector<64x32xf32> to vector<32xf32>
    %119 = vector.shape_cast %118 : vector<32xf32> to vector<1x32xf32>
    %cst_104 = arith.constant 1.562500e-02 : f32
    %120 = vector.broadcast %cst_104 : f32 to vector<1x32xf32>
    %121 = arith.mulf %119, %120 : vector<1x32xf32>
    %cst_105 = arith.constant dense<0.000000e+00> : vector<1x32xf32>
    %122 = tpu.matmul %121, %0, %cst_105 {dimension_numbers = #tpu.dot_dimension_numbers<[1], [0], [0], [1], [0, 0, 1, 1], [], []>} : vector<1x32xf32>, vector<32x32xf32>, vector<1x32xf32> -> vector<1x32xf32>
    %123 = vector.broadcast %122 : vector<1x32xf32> to vector<64x32xf32>
    %124 = arith.subf %117, %123 : vector<64x32xf32>
    %125 = arith.mulf %124, %124 : vector<64x32xf32>
    %cst_106 = arith.constant dense<0.000000e+00> : vector<32xf32>
    %126 = vector.multi_reduction <add>, %125, %cst_106 [0] : vector<64x32xf32> to vector<32xf32>
    %127 = vector.shape_cast %126 : vector<32xf32> to vector<1x32xf32>
    %cst_107 = arith.constant 1.562500e-02 : f32
    %128 = vector.broadcast %cst_107 : f32 to vector<1x32xf32>
    %129 = arith.mulf %127, %128 : vector<1x32xf32>
    %cst_108 = arith.constant dense<0.000000e+00> : vector<1x32xf32>
    %130 = tpu.matmul %129, %0, %cst_108 {dimension_numbers = #tpu.dot_dimension_numbers<[1], [0], [0], [1], [0, 0, 1, 1], [], []>} : vector<1x32xf32>, vector<32x32xf32>, vector<1x32xf32> -> vector<1x32xf32>
    %cst_109 = arith.constant 9.99999974E-6 : f32
    %131 = vector.broadcast %cst_109 : f32 to vector<1x32xf32>
    %132 = arith.addf %130, %131 : vector<1x32xf32>
    %133 = math.rsqrt %132 : vector<1x32xf32>
    %134 = vector.broadcast %133 : vector<1x32xf32> to vector<64x32xf32>
    %135 = arith.mulf %124, %134 : vector<64x32xf32>
    %136 = vector.broadcast %19 : vector<1x32xf32> to vector<64x32xf32>
    %137 = arith.mulf %135, %136 : vector<64x32xf32>
    %138 = vector.broadcast %20 : vector<1x32xf32> to vector<64x32xf32>
    %139 = arith.addf %137, %138 : vector<64x32xf32>
    %140 = vector.broadcast %13 : vector<1x32xf32> to vector<64x32xf32>
    %141 = arith.mulf %140, %139 : vector<64x32xf32>
    %142 = vector.broadcast %15 : vector<1x32xf32> to vector<64x32xf32>
    %143 = arith.addf %141, %142 : vector<64x32xf32>
    %144 = arith.negf %143 : vector<64x32xf32>
    %145 = math.exp %144 : vector<64x32xf32>
    %cst_110 = arith.constant 1.000000e+00 : f32
    %146 = vector.broadcast %cst_110 : f32 to vector<64x32xf32>
    %147 = arith.addf %146, %145 : vector<64x32xf32>
    %148 = arith.divf %146, %147 : vector<64x32xf32>
    %149 = arith.mulf %143, %148 : vector<64x32xf32>
    %150 = vector.shape_cast %149 : vector<64x32xf32> to vector<8x8x32xf32>
    %c1_111 = arith.constant 1 : index
    %c1_112 = arith.constant 1 : index
    %c0_113 = arith.constant 0 : index
    %151 = vector.load %arg30[%c1_111, %c1_112, %c0_113] : memref<10x10x32xf32, #tpu.memory_space<vmem>>, vector<8x8x32xf32>
    tpu.vector_store %arg30[%c1_111, %c1_112, %c0_113], %150 {strides = array<i32>} : memref<10x10x32xf32, #tpu.memory_space<vmem>>, vector<8x8x32xf32>,
    %cst_114 = arith.constant 0.000000e+00 : f32
    %152 = vector.broadcast %cst_114 : f32 to vector<64x32xf32>
    %c0_115 = arith.constant 0 : index
    %c0_116 = arith.constant 0 : index
    %c0_117 = arith.constant 0 : index
    %153 = vector.load %arg30[%c0_115, %c0_116, %c0_117] : memref<10x10x32xf32, #tpu.memory_space<vmem>>, vector<8x8x32xf32>
    %154 = vector.shape_cast %153 : vector<8x8x32xf32> to vector<64x32xf32>
    %c0_118 = arith.constant 0 : index
    %c0_119 = arith.constant 0 : index
    %c0_120 = arith.constant 0 : index
    %155 = vector.load %arg13[%c0_118, %c0_119, %c0_120] : memref<9x32x32xbf16, #tpu.memory_space<vmem>>, vector<1x32x32xbf16>
    %156 = vector.shape_cast %155 : vector<1x32x32xbf16> to vector<32x32xbf16>
    %157 = arith.truncf %154 : vector<64x32xf32> to vector<64x32xbf16>
    %cst_121 = arith.constant dense<0.000000e+00> : vector<64x32xf32>
    %158 = tpu.matmul %157, %156, %cst_121 {dimension_numbers = #tpu.dot_dimension_numbers<[1], [0], [0], [1], [0, 0, 1, 1], [], []>} : vector<64x32xbf16>, vector<32x32xbf16>, vector<64x32xf32> -> vector<64x32xf32>
    %159 = arith.addf %152, %158 : vector<64x32xf32>
    %c0_122 = arith.constant 0 : index
    %c1_123 = arith.constant 1 : index
    %c0_124 = arith.constant 0 : index
    %160 = vector.load %arg30[%c0_122, %c1_123, %c0_124] : memref<10x10x32xf32, #tpu.memory_space<vmem>>, vector<8x8x32xf32>
    %161 = vector.shape_cast %160 : vector<8x8x32xf32> to vector<64x32xf32>
    %c1_125 = arith.constant 1 : index
    %c0_126 = arith.constant 0 : index
    %c0_127 = arith.constant 0 : index
    %162 = vector.load %arg13[%c1_125, %c0_126, %c0_127] : memref<9x32x32xbf16, #tpu.memory_space<vmem>>, vector<1x32x32xbf16>
    %163 = vector.shape_cast %162 : vector<1x32x32xbf16> to vector<32x32xbf16>
    %164 = arith.truncf %161 : vector<64x32xf32> to vector<64x32xbf16>
    %cst_128 = arith.constant dense<0.000000e+00> : vector<64x32xf32>
    %165 = tpu.matmul %164, %163, %cst_128 {dimension_numbers = #tpu.dot_dimension_numbers<[1], [0], [0], [1], [0, 0, 1, 1], [], []>} : vector<64x32xbf16>, vector<32x32xbf16>, vector<64x32xf32> -> vector<64x32xf32>
    %166 = arith.addf %159, %165 : vector<64x32xf32>
    %c0_129 = arith.constant 0 : index
    %c2_130 = arith.constant 2 : index
    %c0_131 = arith.constant 0 : index
    %167 = vector.load %arg30[%c0_129, %c2_130, %c0_131] : memref<10x10x32xf32, #tpu.memory_space<vmem>>, vector<8x8x32xf32>
    %168 = vector.shape_cast %167 : vector<8x8x32xf32> to vector<64x32xf32>
    %c2_132 = arith.constant 2 : index
    %c0_133 = arith.constant 0 : index
    %c0_134 = arith.constant 0 : index
    %169 = vector.load %arg13[%c2_132, %c0_133, %c0_134] : memref<9x32x32xbf16, #tpu.memory_space<vmem>>, vector<1x32x32xbf16>
    %170 = vector.shape_cast %169 : vector<1x32x32xbf16> to vector<32x32xbf16>
    %171 = arith.truncf %168 : vector<64x32xf32> to vector<64x32xbf16>
    %cst_135 = arith.constant dense<0.000000e+00> : vector<64x32xf32>
    %172 = tpu.matmul %171, %170, %cst_135 {dimension_numbers = #tpu.dot_dimension_numbers<[1], [0], [0], [1], [0, 0, 1, 1], [], []>} : vector<64x32xbf16>, vector<32x32xbf16>, vector<64x32xf32> -> vector<64x32xf32>
    %173 = arith.addf %166, %172 : vector<64x32xf32>
    %c1_136 = arith.constant 1 : index
    %c0_137 = arith.constant 0 : index
    %c0_138 = arith.constant 0 : index
    %174 = vector.load %arg30[%c1_136, %c0_137, %c0_138] : memref<10x10x32xf32, #tpu.memory_space<vmem>>, vector<8x8x32xf32>
    %175 = vector.shape_cast %174 : vector<8x8x32xf32> to vector<64x32xf32>
    %c3_139 = arith.constant 3 : index
    %c0_140 = arith.constant 0 : index
    %c0_141 = arith.constant 0 : index
    %176 = vector.load %arg13[%c3_139, %c0_140, %c0_141] : memref<9x32x32xbf16, #tpu.memory_space<vmem>>, vector<1x32x32xbf16>
    %177 = vector.shape_cast %176 : vector<1x32x32xbf16> to vector<32x32xbf16>
    %178 = arith.truncf %175 : vector<64x32xf32> to vector<64x32xbf16>
    %cst_142 = arith.constant dense<0.000000e+00> : vector<64x32xf32>
    %179 = tpu.matmul %178, %177, %cst_142 {dimension_numbers = #tpu.dot_dimension_numbers<[1], [0], [0], [1], [0, 0, 1, 1], [], []>} : vector<64x32xbf16>, vector<32x32xbf16>, vector<64x32xf32> -> vector<64x32xf32>
    %180 = arith.addf %173, %179 : vector<64x32xf32>
    %c1_143 = arith.constant 1 : index
    %c1_144 = arith.constant 1 : index
    %c0_145 = arith.constant 0 : index
    %181 = vector.load %arg30[%c1_143, %c1_144, %c0_145] : memref<10x10x32xf32, #tpu.memory_space<vmem>>, vector<8x8x32xf32>
    %182 = vector.shape_cast %181 : vector<8x8x32xf32> to vector<64x32xf32>
    %c4_146 = arith.constant 4 : index
    %c0_147 = arith.constant 0 : index
    %c0_148 = arith.constant 0 : index
    %183 = vector.load %arg13[%c4_146, %c0_147, %c0_148] : memref<9x32x32xbf16, #tpu.memory_space<vmem>>, vector<1x32x32xbf16>
    %184 = vector.shape_cast %183 : vector<1x32x32xbf16> to vector<32x32xbf16>
    %185 = arith.truncf %182 : vector<64x32xf32> to vector<64x32xbf16>
    %cst_149 = arith.constant dense<0.000000e+00> : vector<64x32xf32>
    %186 = tpu.matmul %185, %184, %cst_149 {dimension_numbers = #tpu.dot_dimension_numbers<[1], [0], [0], [1], [0, 0, 1, 1], [], []>} : vector<64x32xbf16>, vector<32x32xbf16>, vector<64x32xf32> -> vector<64x32xf32>
    %187 = arith.addf %180, %186 : vector<64x32xf32>
    %c1_150 = arith.constant 1 : index
    %c2_151 = arith.constant 2 : index
    %c0_152 = arith.constant 0 : index
    %188 = vector.load %arg30[%c1_150, %c2_151, %c0_152] : memref<10x10x32xf32, #tpu.memory_space<vmem>>, vector<8x8x32xf32>
    %189 = vector.shape_cast %188 : vector<8x8x32xf32> to vector<64x32xf32>
    %c5_153 = arith.constant 5 : index
    %c0_154 = arith.constant 0 : index
    %c0_155 = arith.constant 0 : index
    %190 = vector.load %arg13[%c5_153, %c0_154, %c0_155] : memref<9x32x32xbf16, #tpu.memory_space<vmem>>, vector<1x32x32xbf16>
    %191 = vector.shape_cast %190 : vector<1x32x32xbf16> to vector<32x32xbf16>
    %192 = arith.truncf %189 : vector<64x32xf32> to vector<64x32xbf16>
    %cst_156 = arith.constant dense<0.000000e+00> : vector<64x32xf32>
    %193 = tpu.matmul %192, %191, %cst_156 {dimension_numbers = #tpu.dot_dimension_numbers<[1], [0], [0], [1], [0, 0, 1, 1], [], []>} : vector<64x32xbf16>, vector<32x32xbf16>, vector<64x32xf32> -> vector<64x32xf32>
    %194 = arith.addf %187, %193 : vector<64x32xf32>
    %c2_157 = arith.constant 2 : index
    %c0_158 = arith.constant 0 : index
    %c0_159 = arith.constant 0 : index
    %195 = vector.load %arg30[%c2_157, %c0_158, %c0_159] : memref<10x10x32xf32, #tpu.memory_space<vmem>>, vector<8x8x32xf32>
    %196 = vector.shape_cast %195 : vector<8x8x32xf32> to vector<64x32xf32>
    %c6_160 = arith.constant 6 : index
    %c0_161 = arith.constant 0 : index
    %c0_162 = arith.constant 0 : index
    %197 = vector.load %arg13[%c6_160, %c0_161, %c0_162] : memref<9x32x32xbf16, #tpu.memory_space<vmem>>, vector<1x32x32xbf16>
    %198 = vector.shape_cast %197 : vector<1x32x32xbf16> to vector<32x32xbf16>
    %199 = arith.truncf %196 : vector<64x32xf32> to vector<64x32xbf16>
    %cst_163 = arith.constant dense<0.000000e+00> : vector<64x32xf32>
    %200 = tpu.matmul %199, %198, %cst_163 {dimension_numbers = #tpu.dot_dimension_numbers<[1], [0], [0], [1], [0, 0, 1, 1], [], []>} : vector<64x32xbf16>, vector<32x32xbf16>, vector<64x32xf32> -> vector<64x32xf32>
    %201 = arith.addf %194, %200 : vector<64x32xf32>
    %c2_164 = arith.constant 2 : index
    %c1_165 = arith.constant 1 : index
    %c0_166 = arith.constant 0 : index
    %202 = vector.load %arg30[%c2_164, %c1_165, %c0_166] : memref<10x10x32xf32, #tpu.memory_space<vmem>>, vector<8x8x32xf32>
    %203 = vector.shape_cast %202 : vector<8x8x32xf32> to vector<64x32xf32>
    %c7_167 = arith.constant 7 : index
    %c0_168 = arith.constant 0 : index
    %c0_169 = arith.constant 0 : index
    %204 = vector.load %arg13[%c7_167, %c0_168, %c0_169] : memref<9x32x32xbf16, #tpu.memory_space<vmem>>, vector<1x32x32xbf16>
    %205 = vector.shape_cast %204 : vector<1x32x32xbf16> to vector<32x32xbf16>
    %206 = arith.truncf %203 : vector<64x32xf32> to vector<64x32xbf16>
    %cst_170 = arith.constant dense<0.000000e+00> : vector<64x32xf32>
    %207 = tpu.matmul %206, %205, %cst_170 {dimension_numbers = #tpu.dot_dimension_numbers<[1], [0], [0], [1], [0, 0, 1, 1], [], []>} : vector<64x32xbf16>, vector<32x32xbf16>, vector<64x32xf32> -> vector<64x32xf32>
    %208 = arith.addf %201, %207 : vector<64x32xf32>
    %c2_171 = arith.constant 2 : index
    %c2_172 = arith.constant 2 : index
    %c0_173 = arith.constant 0 : index
    %209 = vector.load %arg30[%c2_171, %c2_172, %c0_173] : memref<10x10x32xf32, #tpu.memory_space<vmem>>, vector<8x8x32xf32>
    %210 = vector.shape_cast %209 : vector<8x8x32xf32> to vector<64x32xf32>
    %c8_174 = arith.constant 8 : index
    %c0_175 = arith.constant 0 : index
    %c0_176 = arith.constant 0 : index
    %211 = vector.load %arg13[%c8_174, %c0_175, %c0_176] : memref<9x32x32xbf16, #tpu.memory_space<vmem>>, vector<1x32x32xbf16>
    %212 = vector.shape_cast %211 : vector<1x32x32xbf16> to vector<32x32xbf16>
    %213 = arith.truncf %210 : vector<64x32xf32> to vector<64x32xbf16>
    %cst_177 = arith.constant dense<0.000000e+00> : vector<64x32xf32>
    %214 = tpu.matmul %213, %212, %cst_177 {dimension_numbers = #tpu.dot_dimension_numbers<[1], [0], [0], [1], [0, 0, 1, 1], [], []>} : vector<64x32xbf16>, vector<32x32xbf16>, vector<64x32xf32> -> vector<64x32xf32>
    %215 = arith.addf %208, %214 : vector<64x32xf32>
    %216 = vector.broadcast %21 : vector<1x32xf32> to vector<64x32xf32>
    %217 = arith.addf %215, %216 : vector<64x32xf32>
    %218 = arith.addf %217, %11 : vector<64x32xf32>
    %c0_178 = arith.constant 0 : index
    %c0_179 = arith.constant 0 : index
    %219 = vector.load %arg15[%c0_178, %c0_179] : memref<1x32xf32, #tpu.memory_space<vmem>>, vector<1x32xf32>
    %c0_180 = arith.constant 0 : index
    %c0_181 = arith.constant 0 : index
    %220 = vector.load %arg16[%c0_180, %c0_181] : memref<1x32xf32, #tpu.memory_space<vmem>>, vector<1x32xf32>
    %c0_182 = arith.constant 0 : index
    %c0_183 = arith.constant 0 : index
    %221 = vector.load %arg20[%c0_182, %c0_183] : memref<1x32xf32, #tpu.memory_space<vmem>>, vector<1x32xf32>
    %cst_184 = arith.constant dense<0.000000e+00> : vector<32xf32>
    %222 = vector.multi_reduction <add>, %218, %cst_184 [0] : vector<64x32xf32> to vector<32xf32>
    %223 = vector.shape_cast %222 : vector<32xf32> to vector<1x32xf32>
    %cst_185 = arith.constant 1.562500e-02 : f32
    %224 = vector.broadcast %cst_185 : f32 to vector<1x32xf32>
    %225 = arith.mulf %223, %224 : vector<1x32xf32>
    %cst_186 = arith.constant dense<0.000000e+00> : vector<1x32xf32>
    %226 = tpu.matmul %225, %0, %cst_186 {dimension_numbers = #tpu.dot_dimension_numbers<[1], [0], [0], [1], [0, 0, 1, 1], [], []>} : vector<1x32xf32>, vector<32x32xf32>, vector<1x32xf32> -> vector<1x32xf32>
    %227 = vector.broadcast %226 : vector<1x32xf32> to vector<64x32xf32>
    %228 = arith.subf %218, %227 : vector<64x32xf32>
    %229 = arith.mulf %228, %228 : vector<64x32xf32>
    %cst_187 = arith.constant dense<0.000000e+00> : vector<32xf32>
    %230 = vector.multi_reduction <add>, %229, %cst_187 [0] : vector<64x32xf32> to vector<32xf32>
    %231 = vector.shape_cast %230 : vector<32xf32> to vector<1x32xf32>
    %cst_188 = arith.constant 1.562500e-02 : f32
    %232 = vector.broadcast %cst_188 : f32 to vector<1x32xf32>
    %233 = arith.mulf %231, %232 : vector<1x32xf32>
    %cst_189 = arith.constant dense<0.000000e+00> : vector<1x32xf32>
    %234 = tpu.matmul %233, %0, %cst_189 {dimension_numbers = #tpu.dot_dimension_numbers<[1], [0], [0], [1], [0, 0, 1, 1], [], []>} : vector<1x32xf32>, vector<32x32xf32>, vector<1x32xf32> -> vector<1x32xf32>
    %cst_190 = arith.constant 9.99999974E-6 : f32
    %235 = vector.broadcast %cst_190 : f32 to vector<1x32xf32>
    %236 = arith.addf %234, %235 : vector<1x32xf32>
    %237 = math.rsqrt %236 : vector<1x32xf32>
    %238 = vector.broadcast %237 : vector<1x32xf32> to vector<64x32xf32>
    %239 = arith.mulf %228, %238 : vector<64x32xf32>
    %240 = vector.broadcast %219 : vector<1x32xf32> to vector<64x32xf32>
    %241 = arith.mulf %239, %240 : vector<64x32xf32>
    %242 = vector.broadcast %220 : vector<1x32xf32> to vector<64x32xf32>
    %243 = arith.addf %241, %242 : vector<64x32xf32>
    %244 = arith.truncf %243 : vector<64x32xf32> to vector<64x32xbf16>
    %cst_191 = arith.constant 0.000000e+00 : f32
    %245 = vector.broadcast %cst_191 : f32 to vector<64x32xf32>
    %c0_192 = arith.constant 0 : index
    %c0_193 = arith.constant 0 : index
    %246 = vector.load %arg31[%c0_192, %c0_193] : memref<64x32xf32, #tpu.memory_space<vmem>>, vector<64x32xf32>
    tpu.vector_store %arg31[%c0_192, %c0_193], %245 {strides = array<i32>} : memref<64x32xf32, #tpu.memory_space<vmem>>, vector<64x32xf32>,
    %c0_i32 = arith.constant 0 : i32
    %c2_i32 = arith.constant 2 : i32
    %247 = arith.addi %c0_i32, %c2_i32 : i32
    %c1_i32 = arith.constant 1 : i32
    scf.for %arg32 = %c0_i32 to %247 step %c1_i32  : i32 {
      %463 = arith.index_cast %arg32 : i32 to index
      %c0_368 = arith.constant 0 : index
      %c0_369 = arith.constant 0 : index
      %464 = vector.load %arg17[%463, %c0_368, %c0_369] : memref<2x32x48xbf16, #tpu.memory_space<vmem>>, vector<1x32x48xbf16>
      %465 = vector.shape_cast %464 : vector<1x32x48xbf16> to vector<32x48xbf16>
      %cst_370 = arith.constant dense<0.000000e+00> : vector<64x48xf32>
      %466 = tpu.matmul %244, %465, %cst_370 {dimension_numbers = #tpu.dot_dimension_numbers<[1], [0], [0], [1], [0, 0, 1, 1], [], []>} : vector<64x32xbf16>, vector<32x48xbf16>, vector<64x48xf32> -> vector<64x48xf32>
      %467 = arith.index_cast %arg32 : i32 to index
      %c0_371 = arith.constant 0 : index
      %c0_372 = arith.constant 0 : index
      %468 = vector.load %arg18[%467, %c0_371, %c0_372] : memref<2x1x48xf32, #tpu.memory_space<vmem>>, vector<1x1x48xf32>
      %469 = vector.shape_cast %468 : vector<1x1x48xf32> to vector<1x48xf32>
      %470 = vector.broadcast %469 : vector<1x48xf32> to vector<64x48xf32>
      %471 = arith.addf %466, %470 : vector<64x48xf32>
      %472 = vector.extract_strided_slice %471 {offsets = [0, 0], sizes = [64, 16], strides = [1, 1]} : vector<64x48xf32> to vector<64x16xf32>
      %473 = vector.extract_strided_slice %471 {offsets = [0, 16], sizes = [64, 16], strides = [1, 1]} : vector<64x48xf32> to vector<64x16xf32>
      %474 = vector.extract_strided_slice %471 {offsets = [0, 32], sizes = [64, 16], strides = [1, 1]} : vector<64x48xf32> to vector<64x16xf32>
      %475 = arith.truncf %472 : vector<64x16xf32> to vector<64x16xbf16>
      %476 = arith.truncf %473 : vector<64x16xf32> to vector<64x16xbf16>
      %cst_373 = arith.constant dense<0.000000e+00> : vector<64x64xf32>
      %477 = tpu.matmul %475, %476, %cst_373 {dimension_numbers = #tpu.dot_dimension_numbers<[1], [1], [0], [0], [0, 0, 1, 0], [], []>} : vector<64x16xbf16>, vector<64x16xbf16>, vector<64x64xf32> -> vector<64x64xf32>
      %cst_374 = arith.constant 2.500000e-01 : f32
      %478 = vector.broadcast %cst_374 : f32 to vector<64x64xf32>
      %479 = arith.mulf %477, %478 : vector<64x64xf32>
      %cst_375 = arith.constant dense<0xFF800000> : vector<64xf32>
      %480 = vector.multi_reduction <maximumf>, %479, %cst_375 [1] : vector<64x64xf32> to vector<64xf32>
      %481 = vector.shape_cast %480 : vector<64xf32> to vector<64x1xf32>
      %482 = vector.broadcast %481 : vector<64x1xf32> to vector<64x64xf32>
      %483 = arith.subf %479, %482 : vector<64x64xf32>
      %484 = math.exp %483 : vector<64x64xf32>
      %cst_376 = arith.constant dense<0.000000e+00> : vector<64xf32>
      %485 = vector.multi_reduction <add>, %484, %cst_376 [1] : vector<64x64xf32> to vector<64xf32>
      %486 = vector.shape_cast %485 : vector<64xf32> to vector<64x1xf32>
      %487 = tpu.reciprocal %486 {approx = true} : vector<64x1xf32> -> vector<64x1xf32>
      %488 = vector.broadcast %487 : vector<64x1xf32> to vector<64x64xf32>
      %489 = arith.mulf %484, %488 : vector<64x64xf32>
      %490 = arith.truncf %489 : vector<64x64xf32> to vector<64x64xbf16>
      %491 = arith.truncf %474 : vector<64x16xf32> to vector<64x16xbf16>
      %cst_377 = arith.constant dense<0.000000e+00> : vector<64x16xf32>
      %492 = tpu.matmul %490, %491, %cst_377 {dimension_numbers = #tpu.dot_dimension_numbers<[1], [0], [0], [1], [0, 0, 1, 1], [], []>} : vector<64x64xbf16>, vector<64x16xbf16>, vector<64x16xf32> -> vector<64x16xf32>
      %c0_378 = arith.constant 0 : index
      %c0_379 = arith.constant 0 : index
      %493 = vector.load %arg31[%c0_378, %c0_379] : memref<64x32xf32, #tpu.memory_space<vmem>>, vector<64x32xf32>
      %494 = arith.index_cast %arg32 : i32 to index
      %c0_380 = arith.constant 0 : index
      %c0_381 = arith.constant 0 : index
      %495 = vector.load %arg19[%494, %c0_380, %c0_381] : memref<2x16x32xbf16, #tpu.memory_space<vmem>>, vector<1x16x32xbf16>
      %496 = vector.shape_cast %495 : vector<1x16x32xbf16> to vector<16x32xbf16>
      %497 = arith.truncf %492 : vector<64x16xf32> to vector<64x16xbf16>
      %cst_382 = arith.constant dense<0.000000e+00> : vector<64x32xf32>
      %498 = tpu.matmul %497, %496, %cst_382 {dimension_numbers = #tpu.dot_dimension_numbers<[1], [0], [0], [1], [0, 0, 1, 1], [], []>} : vector<64x16xbf16>, vector<16x32xbf16>, vector<64x32xf32> -> vector<64x32xf32>
      %499 = arith.addf %493, %498 : vector<64x32xf32>
      %c0_383 = arith.constant 0 : index
      %c0_384 = arith.constant 0 : index
      %500 = vector.load %arg31[%c0_383, %c0_384] : memref<64x32xf32, #tpu.memory_space<vmem>>, vector<64x32xf32>
      tpu.vector_store %arg31[%c0_383, %c0_384], %499 {strides = array<i32>} : memref<64x32xf32, #tpu.memory_space<vmem>>, vector<64x32xf32>,
    }
    %c2_i32_194 = arith.constant 2 : i32
    %c0_195 = arith.constant 0 : index
    %c0_196 = arith.constant 0 : index
    %248 = vector.load %arg31[%c0_195, %c0_196] : memref<64x32xf32, #tpu.memory_space<vmem>>, vector<64x32xf32>
    %249 = vector.broadcast %221 : vector<1x32xf32> to vector<64x32xf32>
    %250 = arith.addf %248, %249 : vector<64x32xf32>
    %251 = arith.addf %250, %218 : vector<64x32xf32>
    %c0_197 = arith.constant 0 : index
    %c0_198 = arith.constant 0 : index
    %c0_199 = arith.constant 0 : index
    %252 = vector.load %arg4[%c0_197, %c0_198, %c0_199] : memref<1x1x32xf32, #tpu.memory_space<vmem>>, vector<1x1x32xf32>
    %253 = vector.shape_cast %252 : vector<1x1x32xf32> to vector<1x32xf32>
    %c0_200 = arith.constant 0 : index
    %c0_201 = arith.constant 0 : index
    %c0_202 = arith.constant 0 : index
    %254 = vector.load %arg5[%c0_200, %c0_201, %c0_202] : memref<1x1x32xf32, #tpu.memory_space<vmem>>, vector<1x1x32xf32>
    %255 = vector.shape_cast %254 : vector<1x1x32xf32> to vector<1x32xf32>
    %c0_203 = arith.constant 0 : index
    %c0_204 = arith.constant 0 : index
    %256 = vector.load %arg21[%c0_203, %c0_204] : memref<1x32xf32, #tpu.memory_space<vmem>>, vector<1x32xf32>
    %c0_205 = arith.constant 0 : index
    %c0_206 = arith.constant 0 : index
    %257 = vector.load %arg22[%c0_205, %c0_206] : memref<1x32xf32, #tpu.memory_space<vmem>>, vector<1x32xf32>
    %c0_207 = arith.constant 0 : index
    %c0_208 = arith.constant 0 : index
    %258 = vector.load %arg24[%c0_207, %c0_208] : memref<1x32xf32, #tpu.memory_space<vmem>>, vector<1x32xf32>
    %c0_209 = arith.constant 0 : index
    %c0_210 = arith.constant 0 : index
    %259 = vector.load %arg25[%c0_209, %c0_210] : memref<1x32xf32, #tpu.memory_space<vmem>>, vector<1x32xf32>
    %c0_211 = arith.constant 0 : index
    %c0_212 = arith.constant 0 : index
    %260 = vector.load %arg26[%c0_211, %c0_212] : memref<1x32xf32, #tpu.memory_space<vmem>>, vector<1x32xf32>
    %c0_213 = arith.constant 0 : index
    %c0_214 = arith.constant 0 : index
    %261 = vector.load %arg28[%c0_213, %c0_214] : memref<1x32xf32, #tpu.memory_space<vmem>>, vector<1x32xf32>
    %cst_215 = arith.constant dense<0.000000e+00> : vector<32xf32>
    %262 = vector.multi_reduction <add>, %251, %cst_215 [0] : vector<64x32xf32> to vector<32xf32>
    %263 = vector.shape_cast %262 : vector<32xf32> to vector<1x32xf32>
    %cst_216 = arith.constant 1.562500e-02 : f32
    %264 = vector.broadcast %cst_216 : f32 to vector<1x32xf32>
    %265 = arith.mulf %263, %264 : vector<1x32xf32>
    %cst_217 = arith.constant dense<0.000000e+00> : vector<1x32xf32>
    %266 = tpu.matmul %265, %0, %cst_217 {dimension_numbers = #tpu.dot_dimension_numbers<[1], [0], [0], [1], [0, 0, 1, 1], [], []>} : vector<1x32xf32>, vector<32x32xf32>, vector<1x32xf32> -> vector<1x32xf32>
    %267 = vector.broadcast %266 : vector<1x32xf32> to vector<64x32xf32>
    %268 = arith.subf %251, %267 : vector<64x32xf32>
    %269 = arith.mulf %268, %268 : vector<64x32xf32>
    %cst_218 = arith.constant dense<0.000000e+00> : vector<32xf32>
    %270 = vector.multi_reduction <add>, %269, %cst_218 [0] : vector<64x32xf32> to vector<32xf32>
    %271 = vector.shape_cast %270 : vector<32xf32> to vector<1x32xf32>
    %cst_219 = arith.constant 1.562500e-02 : f32
    %272 = vector.broadcast %cst_219 : f32 to vector<1x32xf32>
    %273 = arith.mulf %271, %272 : vector<1x32xf32>
    %cst_220 = arith.constant dense<0.000000e+00> : vector<1x32xf32>
    %274 = tpu.matmul %273, %0, %cst_220 {dimension_numbers = #tpu.dot_dimension_numbers<[1], [0], [0], [1], [0, 0, 1, 1], [], []>} : vector<1x32xf32>, vector<32x32xf32>, vector<1x32xf32> -> vector<1x32xf32>
    %cst_221 = arith.constant 9.99999974E-6 : f32
    %275 = vector.broadcast %cst_221 : f32 to vector<1x32xf32>
    %276 = arith.addf %274, %275 : vector<1x32xf32>
    %277 = math.rsqrt %276 : vector<1x32xf32>
    %278 = vector.broadcast %277 : vector<1x32xf32> to vector<64x32xf32>
    %279 = arith.mulf %268, %278 : vector<64x32xf32>
    %280 = vector.broadcast %256 : vector<1x32xf32> to vector<64x32xf32>
    %281 = arith.mulf %279, %280 : vector<64x32xf32>
    %282 = vector.broadcast %257 : vector<1x32xf32> to vector<64x32xf32>
    %283 = arith.addf %281, %282 : vector<64x32xf32>
    %284 = arith.negf %283 : vector<64x32xf32>
    %285 = math.exp %284 : vector<64x32xf32>
    %cst_222 = arith.constant 1.000000e+00 : f32
    %286 = vector.broadcast %cst_222 : f32 to vector<64x32xf32>
    %287 = arith.addf %286, %285 : vector<64x32xf32>
    %288 = arith.divf %286, %287 : vector<64x32xf32>
    %289 = arith.mulf %283, %288 : vector<64x32xf32>
    %290 = vector.shape_cast %289 : vector<64x32xf32> to vector<8x8x32xf32>
    %c1_223 = arith.constant 1 : index
    %c1_224 = arith.constant 1 : index
    %c0_225 = arith.constant 0 : index
    %291 = vector.load %arg30[%c1_223, %c1_224, %c0_225] : memref<10x10x32xf32, #tpu.memory_space<vmem>>, vector<8x8x32xf32>
    tpu.vector_store %arg30[%c1_223, %c1_224, %c0_225], %290 {strides = array<i32>} : memref<10x10x32xf32, #tpu.memory_space<vmem>>, vector<8x8x32xf32>,
    %cst_226 = arith.constant 0.000000e+00 : f32
    %292 = vector.broadcast %cst_226 : f32 to vector<64x32xf32>
    %c0_227 = arith.constant 0 : index
    %c0_228 = arith.constant 0 : index
    %c0_229 = arith.constant 0 : index
    %293 = vector.load %arg30[%c0_227, %c0_228, %c0_229] : memref<10x10x32xf32, #tpu.memory_space<vmem>>, vector<8x8x32xf32>
    %294 = vector.shape_cast %293 : vector<8x8x32xf32> to vector<64x32xf32>
    %c0_230 = arith.constant 0 : index
    %c0_231 = arith.constant 0 : index
    %c0_232 = arith.constant 0 : index
    %295 = vector.load %arg23[%c0_230, %c0_231, %c0_232] : memref<9x32x32xbf16, #tpu.memory_space<vmem>>, vector<1x32x32xbf16>
    %296 = vector.shape_cast %295 : vector<1x32x32xbf16> to vector<32x32xbf16>
    %297 = arith.truncf %294 : vector<64x32xf32> to vector<64x32xbf16>
    %cst_233 = arith.constant dense<0.000000e+00> : vector<64x32xf32>
    %298 = tpu.matmul %297, %296, %cst_233 {dimension_numbers = #tpu.dot_dimension_numbers<[1], [0], [0], [1], [0, 0, 1, 1], [], []>} : vector<64x32xbf16>, vector<32x32xbf16>, vector<64x32xf32> -> vector<64x32xf32>
    %299 = arith.addf %292, %298 : vector<64x32xf32>
    %c0_234 = arith.constant 0 : index
    %c1_235 = arith.constant 1 : index
    %c0_236 = arith.constant 0 : index
    %300 = vector.load %arg30[%c0_234, %c1_235, %c0_236] : memref<10x10x32xf32, #tpu.memory_space<vmem>>, vector<8x8x32xf32>
    %301 = vector.shape_cast %300 : vector<8x8x32xf32> to vector<64x32xf32>
    %c1_237 = arith.constant 1 : index
    %c0_238 = arith.constant 0 : index
    %c0_239 = arith.constant 0 : index
    %302 = vector.load %arg23[%c1_237, %c0_238, %c0_239] : memref<9x32x32xbf16, #tpu.memory_space<vmem>>, vector<1x32x32xbf16>
    %303 = vector.shape_cast %302 : vector<1x32x32xbf16> to vector<32x32xbf16>
    %304 = arith.truncf %301 : vector<64x32xf32> to vector<64x32xbf16>
    %cst_240 = arith.constant dense<0.000000e+00> : vector<64x32xf32>
    %305 = tpu.matmul %304, %303, %cst_240 {dimension_numbers = #tpu.dot_dimension_numbers<[1], [0], [0], [1], [0, 0, 1, 1], [], []>} : vector<64x32xbf16>, vector<32x32xbf16>, vector<64x32xf32> -> vector<64x32xf32>
    %306 = arith.addf %299, %305 : vector<64x32xf32>
    %c0_241 = arith.constant 0 : index
    %c2_242 = arith.constant 2 : index
    %c0_243 = arith.constant 0 : index
    %307 = vector.load %arg30[%c0_241, %c2_242, %c0_243] : memref<10x10x32xf32, #tpu.memory_space<vmem>>, vector<8x8x32xf32>
    %308 = vector.shape_cast %307 : vector<8x8x32xf32> to vector<64x32xf32>
    %c2_244 = arith.constant 2 : index
    %c0_245 = arith.constant 0 : index
    %c0_246 = arith.constant 0 : index
    %309 = vector.load %arg23[%c2_244, %c0_245, %c0_246] : memref<9x32x32xbf16, #tpu.memory_space<vmem>>, vector<1x32x32xbf16>
    %310 = vector.shape_cast %309 : vector<1x32x32xbf16> to vector<32x32xbf16>
    %311 = arith.truncf %308 : vector<64x32xf32> to vector<64x32xbf16>
    %cst_247 = arith.constant dense<0.000000e+00> : vector<64x32xf32>
    %312 = tpu.matmul %311, %310, %cst_247 {dimension_numbers = #tpu.dot_dimension_numbers<[1], [0], [0], [1], [0, 0, 1, 1], [], []>} : vector<64x32xbf16>, vector<32x32xbf16>, vector<64x32xf32> -> vector<64x32xf32>
    %313 = arith.addf %306, %312 : vector<64x32xf32>
    %c1_248 = arith.constant 1 : index
    %c0_249 = arith.constant 0 : index
    %c0_250 = arith.constant 0 : index
    %314 = vector.load %arg30[%c1_248, %c0_249, %c0_250] : memref<10x10x32xf32, #tpu.memory_space<vmem>>, vector<8x8x32xf32>
    %315 = vector.shape_cast %314 : vector<8x8x32xf32> to vector<64x32xf32>
    %c3_251 = arith.constant 3 : index
    %c0_252 = arith.constant 0 : index
    %c0_253 = arith.constant 0 : index
    %316 = vector.load %arg23[%c3_251, %c0_252, %c0_253] : memref<9x32x32xbf16, #tpu.memory_space<vmem>>, vector<1x32x32xbf16>
    %317 = vector.shape_cast %316 : vector<1x32x32xbf16> to vector<32x32xbf16>
    %318 = arith.truncf %315 : vector<64x32xf32> to vector<64x32xbf16>
    %cst_254 = arith.constant dense<0.000000e+00> : vector<64x32xf32>
    %319 = tpu.matmul %318, %317, %cst_254 {dimension_numbers = #tpu.dot_dimension_numbers<[1], [0], [0], [1], [0, 0, 1, 1], [], []>} : vector<64x32xbf16>, vector<32x32xbf16>, vector<64x32xf32> -> vector<64x32xf32>
    %320 = arith.addf %313, %319 : vector<64x32xf32>
    %c1_255 = arith.constant 1 : index
    %c1_256 = arith.constant 1 : index
    %c0_257 = arith.constant 0 : index
    %321 = vector.load %arg30[%c1_255, %c1_256, %c0_257] : memref<10x10x32xf32, #tpu.memory_space<vmem>>, vector<8x8x32xf32>
    %322 = vector.shape_cast %321 : vector<8x8x32xf32> to vector<64x32xf32>
    %c4_258 = arith.constant 4 : index
    %c0_259 = arith.constant 0 : index
    %c0_260 = arith.constant 0 : index
    %323 = vector.load %arg23[%c4_258, %c0_259, %c0_260] : memref<9x32x32xbf16, #tpu.memory_space<vmem>>, vector<1x32x32xbf16>
    %324 = vector.shape_cast %323 : vector<1x32x32xbf16> to vector<32x32xbf16>
    %325 = arith.truncf %322 : vector<64x32xf32> to vector<64x32xbf16>
    %cst_261 = arith.constant dense<0.000000e+00> : vector<64x32xf32>
    %326 = tpu.matmul %325, %324, %cst_261 {dimension_numbers = #tpu.dot_dimension_numbers<[1], [0], [0], [1], [0, 0, 1, 1], [], []>} : vector<64x32xbf16>, vector<32x32xbf16>, vector<64x32xf32> -> vector<64x32xf32>
    %327 = arith.addf %320, %326 : vector<64x32xf32>
    %c1_262 = arith.constant 1 : index
    %c2_263 = arith.constant 2 : index
    %c0_264 = arith.constant 0 : index
    %328 = vector.load %arg30[%c1_262, %c2_263, %c0_264] : memref<10x10x32xf32, #tpu.memory_space<vmem>>, vector<8x8x32xf32>
    %329 = vector.shape_cast %328 : vector<8x8x32xf32> to vector<64x32xf32>
    %c5_265 = arith.constant 5 : index
    %c0_266 = arith.constant 0 : index
    %c0_267 = arith.constant 0 : index
    %330 = vector.load %arg23[%c5_265, %c0_266, %c0_267] : memref<9x32x32xbf16, #tpu.memory_space<vmem>>, vector<1x32x32xbf16>
    %331 = vector.shape_cast %330 : vector<1x32x32xbf16> to vector<32x32xbf16>
    %332 = arith.truncf %329 : vector<64x32xf32> to vector<64x32xbf16>
    %cst_268 = arith.constant dense<0.000000e+00> : vector<64x32xf32>
    %333 = tpu.matmul %332, %331, %cst_268 {dimension_numbers = #tpu.dot_dimension_numbers<[1], [0], [0], [1], [0, 0, 1, 1], [], []>} : vector<64x32xbf16>, vector<32x32xbf16>, vector<64x32xf32> -> vector<64x32xf32>
    %334 = arith.addf %327, %333 : vector<64x32xf32>
    %c2_269 = arith.constant 2 : index
    %c0_270 = arith.constant 0 : index
    %c0_271 = arith.constant 0 : index
    %335 = vector.load %arg30[%c2_269, %c0_270, %c0_271] : memref<10x10x32xf32, #tpu.memory_space<vmem>>, vector<8x8x32xf32>
    %336 = vector.shape_cast %335 : vector<8x8x32xf32> to vector<64x32xf32>
    %c6_272 = arith.constant 6 : index
    %c0_273 = arith.constant 0 : index
    %c0_274 = arith.constant 0 : index
    %337 = vector.load %arg23[%c6_272, %c0_273, %c0_274] : memref<9x32x32xbf16, #tpu.memory_space<vmem>>, vector<1x32x32xbf16>
    %338 = vector.shape_cast %337 : vector<1x32x32xbf16> to vector<32x32xbf16>
    %339 = arith.truncf %336 : vector<64x32xf32> to vector<64x32xbf16>
    %cst_275 = arith.constant dense<0.000000e+00> : vector<64x32xf32>
    %340 = tpu.matmul %339, %338, %cst_275 {dimension_numbers = #tpu.dot_dimension_numbers<[1], [0], [0], [1], [0, 0, 1, 1], [], []>} : vector<64x32xbf16>, vector<32x32xbf16>, vector<64x32xf32> -> vector<64x32xf32>
    %341 = arith.addf %334, %340 : vector<64x32xf32>
    %c2_276 = arith.constant 2 : index
    %c1_277 = arith.constant 1 : index
    %c0_278 = arith.constant 0 : index
    %342 = vector.load %arg30[%c2_276, %c1_277, %c0_278] : memref<10x10x32xf32, #tpu.memory_space<vmem>>, vector<8x8x32xf32>
    %343 = vector.shape_cast %342 : vector<8x8x32xf32> to vector<64x32xf32>
    %c7_279 = arith.constant 7 : index
    %c0_280 = arith.constant 0 : index
    %c0_281 = arith.constant 0 : index
    %344 = vector.load %arg23[%c7_279, %c0_280, %c0_281] : memref<9x32x32xbf16, #tpu.memory_space<vmem>>, vector<1x32x32xbf16>
    %345 = vector.shape_cast %344 : vector<1x32x32xbf16> to vector<32x32xbf16>
    %346 = arith.truncf %343 : vector<64x32xf32> to vector<64x32xbf16>
    %cst_282 = arith.constant dense<0.000000e+00> : vector<64x32xf32>
    %347 = tpu.matmul %346, %345, %cst_282 {dimension_numbers = #tpu.dot_dimension_numbers<[1], [0], [0], [1], [0, 0, 1, 1], [], []>} : vector<64x32xbf16>, vector<32x32xbf16>, vector<64x32xf32> -> vector<64x32xf32>
    %348 = arith.addf %341, %347 : vector<64x32xf32>
    %c2_283 = arith.constant 2 : index
    %c2_284 = arith.constant 2 : index
    %c0_285 = arith.constant 0 : index
    %349 = vector.load %arg30[%c2_283, %c2_284, %c0_285] : memref<10x10x32xf32, #tpu.memory_space<vmem>>, vector<8x8x32xf32>
    %350 = vector.shape_cast %349 : vector<8x8x32xf32> to vector<64x32xf32>
    %c8_286 = arith.constant 8 : index
    %c0_287 = arith.constant 0 : index
    %c0_288 = arith.constant 0 : index
    %351 = vector.load %arg23[%c8_286, %c0_287, %c0_288] : memref<9x32x32xbf16, #tpu.memory_space<vmem>>, vector<1x32x32xbf16>
    %352 = vector.shape_cast %351 : vector<1x32x32xbf16> to vector<32x32xbf16>
    %353 = arith.truncf %350 : vector<64x32xf32> to vector<64x32xbf16>
    %cst_289 = arith.constant dense<0.000000e+00> : vector<64x32xf32>
    %354 = tpu.matmul %353, %352, %cst_289 {dimension_numbers = #tpu.dot_dimension_numbers<[1], [0], [0], [1], [0, 0, 1, 1], [], []>} : vector<64x32xbf16>, vector<32x32xbf16>, vector<64x32xf32> -> vector<64x32xf32>
    %355 = arith.addf %348, %354 : vector<64x32xf32>
    %356 = vector.broadcast %258 : vector<1x32xf32> to vector<64x32xf32>
    %357 = arith.addf %355, %356 : vector<64x32xf32>
    %cst_290 = arith.constant dense<0.000000e+00> : vector<32xf32>
    %358 = vector.multi_reduction <add>, %357, %cst_290 [0] : vector<64x32xf32> to vector<32xf32>
    %359 = vector.shape_cast %358 : vector<32xf32> to vector<1x32xf32>
    %cst_291 = arith.constant 1.562500e-02 : f32
    %360 = vector.broadcast %cst_291 : f32 to vector<1x32xf32>
    %361 = arith.mulf %359, %360 : vector<1x32xf32>
    %cst_292 = arith.constant dense<0.000000e+00> : vector<1x32xf32>
    %362 = tpu.matmul %361, %0, %cst_292 {dimension_numbers = #tpu.dot_dimension_numbers<[1], [0], [0], [1], [0, 0, 1, 1], [], []>} : vector<1x32xf32>, vector<32x32xf32>, vector<1x32xf32> -> vector<1x32xf32>
    %363 = vector.broadcast %362 : vector<1x32xf32> to vector<64x32xf32>
    %364 = arith.subf %357, %363 : vector<64x32xf32>
    %365 = arith.mulf %364, %364 : vector<64x32xf32>
    %cst_293 = arith.constant dense<0.000000e+00> : vector<32xf32>
    %366 = vector.multi_reduction <add>, %365, %cst_293 [0] : vector<64x32xf32> to vector<32xf32>
    %367 = vector.shape_cast %366 : vector<32xf32> to vector<1x32xf32>
    %cst_294 = arith.constant 1.562500e-02 : f32
    %368 = vector.broadcast %cst_294 : f32 to vector<1x32xf32>
    %369 = arith.mulf %367, %368 : vector<1x32xf32>
    %cst_295 = arith.constant dense<0.000000e+00> : vector<1x32xf32>
    %370 = tpu.matmul %369, %0, %cst_295 {dimension_numbers = #tpu.dot_dimension_numbers<[1], [0], [0], [1], [0, 0, 1, 1], [], []>} : vector<1x32xf32>, vector<32x32xf32>, vector<1x32xf32> -> vector<1x32xf32>
    %cst_296 = arith.constant 9.99999974E-6 : f32
    %371 = vector.broadcast %cst_296 : f32 to vector<1x32xf32>
    %372 = arith.addf %370, %371 : vector<1x32xf32>
    %373 = math.rsqrt %372 : vector<1x32xf32>
    %374 = vector.broadcast %373 : vector<1x32xf32> to vector<64x32xf32>
    %375 = arith.mulf %364, %374 : vector<64x32xf32>
    %376 = vector.broadcast %259 : vector<1x32xf32> to vector<64x32xf32>
    %377 = arith.mulf %375, %376 : vector<64x32xf32>
    %378 = vector.broadcast %260 : vector<1x32xf32> to vector<64x32xf32>
    %379 = arith.addf %377, %378 : vector<64x32xf32>
    %380 = vector.broadcast %253 : vector<1x32xf32> to vector<64x32xf32>
    %381 = arith.mulf %380, %379 : vector<64x32xf32>
    %382 = vector.broadcast %255 : vector<1x32xf32> to vector<64x32xf32>
    %383 = arith.addf %381, %382 : vector<64x32xf32>
    %384 = arith.negf %383 : vector<64x32xf32>
    %385 = math.exp %384 : vector<64x32xf32>
    %cst_297 = arith.constant 1.000000e+00 : f32
    %386 = vector.broadcast %cst_297 : f32 to vector<64x32xf32>
    %387 = arith.addf %386, %385 : vector<64x32xf32>
    %388 = arith.divf %386, %387 : vector<64x32xf32>
    %389 = arith.mulf %383, %388 : vector<64x32xf32>
    %390 = vector.shape_cast %389 : vector<64x32xf32> to vector<8x8x32xf32>
    %c1_298 = arith.constant 1 : index
    %c1_299 = arith.constant 1 : index
    %c0_300 = arith.constant 0 : index
    %391 = vector.load %arg30[%c1_298, %c1_299, %c0_300] : memref<10x10x32xf32, #tpu.memory_space<vmem>>, vector<8x8x32xf32>
    tpu.vector_store %arg30[%c1_298, %c1_299, %c0_300], %390 {strides = array<i32>} : memref<10x10x32xf32, #tpu.memory_space<vmem>>, vector<8x8x32xf32>,
    %cst_301 = arith.constant 0.000000e+00 : f32
    %392 = vector.broadcast %cst_301 : f32 to vector<64x32xf32>
    %c0_302 = arith.constant 0 : index
    %c0_303 = arith.constant 0 : index
    %c0_304 = arith.constant 0 : index
    %393 = vector.load %arg30[%c0_302, %c0_303, %c0_304] : memref<10x10x32xf32, #tpu.memory_space<vmem>>, vector<8x8x32xf32>
    %394 = vector.shape_cast %393 : vector<8x8x32xf32> to vector<64x32xf32>
    %c0_305 = arith.constant 0 : index
    %c0_306 = arith.constant 0 : index
    %c0_307 = arith.constant 0 : index
    %395 = vector.load %arg27[%c0_305, %c0_306, %c0_307] : memref<9x32x32xbf16, #tpu.memory_space<vmem>>, vector<1x32x32xbf16>
    %396 = vector.shape_cast %395 : vector<1x32x32xbf16> to vector<32x32xbf16>
    %397 = arith.truncf %394 : vector<64x32xf32> to vector<64x32xbf16>
    %cst_308 = arith.constant dense<0.000000e+00> : vector<64x32xf32>
    %398 = tpu.matmul %397, %396, %cst_308 {dimension_numbers = #tpu.dot_dimension_numbers<[1], [0], [0], [1], [0, 0, 1, 1], [], []>} : vector<64x32xbf16>, vector<32x32xbf16>, vector<64x32xf32> -> vector<64x32xf32>
    %399 = arith.addf %392, %398 : vector<64x32xf32>
    %c0_309 = arith.constant 0 : index
    %c1_310 = arith.constant 1 : index
    %c0_311 = arith.constant 0 : index
    %400 = vector.load %arg30[%c0_309, %c1_310, %c0_311] : memref<10x10x32xf32, #tpu.memory_space<vmem>>, vector<8x8x32xf32>
    %401 = vector.shape_cast %400 : vector<8x8x32xf32> to vector<64x32xf32>
    %c1_312 = arith.constant 1 : index
    %c0_313 = arith.constant 0 : index
    %c0_314 = arith.constant 0 : index
    %402 = vector.load %arg27[%c1_312, %c0_313, %c0_314] : memref<9x32x32xbf16, #tpu.memory_space<vmem>>, vector<1x32x32xbf16>
    %403 = vector.shape_cast %402 : vector<1x32x32xbf16> to vector<32x32xbf16>
    %404 = arith.truncf %401 : vector<64x32xf32> to vector<64x32xbf16>
    %cst_315 = arith.constant dense<0.000000e+00> : vector<64x32xf32>
    %405 = tpu.matmul %404, %403, %cst_315 {dimension_numbers = #tpu.dot_dimension_numbers<[1], [0], [0], [1], [0, 0, 1, 1], [], []>} : vector<64x32xbf16>, vector<32x32xbf16>, vector<64x32xf32> -> vector<64x32xf32>
    %406 = arith.addf %399, %405 : vector<64x32xf32>
    %c0_316 = arith.constant 0 : index
    %c2_317 = arith.constant 2 : index
    %c0_318 = arith.constant 0 : index
    %407 = vector.load %arg30[%c0_316, %c2_317, %c0_318] : memref<10x10x32xf32, #tpu.memory_space<vmem>>, vector<8x8x32xf32>
    %408 = vector.shape_cast %407 : vector<8x8x32xf32> to vector<64x32xf32>
    %c2_319 = arith.constant 2 : index
    %c0_320 = arith.constant 0 : index
    %c0_321 = arith.constant 0 : index
    %409 = vector.load %arg27[%c2_319, %c0_320, %c0_321] : memref<9x32x32xbf16, #tpu.memory_space<vmem>>, vector<1x32x32xbf16>
    %410 = vector.shape_cast %409 : vector<1x32x32xbf16> to vector<32x32xbf16>
    %411 = arith.truncf %408 : vector<64x32xf32> to vector<64x32xbf16>
    %cst_322 = arith.constant dense<0.000000e+00> : vector<64x32xf32>
    %412 = tpu.matmul %411, %410, %cst_322 {dimension_numbers = #tpu.dot_dimension_numbers<[1], [0], [0], [1], [0, 0, 1, 1], [], []>} : vector<64x32xbf16>, vector<32x32xbf16>, vector<64x32xf32> -> vector<64x32xf32>
    %413 = arith.addf %406, %412 : vector<64x32xf32>
    %c1_323 = arith.constant 1 : index
    %c0_324 = arith.constant 0 : index
    %c0_325 = arith.constant 0 : index
    %414 = vector.load %arg30[%c1_323, %c0_324, %c0_325] : memref<10x10x32xf32, #tpu.memory_space<vmem>>, vector<8x8x32xf32>
    %415 = vector.shape_cast %414 : vector<8x8x32xf32> to vector<64x32xf32>
    %c3_326 = arith.constant 3 : index
    %c0_327 = arith.constant 0 : index
    %c0_328 = arith.constant 0 : index
    %416 = vector.load %arg27[%c3_326, %c0_327, %c0_328] : memref<9x32x32xbf16, #tpu.memory_space<vmem>>, vector<1x32x32xbf16>
    %417 = vector.shape_cast %416 : vector<1x32x32xbf16> to vector<32x32xbf16>
    %418 = arith.truncf %415 : vector<64x32xf32> to vector<64x32xbf16>
    %cst_329 = arith.constant dense<0.000000e+00> : vector<64x32xf32>
    %419 = tpu.matmul %418, %417, %cst_329 {dimension_numbers = #tpu.dot_dimension_numbers<[1], [0], [0], [1], [0, 0, 1, 1], [], []>} : vector<64x32xbf16>, vector<32x32xbf16>, vector<64x32xf32> -> vector<64x32xf32>
    %420 = arith.addf %413, %419 : vector<64x32xf32>
    %c1_330 = arith.constant 1 : index
    %c1_331 = arith.constant 1 : index
    %c0_332 = arith.constant 0 : index
    %421 = vector.load %arg30[%c1_330, %c1_331, %c0_332] : memref<10x10x32xf32, #tpu.memory_space<vmem>>, vector<8x8x32xf32>
    %422 = vector.shape_cast %421 : vector<8x8x32xf32> to vector<64x32xf32>
    %c4_333 = arith.constant 4 : index
    %c0_334 = arith.constant 0 : index
    %c0_335 = arith.constant 0 : index
    %423 = vector.load %arg27[%c4_333, %c0_334, %c0_335] : memref<9x32x32xbf16, #tpu.memory_space<vmem>>, vector<1x32x32xbf16>
    %424 = vector.shape_cast %423 : vector<1x32x32xbf16> to vector<32x32xbf16>
    %425 = arith.truncf %422 : vector<64x32xf32> to vector<64x32xbf16>
    %cst_336 = arith.constant dense<0.000000e+00> : vector<64x32xf32>
    %426 = tpu.matmul %425, %424, %cst_336 {dimension_numbers = #tpu.dot_dimension_numbers<[1], [0], [0], [1], [0, 0, 1, 1], [], []>} : vector<64x32xbf16>, vector<32x32xbf16>, vector<64x32xf32> -> vector<64x32xf32>
    %427 = arith.addf %420, %426 : vector<64x32xf32>
    %c1_337 = arith.constant 1 : index
    %c2_338 = arith.constant 2 : index
    %c0_339 = arith.constant 0 : index
    %428 = vector.load %arg30[%c1_337, %c2_338, %c0_339] : memref<10x10x32xf32, #tpu.memory_space<vmem>>, vector<8x8x32xf32>
    %429 = vector.shape_cast %428 : vector<8x8x32xf32> to vector<64x32xf32>
    %c5_340 = arith.constant 5 : index
    %c0_341 = arith.constant 0 : index
    %c0_342 = arith.constant 0 : index
    %430 = vector.load %arg27[%c5_340, %c0_341, %c0_342] : memref<9x32x32xbf16, #tpu.memory_space<vmem>>, vector<1x32x32xbf16>
    %431 = vector.shape_cast %430 : vector<1x32x32xbf16> to vector<32x32xbf16>
    %432 = arith.truncf %429 : vector<64x32xf32> to vector<64x32xbf16>
    %cst_343 = arith.constant dense<0.000000e+00> : vector<64x32xf32>
    %433 = tpu.matmul %432, %431, %cst_343 {dimension_numbers = #tpu.dot_dimension_numbers<[1], [0], [0], [1], [0, 0, 1, 1], [], []>} : vector<64x32xbf16>, vector<32x32xbf16>, vector<64x32xf32> -> vector<64x32xf32>
    %434 = arith.addf %427, %433 : vector<64x32xf32>
    %c2_344 = arith.constant 2 : index
    %c0_345 = arith.constant 0 : index
    %c0_346 = arith.constant 0 : index
    %435 = vector.load %arg30[%c2_344, %c0_345, %c0_346] : memref<10x10x32xf32, #tpu.memory_space<vmem>>, vector<8x8x32xf32>
    %436 = vector.shape_cast %435 : vector<8x8x32xf32> to vector<64x32xf32>
    %c6_347 = arith.constant 6 : index
    %c0_348 = arith.constant 0 : index
    %c0_349 = arith.constant 0 : index
    %437 = vector.load %arg27[%c6_347, %c0_348, %c0_349] : memref<9x32x32xbf16, #tpu.memory_space<vmem>>, vector<1x32x32xbf16>
    %438 = vector.shape_cast %437 : vector<1x32x32xbf16> to vector<32x32xbf16>
    %439 = arith.truncf %436 : vector<64x32xf32> to vector<64x32xbf16>
    %cst_350 = arith.constant dense<0.000000e+00> : vector<64x32xf32>
    %440 = tpu.matmul %439, %438, %cst_350 {dimension_numbers = #tpu.dot_dimension_numbers<[1], [0], [0], [1], [0, 0, 1, 1], [], []>} : vector<64x32xbf16>, vector<32x32xbf16>, vector<64x32xf32> -> vector<64x32xf32>
    %441 = arith.addf %434, %440 : vector<64x32xf32>
    %c2_351 = arith.constant 2 : index
    %c1_352 = arith.constant 1 : index
    %c0_353 = arith.constant 0 : index
    %442 = vector.load %arg30[%c2_351, %c1_352, %c0_353] : memref<10x10x32xf32, #tpu.memory_space<vmem>>, vector<8x8x32xf32>
    %443 = vector.shape_cast %442 : vector<8x8x32xf32> to vector<64x32xf32>
    %c7_354 = arith.constant 7 : index
    %c0_355 = arith.constant 0 : index
    %c0_356 = arith.constant 0 : index
    %444 = vector.load %arg27[%c7_354, %c0_355, %c0_356] : memref<9x32x32xbf16, #tpu.memory_space<vmem>>, vector<1x32x32xbf16>
    %445 = vector.shape_cast %444 : vector<1x32x32xbf16> to vector<32x32xbf16>
    %446 = arith.truncf %443 : vector<64x32xf32> to vector<64x32xbf16>
    %cst_357 = arith.constant dense<0.000000e+00> : vector<64x32xf32>
    %447 = tpu.matmul %446, %445, %cst_357 {dimension_numbers = #tpu.dot_dimension_numbers<[1], [0], [0], [1], [0, 0, 1, 1], [], []>} : vector<64x32xbf16>, vector<32x32xbf16>, vector<64x32xf32> -> vector<64x32xf32>
    %448 = arith.addf %441, %447 : vector<64x32xf32>
    %c2_358 = arith.constant 2 : index
    %c2_359 = arith.constant 2 : index
    %c0_360 = arith.constant 0 : index
    %449 = vector.load %arg30[%c2_358, %c2_359, %c0_360] : memref<10x10x32xf32, #tpu.memory_space<vmem>>, vector<8x8x32xf32>
    %450 = vector.shape_cast %449 : vector<8x8x32xf32> to vector<64x32xf32>
    %c8_361 = arith.constant 8 : index
    %c0_362 = arith.constant 0 : index
    %c0_363 = arith.constant 0 : index
    %451 = vector.load %arg27[%c8_361, %c0_362, %c0_363] : memref<9x32x32xbf16, #tpu.memory_space<vmem>>, vector<1x32x32xbf16>
    %452 = vector.shape_cast %451 : vector<1x32x32xbf16> to vector<32x32xbf16>
    %453 = arith.truncf %450 : vector<64x32xf32> to vector<64x32xbf16>
    %cst_364 = arith.constant dense<0.000000e+00> : vector<64x32xf32>
    %454 = tpu.matmul %453, %452, %cst_364 {dimension_numbers = #tpu.dot_dimension_numbers<[1], [0], [0], [1], [0, 0, 1, 1], [], []>} : vector<64x32xbf16>, vector<32x32xbf16>, vector<64x32xf32> -> vector<64x32xf32>
    %455 = arith.addf %448, %454 : vector<64x32xf32>
    %456 = vector.broadcast %261 : vector<1x32xf32> to vector<64x32xf32>
    %457 = arith.addf %455, %456 : vector<64x32xf32>
    %458 = arith.addf %457, %251 : vector<64x32xf32>
    %459 = tpu.transpose %458, [1, 0] : vector<64x32xf32> -> vector<32x64xf32>
    %c0_365 = arith.constant 0 : index
    %c0_366 = arith.constant 0 : index
    %c0_367 = arith.constant 0 : index
    %460 = vector.load %arg29[%c0_365, %c0_366, %c0_367] : memref<1x32x64xf32, #tpu.memory_space<vmem>>, vector<1x32x64xf32>
    %461 = vector.shape_cast %460 : vector<1x32x64xf32> to vector<32x64xf32>
    %462 = vector.shape_cast %459 : vector<32x64xf32> to vector<1x32x64xf32>
    tpu.vector_store %arg29[%c0_365, %c0_366, %c0_367], %462 {strides = array<i32>} : memref<1x32x64xf32, #tpu.memory_space<vmem>>, vector<1x32x64xf32>,
    return
  }
  func.func @transform_0(%arg0: i32) -> (i32, i32, i32) {
    %c0_i32 = arith.constant 0 : i32
    %c0_i32_0 = arith.constant 0 : i32
    %c0_i32_1 = arith.constant 0 : i32
    return %arg0, %c0_i32, %c0_i32_0 : i32, i32, i32
  }
  func.func @transform_1(%arg0: i32) -> (i32, i32, i32) {
    %c0_i32 = arith.constant 0 : i32
    %c0_i32_0 = arith.constant 0 : i32
    %c0_i32_1 = arith.constant 0 : i32
    return %arg0, %c0_i32, %c0_i32_0 : i32, i32, i32
  }
  func.func @transform_2(%arg0: i32) -> (i32, i32, i32) {
    %c0_i32 = arith.constant 0 : i32
    %c0_i32_0 = arith.constant 0 : i32
    %c0_i32_1 = arith.constant 0 : i32
    return %arg0, %c0_i32, %c0_i32_0 : i32, i32, i32
  }
  func.func @transform_3(%arg0: i32) -> (i32, i32, i32) {
    %c0_i32 = arith.constant 0 : i32
    %c0_i32_0 = arith.constant 0 : i32
    %c0_i32_1 = arith.constant 0 : i32
    return %arg0, %c0_i32, %c0_i32_0 : i32, i32, i32
  }
  func.func @transform_4(%arg0: i32) -> (i32, i32, i32) {
    %c0_i32 = arith.constant 0 : i32
    %c0_i32_0 = arith.constant 0 : i32
    %c0_i32_1 = arith.constant 0 : i32
    return %arg0, %c0_i32, %c0_i32_0 : i32, i32, i32
  }
  func.func @transform_5(%arg0: i32) -> (i32, i32) {
    %c0_i32 = arith.constant 0 : i32
    %c0_i32_0 = arith.constant 0 : i32
    %c0_i32_1 = arith.constant 0 : i32
    return %c0_i32, %c0_i32_0 : i32, i32
  }
  func.func @transform_6(%arg0: i32) -> (i32, i32) {
    %c0_i32 = arith.constant 0 : i32
    %c0_i32_0 = arith.constant 0 : i32
    %c0_i32_1 = arith.constant 0 : i32
    return %c0_i32, %c0_i32_0 : i32, i32
  }
  func.func @transform_7(%arg0: i32) -> (i32, i32) {
    %c0_i32 = arith.constant 0 : i32
    %c0_i32_0 = arith.constant 0 : i32
    %c0_i32_1 = arith.constant 0 : i32
    return %c0_i32, %c0_i32_0 : i32, i32
  }
  func.func @transform_8(%arg0: i32) -> (i32, i32, i32) {
    %c0_i32 = arith.constant 0 : i32
    %c0_i32_0 = arith.constant 0 : i32
    %c0_i32_1 = arith.constant 0 : i32
    %c0_i32_2 = arith.constant 0 : i32
    return %c0_i32, %c0_i32_0, %c0_i32_1 : i32, i32, i32
  }
  func.func @transform_9(%arg0: i32) -> (i32, i32) {
    %c0_i32 = arith.constant 0 : i32
    %c0_i32_0 = arith.constant 0 : i32
    %c0_i32_1 = arith.constant 0 : i32
    return %c0_i32, %c0_i32_0 : i32, i32
  }
  func.func @transform_10(%arg0: i32) -> (i32, i32) {
    %c0_i32 = arith.constant 0 : i32
    %c0_i32_0 = arith.constant 0 : i32
    %c0_i32_1 = arith.constant 0 : i32
    return %c0_i32, %c0_i32_0 : i32, i32
  }
  func.func @transform_11(%arg0: i32) -> (i32, i32) {
    %c0_i32 = arith.constant 0 : i32
    %c0_i32_0 = arith.constant 0 : i32
    %c0_i32_1 = arith.constant 0 : i32
    return %c0_i32, %c0_i32_0 : i32, i32
  }
  func.func @transform_12(%arg0: i32) -> (i32, i32, i32) {
    %c0_i32 = arith.constant 0 : i32
    %c0_i32_0 = arith.constant 0 : i32
    %c0_i32_1 = arith.constant 0 : i32
    %c0_i32_2 = arith.constant 0 : i32
    return %c0_i32, %c0_i32_0, %c0_i32_1 : i32, i32, i32
  }
  func.func @transform_13(%arg0: i32) -> (i32, i32) {
    %c0_i32 = arith.constant 0 : i32
    %c0_i32_0 = arith.constant 0 : i32
    %c0_i32_1 = arith.constant 0 : i32
    return %c0_i32, %c0_i32_0 : i32, i32
  }
  func.func @transform_14(%arg0: i32) -> (i32, i32) {
    %c0_i32 = arith.constant 0 : i32
    %c0_i32_0 = arith.constant 0 : i32
    %c0_i32_1 = arith.constant 0 : i32
    return %c0_i32, %c0_i32_0 : i32, i32
  }
  func.func @transform_15(%arg0: i32) -> (i32, i32) {
    %c0_i32 = arith.constant 0 : i32
    %c0_i32_0 = arith.constant 0 : i32
    %c0_i32_1 = arith.constant 0 : i32
    return %c0_i32, %c0_i32_0 : i32, i32
  }
  func.func @transform_16(%arg0: i32) -> (i32, i32, i32) {
    %c0_i32 = arith.constant 0 : i32
    %c0_i32_0 = arith.constant 0 : i32
    %c0_i32_1 = arith.constant 0 : i32
    %c0_i32_2 = arith.constant 0 : i32
    return %c0_i32, %c0_i32_0, %c0_i32_1 : i32, i32, i32
  }
  func.func @transform_17(%arg0: i32) -> (i32, i32, i32) {
    %c0_i32 = arith.constant 0 : i32
    %c0_i32_0 = arith.constant 0 : i32
    %c0_i32_1 = arith.constant 0 : i32
    %c0_i32_2 = arith.constant 0 : i32
    return %c0_i32, %c0_i32_0, %c0_i32_1 : i32, i32, i32
  }
  func.func @transform_18(%arg0: i32) -> (i32, i32, i32) {
    %c0_i32 = arith.constant 0 : i32
    %c0_i32_0 = arith.constant 0 : i32
    %c0_i32_1 = arith.constant 0 : i32
    %c0_i32_2 = arith.constant 0 : i32
    return %c0_i32, %c0_i32_0, %c0_i32_1 : i32, i32, i32
  }
  func.func @transform_19(%arg0: i32) -> (i32, i32) {
    %c0_i32 = arith.constant 0 : i32
    %c0_i32_0 = arith.constant 0 : i32
    %c0_i32_1 = arith.constant 0 : i32
    return %c0_i32, %c0_i32_0 : i32, i32
  }
  func.func @transform_20(%arg0: i32) -> (i32, i32) {
    %c0_i32 = arith.constant 0 : i32
    %c0_i32_0 = arith.constant 0 : i32
    %c0_i32_1 = arith.constant 0 : i32
    return %c0_i32, %c0_i32_0 : i32, i32
  }
  func.func @transform_21(%arg0: i32) -> (i32, i32) {
    %c0_i32 = arith.constant 0 : i32
    %c0_i32_0 = arith.constant 0 : i32
    %c0_i32_1 = arith.constant 0 : i32
    return %c0_i32, %c0_i32_0 : i32, i32
  }
  func.func @transform_22(%arg0: i32) -> (i32, i32, i32) {
    %c0_i32 = arith.constant 0 : i32
    %c0_i32_0 = arith.constant 0 : i32
    %c0_i32_1 = arith.constant 0 : i32
    %c0_i32_2 = arith.constant 0 : i32
    return %c0_i32, %c0_i32_0, %c0_i32_1 : i32, i32, i32
  }
  func.func @transform_23(%arg0: i32) -> (i32, i32) {
    %c0_i32 = arith.constant 0 : i32
    %c0_i32_0 = arith.constant 0 : i32
    %c0_i32_1 = arith.constant 0 : i32
    return %c0_i32, %c0_i32_0 : i32, i32
  }
  func.func @transform_24(%arg0: i32) -> (i32, i32) {
    %c0_i32 = arith.constant 0 : i32
    %c0_i32_0 = arith.constant 0 : i32
    %c0_i32_1 = arith.constant 0 : i32
    return %c0_i32, %c0_i32_0 : i32, i32
  }
  func.func @transform_25(%arg0: i32) -> (i32, i32) {
    %c0_i32 = arith.constant 0 : i32
    %c0_i32_0 = arith.constant 0 : i32
    %c0_i32_1 = arith.constant 0 : i32
    return %c0_i32, %c0_i32_0 : i32, i32
  }
  func.func @transform_26(%arg0: i32) -> (i32, i32, i32) {
    %c0_i32 = arith.constant 0 : i32
    %c0_i32_0 = arith.constant 0 : i32
    %c0_i32_1 = arith.constant 0 : i32
    %c0_i32_2 = arith.constant 0 : i32
    return %c0_i32, %c0_i32_0, %c0_i32_1 : i32, i32, i32
  }
  func.func @transform_27(%arg0: i32) -> (i32, i32) {
    %c0_i32 = arith.constant 0 : i32
    %c0_i32_0 = arith.constant 0 : i32
    %c0_i32_1 = arith.constant 0 : i32
    return %c0_i32, %c0_i32_0 : i32, i32
  }
  func.func @transform_28(%arg0: i32) -> (i32, i32, i32) {
    %c0_i32 = arith.constant 0 : i32
    %c0_i32_0 = arith.constant 0 : i32
    %c0_i32_1 = arith.constant 0 : i32
    return %arg0, %c0_i32, %c0_i32_0 : i32, i32, i32
  }
}

module attributes {stable_mosaic.version = 11 : i64} {
  func.func @middle_block_kernel(%arg0: i32, %arg1: memref<1x32x64xf32, #tpu.memory_space<vmem>>, %arg2: memref<1x1x32xf32, #tpu.memory_space<vmem>>, %arg3: memref<1x1x32xf32, #tpu.memory_space<vmem>>, %arg4: memref<1x1x32xf32, #tpu.memory_space<vmem>>, %arg5: memref<1x1x32xf32, #tpu.memory_space<vmem>>, %arg6: memref<32x32xf32, #tpu.memory_space<vmem>>, %arg7: memref<1x32xf32, #tpu.memory_space<vmem>>, %arg8: memref<1x32xf32, #tpu.memory_space<vmem>>, %arg9: memref<9x32x32xbf16, #tpu.memory_space<vmem>>, %arg10: memref<1x32xf32, #tpu.memory_space<vmem>>, %arg11: memref<1x32xf32, #tpu.memory_space<vmem>>, %arg12: memref<1x32xf32, #tpu.memory_space<vmem>>, %arg13: memref<9x32x32xbf16, #tpu.memory_space<vmem>>, %arg14: memref<1x32xf32, #tpu.memory_space<vmem>>, %arg15: memref<1x32xf32, #tpu.memory_space<vmem>>, %arg16: memref<1x32xf32, #tpu.memory_space<vmem>>, %arg17: memref<2x32x48xbf16, #tpu.memory_space<vmem>>, %arg18: memref<2x1x48xf32, #tpu.memory_space<vmem>>, %arg19: memref<2x16x32xbf16, #tpu.memory_space<vmem>>, %arg20: memref<1x32xf32, #tpu.memory_space<vmem>>, %arg21: memref<1x32xf32, #tpu.memory_space<vmem>>, %arg22: memref<1x32xf32, #tpu.memory_space<vmem>>, %arg23: memref<9x32x32xbf16, #tpu.memory_space<vmem>>, %arg24: memref<1x32xf32, #tpu.memory_space<vmem>>, %arg25: memref<1x32xf32, #tpu.memory_space<vmem>>, %arg26: memref<1x32xf32, #tpu.memory_space<vmem>>, %arg27: memref<9x32x32xbf16, #tpu.memory_space<vmem>>, %arg28: memref<1x32xf32, #tpu.memory_space<vmem>>, %arg29: memref<1x32x64xf32, #tpu.memory_space<vmem>>, %arg30: memref<10x10x32xf32, #tpu.memory_space<vmem>>, %arg31: memref<64x32xf32, #tpu.memory_space<vmem>>) attributes {dimension_semantics = [#tpu.dimension_semantics<parallel>], iteration_bounds = array<i64: 2>, scalar_prefetch = 0 : i64, scratch_operands = 2 : i64, tpu.core_type = #tpu.core_type<tc>, window_params = [{transform_indices = @transform_0, window_bounds = array<i64: 1, 32, 64>}, {transform_indices = @transform_1, window_bounds = array<i64: 1, 1, 32>}, {transform_indices = @transform_2, window_bounds = array<i64: 1, 1, 32>}, {transform_indices = @transform_3, window_bounds = array<i64: 1, 1, 32>}, {transform_indices = @transform_4, window_bounds = array<i64: 1, 1, 32>}, {pipeline_mode = #tpu.pipeline_mode<synchronous>, transform_indices = @transform_5, window_bounds = array<i64: 32, 32>}, {pipeline_mode = #tpu.pipeline_mode<synchronous>, transform_indices = @transform_6, window_bounds = array<i64: 1, 32>}, {pipeline_mode = #tpu.pipeline_mode<synchronous>, transform_indices = @transform_7, window_bounds = array<i64: 1, 32>}, {pipeline_mode = #tpu.pipeline_mode<synchronous>, transform_indices = @transform_8, window_bounds = array<i64: 9, 32, 32>}, {pipeline_mode = #tpu.pipeline_mode<synchronous>, transform_indices = @transform_9, window_bounds = array<i64: 1, 32>}, {pipeline_mode = #tpu.pipeline_mode<synchronous>, transform_indices = @transform_10, window_bounds = array<i64: 1, 32>}, {pipeline_mode = #tpu.pipeline_mode<synchronous>, transform_indices = @transform_11, window_bounds = array<i64: 1, 32>}, {pipeline_mode = #tpu.pipeline_mode<synchronous>, transform_indices = @transform_12, window_bounds = array<i64: 9, 32, 32>}, {pipeline_mode = #tpu.pipeline_mode<synchronous>, transform_indices = @transform_13, window_bounds = array<i64: 1, 32>}, {pipeline_mode = #tpu.pipeline_mode<synchronous>, transform_indices = @transform_14, window_bounds = array<i64: 1, 32>}, {pipeline_mode = #tpu.pipeline_mode<synchronous>, transform_indices = @transform_15, window_bounds = array<i64: 1, 32>}, {pipeline_mode = #tpu.pipeline_mode<synchronous>, transform_indices = @transform_16, window_bounds = array<i64: 2, 32, 48>}, {pipeline_mode = #tpu.pipeline_mode<synchronous>, transform_indices = @transform_17, window_bounds = array<i64: 2, 1, 48>}, {pipeline_mode = #tpu.pipeline_mode<synchronous>, transform_indices = @transform_18, window_bounds = array<i64: 2, 16, 32>}, {pipeline_mode = #tpu.pipeline_mode<synchronous>, transform_indices = @transform_19, window_bounds = array<i64: 1, 32>}, {pipeline_mode = #tpu.pipeline_mode<synchronous>, transform_indices = @transform_20, window_bounds = array<i64: 1, 32>}, {pipeline_mode = #tpu.pipeline_mode<synchronous>, transform_indices = @transform_21, window_bounds = array<i64: 1, 32>}, {pipeline_mode = #tpu.pipeline_mode<synchronous>, transform_indices = @transform_22, window_bounds = array<i64: 9, 32, 32>}, {pipeline_mode = #tpu.pipeline_mode<synchronous>, transform_indices = @transform_23, window_bounds = array<i64: 1, 32>}, {pipeline_mode = #tpu.pipeline_mode<synchronous>, transform_indices = @transform_24, window_bounds = array<i64: 1, 32>}, {pipeline_mode = #tpu.pipeline_mode<synchronous>, transform_indices = @transform_25, window_bounds = array<i64: 1, 32>}, {pipeline_mode = #tpu.pipeline_mode<synchronous>, transform_indices = @transform_26, window_bounds = array<i64: 9, 32, 32>}, {pipeline_mode = #tpu.pipeline_mode<synchronous>, transform_indices = @transform_27, window_bounds = array<i64: 1, 32>}, {transform_indices = @transform_28, window_bounds = array<i64: 1, 32, 64>}]} {
    %c0 = arith.constant 0 : index
    %c0_0 = arith.constant 0 : index
    %0 = vector.load %arg6[%c0, %c0_0] : memref<32x32xf32, #tpu.memory_space<vmem>>, vector<32x32xf32>
    %cst = arith.constant 0.000000e+00 : f32
    %1 = vector.broadcast %cst : f32 to vector<1x10x32xf32>
    %c0_1 = arith.constant 0 : index
    %c0_2 = arith.constant 0 : index
    %c0_3 = arith.constant 0 : index
    %2 = vector.load %arg30[%c0_1, %c0_2, %c0_3] : memref<10x10x32xf32, #tpu.memory_space<vmem>>, vector<1x10x32xf32>
    tpu.vector_store %arg30[%c0_1, %c0_2, %c0_3], %1 {strides = array<i32>} : memref<10x10x32xf32, #tpu.memory_space<vmem>>, vector<1x10x32xf32>,
    %cst_4 = arith.constant 0.000000e+00 : f32
    %3 = vector.broadcast %cst_4 : f32 to vector<1x10x32xf32>
    %c9 = arith.constant 9 : index
    %c0_5 = arith.constant 0 : index
    %c0_6 = arith.constant 0 : index
    %4 = vector.load %arg30[%c9, %c0_5, %c0_6] : memref<10x10x32xf32, #tpu.memory_space<vmem>>, vector<1x10x32xf32>
    tpu.vector_store %arg30[%c9, %c0_5, %c0_6], %3 {strides = array<i32>} : memref<10x10x32xf32, #tpu.memory_space<vmem>>, vector<1x10x32xf32>,
    %cst_7 = arith.constant 0.000000e+00 : f32
    %5 = vector.broadcast %cst_7 : f32 to vector<8x1x32xf32>
    %c1 = arith.constant 1 : index
    %c0_8 = arith.constant 0 : index
    %c0_9 = arith.constant 0 : index
    %6 = vector.load %arg30[%c1, %c0_8, %c0_9] : memref<10x10x32xf32, #tpu.memory_space<vmem>>, vector<8x1x32xf32>
    tpu.vector_store %arg30[%c1, %c0_8, %c0_9], %5 {strides = array<i32>} : memref<10x10x32xf32, #tpu.memory_space<vmem>>, vector<8x1x32xf32>,
    %cst_10 = arith.constant 0.000000e+00 : f32
    %7 = vector.broadcast %cst_10 : f32 to vector<8x1x32xf32>
    %c1_11 = arith.constant 1 : index
    %c9_12 = arith.constant 9 : index
    %c0_13 = arith.constant 0 : index
    %8 = vector.load %arg30[%c1_11, %c9_12, %c0_13] : memref<10x10x32xf32, #tpu.memory_space<vmem>>, vector<8x1x32xf32>
    tpu.vector_store %arg30[%c1_11, %c9_12, %c0_13], %7 {strides = array<i32>} : memref<10x10x32xf32, #tpu.memory_space<vmem>>, vector<8x1x32xf32>,
    %c0_14 = arith.constant 0 : index
    %c0_15 = arith.constant 0 : index
    %c0_16 = arith.constant 0 : index
    %9 = vector.load %arg1[%c0_14, %c0_15, %c0_16] : memref<1x32x64xf32, #tpu.memory_space<vmem>>, vector<1x32x64xf32>
    %10 = vector.shape_cast %9 : vector<1x32x64xf32> to vector<32x64xf32>
    %11 = tpu.transpose %10, [1, 0] : vector<32x64xf32> -> vector<64x32xf32>
    %c0_17 = arith.constant 0 : index
    %c0_18 = arith.constant 0 : index
    %c0_19 = arith.constant 0 : index
    %12 = vector.load %arg2[%c0_17, %c0_18, %c0_19] : memref<1x1x32xf32, #tpu.memory_space<vmem>>, vector<1x1x32xf32>
    %13 = vector.shape_cast %12 : vector<1x1x32xf32> to vector<1x32xf32>
    %c0_20 = arith.constant 0 : index
    %c0_21 = arith.constant 0 : index
    %c0_22 = arith.constant 0 : index
    %14 = vector.load %arg3[%c0_20, %c0_21, %c0_22] : memref<1x1x32xf32, #tpu.memory_space<vmem>>, vector<1x1x32xf32>
    %15 = vector.shape_cast %14 : vector<1x1x32xf32> to vector<1x32xf32>
    %c0_23 = arith.constant 0 : index
    %c0_24 = arith.constant 0 : index
    %16 = vector.load %arg7[%c0_23, %c0_24] : memref<1x32xf32, #tpu.memory_space<vmem>>, vector<1x32xf32>
    %c0_25 = arith.constant 0 : index
    %c0_26 = arith.constant 0 : index
    %17 = vector.load %arg8[%c0_25, %c0_26] : memref<1x32xf32, #tpu.memory_space<vmem>>, vector<1x32xf32>
    %c0_27 = arith.constant 0 : index
    %c0_28 = arith.constant 0 : index
    %18 = vector.load %arg10[%c0_27, %c0_28] : memref<1x32xf32, #tpu.memory_space<vmem>>, vector<1x32xf32>
    %c0_29 = arith.constant 0 : index
    %c0_30 = arith.constant 0 : index
    %19 = vector.load %arg11[%c0_29, %c0_30] : memref<1x32xf32, #tpu.memory_space<vmem>>, vector<1x32xf32>
    %c0_31 = arith.constant 0 : index
    %c0_32 = arith.constant 0 : index
    %20 = vector.load %arg12[%c0_31, %c0_32] : memref<1x32xf32, #tpu.memory_space<vmem>>, vector<1x32xf32>
    %c0_33 = arith.constant 0 : index
    %c0_34 = arith.constant 0 : index
    %21 = vector.load %arg14[%c0_33, %c0_34] : memref<1x32xf32, #tpu.memory_space<vmem>>, vector<1x32xf32>
    %cst_35 = arith.constant dense<0.000000e+00> : vector<32xf32>
    %22 = vector.multi_reduction <add>, %11, %cst_35 [0] : vector<64x32xf32> to vector<32xf32>
    %23 = vector.shape_cast %22 : vector<32xf32> to vector<1x32xf32>
    %cst_36 = arith.constant 1.562500e-02 : f32
    %24 = vector.broadcast %cst_36 : f32 to vector<1x32xf32>
    %25 = arith.mulf %23, %24 : vector<1x32xf32>
    %cst_37 = arith.constant dense<0.000000e+00> : vector<1x32xf32>
    %26 = tpu.matmul %25, %0, %cst_37 {dimension_numbers = #tpu.dot_dimension_numbers<[1], [0], [0], [1], [0, 0, 1, 1], [], []>} : vector<1x32xf32>, vector<32x32xf32>, vector<1x32xf32> -> vector<1x32xf32>
    %27 = vector.broadcast %26 : vector<1x32xf32> to vector<64x32xf32>
    %28 = arith.subf %11, %27 : vector<64x32xf32>
    %29 = arith.mulf %28, %28 : vector<64x32xf32>
    %cst_38 = arith.constant dense<0.000000e+00> : vector<32xf32>
    %30 = vector.multi_reduction <add>, %29, %cst_38 [0] : vector<64x32xf32> to vector<32xf32>
    %31 = vector.shape_cast %30 : vector<32xf32> to vector<1x32xf32>
    %cst_39 = arith.constant 1.562500e-02 : f32
    %32 = vector.broadcast %cst_39 : f32 to vector<1x32xf32>
    %33 = arith.mulf %31, %32 : vector<1x32xf32>
    %cst_40 = arith.constant dense<0.000000e+00> : vector<1x32xf32>
    %34 = tpu.matmul %33, %0, %cst_40 {dimension_numbers = #tpu.dot_dimension_numbers<[1], [0], [0], [1], [0, 0, 1, 1], [], []>} : vector<1x32xf32>, vector<32x32xf32>, vector<1x32xf32> -> vector<1x32xf32>
    %cst_41 = arith.constant 9.99999974E-6 : f32
    %35 = vector.broadcast %cst_41 : f32 to vector<1x32xf32>
    %36 = arith.addf %34, %35 : vector<1x32xf32>
    %37 = math.rsqrt %36 : vector<1x32xf32>
    %38 = vector.broadcast %37 : vector<1x32xf32> to vector<64x32xf32>
    %39 = arith.mulf %28, %38 : vector<64x32xf32>
    %40 = vector.broadcast %16 : vector<1x32xf32> to vector<64x32xf32>
    %41 = arith.mulf %39, %40 : vector<64x32xf32>
    %42 = vector.broadcast %17 : vector<1x32xf32> to vector<64x32xf32>
    %43 = arith.addf %41, %42 : vector<64x32xf32>
    %44 = arith.negf %43 : vector<64x32xf32>
    %45 = math.exp %44 : vector<64x32xf32>
    %cst_42 = arith.constant 1.000000e+00 : f32
    %46 = vector.broadcast %cst_42 : f32 to vector<64x32xf32>
    %47 = arith.addf %46, %45 : vector<64x32xf32>
    %48 = arith.divf %46, %47 : vector<64x32xf32>
    %49 = arith.mulf %43, %48 : vector<64x32xf32>
    %50 = vector.shape_cast %49 : vector<64x32xf32> to vector<8x8x32xf32>
    %c1_43 = arith.constant 1 : index
    %c1_44 = arith.constant 1 : index
    %c0_45 = arith.constant 0 : index
    %51 = vector.load %arg30[%c1_43, %c1_44, %c0_45] : memref<10x10x32xf32, #tpu.memory_space<vmem>>, vector<8x8x32xf32>
    tpu.vector_store %arg30[%c1_43, %c1_44, %c0_45], %50 {strides = array<i32>} : memref<10x10x32xf32, #tpu.memory_space<vmem>>, vector<8x8x32xf32>,
    %cst_46 = arith.constant 0.000000e+00 : f32
    %52 = vector.broadcast %cst_46 : f32 to vector<64x32xf32>
    %c0_47 = arith.constant 0 : index
    %c0_48 = arith.constant 0 : index
    %c0_49 = arith.constant 0 : index
    %53 = vector.load %arg30[%c0_47, %c0_48, %c0_49] : memref<10x10x32xf32, #tpu.memory_space<vmem>>, vector<8x8x32xf32>
    %54 = vector.shape_cast %53 : vector<8x8x32xf32> to vector<64x32xf32>
    %c0_50 = arith.constant 0 : index
    %c0_51 = arith.constant 0 : index
    %c0_52 = arith.constant 0 : index
    %55 = vector.load %arg9[%c0_50, %c0_51, %c0_52] : memref<9x32x32xbf16, #tpu.memory_space<vmem>>, vector<1x32x32xbf16>
    %56 = vector.shape_cast %55 : vector<1x32x32xbf16> to vector<32x32xbf16>
    %57 = arith.truncf %54 : vector<64x32xf32> to vector<64x32xbf16>
    %cst_53 = arith.constant dense<0.000000e+00> : vector<64x32xf32>
    %58 = tpu.matmul %57, %56, %cst_53 {dimension_numbers = #tpu.dot_dimension_numbers<[1], [0], [0], [1], [0, 0, 1, 1], [], []>} : vector<64x32xbf16>, vector<32x32xbf16>, vector<64x32xf32> -> vector<64x32xf32>
    %59 = arith.addf %52, %58 : vector<64x32xf32>
    %c0_54 = arith.constant 0 : index
    %c1_55 = arith.constant 1 : index
    %c0_56 = arith.constant 0 : index
    %60 = vector.load %arg30[%c0_54, %c1_55, %c0_56] : memref<10x10x32xf32, #tpu.memory_space<vmem>>, vector<8x8x32xf32>
    %61 = vector.shape_cast %60 : vector<8x8x32xf32> to vector<64x32xf32>
    %c1_57 = arith.constant 1 : index
    %c0_58 = arith.constant 0 : index
    %c0_59 = arith.constant 0 : index
    %62 = vector.load %arg9[%c1_57, %c0_58, %c0_59] : memref<9x32x32xbf16, #tpu.memory_space<vmem>>, vector<1x32x32xbf16>
    %63 = vector.shape_cast %62 : vector<1x32x32xbf16> to vector<32x32xbf16>
    %64 = arith.truncf %61 : vector<64x32xf32> to vector<64x32xbf16>
    %cst_60 = arith.constant dense<0.000000e+00> : vector<64x32xf32>
    %65 = tpu.matmul %64, %63, %cst_60 {dimension_numbers = #tpu.dot_dimension_numbers<[1], [0], [0], [1], [0, 0, 1, 1], [], []>} : vector<64x32xbf16>, vector<32x32xbf16>, vector<64x32xf32> -> vector<64x32xf32>
    %66 = arith.addf %59, %65 : vector<64x32xf32>
    %c0_61 = arith.constant 0 : index
    %c2 = arith.constant 2 : index
    %c0_62 = arith.constant 0 : index
    %67 = vector.load %arg30[%c0_61, %c2, %c0_62] : memref<10x10x32xf32, #tpu.memory_space<vmem>>, vector<8x8x32xf32>
    %68 = vector.shape_cast %67 : vector<8x8x32xf32> to vector<64x32xf32>
    %c2_63 = arith.constant 2 : index
    %c0_64 = arith.constant 0 : index
    %c0_65 = arith.constant 0 : index
    %69 = vector.load %arg9[%c2_63, %c0_64, %c0_65] : memref<9x32x32xbf16, #tpu.memory_space<vmem>>, vector<1x32x32xbf16>
    %70 = vector.shape_cast %69 : vector<1x32x32xbf16> to vector<32x32xbf16>
    %71 = arith.truncf %68 : vector<64x32xf32> to vector<64x32xbf16>
    %cst_66 = arith.constant dense<0.000000e+00> : vector<64x32xf32>
    %72 = tpu.matmul %71, %70, %cst_66 {dimension_numbers = #tpu.dot_dimension_numbers<[1], [0], [0], [1], [0, 0, 1, 1], [], []>} : vector<64x32xbf16>, vector<32x32xbf16>, vector<64x32xf32> -> vector<64x32xf32>
    %73 = arith.addf %66, %72 : vector<64x32xf32>
    %c1_67 = arith.constant 1 : index
    %c0_68 = arith.constant 0 : index
    %c0_69 = arith.constant 0 : index
    %74 = vector.load %arg30[%c1_67, %c0_68, %c0_69] : memref<10x10x32xf32, #tpu.memory_space<vmem>>, vector<8x8x32xf32>
    %75 = vector.shape_cast %74 : vector<8x8x32xf32> to vector<64x32xf32>
    %c3 = arith.constant 3 : index
    %c0_70 = arith.constant 0 : index
    %c0_71 = arith.constant 0 : index
    %76 = vector.load %arg9[%c3, %c0_70, %c0_71] : memref<9x32x32xbf16, #tpu.memory_space<vmem>>, vector<1x32x32xbf16>
    %77 = vector.shape_cast %76 : vector<1x32x32xbf16> to vector<32x32xbf16>
    %78 = arith.truncf %75 : vector<64x32xf32> to vector<64x32xbf16>
    %cst_72 = arith.constant dense<0.000000e+00> : vector<64x32xf32>
    %79 = tpu.matmul %78, %77, %cst_72 {dimension_numbers = #tpu.dot_dimension_numbers<[1], [0], [0], [1], [0, 0, 1, 1], [], []>} : vector<64x32xbf16>, vector<32x32xbf16>, vector<64x32xf32> -> vector<64x32xf32>
    %80 = arith.addf %73, %79 : vector<64x32xf32>
    %c1_73 = arith.constant 1 : index
    %c1_74 = arith.constant 1 : index
    %c0_75 = arith.constant 0 : index
    %81 = vector.load %arg30[%c1_73, %c1_74, %c0_75] : memref<10x10x32xf32, #tpu.memory_space<vmem>>, vector<8x8x32xf32>
    %82 = vector.shape_cast %81 : vector<8x8x32xf32> to vector<64x32xf32>
    %c4 = arith.constant 4 : index
    %c0_76 = arith.constant 0 : index
    %c0_77 = arith.constant 0 : index
    %83 = vector.load %arg9[%c4, %c0_76, %c0_77] : memref<9x32x32xbf16, #tpu.memory_space<vmem>>, vector<1x32x32xbf16>
    %84 = vector.shape_cast %83 : vector<1x32x32xbf16> to vector<32x32xbf16>
    %85 = arith.truncf %82 : vector<64x32xf32> to vector<64x32xbf16>
    %cst_78 = arith.constant dense<0.000000e+00> : vector<64x32xf32>
    %86 = tpu.matmul %85, %84, %cst_78 {dimension_numbers = #tpu.dot_dimension_numbers<[1], [0], [0], [1], [0, 0, 1, 1], [], []>} : vector<64x32xbf16>, vector<32x32xbf16>, vector<64x32xf32> -> vector<64x32xf32>
    %87 = arith.addf %80, %86 : vector<64x32xf32>
    %c1_79 = arith.constant 1 : index
    %c2_80 = arith.constant 2 : index
    %c0_81 = arith.constant 0 : index
    %88 = vector.load %arg30[%c1_79, %c2_80, %c0_81] : memref<10x10x32xf32, #tpu.memory_space<vmem>>, vector<8x8x32xf32>
    %89 = vector.shape_cast %88 : vector<8x8x32xf32> to vector<64x32xf32>
    %c5 = arith.constant 5 : index
    %c0_82 = arith.constant 0 : index
    %c0_83 = arith.constant 0 : index
    %90 = vector.load %arg9[%c5, %c0_82, %c0_83] : memref<9x32x32xbf16, #tpu.memory_space<vmem>>, vector<1x32x32xbf16>
    %91 = vector.shape_cast %90 : vector<1x32x32xbf16> to vector<32x32xbf16>
    %92 = arith.truncf %89 : vector<64x32xf32> to vector<64x32xbf16>
    %cst_84 = arith.constant dense<0.000000e+00> : vector<64x32xf32>
    %93 = tpu.matmul %92, %91, %cst_84 {dimension_numbers = #tpu.dot_dimension_numbers<[1], [0], [0], [1], [0, 0, 1, 1], [], []>} : vector<64x32xbf16>, vector<32x32xbf16>, vector<64x32xf32> -> vector<64x32xf32>
    %94 = arith.addf %87, %93 : vector<64x32xf32>
    %c2_85 = arith.constant 2 : index
    %c0_86 = arith.constant 0 : index
    %c0_87 = arith.constant 0 : index
    %95 = vector.load %arg30[%c2_85, %c0_86, %c0_87] : memref<10x10x32xf32, #tpu.memory_space<vmem>>, vector<8x8x32xf32>
    %96 = vector.shape_cast %95 : vector<8x8x32xf32> to vector<64x32xf32>
    %c6 = arith.constant 6 : index
    %c0_88 = arith.constant 0 : index
    %c0_89 = arith.constant 0 : index
    %97 = vector.load %arg9[%c6, %c0_88, %c0_89] : memref<9x32x32xbf16, #tpu.memory_space<vmem>>, vector<1x32x32xbf16>
    %98 = vector.shape_cast %97 : vector<1x32x32xbf16> to vector<32x32xbf16>
    %99 = arith.truncf %96 : vector<64x32xf32> to vector<64x32xbf16>
    %cst_90 = arith.constant dense<0.000000e+00> : vector<64x32xf32>
    %100 = tpu.matmul %99, %98, %cst_90 {dimension_numbers = #tpu.dot_dimension_numbers<[1], [0], [0], [1], [0, 0, 1, 1], [], []>} : vector<64x32xbf16>, vector<32x32xbf16>, vector<64x32xf32> -> vector<64x32xf32>
    %101 = arith.addf %94, %100 : vector<64x32xf32>
    %c2_91 = arith.constant 2 : index
    %c1_92 = arith.constant 1 : index
    %c0_93 = arith.constant 0 : index
    %102 = vector.load %arg30[%c2_91, %c1_92, %c0_93] : memref<10x10x32xf32, #tpu.memory_space<vmem>>, vector<8x8x32xf32>
    %103 = vector.shape_cast %102 : vector<8x8x32xf32> to vector<64x32xf32>
    %c7 = arith.constant 7 : index
    %c0_94 = arith.constant 0 : index
    %c0_95 = arith.constant 0 : index
    %104 = vector.load %arg9[%c7, %c0_94, %c0_95] : memref<9x32x32xbf16, #tpu.memory_space<vmem>>, vector<1x32x32xbf16>
    %105 = vector.shape_cast %104 : vector<1x32x32xbf16> to vector<32x32xbf16>
    %106 = arith.truncf %103 : vector<64x32xf32> to vector<64x32xbf16>
    %cst_96 = arith.constant dense<0.000000e+00> : vector<64x32xf32>
    %107 = tpu.matmul %106, %105, %cst_96 {dimension_numbers = #tpu.dot_dimension_numbers<[1], [0], [0], [1], [0, 0, 1, 1], [], []>} : vector<64x32xbf16>, vector<32x32xbf16>, vector<64x32xf32> -> vector<64x32xf32>
    %108 = arith.addf %101, %107 : vector<64x32xf32>
    %c2_97 = arith.constant 2 : index
    %c2_98 = arith.constant 2 : index
    %c0_99 = arith.constant 0 : index
    %109 = vector.load %arg30[%c2_97, %c2_98, %c0_99] : memref<10x10x32xf32, #tpu.memory_space<vmem>>, vector<8x8x32xf32>
    %110 = vector.shape_cast %109 : vector<8x8x32xf32> to vector<64x32xf32>
    %c8 = arith.constant 8 : index
    %c0_100 = arith.constant 0 : index
    %c0_101 = arith.constant 0 : index
    %111 = vector.load %arg9[%c8, %c0_100, %c0_101] : memref<9x32x32xbf16, #tpu.memory_space<vmem>>, vector<1x32x32xbf16>
    %112 = vector.shape_cast %111 : vector<1x32x32xbf16> to vector<32x32xbf16>
    %113 = arith.truncf %110 : vector<64x32xf32> to vector<64x32xbf16>
    %cst_102 = arith.constant dense<0.000000e+00> : vector<64x32xf32>
    %114 = tpu.matmul %113, %112, %cst_102 {dimension_numbers = #tpu.dot_dimension_numbers<[1], [0], [0], [1], [0, 0, 1, 1], [], []>} : vector<64x32xbf16>, vector<32x32xbf16>, vector<64x32xf32> -> vector<64x32xf32>
    %115 = arith.addf %108, %114 : vector<64x32xf32>
    %116 = vector.broadcast %18 : vector<1x32xf32> to vector<64x32xf32>
    %117 = arith.addf %115, %116 : vector<64x32xf32>
    %cst_103 = arith.constant dense<0.000000e+00> : vector<32xf32>
    %118 = vector.multi_reduction <add>, %117, %cst_103 [0] : vector<64x32xf32> to vector<32xf32>
    %119 = vector.shape_cast %118 : vector<32xf32> to vector<1x32xf32>
    %cst_104 = arith.constant 1.562500e-02 : f32
    %120 = vector.broadcast %cst_104 : f32 to vector<1x32xf32>
    %121 = arith.mulf %119, %120 : vector<1x32xf32>
    %cst_105 = arith.constant dense<0.000000e+00> : vector<1x32xf32>
    %122 = tpu.matmul %121, %0, %cst_105 {dimension_numbers = #tpu.dot_dimension_numbers<[1], [0], [0], [1], [0, 0, 1, 1], [], []>} : vector<1x32xf32>, vector<32x32xf32>, vector<1x32xf32> -> vector<1x32xf32>
    %123 = vector.broadcast %122 : vector<1x32xf32> to vector<64x32xf32>
    %124 = arith.subf %117, %123 : vector<64x32xf32>
    %125 = arith.mulf %124, %124 : vector<64x32xf32>
    %cst_106 = arith.constant dense<0.000000e+00> : vector<32xf32>
    %126 = vector.multi_reduction <add>, %125, %cst_106 [0] : vector<64x32xf32> to vector<32xf32>
    %127 = vector.shape_cast %126 : vector<32xf32> to vector<1x32xf32>
    %cst_107 = arith.constant 1.562500e-02 : f32
    %128 = vector.broadcast %cst_107 : f32 to vector<1x32xf32>
    %129 = arith.mulf %127, %128 : vector<1x32xf32>
    %cst_108 = arith.constant dense<0.000000e+00> : vector<1x32xf32>
    %130 = tpu.matmul %129, %0, %cst_108 {dimension_numbers = #tpu.dot_dimension_numbers<[1], [0], [0], [1], [0, 0, 1, 1], [], []>} : vector<1x32xf32>, vector<32x32xf32>, vector<1x32xf32> -> vector<1x32xf32>
    %cst_109 = arith.constant 9.99999974E-6 : f32
    %131 = vector.broadcast %cst_109 : f32 to vector<1x32xf32>
    %132 = arith.addf %130, %131 : vector<1x32xf32>
    %133 = math.rsqrt %132 : vector<1x32xf32>
    %134 = vector.broadcast %133 : vector<1x32xf32> to vector<64x32xf32>
    %135 = arith.mulf %124, %134 : vector<64x32xf32>
    %136 = vector.broadcast %19 : vector<1x32xf32> to vector<64x32xf32>
    %137 = arith.mulf %135, %136 : vector<64x32xf32>
    %138 = vector.broadcast %20 : vector<1x32xf32> to vector<64x32xf32>
    %139 = arith.addf %137, %138 : vector<64x32xf32>
    %140 = vector.broadcast %13 : vector<1x32xf32> to vector<64x32xf32>
    %141 = arith.mulf %140, %139 : vector<64x32xf32>
    %142 = vector.broadcast %15 : vector<1x32xf32> to vector<64x32xf32>
    %143 = arith.addf %141, %142 : vector<64x32xf32>
    %144 = arith.negf %143 : vector<64x32xf32>
    %145 = math.exp %144 : vector<64x32xf32>
    %cst_110 = arith.constant 1.000000e+00 : f32
    %146 = vector.broadcast %cst_110 : f32 to vector<64x32xf32>
    %147 = arith.addf %146, %145 : vector<64x32xf32>
    %148 = arith.divf %146, %147 : vector<64x32xf32>
    %149 = arith.mulf %143, %148 : vector<64x32xf32>
    %150 = vector.shape_cast %149 : vector<64x32xf32> to vector<8x8x32xf32>
    %c1_111 = arith.constant 1 : index
    %c1_112 = arith.constant 1 : index
    %c0_113 = arith.constant 0 : index
    %151 = vector.load %arg30[%c1_111, %c1_112, %c0_113] : memref<10x10x32xf32, #tpu.memory_space<vmem>>, vector<8x8x32xf32>
    tpu.vector_store %arg30[%c1_111, %c1_112, %c0_113], %150 {strides = array<i32>} : memref<10x10x32xf32, #tpu.memory_space<vmem>>, vector<8x8x32xf32>,
    %cst_114 = arith.constant 0.000000e+00 : f32
    %152 = vector.broadcast %cst_114 : f32 to vector<64x32xf32>
    %c0_115 = arith.constant 0 : index
    %c0_116 = arith.constant 0 : index
    %c0_117 = arith.constant 0 : index
    %153 = vector.load %arg30[%c0_115, %c0_116, %c0_117] : memref<10x10x32xf32, #tpu.memory_space<vmem>>, vector<8x8x32xf32>
    %154 = vector.shape_cast %153 : vector<8x8x32xf32> to vector<64x32xf32>
    %c0_118 = arith.constant 0 : index
    %c0_119 = arith.constant 0 : index
    %c0_120 = arith.constant 0 : index
    %155 = vector.load %arg13[%c0_118, %c0_119, %c0_120] : memref<9x32x32xbf16, #tpu.memory_space<vmem>>, vector<1x32x32xbf16>
    %156 = vector.shape_cast %155 : vector<1x32x32xbf16> to vector<32x32xbf16>
    %157 = arith.truncf %154 : vector<64x32xf32> to vector<64x32xbf16>
    %cst_121 = arith.constant dense<0.000000e+00> : vector<64x32xf32>
    %158 = tpu.matmul %157, %156, %cst_121 {dimension_numbers = #tpu.dot_dimension_numbers<[1], [0], [0], [1], [0, 0, 1, 1], [], []>} : vector<64x32xbf16>, vector<32x32xbf16>, vector<64x32xf32> -> vector<64x32xf32>
    %159 = arith.addf %152, %158 : vector<64x32xf32>
    %c0_122 = arith.constant 0 : index
    %c1_123 = arith.constant 1 : index
    %c0_124 = arith.constant 0 : index
    %160 = vector.load %arg30[%c0_122, %c1_123, %c0_124] : memref<10x10x32xf32, #tpu.memory_space<vmem>>, vector<8x8x32xf32>
    %161 = vector.shape_cast %160 : vector<8x8x32xf32> to vector<64x32xf32>
    %c1_125 = arith.constant 1 : index
    %c0_126 = arith.constant 0 : index
    %c0_127 = arith.constant 0 : index
    %162 = vector.load %arg13[%c1_125, %c0_126, %c0_127] : memref<9x32x32xbf16, #tpu.memory_space<vmem>>, vector<1x32x32xbf16>
    %163 = vector.shape_cast %162 : vector<1x32x32xbf16> to vector<32x32xbf16>
    %164 = arith.truncf %161 : vector<64x32xf32> to vector<64x32xbf16>
    %cst_128 = arith.constant dense<0.000000e+00> : vector<64x32xf32>
    %165 = tpu.matmul %164, %163, %cst_128 {dimension_numbers = #tpu.dot_dimension_numbers<[1], [0], [0], [1], [0, 0, 1, 1], [], []>} : vector<64x32xbf16>, vector<32x32xbf16>, vector<64x32xf32> -> vector<64x32xf32>
    %166 = arith.addf %159, %165 : vector<64x32xf32>
    %c0_129 = arith.constant 0 : index
    %c2_130 = arith.constant 2 : index
    %c0_131 = arith.constant 0 : index
    %167 = vector.load %arg30[%c0_129, %c2_130, %c0_131] : memref<10x10x32xf32, #tpu.memory_space<vmem>>, vector<8x8x32xf32>
    %168 = vector.shape_cast %167 : vector<8x8x32xf32> to vector<64x32xf32>
    %c2_132 = arith.constant 2 : index
    %c0_133 = arith.constant 0 : index
    %c0_134 = arith.constant 0 : index
    %169 = vector.load %arg13[%c2_132, %c0_133, %c0_134] : memref<9x32x32xbf16, #tpu.memory_space<vmem>>, vector<1x32x32xbf16>
    %170 = vector.shape_cast %169 : vector<1x32x32xbf16> to vector<32x32xbf16>
    %171 = arith.truncf %168 : vector<64x32xf32> to vector<64x32xbf16>
    %cst_135 = arith.constant dense<0.000000e+00> : vector<64x32xf32>
    %172 = tpu.matmul %171, %170, %cst_135 {dimension_numbers = #tpu.dot_dimension_numbers<[1], [0], [0], [1], [0, 0, 1, 1], [], []>} : vector<64x32xbf16>, vector<32x32xbf16>, vector<64x32xf32> -> vector<64x32xf32>
    %173 = arith.addf %166, %172 : vector<64x32xf32>
    %c1_136 = arith.constant 1 : index
    %c0_137 = arith.constant 0 : index
    %c0_138 = arith.constant 0 : index
    %174 = vector.load %arg30[%c1_136, %c0_137, %c0_138] : memref<10x10x32xf32, #tpu.memory_space<vmem>>, vector<8x8x32xf32>
    %175 = vector.shape_cast %174 : vector<8x8x32xf32> to vector<64x32xf32>
    %c3_139 = arith.constant 3 : index
    %c0_140 = arith.constant 0 : index
    %c0_141 = arith.constant 0 : index
    %176 = vector.load %arg13[%c3_139, %c0_140, %c0_141] : memref<9x32x32xbf16, #tpu.memory_space<vmem>>, vector<1x32x32xbf16>
    %177 = vector.shape_cast %176 : vector<1x32x32xbf16> to vector<32x32xbf16>
    %178 = arith.truncf %175 : vector<64x32xf32> to vector<64x32xbf16>
    %cst_142 = arith.constant dense<0.000000e+00> : vector<64x32xf32>
    %179 = tpu.matmul %178, %177, %cst_142 {dimension_numbers = #tpu.dot_dimension_numbers<[1], [0], [0], [1], [0, 0, 1, 1], [], []>} : vector<64x32xbf16>, vector<32x32xbf16>, vector<64x32xf32> -> vector<64x32xf32>
    %180 = arith.addf %173, %179 : vector<64x32xf32>
    %c1_143 = arith.constant 1 : index
    %c1_144 = arith.constant 1 : index
    %c0_145 = arith.constant 0 : index
    %181 = vector.load %arg30[%c1_143, %c1_144, %c0_145] : memref<10x10x32xf32, #tpu.memory_space<vmem>>, vector<8x8x32xf32>
    %182 = vector.shape_cast %181 : vector<8x8x32xf32> to vector<64x32xf32>
    %c4_146 = arith.constant 4 : index
    %c0_147 = arith.constant 0 : index
    %c0_148 = arith.constant 0 : index
    %183 = vector.load %arg13[%c4_146, %c0_147, %c0_148] : memref<9x32x32xbf16, #tpu.memory_space<vmem>>, vector<1x32x32xbf16>
    %184 = vector.shape_cast %183 : vector<1x32x32xbf16> to vector<32x32xbf16>
    %185 = arith.truncf %182 : vector<64x32xf32> to vector<64x32xbf16>
    %cst_149 = arith.constant dense<0.000000e+00> : vector<64x32xf32>
    %186 = tpu.matmul %185, %184, %cst_149 {dimension_numbers = #tpu.dot_dimension_numbers<[1], [0], [0], [1], [0, 0, 1, 1], [], []>} : vector<64x32xbf16>, vector<32x32xbf16>, vector<64x32xf32> -> vector<64x32xf32>
    %187 = arith.addf %180, %186 : vector<64x32xf32>
    %c1_150 = arith.constant 1 : index
    %c2_151 = arith.constant 2 : index
    %c0_152 = arith.constant 0 : index
    %188 = vector.load %arg30[%c1_150, %c2_151, %c0_152] : memref<10x10x32xf32, #tpu.memory_space<vmem>>, vector<8x8x32xf32>
    %189 = vector.shape_cast %188 : vector<8x8x32xf32> to vector<64x32xf32>
    %c5_153 = arith.constant 5 : index
    %c0_154 = arith.constant 0 : index
    %c0_155 = arith.constant 0 : index
    %190 = vector.load %arg13[%c5_153, %c0_154, %c0_155] : memref<9x32x32xbf16, #tpu.memory_space<vmem>>, vector<1x32x32xbf16>
    %191 = vector.shape_cast %190 : vector<1x32x32xbf16> to vector<32x32xbf16>
    %192 = arith.truncf %189 : vector<64x32xf32> to vector<64x32xbf16>
    %cst_156 = arith.constant dense<0.000000e+00> : vector<64x32xf32>
    %193 = tpu.matmul %192, %191, %cst_156 {dimension_numbers = #tpu.dot_dimension_numbers<[1], [0], [0], [1], [0, 0, 1, 1], [], []>} : vector<64x32xbf16>, vector<32x32xbf16>, vector<64x32xf32> -> vector<64x32xf32>
    %194 = arith.addf %187, %193 : vector<64x32xf32>
    %c2_157 = arith.constant 2 : index
    %c0_158 = arith.constant 0 : index
    %c0_159 = arith.constant 0 : index
    %195 = vector.load %arg30[%c2_157, %c0_158, %c0_159] : memref<10x10x32xf32, #tpu.memory_space<vmem>>, vector<8x8x32xf32>
    %196 = vector.shape_cast %195 : vector<8x8x32xf32> to vector<64x32xf32>
    %c6_160 = arith.constant 6 : index
    %c0_161 = arith.constant 0 : index
    %c0_162 = arith.constant 0 : index
    %197 = vector.load %arg13[%c6_160, %c0_161, %c0_162] : memref<9x32x32xbf16, #tpu.memory_space<vmem>>, vector<1x32x32xbf16>
    %198 = vector.shape_cast %197 : vector<1x32x32xbf16> to vector<32x32xbf16>
    %199 = arith.truncf %196 : vector<64x32xf32> to vector<64x32xbf16>
    %cst_163 = arith.constant dense<0.000000e+00> : vector<64x32xf32>
    %200 = tpu.matmul %199, %198, %cst_163 {dimension_numbers = #tpu.dot_dimension_numbers<[1], [0], [0], [1], [0, 0, 1, 1], [], []>} : vector<64x32xbf16>, vector<32x32xbf16>, vector<64x32xf32> -> vector<64x32xf32>
    %201 = arith.addf %194, %200 : vector<64x32xf32>
    %c2_164 = arith.constant 2 : index
    %c1_165 = arith.constant 1 : index
    %c0_166 = arith.constant 0 : index
    %202 = vector.load %arg30[%c2_164, %c1_165, %c0_166] : memref<10x10x32xf32, #tpu.memory_space<vmem>>, vector<8x8x32xf32>
    %203 = vector.shape_cast %202 : vector<8x8x32xf32> to vector<64x32xf32>
    %c7_167 = arith.constant 7 : index
    %c0_168 = arith.constant 0 : index
    %c0_169 = arith.constant 0 : index
    %204 = vector.load %arg13[%c7_167, %c0_168, %c0_169] : memref<9x32x32xbf16, #tpu.memory_space<vmem>>, vector<1x32x32xbf16>
    %205 = vector.shape_cast %204 : vector<1x32x32xbf16> to vector<32x32xbf16>
    %206 = arith.truncf %203 : vector<64x32xf32> to vector<64x32xbf16>
    %cst_170 = arith.constant dense<0.000000e+00> : vector<64x32xf32>
    %207 = tpu.matmul %206, %205, %cst_170 {dimension_numbers = #tpu.dot_dimension_numbers<[1], [0], [0], [1], [0, 0, 1, 1], [], []>} : vector<64x32xbf16>, vector<32x32xbf16>, vector<64x32xf32> -> vector<64x32xf32>
    %208 = arith.addf %201, %207 : vector<64x32xf32>
    %c2_171 = arith.constant 2 : index
    %c2_172 = arith.constant 2 : index
    %c0_173 = arith.constant 0 : index
    %209 = vector.load %arg30[%c2_171, %c2_172, %c0_173] : memref<10x10x32xf32, #tpu.memory_space<vmem>>, vector<8x8x32xf32>
    %210 = vector.shape_cast %209 : vector<8x8x32xf32> to vector<64x32xf32>
    %c8_174 = arith.constant 8 : index
    %c0_175 = arith.constant 0 : index
    %c0_176 = arith.constant 0 : index
    %211 = vector.load %arg13[%c8_174, %c0_175, %c0_176] : memref<9x32x32xbf16, #tpu.memory_space<vmem>>, vector<1x32x32xbf16>
    %212 = vector.shape_cast %211 : vector<1x32x32xbf16> to vector<32x32xbf16>
    %213 = arith.truncf %210 : vector<64x32xf32> to vector<64x32xbf16>
    %cst_177 = arith.constant dense<0.000000e+00> : vector<64x32xf32>
    %214 = tpu.matmul %213, %212, %cst_177 {dimension_numbers = #tpu.dot_dimension_numbers<[1], [0], [0], [1], [0, 0, 1, 1], [], []>} : vector<64x32xbf16>, vector<32x32xbf16>, vector<64x32xf32> -> vector<64x32xf32>
    %215 = arith.addf %208, %214 : vector<64x32xf32>
    %216 = vector.broadcast %21 : vector<1x32xf32> to vector<64x32xf32>
    %217 = arith.addf %215, %216 : vector<64x32xf32>
    %218 = arith.addf %217, %11 : vector<64x32xf32>
    %c0_178 = arith.constant 0 : index
    %c0_179 = arith.constant 0 : index
    %219 = vector.load %arg15[%c0_178, %c0_179] : memref<1x32xf32, #tpu.memory_space<vmem>>, vector<1x32xf32>
    %c0_180 = arith.constant 0 : index
    %c0_181 = arith.constant 0 : index
    %220 = vector.load %arg16[%c0_180, %c0_181] : memref<1x32xf32, #tpu.memory_space<vmem>>, vector<1x32xf32>
    %c0_182 = arith.constant 0 : index
    %c0_183 = arith.constant 0 : index
    %221 = vector.load %arg20[%c0_182, %c0_183] : memref<1x32xf32, #tpu.memory_space<vmem>>, vector<1x32xf32>
    %cst_184 = arith.constant dense<0.000000e+00> : vector<32xf32>
    %222 = vector.multi_reduction <add>, %218, %cst_184 [0] : vector<64x32xf32> to vector<32xf32>
    %223 = vector.shape_cast %222 : vector<32xf32> to vector<1x32xf32>
    %cst_185 = arith.constant 1.562500e-02 : f32
    %224 = vector.broadcast %cst_185 : f32 to vector<1x32xf32>
    %225 = arith.mulf %223, %224 : vector<1x32xf32>
    %cst_186 = arith.constant dense<0.000000e+00> : vector<1x32xf32>
    %226 = tpu.matmul %225, %0, %cst_186 {dimension_numbers = #tpu.dot_dimension_numbers<[1], [0], [0], [1], [0, 0, 1, 1], [], []>} : vector<1x32xf32>, vector<32x32xf32>, vector<1x32xf32> -> vector<1x32xf32>
    %227 = vector.broadcast %226 : vector<1x32xf32> to vector<64x32xf32>
    %228 = arith.subf %218, %227 : vector<64x32xf32>
    %229 = arith.mulf %228, %228 : vector<64x32xf32>
    %cst_187 = arith.constant dense<0.000000e+00> : vector<32xf32>
    %230 = vector.multi_reduction <add>, %229, %cst_187 [0] : vector<64x32xf32> to vector<32xf32>
    %231 = vector.shape_cast %230 : vector<32xf32> to vector<1x32xf32>
    %cst_188 = arith.constant 1.562500e-02 : f32
    %232 = vector.broadcast %cst_188 : f32 to vector<1x32xf32>
    %233 = arith.mulf %231, %232 : vector<1x32xf32>
    %cst_189 = arith.constant dense<0.000000e+00> : vector<1x32xf32>
    %234 = tpu.matmul %233, %0, %cst_189 {dimension_numbers = #tpu.dot_dimension_numbers<[1], [0], [0], [1], [0, 0, 1, 1], [], []>} : vector<1x32xf32>, vector<32x32xf32>, vector<1x32xf32> -> vector<1x32xf32>
    %cst_190 = arith.constant 9.99999974E-6 : f32
    %235 = vector.broadcast %cst_190 : f32 to vector<1x32xf32>
    %236 = arith.addf %234, %235 : vector<1x32xf32>
    %237 = math.rsqrt %236 : vector<1x32xf32>
    %238 = vector.broadcast %237 : vector<1x32xf32> to vector<64x32xf32>
    %239 = arith.mulf %228, %238 : vector<64x32xf32>
    %240 = vector.broadcast %219 : vector<1x32xf32> to vector<64x32xf32>
    %241 = arith.mulf %239, %240 : vector<64x32xf32>
    %242 = vector.broadcast %220 : vector<1x32xf32> to vector<64x32xf32>
    %243 = arith.addf %241, %242 : vector<64x32xf32>
    %244 = arith.truncf %243 : vector<64x32xf32> to vector<64x32xbf16>
    %cst_191 = arith.constant 0.000000e+00 : f32
    %245 = vector.broadcast %cst_191 : f32 to vector<64x32xf32>
    %c0_192 = arith.constant 0 : index
    %c0_193 = arith.constant 0 : index
    %246 = vector.load %arg31[%c0_192, %c0_193] : memref<64x32xf32, #tpu.memory_space<vmem>>, vector<64x32xf32>
    tpu.vector_store %arg31[%c0_192, %c0_193], %245 {strides = array<i32>} : memref<64x32xf32, #tpu.memory_space<vmem>>, vector<64x32xf32>,
    %c0_i32 = arith.constant 0 : i32
    %c2_i32 = arith.constant 2 : i32
    %247 = arith.addi %c0_i32, %c2_i32 : i32
    %c1_i32 = arith.constant 1 : i32
    scf.for %arg32 = %c0_i32 to %247 step %c1_i32  : i32 {
      %463 = arith.index_cast %arg32 : i32 to index
      %c0_368 = arith.constant 0 : index
      %c0_369 = arith.constant 0 : index
      %464 = vector.load %arg17[%463, %c0_368, %c0_369] : memref<2x32x48xbf16, #tpu.memory_space<vmem>>, vector<1x32x48xbf16>
      %465 = vector.shape_cast %464 : vector<1x32x48xbf16> to vector<32x48xbf16>
      %cst_370 = arith.constant dense<0.000000e+00> : vector<64x48xf32>
      %466 = tpu.matmul %244, %465, %cst_370 {dimension_numbers = #tpu.dot_dimension_numbers<[1], [0], [0], [1], [0, 0, 1, 1], [], []>} : vector<64x32xbf16>, vector<32x48xbf16>, vector<64x48xf32> -> vector<64x48xf32>
      %467 = arith.index_cast %arg32 : i32 to index
      %c0_371 = arith.constant 0 : index
      %c0_372 = arith.constant 0 : index
      %468 = vector.load %arg18[%467, %c0_371, %c0_372] : memref<2x1x48xf32, #tpu.memory_space<vmem>>, vector<1x1x48xf32>
      %469 = vector.shape_cast %468 : vector<1x1x48xf32> to vector<1x48xf32>
      %470 = vector.broadcast %469 : vector<1x48xf32> to vector<64x48xf32>
      %471 = arith.addf %466, %470 : vector<64x48xf32>
      %472 = vector.extract_strided_slice %471 {offsets = [0, 0], sizes = [64, 16], strides = [1, 1]} : vector<64x48xf32> to vector<64x16xf32>
      %473 = vector.extract_strided_slice %471 {offsets = [0, 16], sizes = [64, 16], strides = [1, 1]} : vector<64x48xf32> to vector<64x16xf32>
      %474 = vector.extract_strided_slice %471 {offsets = [0, 32], sizes = [64, 16], strides = [1, 1]} : vector<64x48xf32> to vector<64x16xf32>
      %475 = arith.truncf %472 : vector<64x16xf32> to vector<64x16xbf16>
      %476 = arith.truncf %473 : vector<64x16xf32> to vector<64x16xbf16>
      %cst_373 = arith.constant dense<0.000000e+00> : vector<64x64xf32>
      %477 = tpu.matmul %475, %476, %cst_373 {dimension_numbers = #tpu.dot_dimension_numbers<[1], [1], [0], [0], [0, 0, 1, 0], [], []>} : vector<64x16xbf16>, vector<64x16xbf16>, vector<64x64xf32> -> vector<64x64xf32>
      %cst_374 = arith.constant 2.500000e-01 : f32
      %478 = vector.broadcast %cst_374 : f32 to vector<64x64xf32>
      %479 = arith.mulf %477, %478 : vector<64x64xf32>
      %cst_375 = arith.constant dense<0xFF800000> : vector<64xf32>
      %480 = vector.multi_reduction <maximumf>, %479, %cst_375 [1] : vector<64x64xf32> to vector<64xf32>
      %481 = vector.shape_cast %480 : vector<64xf32> to vector<64x1xf32>
      %482 = vector.broadcast %481 : vector<64x1xf32> to vector<64x64xf32>
      %483 = arith.subf %479, %482 : vector<64x64xf32>
      %484 = math.exp %483 : vector<64x64xf32>
      %cst_376 = arith.constant dense<0.000000e+00> : vector<64xf32>
      %485 = vector.multi_reduction <add>, %484, %cst_376 [1] : vector<64x64xf32> to vector<64xf32>
      %486 = vector.shape_cast %485 : vector<64xf32> to vector<64x1xf32>
      %487 = tpu.reciprocal %486 {approx = true} : vector<64x1xf32> -> vector<64x1xf32>
      %488 = vector.broadcast %487 : vector<64x1xf32> to vector<64x64xf32>
      %489 = arith.mulf %484, %488 : vector<64x64xf32>
      %490 = arith.truncf %489 : vector<64x64xf32> to vector<64x64xbf16>
      %491 = arith.truncf %474 : vector<64x16xf32> to vector<64x16xbf16>
      %cst_377 = arith.constant dense<0.000000e+00> : vector<64x16xf32>
      %492 = tpu.matmul %490, %491, %cst_377 {dimension_numbers = #tpu.dot_dimension_numbers<[1], [0], [0], [1], [0, 0, 1, 1], [], []>} : vector<64x64xbf16>, vector<64x16xbf16>, vector<64x16xf32> -> vector<64x16xf32>
      %c0_378 = arith.constant 0 : index
      %c0_379 = arith.constant 0 : index
      %493 = vector.load %arg31[%c0_378, %c0_379] : memref<64x32xf32, #tpu.memory_space<vmem>>, vector<64x32xf32>
      %494 = arith.index_cast %arg32 : i32 to index
      %c0_380 = arith.constant 0 : index
      %c0_381 = arith.constant 0 : index
      %495 = vector.load %arg19[%494, %c0_380, %c0_381] : memref<2x16x32xbf16, #tpu.memory_space<vmem>>, vector<1x16x32xbf16>
      %496 = vector.shape_cast %495 : vector<1x16x32xbf16> to vector<16x32xbf16>
      %497 = arith.truncf %492 : vector<64x16xf32> to vector<64x16xbf16>
      %cst_382 = arith.constant dense<0.000000e+00> : vector<64x32xf32>
      %498 = tpu.matmul %497, %496, %cst_382 {dimension_numbers = #tpu.dot_dimension_numbers<[1], [0], [0], [1], [0, 0, 1, 1], [], []>} : vector<64x16xbf16>, vector<16x32xbf16>, vector<64x32xf32> -> vector<64x32xf32>
      %499 = arith.addf %493, %498 : vector<64x32xf32>
      %c0_383 = arith.constant 0 : index
      %c0_384 = arith.constant 0 : index
      %500 = vector.load %arg31[%c0_383, %c0_384] : memref<64x32xf32, #tpu.memory_space<vmem>>, vector<64x32xf32>
      tpu.vector_store %arg31[%c0_383, %c0_384], %499 {strides = array<i32>} : memref<64x32xf32, #tpu.memory_space<vmem>>, vector<64x32xf32>,
    }
    %c2_i32_194 = arith.constant 2 : i32
    %c0_195 = arith.constant 0 : index
    %c0_196 = arith.constant 0 : index
    %248 = vector.load %arg31[%c0_195, %c0_196] : memref<64x32xf32, #tpu.memory_space<vmem>>, vector<64x32xf32>
    %249 = vector.broadcast %221 : vector<1x32xf32> to vector<64x32xf32>
    %250 = arith.addf %248, %249 : vector<64x32xf32>
    %251 = arith.addf %250, %218 : vector<64x32xf32>
    %c0_197 = arith.constant 0 : index
    %c0_198 = arith.constant 0 : index
    %c0_199 = arith.constant 0 : index
    %252 = vector.load %arg4[%c0_197, %c0_198, %c0_199] : memref<1x1x32xf32, #tpu.memory_space<vmem>>, vector<1x1x32xf32>
    %253 = vector.shape_cast %252 : vector<1x1x32xf32> to vector<1x32xf32>
    %c0_200 = arith.constant 0 : index
    %c0_201 = arith.constant 0 : index
    %c0_202 = arith.constant 0 : index
    %254 = vector.load %arg5[%c0_200, %c0_201, %c0_202] : memref<1x1x32xf32, #tpu.memory_space<vmem>>, vector<1x1x32xf32>
    %255 = vector.shape_cast %254 : vector<1x1x32xf32> to vector<1x32xf32>
    %c0_203 = arith.constant 0 : index
    %c0_204 = arith.constant 0 : index
    %256 = vector.load %arg21[%c0_203, %c0_204] : memref<1x32xf32, #tpu.memory_space<vmem>>, vector<1x32xf32>
    %c0_205 = arith.constant 0 : index
    %c0_206 = arith.constant 0 : index
    %257 = vector.load %arg22[%c0_205, %c0_206] : memref<1x32xf32, #tpu.memory_space<vmem>>, vector<1x32xf32>
    %c0_207 = arith.constant 0 : index
    %c0_208 = arith.constant 0 : index
    %258 = vector.load %arg24[%c0_207, %c0_208] : memref<1x32xf32, #tpu.memory_space<vmem>>, vector<1x32xf32>
    %c0_209 = arith.constant 0 : index
    %c0_210 = arith.constant 0 : index
    %259 = vector.load %arg25[%c0_209, %c0_210] : memref<1x32xf32, #tpu.memory_space<vmem>>, vector<1x32xf32>
    %c0_211 = arith.constant 0 : index
    %c0_212 = arith.constant 0 : index
    %260 = vector.load %arg26[%c0_211, %c0_212] : memref<1x32xf32, #tpu.memory_space<vmem>>, vector<1x32xf32>
    %c0_213 = arith.constant 0 : index
    %c0_214 = arith.constant 0 : index
    %261 = vector.load %arg28[%c0_213, %c0_214] : memref<1x32xf32, #tpu.memory_space<vmem>>, vector<1x32xf32>
    %cst_215 = arith.constant dense<0.000000e+00> : vector<32xf32>
    %262 = vector.multi_reduction <add>, %251, %cst_215 [0] : vector<64x32xf32> to vector<32xf32>
    %263 = vector.shape_cast %262 : vector<32xf32> to vector<1x32xf32>
    %cst_216 = arith.constant 1.562500e-02 : f32
    %264 = vector.broadcast %cst_216 : f32 to vector<1x32xf32>
    %265 = arith.mulf %263, %264 : vector<1x32xf32>
    %cst_217 = arith.constant dense<0.000000e+00> : vector<1x32xf32>
    %266 = tpu.matmul %265, %0, %cst_217 {dimension_numbers = #tpu.dot_dimension_numbers<[1], [0], [0], [1], [0, 0, 1, 1], [], []>} : vector<1x32xf32>, vector<32x32xf32>, vector<1x32xf32> -> vector<1x32xf32>
    %267 = vector.broadcast %266 : vector<1x32xf32> to vector<64x32xf32>
    %268 = arith.subf %251, %267 : vector<64x32xf32>
    %269 = arith.mulf %268, %268 : vector<64x32xf32>
    %cst_218 = arith.constant dense<0.000000e+00> : vector<32xf32>
    %270 = vector.multi_reduction <add>, %269, %cst_218 [0] : vector<64x32xf32> to vector<32xf32>
    %271 = vector.shape_cast %270 : vector<32xf32> to vector<1x32xf32>
    %cst_219 = arith.constant 1.562500e-02 : f32
    %272 = vector.broadcast %cst_219 : f32 to vector<1x32xf32>
    %273 = arith.mulf %271, %272 : vector<1x32xf32>
    %cst_220 = arith.constant dense<0.000000e+00> : vector<1x32xf32>
    %274 = tpu.matmul %273, %0, %cst_220 {dimension_numbers = #tpu.dot_dimension_numbers<[1], [0], [0], [1], [0, 0, 1, 1], [], []>} : vector<1x32xf32>, vector<32x32xf32>, vector<1x32xf32> -> vector<1x32xf32>
    %cst_221 = arith.constant 9.99999974E-6 : f32
    %275 = vector.broadcast %cst_221 : f32 to vector<1x32xf32>
    %276 = arith.addf %274, %275 : vector<1x32xf32>
    %277 = math.rsqrt %276 : vector<1x32xf32>
    %278 = vector.broadcast %277 : vector<1x32xf32> to vector<64x32xf32>
    %279 = arith.mulf %268, %278 : vector<64x32xf32>
    %280 = vector.broadcast %256 : vector<1x32xf32> to vector<64x32xf32>
    %281 = arith.mulf %279, %280 : vector<64x32xf32>
    %282 = vector.broadcast %257 : vector<1x32xf32> to vector<64x32xf32>
    %283 = arith.addf %281, %282 : vector<64x32xf32>
    %284 = arith.negf %283 : vector<64x32xf32>
    %285 = math.exp %284 : vector<64x32xf32>
    %cst_222 = arith.constant 1.000000e+00 : f32
    %286 = vector.broadcast %cst_222 : f32 to vector<64x32xf32>
    %287 = arith.addf %286, %285 : vector<64x32xf32>
    %288 = arith.divf %286, %287 : vector<64x32xf32>
    %289 = arith.mulf %283, %288 : vector<64x32xf32>
    %290 = vector.shape_cast %289 : vector<64x32xf32> to vector<8x8x32xf32>
    %c1_223 = arith.constant 1 : index
    %c1_224 = arith.constant 1 : index
    %c0_225 = arith.constant 0 : index
    %291 = vector.load %arg30[%c1_223, %c1_224, %c0_225] : memref<10x10x32xf32, #tpu.memory_space<vmem>>, vector<8x8x32xf32>
    tpu.vector_store %arg30[%c1_223, %c1_224, %c0_225], %290 {strides = array<i32>} : memref<10x10x32xf32, #tpu.memory_space<vmem>>, vector<8x8x32xf32>,
    %cst_226 = arith.constant 0.000000e+00 : f32
    %292 = vector.broadcast %cst_226 : f32 to vector<64x32xf32>
    %c0_227 = arith.constant 0 : index
    %c0_228 = arith.constant 0 : index
    %c0_229 = arith.constant 0 : index
    %293 = vector.load %arg30[%c0_227, %c0_228, %c0_229] : memref<10x10x32xf32, #tpu.memory_space<vmem>>, vector<8x8x32xf32>
    %294 = vector.shape_cast %293 : vector<8x8x32xf32> to vector<64x32xf32>
    %c0_230 = arith.constant 0 : index
    %c0_231 = arith.constant 0 : index
    %c0_232 = arith.constant 0 : index
    %295 = vector.load %arg23[%c0_230, %c0_231, %c0_232] : memref<9x32x32xbf16, #tpu.memory_space<vmem>>, vector<1x32x32xbf16>
    %296 = vector.shape_cast %295 : vector<1x32x32xbf16> to vector<32x32xbf16>
    %297 = arith.truncf %294 : vector<64x32xf32> to vector<64x32xbf16>
    %cst_233 = arith.constant dense<0.000000e+00> : vector<64x32xf32>
    %298 = tpu.matmul %297, %296, %cst_233 {dimension_numbers = #tpu.dot_dimension_numbers<[1], [0], [0], [1], [0, 0, 1, 1], [], []>} : vector<64x32xbf16>, vector<32x32xbf16>, vector<64x32xf32> -> vector<64x32xf32>
    %299 = arith.addf %292, %298 : vector<64x32xf32>
    %c0_234 = arith.constant 0 : index
    %c1_235 = arith.constant 1 : index
    %c0_236 = arith.constant 0 : index
    %300 = vector.load %arg30[%c0_234, %c1_235, %c0_236] : memref<10x10x32xf32, #tpu.memory_space<vmem>>, vector<8x8x32xf32>
    %301 = vector.shape_cast %300 : vector<8x8x32xf32> to vector<64x32xf32>
    %c1_237 = arith.constant 1 : index
    %c0_238 = arith.constant 0 : index
    %c0_239 = arith.constant 0 : index
    %302 = vector.load %arg23[%c1_237, %c0_238, %c0_239] : memref<9x32x32xbf16, #tpu.memory_space<vmem>>, vector<1x32x32xbf16>
    %303 = vector.shape_cast %302 : vector<1x32x32xbf16> to vector<32x32xbf16>
    %304 = arith.truncf %301 : vector<64x32xf32> to vector<64x32xbf16>
    %cst_240 = arith.constant dense<0.000000e+00> : vector<64x32xf32>
    %305 = tpu.matmul %304, %303, %cst_240 {dimension_numbers = #tpu.dot_dimension_numbers<[1], [0], [0], [1], [0, 0, 1, 1], [], []>} : vector<64x32xbf16>, vector<32x32xbf16>, vector<64x32xf32> -> vector<64x32xf32>
    %306 = arith.addf %299, %305 : vector<64x32xf32>
    %c0_241 = arith.constant 0 : index
    %c2_242 = arith.constant 2 : index
    %c0_243 = arith.constant 0 : index
    %307 = vector.load %arg30[%c0_241, %c2_242, %c0_243] : memref<10x10x32xf32, #tpu.memory_space<vmem>>, vector<8x8x32xf32>
    %308 = vector.shape_cast %307 : vector<8x8x32xf32> to vector<64x32xf32>
    %c2_244 = arith.constant 2 : index
    %c0_245 = arith.constant 0 : index
    %c0_246 = arith.constant 0 : index
    %309 = vector.load %arg23[%c2_244, %c0_245, %c0_246] : memref<9x32x32xbf16, #tpu.memory_space<vmem>>, vector<1x32x32xbf16>
    %310 = vector.shape_cast %309 : vector<1x32x32xbf16> to vector<32x32xbf16>
    %311 = arith.truncf %308 : vector<64x32xf32> to vector<64x32xbf16>
    %cst_247 = arith.constant dense<0.000000e+00> : vector<64x32xf32>
    %312 = tpu.matmul %311, %310, %cst_247 {dimension_numbers = #tpu.dot_dimension_numbers<[1], [0], [0], [1], [0, 0, 1, 1], [], []>} : vector<64x32xbf16>, vector<32x32xbf16>, vector<64x32xf32> -> vector<64x32xf32>
    %313 = arith.addf %306, %312 : vector<64x32xf32>
    %c1_248 = arith.constant 1 : index
    %c0_249 = arith.constant 0 : index
    %c0_250 = arith.constant 0 : index
    %314 = vector.load %arg30[%c1_248, %c0_249, %c0_250] : memref<10x10x32xf32, #tpu.memory_space<vmem>>, vector<8x8x32xf32>
    %315 = vector.shape_cast %314 : vector<8x8x32xf32> to vector<64x32xf32>
    %c3_251 = arith.constant 3 : index
    %c0_252 = arith.constant 0 : index
    %c0_253 = arith.constant 0 : index
    %316 = vector.load %arg23[%c3_251, %c0_252, %c0_253] : memref<9x32x32xbf16, #tpu.memory_space<vmem>>, vector<1x32x32xbf16>
    %317 = vector.shape_cast %316 : vector<1x32x32xbf16> to vector<32x32xbf16>
    %318 = arith.truncf %315 : vector<64x32xf32> to vector<64x32xbf16>
    %cst_254 = arith.constant dense<0.000000e+00> : vector<64x32xf32>
    %319 = tpu.matmul %318, %317, %cst_254 {dimension_numbers = #tpu.dot_dimension_numbers<[1], [0], [0], [1], [0, 0, 1, 1], [], []>} : vector<64x32xbf16>, vector<32x32xbf16>, vector<64x32xf32> -> vector<64x32xf32>
    %320 = arith.addf %313, %319 : vector<64x32xf32>
    %c1_255 = arith.constant 1 : index
    %c1_256 = arith.constant 1 : index
    %c0_257 = arith.constant 0 : index
    %321 = vector.load %arg30[%c1_255, %c1_256, %c0_257] : memref<10x10x32xf32, #tpu.memory_space<vmem>>, vector<8x8x32xf32>
    %322 = vector.shape_cast %321 : vector<8x8x32xf32> to vector<64x32xf32>
    %c4_258 = arith.constant 4 : index
    %c0_259 = arith.constant 0 : index
    %c0_260 = arith.constant 0 : index
    %323 = vector.load %arg23[%c4_258, %c0_259, %c0_260] : memref<9x32x32xbf16, #tpu.memory_space<vmem>>, vector<1x32x32xbf16>
    %324 = vector.shape_cast %323 : vector<1x32x32xbf16> to vector<32x32xbf16>
    %325 = arith.truncf %322 : vector<64x32xf32> to vector<64x32xbf16>
    %cst_261 = arith.constant dense<0.000000e+00> : vector<64x32xf32>
    %326 = tpu.matmul %325, %324, %cst_261 {dimension_numbers = #tpu.dot_dimension_numbers<[1], [0], [0], [1], [0, 0, 1, 1], [], []>} : vector<64x32xbf16>, vector<32x32xbf16>, vector<64x32xf32> -> vector<64x32xf32>
    %327 = arith.addf %320, %326 : vector<64x32xf32>
    %c1_262 = arith.constant 1 : index
    %c2_263 = arith.constant 2 : index
    %c0_264 = arith.constant 0 : index
    %328 = vector.load %arg30[%c1_262, %c2_263, %c0_264] : memref<10x10x32xf32, #tpu.memory_space<vmem>>, vector<8x8x32xf32>
    %329 = vector.shape_cast %328 : vector<8x8x32xf32> to vector<64x32xf32>
    %c5_265 = arith.constant 5 : index
    %c0_266 = arith.constant 0 : index
    %c0_267 = arith.constant 0 : index
    %330 = vector.load %arg23[%c5_265, %c0_266, %c0_267] : memref<9x32x32xbf16, #tpu.memory_space<vmem>>, vector<1x32x32xbf16>
    %331 = vector.shape_cast %330 : vector<1x32x32xbf16> to vector<32x32xbf16>
    %332 = arith.truncf %329 : vector<64x32xf32> to vector<64x32xbf16>
    %cst_268 = arith.constant dense<0.000000e+00> : vector<64x32xf32>
    %333 = tpu.matmul %332, %331, %cst_268 {dimension_numbers = #tpu.dot_dimension_numbers<[1], [0], [0], [1], [0, 0, 1, 1], [], []>} : vector<64x32xbf16>, vector<32x32xbf16>, vector<64x32xf32> -> vector<64x32xf32>
    %334 = arith.addf %327, %333 : vector<64x32xf32>
    %c2_269 = arith.constant 2 : index
    %c0_270 = arith.constant 0 : index
    %c0_271 = arith.constant 0 : index
    %335 = vector.load %arg30[%c2_269, %c0_270, %c0_271] : memref<10x10x32xf32, #tpu.memory_space<vmem>>, vector<8x8x32xf32>
    %336 = vector.shape_cast %335 : vector<8x8x32xf32> to vector<64x32xf32>
    %c6_272 = arith.constant 6 : index
    %c0_273 = arith.constant 0 : index
    %c0_274 = arith.constant 0 : index
    %337 = vector.load %arg23[%c6_272, %c0_273, %c0_274] : memref<9x32x32xbf16, #tpu.memory_space<vmem>>, vector<1x32x32xbf16>
    %338 = vector.shape_cast %337 : vector<1x32x32xbf16> to vector<32x32xbf16>
    %339 = arith.truncf %336 : vector<64x32xf32> to vector<64x32xbf16>
    %cst_275 = arith.constant dense<0.000000e+00> : vector<64x32xf32>
    %340 = tpu.matmul %339, %338, %cst_275 {dimension_numbers = #tpu.dot_dimension_numbers<[1], [0], [0], [1], [0, 0, 1, 1], [], []>} : vector<64x32xbf16>, vector<32x32xbf16>, vector<64x32xf32> -> vector<64x32xf32>
    %341 = arith.addf %334, %340 : vector<64x32xf32>
    %c2_276 = arith.constant 2 : index
    %c1_277 = arith.constant 1 : index
    %c0_278 = arith.constant 0 : index
    %342 = vector.load %arg30[%c2_276, %c1_277, %c0_278] : memref<10x10x32xf32, #tpu.memory_space<vmem>>, vector<8x8x32xf32>
    %343 = vector.shape_cast %342 : vector<8x8x32xf32> to vector<64x32xf32>
    %c7_279 = arith.constant 7 : index
    %c0_280 = arith.constant 0 : index
    %c0_281 = arith.constant 0 : index
    %344 = vector.load %arg23[%c7_279, %c0_280, %c0_281] : memref<9x32x32xbf16, #tpu.memory_space<vmem>>, vector<1x32x32xbf16>
    %345 = vector.shape_cast %344 : vector<1x32x32xbf16> to vector<32x32xbf16>
    %346 = arith.truncf %343 : vector<64x32xf32> to vector<64x32xbf16>
    %cst_282 = arith.constant dense<0.000000e+00> : vector<64x32xf32>
    %347 = tpu.matmul %346, %345, %cst_282 {dimension_numbers = #tpu.dot_dimension_numbers<[1], [0], [0], [1], [0, 0, 1, 1], [], []>} : vector<64x32xbf16>, vector<32x32xbf16>, vector<64x32xf32> -> vector<64x32xf32>
    %348 = arith.addf %341, %347 : vector<64x32xf32>
    %c2_283 = arith.constant 2 : index
    %c2_284 = arith.constant 2 : index
    %c0_285 = arith.constant 0 : index
    %349 = vector.load %arg30[%c2_283, %c2_284, %c0_285] : memref<10x10x32xf32, #tpu.memory_space<vmem>>, vector<8x8x32xf32>
    %350 = vector.shape_cast %349 : vector<8x8x32xf32> to vector<64x32xf32>
    %c8_286 = arith.constant 8 : index
    %c0_287 = arith.constant 0 : index
    %c0_288 = arith.constant 0 : index
    %351 = vector.load %arg23[%c8_286, %c0_287, %c0_288] : memref<9x32x32xbf16, #tpu.memory_space<vmem>>, vector<1x32x32xbf16>
    %352 = vector.shape_cast %351 : vector<1x32x32xbf16> to vector<32x32xbf16>
    %353 = arith.truncf %350 : vector<64x32xf32> to vector<64x32xbf16>
    %cst_289 = arith.constant dense<0.000000e+00> : vector<64x32xf32>
    %354 = tpu.matmul %353, %352, %cst_289 {dimension_numbers = #tpu.dot_dimension_numbers<[1], [0], [0], [1], [0, 0, 1, 1], [], []>} : vector<64x32xbf16>, vector<32x32xbf16>, vector<64x32xf32> -> vector<64x32xf32>
    %355 = arith.addf %348, %354 : vector<64x32xf32>
    %356 = vector.broadcast %258 : vector<1x32xf32> to vector<64x32xf32>
    %357 = arith.addf %355, %356 : vector<64x32xf32>
    %cst_290 = arith.constant dense<0.000000e+00> : vector<32xf32>
    %358 = vector.multi_reduction <add>, %357, %cst_290 [0] : vector<64x32xf32> to vector<32xf32>
    %359 = vector.shape_cast %358 : vector<32xf32> to vector<1x32xf32>
    %cst_291 = arith.constant 1.562500e-02 : f32
    %360 = vector.broadcast %cst_291 : f32 to vector<1x32xf32>
    %361 = arith.mulf %359, %360 : vector<1x32xf32>
    %cst_292 = arith.constant dense<0.000000e+00> : vector<1x32xf32>
    %362 = tpu.matmul %361, %0, %cst_292 {dimension_numbers = #tpu.dot_dimension_numbers<[1], [0], [0], [1], [0, 0, 1, 1], [], []>} : vector<1x32xf32>, vector<32x32xf32>, vector<1x32xf32> -> vector<1x32xf32>
    %363 = vector.broadcast %362 : vector<1x32xf32> to vector<64x32xf32>
    %364 = arith.subf %357, %363 : vector<64x32xf32>
    %365 = arith.mulf %364, %364 : vector<64x32xf32>
    %cst_293 = arith.constant dense<0.000000e+00> : vector<32xf32>
    %366 = vector.multi_reduction <add>, %365, %cst_293 [0] : vector<64x32xf32> to vector<32xf32>
    %367 = vector.shape_cast %366 : vector<32xf32> to vector<1x32xf32>
    %cst_294 = arith.constant 1.562500e-02 : f32
    %368 = vector.broadcast %cst_294 : f32 to vector<1x32xf32>
    %369 = arith.mulf %367, %368 : vector<1x32xf32>
    %cst_295 = arith.constant dense<0.000000e+00> : vector<1x32xf32>
    %370 = tpu.matmul %369, %0, %cst_295 {dimension_numbers = #tpu.dot_dimension_numbers<[1], [0], [0], [1], [0, 0, 1, 1], [], []>} : vector<1x32xf32>, vector<32x32xf32>, vector<1x32xf32> -> vector<1x32xf32>
    %cst_296 = arith.constant 9.99999974E-6 : f32
    %371 = vector.broadcast %cst_296 : f32 to vector<1x32xf32>
    %372 = arith.addf %370, %371 : vector<1x32xf32>
    %373 = math.rsqrt %372 : vector<1x32xf32>
    %374 = vector.broadcast %373 : vector<1x32xf32> to vector<64x32xf32>
    %375 = arith.mulf %364, %374 : vector<64x32xf32>
    %376 = vector.broadcast %259 : vector<1x32xf32> to vector<64x32xf32>
    %377 = arith.mulf %375, %376 : vector<64x32xf32>
    %378 = vector.broadcast %260 : vector<1x32xf32> to vector<64x32xf32>
    %379 = arith.addf %377, %378 : vector<64x32xf32>
    %380 = vector.broadcast %253 : vector<1x32xf32> to vector<64x32xf32>
    %381 = arith.mulf %380, %379 : vector<64x32xf32>
    %382 = vector.broadcast %255 : vector<1x32xf32> to vector<64x32xf32>
    %383 = arith.addf %381, %382 : vector<64x32xf32>
    %384 = arith.negf %383 : vector<64x32xf32>
    %385 = math.exp %384 : vector<64x32xf32>
    %cst_297 = arith.constant 1.000000e+00 : f32
    %386 = vector.broadcast %cst_297 : f32 to vector<64x32xf32>
    %387 = arith.addf %386, %385 : vector<64x32xf32>
    %388 = arith.divf %386, %387 : vector<64x32xf32>
    %389 = arith.mulf %383, %388 : vector<64x32xf32>
    %390 = vector.shape_cast %389 : vector<64x32xf32> to vector<8x8x32xf32>
    %c1_298 = arith.constant 1 : index
    %c1_299 = arith.constant 1 : index
    %c0_300 = arith.constant 0 : index
    %391 = vector.load %arg30[%c1_298, %c1_299, %c0_300] : memref<10x10x32xf32, #tpu.memory_space<vmem>>, vector<8x8x32xf32>
    tpu.vector_store %arg30[%c1_298, %c1_299, %c0_300], %390 {strides = array<i32>} : memref<10x10x32xf32, #tpu.memory_space<vmem>>, vector<8x8x32xf32>,
    %cst_301 = arith.constant 0.000000e+00 : f32
    %392 = vector.broadcast %cst_301 : f32 to vector<64x32xf32>
    %c0_302 = arith.constant 0 : index
    %c0_303 = arith.constant 0 : index
    %c0_304 = arith.constant 0 : index
    %393 = vector.load %arg30[%c0_302, %c0_303, %c0_304] : memref<10x10x32xf32, #tpu.memory_space<vmem>>, vector<8x8x32xf32>
    %394 = vector.shape_cast %393 : vector<8x8x32xf32> to vector<64x32xf32>
    %c0_305 = arith.constant 0 : index
    %c0_306 = arith.constant 0 : index
    %c0_307 = arith.constant 0 : index
    %395 = vector.load %arg27[%c0_305, %c0_306, %c0_307] : memref<9x32x32xbf16, #tpu.memory_space<vmem>>, vector<1x32x32xbf16>
    %396 = vector.shape_cast %395 : vector<1x32x32xbf16> to vector<32x32xbf16>
    %397 = arith.truncf %394 : vector<64x32xf32> to vector<64x32xbf16>
    %cst_308 = arith.constant dense<0.000000e+00> : vector<64x32xf32>
    %398 = tpu.matmul %397, %396, %cst_308 {dimension_numbers = #tpu.dot_dimension_numbers<[1], [0], [0], [1], [0, 0, 1, 1], [], []>} : vector<64x32xbf16>, vector<32x32xbf16>, vector<64x32xf32> -> vector<64x32xf32>
    %399 = arith.addf %392, %398 : vector<64x32xf32>
    %c0_309 = arith.constant 0 : index
    %c1_310 = arith.constant 1 : index
    %c0_311 = arith.constant 0 : index
    %400 = vector.load %arg30[%c0_309, %c1_310, %c0_311] : memref<10x10x32xf32, #tpu.memory_space<vmem>>, vector<8x8x32xf32>
    %401 = vector.shape_cast %400 : vector<8x8x32xf32> to vector<64x32xf32>
    %c1_312 = arith.constant 1 : index
    %c0_313 = arith.constant 0 : index
    %c0_314 = arith.constant 0 : index
    %402 = vector.load %arg27[%c1_312, %c0_313, %c0_314] : memref<9x32x32xbf16, #tpu.memory_space<vmem>>, vector<1x32x32xbf16>
    %403 = vector.shape_cast %402 : vector<1x32x32xbf16> to vector<32x32xbf16>
    %404 = arith.truncf %401 : vector<64x32xf32> to vector<64x32xbf16>
    %cst_315 = arith.constant dense<0.000000e+00> : vector<64x32xf32>
    %405 = tpu.matmul %404, %403, %cst_315 {dimension_numbers = #tpu.dot_dimension_numbers<[1], [0], [0], [1], [0, 0, 1, 1], [], []>} : vector<64x32xbf16>, vector<32x32xbf16>, vector<64x32xf32> -> vector<64x32xf32>
    %406 = arith.addf %399, %405 : vector<64x32xf32>
    %c0_316 = arith.constant 0 : index
    %c2_317 = arith.constant 2 : index
    %c0_318 = arith.constant 0 : index
    %407 = vector.load %arg30[%c0_316, %c2_317, %c0_318] : memref<10x10x32xf32, #tpu.memory_space<vmem>>, vector<8x8x32xf32>
    %408 = vector.shape_cast %407 : vector<8x8x32xf32> to vector<64x32xf32>
    %c2_319 = arith.constant 2 : index
    %c0_320 = arith.constant 0 : index
    %c0_321 = arith.constant 0 : index
    %409 = vector.load %arg27[%c2_319, %c0_320, %c0_321] : memref<9x32x32xbf16, #tpu.memory_space<vmem>>, vector<1x32x32xbf16>
    %410 = vector.shape_cast %409 : vector<1x32x32xbf16> to vector<32x32xbf16>
    %411 = arith.truncf %408 : vector<64x32xf32> to vector<64x32xbf16>
    %cst_322 = arith.constant dense<0.000000e+00> : vector<64x32xf32>
    %412 = tpu.matmul %411, %410, %cst_322 {dimension_numbers = #tpu.dot_dimension_numbers<[1], [0], [0], [1], [0, 0, 1, 1], [], []>} : vector<64x32xbf16>, vector<32x32xbf16>, vector<64x32xf32> -> vector<64x32xf32>
    %413 = arith.addf %406, %412 : vector<64x32xf32>
    %c1_323 = arith.constant 1 : index
    %c0_324 = arith.constant 0 : index
    %c0_325 = arith.constant 0 : index
    %414 = vector.load %arg30[%c1_323, %c0_324, %c0_325] : memref<10x10x32xf32, #tpu.memory_space<vmem>>, vector<8x8x32xf32>
    %415 = vector.shape_cast %414 : vector<8x8x32xf32> to vector<64x32xf32>
    %c3_326 = arith.constant 3 : index
    %c0_327 = arith.constant 0 : index
    %c0_328 = arith.constant 0 : index
    %416 = vector.load %arg27[%c3_326, %c0_327, %c0_328] : memref<9x32x32xbf16, #tpu.memory_space<vmem>>, vector<1x32x32xbf16>
    %417 = vector.shape_cast %416 : vector<1x32x32xbf16> to vector<32x32xbf16>
    %418 = arith.truncf %415 : vector<64x32xf32> to vector<64x32xbf16>
    %cst_329 = arith.constant dense<0.000000e+00> : vector<64x32xf32>
    %419 = tpu.matmul %418, %417, %cst_329 {dimension_numbers = #tpu.dot_dimension_numbers<[1], [0], [0], [1], [0, 0, 1, 1], [], []>} : vector<64x32xbf16>, vector<32x32xbf16>, vector<64x32xf32> -> vector<64x32xf32>
    %420 = arith.addf %413, %419 : vector<64x32xf32>
    %c1_330 = arith.constant 1 : index
    %c1_331 = arith.constant 1 : index
    %c0_332 = arith.constant 0 : index
    %421 = vector.load %arg30[%c1_330, %c1_331, %c0_332] : memref<10x10x32xf32, #tpu.memory_space<vmem>>, vector<8x8x32xf32>
    %422 = vector.shape_cast %421 : vector<8x8x32xf32> to vector<64x32xf32>
    %c4_333 = arith.constant 4 : index
    %c0_334 = arith.constant 0 : index
    %c0_335 = arith.constant 0 : index
    %423 = vector.load %arg27[%c4_333, %c0_334, %c0_335] : memref<9x32x32xbf16, #tpu.memory_space<vmem>>, vector<1x32x32xbf16>
    %424 = vector.shape_cast %423 : vector<1x32x32xbf16> to vector<32x32xbf16>
    %425 = arith.truncf %422 : vector<64x32xf32> to vector<64x32xbf16>
    %cst_336 = arith.constant dense<0.000000e+00> : vector<64x32xf32>
    %426 = tpu.matmul %425, %424, %cst_336 {dimension_numbers = #tpu.dot_dimension_numbers<[1], [0], [0], [1], [0, 0, 1, 1], [], []>} : vector<64x32xbf16>, vector<32x32xbf16>, vector<64x32xf32> -> vector<64x32xf32>
    %427 = arith.addf %420, %426 : vector<64x32xf32>
    %c1_337 = arith.constant 1 : index
    %c2_338 = arith.constant 2 : index
    %c0_339 = arith.constant 0 : index
    %428 = vector.load %arg30[%c1_337, %c2_338, %c0_339] : memref<10x10x32xf32, #tpu.memory_space<vmem>>, vector<8x8x32xf32>
    %429 = vector.shape_cast %428 : vector<8x8x32xf32> to vector<64x32xf32>
    %c5_340 = arith.constant 5 : index
    %c0_341 = arith.constant 0 : index
    %c0_342 = arith.constant 0 : index
    %430 = vector.load %arg27[%c5_340, %c0_341, %c0_342] : memref<9x32x32xbf16, #tpu.memory_space<vmem>>, vector<1x32x32xbf16>
    %431 = vector.shape_cast %430 : vector<1x32x32xbf16> to vector<32x32xbf16>
    %432 = arith.truncf %429 : vector<64x32xf32> to vector<64x32xbf16>
    %cst_343 = arith.constant dense<0.000000e+00> : vector<64x32xf32>
    %433 = tpu.matmul %432, %431, %cst_343 {dimension_numbers = #tpu.dot_dimension_numbers<[1], [0], [0], [1], [0, 0, 1, 1], [], []>} : vector<64x32xbf16>, vector<32x32xbf16>, vector<64x32xf32> -> vector<64x32xf32>
    %434 = arith.addf %427, %433 : vector<64x32xf32>
    %c2_344 = arith.constant 2 : index
    %c0_345 = arith.constant 0 : index
    %c0_346 = arith.constant 0 : index
    %435 = vector.load %arg30[%c2_344, %c0_345, %c0_346] : memref<10x10x32xf32, #tpu.memory_space<vmem>>, vector<8x8x32xf32>
    %436 = vector.shape_cast %435 : vector<8x8x32xf32> to vector<64x32xf32>
    %c6_347 = arith.constant 6 : index
    %c0_348 = arith.constant 0 : index
    %c0_349 = arith.constant 0 : index
    %437 = vector.load %arg27[%c6_347, %c0_348, %c0_349] : memref<9x32x32xbf16, #tpu.memory_space<vmem>>, vector<1x32x32xbf16>
    %438 = vector.shape_cast %437 : vector<1x32x32xbf16> to vector<32x32xbf16>
    %439 = arith.truncf %436 : vector<64x32xf32> to vector<64x32xbf16>
    %cst_350 = arith.constant dense<0.000000e+00> : vector<64x32xf32>
    %440 = tpu.matmul %439, %438, %cst_350 {dimension_numbers = #tpu.dot_dimension_numbers<[1], [0], [0], [1], [0, 0, 1, 1], [], []>} : vector<64x32xbf16>, vector<32x32xbf16>, vector<64x32xf32> -> vector<64x32xf32>
    %441 = arith.addf %434, %440 : vector<64x32xf32>
    %c2_351 = arith.constant 2 : index
    %c1_352 = arith.constant 1 : index
    %c0_353 = arith.constant 0 : index
    %442 = vector.load %arg30[%c2_351, %c1_352, %c0_353] : memref<10x10x32xf32, #tpu.memory_space<vmem>>, vector<8x8x32xf32>
    %443 = vector.shape_cast %442 : vector<8x8x32xf32> to vector<64x32xf32>
    %c7_354 = arith.constant 7 : index
    %c0_355 = arith.constant 0 : index
    %c0_356 = arith.constant 0 : index
    %444 = vector.load %arg27[%c7_354, %c0_355, %c0_356] : memref<9x32x32xbf16, #tpu.memory_space<vmem>>, vector<1x32x32xbf16>
    %445 = vector.shape_cast %444 : vector<1x32x32xbf16> to vector<32x32xbf16>
    %446 = arith.truncf %443 : vector<64x32xf32> to vector<64x32xbf16>
    %cst_357 = arith.constant dense<0.000000e+00> : vector<64x32xf32>
    %447 = tpu.matmul %446, %445, %cst_357 {dimension_numbers = #tpu.dot_dimension_numbers<[1], [0], [0], [1], [0, 0, 1, 1], [], []>} : vector<64x32xbf16>, vector<32x32xbf16>, vector<64x32xf32> -> vector<64x32xf32>
    %448 = arith.addf %441, %447 : vector<64x32xf32>
    %c2_358 = arith.constant 2 : index
    %c2_359 = arith.constant 2 : index
    %c0_360 = arith.constant 0 : index
    %449 = vector.load %arg30[%c2_358, %c2_359, %c0_360] : memref<10x10x32xf32, #tpu.memory_space<vmem>>, vector<8x8x32xf32>
    %450 = vector.shape_cast %449 : vector<8x8x32xf32> to vector<64x32xf32>
    %c8_361 = arith.constant 8 : index
    %c0_362 = arith.constant 0 : index
    %c0_363 = arith.constant 0 : index
    %451 = vector.load %arg27[%c8_361, %c0_362, %c0_363] : memref<9x32x32xbf16, #tpu.memory_space<vmem>>, vector<1x32x32xbf16>
    %452 = vector.shape_cast %451 : vector<1x32x32xbf16> to vector<32x32xbf16>
    %453 = arith.truncf %450 : vector<64x32xf32> to vector<64x32xbf16>
    %cst_364 = arith.constant dense<0.000000e+00> : vector<64x32xf32>
    %454 = tpu.matmul %453, %452, %cst_364 {dimension_numbers = #tpu.dot_dimension_numbers<[1], [0], [0], [1], [0, 0, 1, 1], [], []>} : vector<64x32xbf16>, vector<32x32xbf16>, vector<64x32xf32> -> vector<64x32xf32>
    %455 = arith.addf %448, %454 : vector<64x32xf32>
    %456 = vector.broadcast %261 : vector<1x32xf32> to vector<64x32xf32>
    %457 = arith.addf %455, %456 : vector<64x32xf32>
    %458 = arith.addf %457, %251 : vector<64x32xf32>
    %459 = tpu.transpose %458, [1, 0] : vector<64x32xf32> -> vector<32x64xf32>
    %c0_365 = arith.constant 0 : index
    %c0_366 = arith.constant 0 : index
    %c0_367 = arith.constant 0 : index
    %460 = vector.load %arg29[%c0_365, %c0_366, %c0_367] : memref<1x32x64xf32, #tpu.memory_space<vmem>>, vector<1x32x64xf32>
    %461 = vector.shape_cast %460 : vector<1x32x64xf32> to vector<32x64xf32>
    %462 = vector.shape_cast %459 : vector<32x64xf32> to vector<1x32x64xf32>
    tpu.vector_store %arg29[%c0_365, %c0_366, %c0_367], %462 {strides = array<i32>} : memref<1x32x64xf32, #tpu.memory_space<vmem>>, vector<1x32x64xf32>,
    return
  }
  func.func @transform_0(%arg0: i32) -> (i32, i32, i32) {
    %c0_i32 = arith.constant 0 : i32
    %c0_i32_0 = arith.constant 0 : i32
    %c0_i32_1 = arith.constant 0 : i32
    return %arg0, %c0_i32, %c0_i32_0 : i32, i32, i32
  }
  func.func @transform_1(%arg0: i32) -> (i32, i32, i32) {
    %c0_i32 = arith.constant 0 : i32
    %c0_i32_0 = arith.constant 0 : i32
    %c0_i32_1 = arith.constant 0 : i32
    return %arg0, %c0_i32, %c0_i32_0 : i32, i32, i32
  }
  func.func @transform_2(%arg0: i32) -> (i32, i32, i32) {
    %c0_i32 = arith.constant 0 : i32
    %c0_i32_0 = arith.constant 0 : i32
    %c0_i32_1 = arith.constant 0 : i32
    return %arg0, %c0_i32, %c0_i32_0 : i32, i32, i32
  }
  func.func @transform_3(%arg0: i32) -> (i32, i32, i32) {
    %c0_i32 = arith.constant 0 : i32
    %c0_i32_0 = arith.constant 0 : i32
    %c0_i32_1 = arith.constant 0 : i32
    return %arg0, %c0_i32, %c0_i32_0 : i32, i32, i32
  }
  func.func @transform_4(%arg0: i32) -> (i32, i32, i32) {
    %c0_i32 = arith.constant 0 : i32
    %c0_i32_0 = arith.constant 0 : i32
    %c0_i32_1 = arith.constant 0 : i32
    return %arg0, %c0_i32, %c0_i32_0 : i32, i32, i32
  }
  func.func @transform_5(%arg0: i32) -> (i32, i32) {
    %c0_i32 = arith.constant 0 : i32
    %c0_i32_0 = arith.constant 0 : i32
    %c0_i32_1 = arith.constant 0 : i32
    return %c0_i32, %c0_i32_0 : i32, i32
  }
  func.func @transform_6(%arg0: i32) -> (i32, i32) {
    %c0_i32 = arith.constant 0 : i32
    %c0_i32_0 = arith.constant 0 : i32
    %c0_i32_1 = arith.constant 0 : i32
    return %c0_i32, %c0_i32_0 : i32, i32
  }
  func.func @transform_7(%arg0: i32) -> (i32, i32) {
    %c0_i32 = arith.constant 0 : i32
    %c0_i32_0 = arith.constant 0 : i32
    %c0_i32_1 = arith.constant 0 : i32
    return %c0_i32, %c0_i32_0 : i32, i32
  }
  func.func @transform_8(%arg0: i32) -> (i32, i32, i32) {
    %c0_i32 = arith.constant 0 : i32
    %c0_i32_0 = arith.constant 0 : i32
    %c0_i32_1 = arith.constant 0 : i32
    %c0_i32_2 = arith.constant 0 : i32
    return %c0_i32, %c0_i32_0, %c0_i32_1 : i32, i32, i32
  }
  func.func @transform_9(%arg0: i32) -> (i32, i32) {
    %c0_i32 = arith.constant 0 : i32
    %c0_i32_0 = arith.constant 0 : i32
    %c0_i32_1 = arith.constant 0 : i32
    return %c0_i32, %c0_i32_0 : i32, i32
  }
  func.func @transform_10(%arg0: i32) -> (i32, i32) {
    %c0_i32 = arith.constant 0 : i32
    %c0_i32_0 = arith.constant 0 : i32
    %c0_i32_1 = arith.constant 0 : i32
    return %c0_i32, %c0_i32_0 : i32, i32
  }
  func.func @transform_11(%arg0: i32) -> (i32, i32) {
    %c0_i32 = arith.constant 0 : i32
    %c0_i32_0 = arith.constant 0 : i32
    %c0_i32_1 = arith.constant 0 : i32
    return %c0_i32, %c0_i32_0 : i32, i32
  }
  func.func @transform_12(%arg0: i32) -> (i32, i32, i32) {
    %c0_i32 = arith.constant 0 : i32
    %c0_i32_0 = arith.constant 0 : i32
    %c0_i32_1 = arith.constant 0 : i32
    %c0_i32_2 = arith.constant 0 : i32
    return %c0_i32, %c0_i32_0, %c0_i32_1 : i32, i32, i32
  }
  func.func @transform_13(%arg0: i32) -> (i32, i32) {
    %c0_i32 = arith.constant 0 : i32
    %c0_i32_0 = arith.constant 0 : i32
    %c0_i32_1 = arith.constant 0 : i32
    return %c0_i32, %c0_i32_0 : i32, i32
  }
  func.func @transform_14(%arg0: i32) -> (i32, i32) {
    %c0_i32 = arith.constant 0 : i32
    %c0_i32_0 = arith.constant 0 : i32
    %c0_i32_1 = arith.constant 0 : i32
    return %c0_i32, %c0_i32_0 : i32, i32
  }
  func.func @transform_15(%arg0: i32) -> (i32, i32) {
    %c0_i32 = arith.constant 0 : i32
    %c0_i32_0 = arith.constant 0 : i32
    %c0_i32_1 = arith.constant 0 : i32
    return %c0_i32, %c0_i32_0 : i32, i32
  }
  func.func @transform_16(%arg0: i32) -> (i32, i32, i32) {
    %c0_i32 = arith.constant 0 : i32
    %c0_i32_0 = arith.constant 0 : i32
    %c0_i32_1 = arith.constant 0 : i32
    %c0_i32_2 = arith.constant 0 : i32
    return %c0_i32, %c0_i32_0, %c0_i32_1 : i32, i32, i32
  }
  func.func @transform_17(%arg0: i32) -> (i32, i32, i32) {
    %c0_i32 = arith.constant 0 : i32
    %c0_i32_0 = arith.constant 0 : i32
    %c0_i32_1 = arith.constant 0 : i32
    %c0_i32_2 = arith.constant 0 : i32
    return %c0_i32, %c0_i32_0, %c0_i32_1 : i32, i32, i32
  }
  func.func @transform_18(%arg0: i32) -> (i32, i32, i32) {
    %c0_i32 = arith.constant 0 : i32
    %c0_i32_0 = arith.constant 0 : i32
    %c0_i32_1 = arith.constant 0 : i32
    %c0_i32_2 = arith.constant 0 : i32
    return %c0_i32, %c0_i32_0, %c0_i32_1 : i32, i32, i32
  }
  func.func @transform_19(%arg0: i32) -> (i32, i32) {
    %c0_i32 = arith.constant 0 : i32
    %c0_i32_0 = arith.constant 0 : i32
    %c0_i32_1 = arith.constant 0 : i32
    return %c0_i32, %c0_i32_0 : i32, i32
  }
  func.func @transform_20(%arg0: i32) -> (i32, i32) {
    %c0_i32 = arith.constant 0 : i32
    %c0_i32_0 = arith.constant 0 : i32
    %c0_i32_1 = arith.constant 0 : i32
    return %c0_i32, %c0_i32_0 : i32, i32
  }
  func.func @transform_21(%arg0: i32) -> (i32, i32) {
    %c0_i32 = arith.constant 0 : i32
    %c0_i32_0 = arith.constant 0 : i32
    %c0_i32_1 = arith.constant 0 : i32
    return %c0_i32, %c0_i32_0 : i32, i32
  }
  func.func @transform_22(%arg0: i32) -> (i32, i32, i32) {
    %c0_i32 = arith.constant 0 : i32
    %c0_i32_0 = arith.constant 0 : i32
    %c0_i32_1 = arith.constant 0 : i32
    %c0_i32_2 = arith.constant 0 : i32
    return %c0_i32, %c0_i32_0, %c0_i32_1 : i32, i32, i32
  }
  func.func @transform_23(%arg0: i32) -> (i32, i32) {
    %c0_i32 = arith.constant 0 : i32
    %c0_i32_0 = arith.constant 0 : i32
    %c0_i32_1 = arith.constant 0 : i32
    return %c0_i32, %c0_i32_0 : i32, i32
  }
  func.func @transform_24(%arg0: i32) -> (i32, i32) {
    %c0_i32 = arith.constant 0 : i32
    %c0_i32_0 = arith.constant 0 : i32
    %c0_i32_1 = arith.constant 0 : i32
    return %c0_i32, %c0_i32_0 : i32, i32
  }
  func.func @transform_25(%arg0: i32) -> (i32, i32) {
    %c0_i32 = arith.constant 0 : i32
    %c0_i32_0 = arith.constant 0 : i32
    %c0_i32_1 = arith.constant 0 : i32
    return %c0_i32, %c0_i32_0 : i32, i32
  }
  func.func @transform_26(%arg0: i32) -> (i32, i32, i32) {
    %c0_i32 = arith.constant 0 : i32
    %c0_i32_0 = arith.constant 0 : i32
    %c0_i32_1 = arith.constant 0 : i32
    %c0_i32_2 = arith.constant 0 : i32
    return %c0_i32, %c0_i32_0, %c0_i32_1 : i32, i32, i32
  }
  func.func @transform_27(%arg0: i32) -> (i32, i32) {
    %c0_i32 = arith.constant 0 : i32
    %c0_i32_0 = arith.constant 0 : i32
    %c0_i32_1 = arith.constant 0 : i32
    return %c0_i32, %c0_i32_0 : i32, i32
  }
  func.func @transform_28(%arg0: i32) -> (i32, i32, i32) {
    %c0_i32 = arith.constant 0 : i32
    %c0_i32_0 = arith.constant 0 : i32
    %c0_i32_1 = arith.constant 0 : i32
    return %arg0, %c0_i32, %c0_i32_0 : i32, i32, i32
  }
}

</mosaic_0001>

<bundles_post_ra>
// kernel: middle_block.1
= control target key start
LH: loop header
LB: loop body
LE: loop exit
PB: predicated region body
PF: predicated region fallthrough
CT: control target
= control target key end

     0   :  { %s10804_s0 = inlined_call_operand.vmem [shape: f32[2,32,64], index: 0, kind: input, shape index: {}]   ;;  %s10805_s1 = inlined_call_operand.vmem [shape: f32[2,1,32], index: 1, kind: input, shape index: {}]   ;;  %s10806_s2 = inlined_call_operand.vmem [shape: f32[2,1,32], index: 2, kind: input, shape index: {}]   ;;  %s10807_s3 = inlined_call_operand.vmem [shape: f32[2,1,32], index: 3, kind: input, shape index: {}]   ;;  %s10808_s4 = inlined_call_operand.vmem [shape: f32[2,1,32], index: 4, kind: input, shape index: {}]   ;;  %s10809_s5 = inlined_call_operand.vmem [shape: f32[32,32], index: 5, kind: input, shape index: {}]   ;;  %s10810_s6 = inlined_call_operand.vmem [shape: f32[1,32], index: 6, kind: input, shape index: {}]   ;;  %s10811_s7 = inlined_call_operand.vmem [shape: f32[1,32], index: 7, kind: input, shape index: {}]   ;;  %s10812_s8 = inlined_call_operand.vmem [shape: bf16[9,32,32], index: 8, kind: input, shape index: {}]   ;;  %s10813_s9 = inlined_call_operand.vmem [shape: f32[1,32], index: 9, kind: input, shape index: {}]   ;;  %s10814_s10 = inlined_call_operand.vmem [shape: f32[1,32], index: 10, kind: input, shape index: {}]   ;;  %s10815_s11 = inlined_call_operand.vmem [shape: f32[1,32], index: 11, kind: input, shape index: {}]   ;;  %s10816_s12 = inlined_call_operand.vmem [shape: bf16[9,32,32], index: 12, kind: input, shape index: {}]   ;;  %s10817_s13 = inlined_call_operand.vmem [shape: f32[1,32], index: 13, kind: input, shape index: {}]   ;;  %s10818_s14 = inlined_call_operand.vmem [shape: f32[1,32], index: 14, kind: input, shape index: {}]   ;;  %s10819_s15 = inlined_call_operand.vmem [shape: f32[1,32], index: 15, kind: input, shape index: {}]   ;;  %s10820_s16 = inlined_call_operand.vmem [shape: bf16[2,32,48], index: 16, kind: input, shape index: {}]   ;;  %s10821_s17 = inlined_call_operand.vmem [shape: f32[2,1,48], index: 17, kind: input, shape index: {}]   ;;  %s10822_s18 = inlined_call_operand.vmem [shape: bf16[2,16,32], index: 18, kind: input, shape index: {}]   ;;  %s10823_s19 = inlined_call_operand.vmem [shape: f32[1,32], index: 19, kind: input, shape index: {}]   ;;  %s10824_s20 = inlined_call_operand.vmem [shape: f32[1,32], index: 20, kind: input, shape index: {}]   ;;  %s10825_s21 = inlined_call_operand.vmem [shape: f32[1,32], index: 21, kind: input, shape index: {}]   ;;  %s10826_s22 = inlined_call_operand.vmem [shape: bf16[9,32,32], index: 22, kind: input, shape index: {}]   ;;  %s10827_s23 = inlined_call_operand.vmem [shape: f32[1,32], index: 23, kind: input, shape index: {}]   ;;  %s10828_s24 = inlined_call_operand.vmem [shape: f32[1,32], index: 24, kind: input, shape index: {}]   ;;  %s10829_s25 = inlined_call_operand.vmem [shape: f32[1,32], index: 25, kind: input, shape index: {}]   ;;  %s10830_s26 = inlined_call_operand.vmem [shape: bf16[9,32,32], index: 26, kind: input, shape index: {}]   ;;  %s10831_s27 = inlined_call_operand.vmem [shape: f32[1,32], index: 27, kind: input, shape index: {}]   ;;  %s10832_s28 = inlined_call_operand.vmem [shape: f32[2,32,64], index: 28, kind: output, shape index: {}]  }
   0x1   :  { %10837 = sst [smem:[#allocation5_spill]] %s10804_s0 }
   0x2   :  { %10838 = sst [smem:[#allocation6_spill]] %s10805_s1 }
   0x3   :  { %10839 = sst [smem:[#allocation7_spill]] %s10806_s2 }
   0x4   :  { %10840 = sst [smem:[#allocation8_spill]] %s10807_s3 }
   0x5   :  { %10841 = sst [smem:[#allocation9_spill]] %s10808_s4 }
   0x6   :  { %10842 = sst [smem:[#allocation10_spill]] %s10809_s5 }
   0x7   :  { %10843 = sst [smem:[#allocation11_spill]] %s10810_s6 }
   0x8   :  { %10844 = sst [smem:[#allocation12_spill]] %s10811_s7 }
   0x9   :  { %10845 = sst [smem:[#allocation13_spill]] %s10812_s8  ;;  %s9450_s8 = smov 0  }
   0xa   :  { %10846 = sst [smem:[#allocation14_spill]] %s10813_s9 }
   0xb   :  { %10847 = sst [smem:[#allocation15_spill]] %s10814_s10 }
   0xc   :  { %10848 = sst [smem:[#allocation16_spill]] %s10815_s11 }
   0xd   :  { %10849 = sst [smem:[#allocation17_spill]] %s10816_s12 }
   0xe   :  { %10850 = sst [smem:[#allocation18_spill]] %s10829_s25 }
   0xf   :  { %10851 = sst [smem:[#allocation19_spill]] %s10831_s27 }
  0x10 LB: > { %10852 = sst [smem:[#allocation4_spill]] %s9294_s8  ;;  %s7365_s5 = sadd.s32 4294967295, %s9294_s8   ;;  %s9294_s8 = sphi %s9450_s8, %s38_s8  }
  0x11   : > { %p7369_p0 = scmp.ge.s32.totalorder %s9294_s8, 1  ;;  %p794_p1 = scmp.lt.s32.totalorder %s9294_s8, 3 }
  0x13   : > { %p795_p2 = pnand %p7369_p0, %p794_p1 }
  0x14   : > { %p880_p3 = scmp.lt.s32.totalorder (!%p795_p2), %s7365_s5, 1  ;;  %s10853_s6 = sld [smem:[#allocation5_spill]] (!%p795_p2)  ;;  %v9300_v7 = vmov (!%p795_p2), 0.0|0.0   ;;  %vm907_vm0 = vcmask (!%p795_p2), 261120   ;;  %vm9301_vm1 = vmmov (!%p795_p2), 0   ;;  %v9302_v11 = vmov (!%p795_p2), 0.0  }
  0x15   : > { %798 = sbr.rel (%p795_p2) target bundleno = 5796 (0x16a4), region = 132  ;;  %8698 = vmatprep.subr.bf16.mxu0 (!%p795_p2), %v9300_v7  ;;  %8704 = vmatprep.subr.bf16.mxu1 (!%p795_p2), %v9300_v7  ;;  %3947 = vst.msk [vmem:[#allocation3] sm:$0xff] (!%p795_p2), %vm907_vm0, %v9302_v11  ;;  %3948 = vst.msk [vmem:[#allocation3 + $0x8] sm:$0xff] (!%p795_p2), %vm907_vm0, %v9302_v11  ;;  %v1071_v42 = vlaneseq (!%p795_p2)  ;;  %s10857_s12 = sld [smem:[#allocation13_spill]] (!%p795_p2)  ;;  %vm909_vm2 = vcmask (!%p795_p2), 254976   ;;  %vm915_vm3 = vcmask (!%p795_p2), 253952  }
  0x16   : > { %8110 = vmatprep.mubr.msk.f32.mxu0 (!%p795_p2), %vm9301_vm1, %v9302_v11  ;;  %3949 = vst.msk [vmem:[#allocation3 + $0x10] sm:$0xff] (!%p795_p2), %vm907_vm0, %v9302_v11  ;;  %3950 = vst.msk [vmem:[#allocation3 + $0x18] sm:$0xff] (!%p795_p2), %vm907_vm0, %v9302_v11  ;;  %8121 = vmatprep.mubr.msk.f32.mxu1 (!%p795_p2), %vm9301_vm1, %v9302_v11  ;;  %s10858_s8 = sld [smem:[#allocation11_spill]] (!%p795_p2)  ;;  %s10859_s29 = sld [smem:[#allocation12_spill]] (!%p795_p2) }
  0x17   : > { %3951 = vst.msk [vmem:[#allocation3 + $0x20] sm:$0xff] (!%p795_p2), %vm907_vm0, %v9302_v11  ;;  %3952 = vst.msk [vmem:[#allocation3 + $0x28] sm:$0xff] (!%p795_p2), %vm907_vm0, %v9302_v11  ;;  %v1072_v43 = vshrl.u32 (!%p795_p2), %v1071_v42, 7  ;;  %s10861_s30 = sld [smem:[#allocation17_spill]] (!%p795_p2)  ;;  %s10863_s1 = sld [smem:[#allocation6_spill]] (!%p795_p2) }
  0x18   : > { %3953 = vst.msk [vmem:[#allocation3 + $0x30] sm:$0xff] (!%p795_p2), %vm907_vm0, %v9302_v11  ;;  %3954 = vst.msk [vmem:[#allocation3 + $0x38] sm:$0xff] (!%p795_p2), %vm907_vm0, %v9302_v11  ;;  %s10864_s27 = sld [smem:[#allocation16_spill]] (!%p795_p2) }
  0x19   : > { %908 = vst.msk [vmem:[#allocation2] sm:$0xff] (!%p795_p2), %vm907_vm0, %v9302_v11  ;;  %912 = vst.msk [vmem:[#allocation2 + $0x90] sm:$0xff] (!%p795_p2), %vm907_vm0, %v9302_v11  ;;  %v9559_v44 = vsub.s32 (!%p795_p2), 0, %v1072_v43 }
  0x1a   : > { %910 = vst.msk [vmem:[#allocation2 + $0x8] sm:$0x3] (!%p795_p2), %vm909_vm2, %v9302_v11  ;;  %913 = vst.msk [vmem:[#allocation2 + $0x98] sm:$0x3] (!%p795_p2), %vm909_vm2, %v9302_v11 }
  0x1b   : > { %916 = vst.msk [vmem:[#allocation2 + $0x10] sm:$0x1] (!%p795_p2), %vm915_vm3, %v9302_v11  ;;  %917 = vst.msk [vmem:[#allocation2 + $0x20] sm:$0x1] (!%p795_p2), %vm915_vm3, %v9302_v11 }
  0x1c   : > { %s10874_s5 = smov (!%p880_p3, %s7365_s5), 1  ;;  %918 = vst.msk [vmem:[#allocation2 + $0x30] sm:$0x1] %vm915_vm3, %v9302_v11  ;;  %919 = vst.msk [vmem:[#allocation2 + $0x40] sm:$0x1] %vm915_vm3, %v9302_v11 }
  0x1d   : > { %s7805_s9 = sshll.u32 %s10874_s5, 5  ;;  %920 = vst.msk [vmem:[#allocation2 + $0x50] sm:$0x1] %vm915_vm3, %v9302_v11  ;;  %921 = vst.msk [vmem:[#allocation2 + $0x60] sm:$0x1] %vm915_vm3, %v9302_v11  ;;  %s887_s3 = scalar_lea.vmem %s10863_s1, %s10874_s5 }
  0x1e   : > { %s884_s10 = scalar_lea.vmem %s10853_s6, %s7805_s9  ;;  %s9475_s25 = scalar_lea.vmem %s10832_s28, %s7805_s9  ;;  %922 = vst.msk [vmem:[#allocation2 + $0x70] sm:$0x1] %vm915_vm3, %v9302_v11  ;;  %923 = vst.msk [vmem:[#allocation2 + $0x80] sm:$0x1] %vm915_vm3, %v9302_v11  ;;  %v7376_v42 = vld [vmem:[%s10858_s8] ss:$0 sm:$0xff] }
  0x1f   : > { %v932_v0 = vld [vmem:[%s884_s10] sm:$0xff]  ;;  %v933_v1 = vld [vmem:[%s884_s10 + $0x8] sm:$0xff]  ;;  %v934_v2 = vld [vmem:[%s884_s10 + $0x10] sm:$0xff]  ;;  %s10856_s6 = sld [smem:[#allocation10_spill]]  ;;  %924 = vst.msk [vmem:[#allocation2 + $0x19] sm:$0x1] %vm915_vm3, %v9302_v11 }
  0x20   : > { %936 = vxpose.xlu0.b32.start [1/4] (short) (narrow) %v932_v0, 64  ;;  %v935_v3 = vld [vmem:[%s884_s10 + $0x18] sm:$0xff]  ;;  %925 = vst.msk [vmem:[#allocation2 + $0x29] sm:$0x1] %vm915_vm3, %v9302_v11  ;;  %926 = vst.msk [vmem:[#allocation2 + $0x39] sm:$0x1] %vm915_vm3, %v9302_v11 }
  0x21   : > { %927 = vst.msk [vmem:[#allocation2 + $0x49] sm:$0x1] %vm915_vm3, %v9302_v11  ;;  %928 = vst.msk [vmem:[#allocation2 + $0x59] sm:$0x1] %vm915_vm3, %v9302_v11  ;;  %s10862_s10 = sld [smem:[#allocation15_spill]] }
  0x22   : > { %929 = vst.msk [vmem:[#allocation2 + $0x69] sm:$0x1] %vm915_vm3, %v9302_v11  ;;  %930 = vst.msk [vmem:[#allocation2 + $0x79] sm:$0x1] %vm915_vm3, %v9302_v11  ;;  %s10865_s8 = sld [smem:[#allocation7_spill]] }
  0x23   : > { %931 = vst.msk [vmem:[#allocation2 + $0x89] sm:$0x1] %vm915_vm3, %v9302_v11 }
  0x24   : > { %937 = vxpose.xlu0.b32.cont [2/4] (short) (narrow) %v933_v1, 64 }
  0x25   : > { %v903_v4 = vld [vmem:[%s10856_s6] sm:$0xff]  ;;  %v904_v5 = vld [vmem:[%s10856_s6 + $0x8] sm:$0xff]  ;;  %v905_v8 = vld [vmem:[%s10856_s6 + $0x10] sm:$0xff] }
  0x26   : > { %v9483_v6 = vpack.c.bf16 %v904_v5, %v903_v4  ;;  %v906_v9 = vld [vmem:[%s10856_s6 + $0x18] sm:$0xff] }
  0x27   : > { %v9497_v10 = vpack.c.bf16 %v906_v9, %v905_v8 }
  0x28   : > { %938 = vxpose.xlu0.b32.cont [3/4] (short) (narrow) %v934_v2, 64  ;;  %8700 = vmatpush3.bf16.msra.mxu0 %v9483_v6  ;;  %s890_s9 = scalar_lea.vmem %s10865_s8, %s10874_s5 }
  0x29   : > { %8706 = vmatpush3.bf16.msra.mxu1 %v9483_v6  ;;  %8701 = vmatprep.subr.bf16.mxu0 %v9300_v7 }
  0x2a   : > { %8707 = vmatprep.subr.bf16.mxu1 %v9300_v7 }
  0x2c   : > { %939 = vxpose.xlu0.b32.end [4/4] (short) (narrow) %v935_v3, 64  ;;  %8703 = vmatpush3.bf16.msra.mxu0 %v9497_v10 }
  0x2d   : > { %8709 = vmatpush3.bf16.msra.mxu1 %v9497_v10 }
  0x2e   : > { %8710 = vmatprep.subr.bf16.mxu1 %v9300_v7 }
  0xa0   : > { %v9526_v12 = vpop.trf.xlu0 }
  0xa1   : > { %v976_v18 = vsel %vm907_vm0, %v9526_v12, 0.0 }
  0xa4   : > { %v9528_v13 = vpop.trf.xlu0 }
  0xa5   : > { %v977_v16 = vsel %vm907_vm0, %v9528_v13, 0.0 }
  0xa6   : > { %v978_v20 = vadd.f32 %v977_v16, %v976_v18 }
  0xa8   : > { %v9530_v14 = vpop.trf.xlu0 }
  0xa9   : > { %v979_v19 = vsel %vm907_vm0, %v9530_v14, 0.0 }
  0xaa   : > { %v980_v22 = vadd.f32 %v979_v19, %v978_v20 }
  0xac   : > { %v9532_v15 = vpop.trf.xlu0 }
  0xad   : > { %v981_v21 = vsel %vm907_vm0, %v9532_v15, 0.0 }
  0xae   : > { %v982_v25 = vadd.f32 %v981_v21, %v980_v22 }
  0xb0   : > { %v9536_v17 = vpop.trf.xlu0 }
  0xb1   : > { %v983_v24 = vsel %vm907_vm0, %v9536_v17, 0.0 }
  0xb2   : > { %v984_v27 = vadd.f32 %v983_v24, %v982_v25 }
  0xb4   : > { %v9544_v23 = vpop.trf.xlu0 }
  0xb5   : > { %v985_v26 = vsel %vm907_vm0, %v9544_v23, 0.0 }
  0xb6   : > { %v986_v30 = vadd.f32 %v985_v26, %v984_v27 }
  0xb8   : > { %v9550_v28 = vpop.trf.xlu0 }
  0xb9   : > { %v987_v29 = vsel %vm907_vm0, %v9550_v28, 0.0 }
  0xba   : > { %v988_v31 = vadd.f32 %v987_v29, %v986_v30 }
  0xbc   : > { %v9554_v32 = vpop.trf.xlu0 }
  0xbd   : > { %v989_v33 = vsel %vm907_vm0, %v9554_v32, 0.0 }
  0xbe   : > { %v990_v34 = vadd.f32 %v989_v33, %v988_v31 }
  0xc0   : > { %v991_v35 = vrot.slane %v990_v34, 4 }
  0xc2   : > { %v992_v36 = vadd.f32 %v991_v35, %v990_v34  ;;  %v9039_v34 = vld [vmem:[%s10857_s12 + $0x10] sm:$0xff]   ;;  %v9040_v35 = vld [vmem:[%s10857_s12 + $0x18] sm:$0xff]  }
  0xc3   : > { %8124 = vmatprep.subr.bf16.mxu0 %v9039_v34 }
  0xc4   : > { %v993_v37 = vrot.slane %v992_v36, 2 }
  0xc6   : > { %v994_v38 = vadd.f32 %v993_v37, %v992_v36  ;;  %v9660_v36 = vld [vmem:[%s10857_s12] sm:$0xff]  }
  0xc8   : > { %v995_v39 = vrot.slane %v994_v38, 1 }
  0xca   : > { %v996_v40 = vadd.f32 %v995_v39, %v994_v38 }
  0xcc   : > { %v997_v41 = vmul.f32 0.015625, %v996_v40 }
  0xce   : > { %8111 = vmatmul.mubr.msk.f32.vlgmr.msra.gmra.mrb[0].mxu0 %vm907_vm0, %v997_v41 }
  0xcf   : > { %8125 = vmatpush3.bf16.msra.mxu0 %v9039_v34 }
  0xd0   : > { %8126 = vmatprep.subr.bf16.mxu0 %v9040_v35 }
  0xd3   : > { %8127 = vmatpush3.bf16.msra.mxu0 %v9040_v35 }
  0xd4   : > { %8136 = vmatprep.subr.bf16.mxu0 %v9660_v36 }
 0x1a1   : > { %v1067_v45 = vpop.f32.mrb[0].mxu0 }
 0x1a2   : > { %v1074_v46 = vrot.slane %v1067_v45, %v9559_v44  ;;  %v8112_v47 = vpop.f32.mrb[1].mxu0 }
 0x1a4   : > { %v9563_v48 = vsub.f32 %v9526_v12, %v1074_v46  ;;  %v9566_v49 = vsub.f32 %v9528_v13, %v1074_v46  ;;  %v9569_v50 = vsub.f32 %v9530_v14, %v1074_v46  ;;  %v9572_v51 = vsub.f32 %v9532_v15, %v1074_v46 }
 0x1a5   : > { %v9575_v52 = vsub.f32 %v9536_v17, %v1074_v46  ;;  %v9584_v56 = vsub.f32 %v9544_v23, %v1074_v46  ;;  %v9591_v61 = vsub.f32 %v9550_v28, %v1074_v46  ;;  %v9597_v1 = vsub.f32 %v9554_v32, %v1074_v46 }
 0x1a6   : > { %v1083_v53 = vmul.f32 %v9563_v48, %v9563_v48  ;;  %v1084_v54 = vmul.f32 %v9566_v49, %v9566_v49  ;;  %v1085_v55 = vmul.f32 %v9569_v50, %v9569_v50  ;;  %v1086_v57 = vmul.f32 %v9572_v51, %v9572_v51 }
 0x1a7   : > { %v1087_v62 = vmul.f32 %v9575_v52, %v9575_v52  ;;  %v1088_v2 = vmul.f32 %v9584_v56, %v9584_v56  ;;  %v1089_v5 = vmul.f32 %v9591_v61, %v9591_v61  ;;  %v1090_v16 = vmul.f32 %v9597_v1, %v9597_v1 }
 0x1a8   : > { %v1091_v58 = vsel %vm907_vm0, %v1083_v53, 0.0  ;;  %v1092_v59 = vsel %vm907_vm0, %v1084_v54, 0.0  ;;  %v1094_v63 = vsel %vm907_vm0, %v1085_v55, 0.0  ;;  %v1096_v3 = vsel %vm907_vm0, %v1086_v57, 0.0  ;;  %v7377_v53 = vld [vmem:[%s10859_s29] ss:$0 sm:$0xff] }
 0x1a9   : > { %v1093_v60 = vadd.f32 %v1092_v59, %v1091_v58  ;;  %v1098_v8 = vsel %vm907_vm0, %v1087_v62, 0.0  ;;  %v1100_v18 = vsel %vm907_vm0, %v1088_v2, 0.0  ;;  %v1102_v20 = vsel %vm907_vm0, %v1089_v5, 0.0  ;;  %s10860_s29 = sld [smem:[#allocation14_spill]] }
 0x1aa   : > { %v1104_v22 = vsel %vm907_vm0, %v1090_v16, 0.0 }
 0x1ab   : > { %v1095_v0 = vadd.f32 %v1094_v63, %v1093_v60 }
 0x1ad   : > { %v1097_v4 = vadd.f32 %v1096_v3, %v1095_v0 }
 0x1af   : > { %v1099_v9 = vadd.f32 %v1098_v8, %v1097_v4 }
 0x1b1   : > { %v1101_v19 = vadd.f32 %v1100_v18, %v1099_v9 }
 0x1b3   : > { %v1103_v21 = vadd.f32 %v1102_v20, %v1101_v19 }
 0x1b5   : > { %v1105_v24 = vadd.f32 %v1104_v22, %v1103_v21 }
 0x1b7   : > { %v1106_v25 = vrot.slane %v1105_v24, 4 }
 0x1b9   : > { %v1107_v26 = vadd.f32 %v1106_v25, %v1105_v24 }
 0x1bb   : > { %v1108_v27 = vrot.slane %v1107_v26, 2 }
 0x1bd   : > { %v1109_v29 = vadd.f32 %v1108_v27, %v1107_v26 }
 0x1bf   : > { %v1110_v30 = vrot.slane %v1109_v29, 1 }
 0x1c1   : > { %v1111_v31 = vadd.f32 %v1110_v30, %v1109_v29 }
 0x1c3   : > { %v1112_v33 = vmul.f32 0.015625, %v1111_v31 }
 0x1c5   : > { %8122 = vmatmul.mubr.msk.f32.vlgmr.msra.gmra.mrb[0].mxu1 %vm907_vm0, %v1112_v33 }
 0x1c6   : > { %8712 = vmatpush3.bf16.msra.mxu1 %v9483_v6  ;;  %8240 = vmatprep.mubr.msk.f32.mxu1 %vm9301_vm1, %v9302_v11 }
 0x1c7   : > { %8713 = vmatprep.subr.bf16.mxu1 %v9300_v7 }
 0x1ca   : > { %8715 = vmatpush3.bf16.msra.mxu1 %v9497_v10 }
 0x1cb   : > { %8716 = vmatprep.subr.bf16.mxu1 %v9300_v7 }
 0x298   : > { %v1182_v37 = vpop.f32.mrb[0].mxu1 }
 0x299   : > { %v1183_v38 = vadd.f32 1e-05, %v1182_v37  ;;  %v8123_v39 = vpop.f32.mrb[1].mxu1 }
 0x29b   : > { %9075 = vrsqrt.f32 %v1183_v38 }
 0x2a5   : > { %v9076_v40 = vpop.eup %9075 }
 0x2a6   : > { %v1190_v41 = vrot.slane %v9076_v40, %v9559_v44 }
 0x2a8   : > { %v1191_v43 = vmul.f32 %v1190_v41, %v9563_v48  ;;  %v1192_v45 = vmul.f32 %v1190_v41, %v9566_v49  ;;  %v1193_v46 = vmul.f32 %v1190_v41, %v9569_v50  ;;  %v1194_v47 = vmul.f32 %v1190_v41, %v9572_v51 }
 0x2a9   : > { %v1195_v54 = vmul.f32 %v1190_v41, %v9575_v52  ;;  %v1196_v55 = vmul.f32 %v1190_v41, %v9584_v56  ;;  %v1197_v57 = vmul.f32 %v1190_v41, %v9591_v61  ;;  %v1198_v58 = vmul.f32 %v1190_v41, %v9597_v1 }
 0x2aa   : > { %v1205_v59 = vmul.f32 %v7376_v42, %v1191_v43  ;;  %v1206_v48 = vmul.f32 %v7376_v42, %v1192_v45  ;;  %v1207_v60 = vmul.f32 %v7376_v42, %v1193_v46  ;;  %v1208_v49 = vmul.f32 %v7376_v42, %v1194_v47 }
 0x2ab   : > { %v1209_v62 = vmul.f32 %v7376_v42, %v1195_v54  ;;  %v1210_v50 = vmul.f32 %v7376_v42, %v1196_v55  ;;  %v1211_v63 = vmul.f32 %v7376_v42, %v1197_v57  ;;  %v1212_v51 = vmul.f32 %v7376_v42, %v1198_v58 }
 0x2ac   : > { %v1220_v0 = vadd.f32 %v7377_v53, %v1206_v48  ;;  %v1221_v2 = vadd.f32 %v7377_v53, %v1207_v60  ;;  %v1219_v3 = vadd.f32 %v7377_v53, %v1205_v59  ;;  %v1222_v4 = vadd.f32 %v7377_v53, %v1208_v49 }
 0x2ad   : > { %v1223_v5 = vadd.f32 %v7377_v53, %v1209_v62  ;;  %v1224_v52 = vadd.f32 %v7377_v53, %v1210_v50  ;;  %v1225_v61 = vadd.f32 %v7377_v53, %v1211_v63  ;;  %v1226_v1 = vadd.f32 %v7377_v53, %v1212_v51  ;;  %v9685_v63 = vld [vmem:[#allocation2 + $0x1] sm:$0xff] }
 0x2ae   : > { %v7379_v8 = vmul.f32 -1.442695, %v1220_v0  ;;  %v7380_v56 = vmul.f32 -1.442695, %v1221_v2  ;;  %v7378_v9 = vmul.f32 -1.442695, %v1219_v3 }
 0x2af   : > { %v7381_v16 = vmul.f32 -1.442695, %v1222_v4  ;;  %v7382_v18 = vmul.f32 -1.442695, %v1223_v5  ;;  %v7383_v19 = vmul.f32 -1.442695, %v1224_v52 }
 0x2b0   : > { %9077 = vpow2.f32 %v7379_v8  ;;  %v7384_v20 = vmul.f32 -1.442695, %v1225_v61  ;;  %v7385_v21 = vmul.f32 -1.442695, %v1226_v1  ;;  %v9042_v8 = vld [vmem:[%s10857_s12 + $0x8] sm:$0xff]  }
 0x2b1   : > { %9079 = vpow2.f32 %v7380_v56 }
 0x2b2   : > { %9081 = vpow2.f32 %v7378_v9  ;;  %v9043_v9 = vld [vmem:[%s10857_s12 + $0x20] sm:$0xff]  }
 0x2b3   : > { %9083 = vpow2.f32 %v7381_v16 }
 0x2b4   : > { %9085 = vpow2.f32 %v7382_v18 }
 0x2b5   : > { %9087 = vpow2.f32 %v7383_v19 }
 0x2b6   : > { %9089 = vpow2.f32 %v7384_v20 }
 0x2b7   : > { %9091 = vpow2.f32 %v7385_v21 }
 0x2ba   : > { %v9078_v22 = vpop.eup %9077 }
 0x2bb   : > { %v9080_v24 = vpop.eup %9079  ;;  %v1252_v25 = vadd.f32 1.0, %v9078_v22 }
 0x2bc   : > { %v9082_v26 = vpop.eup %9081  ;;  %v1253_v27 = vadd.f32 1.0, %v9080_v24 }
 0x2bd   : > { %v9084_v29 = vpop.eup %9083  ;;  %9093 = vrcp.f32 %v1252_v25  ;;  %v1251_v30 = vadd.f32 1.0, %v9082_v26  ;;  %v9044_v26 = vld [vmem:[%s10857_s12 + $0x28] sm:$0xff]  }
 0x2be   : > { %v9086_v31 = vpop.eup %9085  ;;  %9095 = vrcp.f32 %v1253_v27  ;;  %v1254_v33 = vadd.f32 1.0, %v9084_v29  ;;  %v9045_v29 = vld [vmem:[%s10857_s12 + $0x30] sm:$0xff]  }
 0x2bf   : > { %v9088_v34 = vpop.eup %9087  ;;  %9097 = vrcp.f32 %v1251_v30  ;;  %v1255_v35 = vadd.f32 1.0, %v9086_v31 }
 0x2c0   : > { %v9090_v37 = vpop.eup %9089  ;;  %9099 = vrcp.f32 %v1254_v33  ;;  %v1256_v38 = vadd.f32 1.0, %v9088_v34  ;;  %v9748_v33 = vld [vmem:[#allocation2 + $0x2] sm:$0xff] }
 0x2c1   : > { %v9092_v39 = vpop.eup %9091  ;;  %9101 = vrcp.f32 %v1255_v35  ;;  %v1257_v40 = vadd.f32 1.0, %v9090_v37 }
 0x2c2   : > { %9103 = vrcp.f32 %v1256_v38  ;;  %v1258_v41 = vadd.f32 1.0, %v9092_v39 }
 0x2c3   : > { %9105 = vrcp.f32 %v1257_v40 }
 0x2c4   : > { %9107 = vrcp.f32 %v1258_v41 }
 0x2c7   : > { %v9094_v42 = vpop.eup %9093 }
 0x2c8   : > { %v9096_v43 = vpop.eup %9095  ;;  %v1276_v45 = vmul.f32 %v9094_v42, %v1220_v0 }
 0x2c9   : > { %v9098_v46 = vpop.eup %9097  ;;  %v1277_v47 = vmul.f32 %v9096_v43, %v1221_v2  ;;  %v9046_v43 = vld [vmem:[%s10857_s12 + $0x38] sm:$0xff]  }
 0x2ca   : > { %v9100_v53 = vpop.eup %9099  ;;  %v1275_v54 = vmul.f32 %v9098_v46, %v1219_v3  ;;  %1284 = vst.msk [vmem:[#allocation2 + $0x21] sm:$0xff] %vm907_vm0, %v1276_v45  ;;  %v9047_v46 = vld [vmem:[%s10857_s12 + $0x40] sm:$0xff]  }
 0x2cb   : > { %v9102_v55 = vpop.eup %9101  ;;  %1285 = vst.msk [vmem:[#allocation2 + $0x31] sm:$0xff] %vm907_vm0, %v1277_v47  ;;  %v1278_v57 = vmul.f32 %v9100_v53, %v1222_v4 }
 0x2cc   : > { %v9104_v58 = vpop.eup %9103  ;;  %1283 = vst.msk [vmem:[#allocation2 + $0x11] sm:$0xff] %vm907_vm0, %v1275_v54  ;;  %v1279_v59 = vmul.f32 %v9102_v55, %v1223_v5 }
 0x2cd   : > { %v9106_v48 = vpop.eup %9105  ;;  %1286 = vst.msk [vmem:[#allocation2 + $0x41] sm:$0xff] %vm907_vm0, %v1278_v57  ;;  %v1280_v60 = vmul.f32 %v9104_v58, %v1224_v52  ;;  %v9048_v58 = vld [vmem:[%s10857_s12 + $0x48] sm:$0xff]  }
 0x2ce   : > { %v9108_v49 = vpop.eup %9107  ;;  %1287 = vst.msk [vmem:[#allocation2 + $0x51] sm:$0xff] %vm907_vm0, %v1279_v59  ;;  %v1281_v62 = vmul.f32 %v9106_v48, %v1225_v61  ;;  %v9049_v48 = vld [vmem:[%s10857_s12 + $0x50] sm:$0xff]  }
 0x2cf   : > { %1288 = vst.msk [vmem:[#allocation2 + $0x61] sm:$0xff] %vm907_vm0, %v1280_v60  ;;  %v1282_v50 = vmul.f32 %v9108_v49, %v1226_v1  ;;  %v9724_v1 = vld [vmem:[#allocation2] sm:$0xff] }
 0x2d0   : > { %1289 = vst.msk [vmem:[#allocation2 + $0x71] sm:$0xff] %vm907_vm0, %v1281_v62 }
 0x2d1   : > { %v9687_v51 = vld [vmem:[#allocation2 + $0x21] sm:$0xff]  ;;  %1290 = vst.msk [vmem:[#allocation2 + $0x81] sm:$0xff] %vm907_vm0, %v1282_v50 }
 0x2d2   : > { %v9690_v0 = vld [vmem:[#allocation2 + $0x31] sm:$0xff]  ;;  %v1293_v20 = vld [vmem:[#allocation2 + $0x20] sm:$0xff] }
 0x2d3   : > { %v9692_v2 = vld [vmem:[#allocation2 + $0x11] sm:$0xff]  ;;  %v9696_v3 = vpack.c.bf16 %v9690_v0, %v9687_v51  ;;  %v1504_v38 = vld [vmem:[#allocation2 + $0x22] sm:$0xff] }
 0x2d4   : > { %v1320_v4 = vpack.c.bf16 %v9692_v2, %v9685_v63  ;;  %v9700_v5 = vld [vmem:[#allocation2 + $0x41] sm:$0xff]  ;;  %v1292_v18 = vld [vmem:[#allocation2 + $0x10] sm:$0xff]  ;;  %v1743_v62 = vpack.c.bf16 %v9687_v51, %v9692_v2 }
 0x2d5   : > { %v9702_v52 = vld [vmem:[#allocation2 + $0x51] sm:$0xff]  ;;  %v1295_v22 = vld [vmem:[#allocation2 + $0x40] sm:$0xff]  ;;  %v1629_v55 = vpack.c.bf16 %v1293_v20, %v1292_v18  ;;  %v1744_v50 = vpack.c.bf16 %v9700_v5, %v9690_v0 }
 0x2d6   : > { %8128 = vmatprep.mubr.msk.bf16.mxu0 %vm907_vm0, %v1320_v4  ;;  %v9710_v56 = vpack.c.bf16 %v9702_v52, %v9700_v5  ;;  %v9720_v61 = vld [vmem:[#allocation2 + $0x61] sm:$0xff]  ;;  %v1294_v21 = vld [vmem:[#allocation2 + $0x30] sm:$0xff]  ;;  %v9050_v4 = vld [vmem:[%s10857_s12 + $0x58] sm:$0xff]  }
 0x2d7   : > { %8129 = vmatmul.mubr.msk.bf16.vlgmr.msra.gmra.mrb[4].mxu0 %vm907_vm0, %v9696_v3  ;;  %v9722_v16 = vld [vmem:[#allocation2 + $0x71] sm:$0xff]  ;;  %v9734_v25 = vpack.c.bf16 %v1294_v21, %v1293_v20  ;;  %v1297_v30 = vld [vmem:[#allocation2 + $0x60] sm:$0xff]  ;;  %v1630_v57 = vpack.c.bf16 %v1295_v22, %v1294_v21 }
 0x2d8   : > { %8137 = vmatpush3.bf16.msra.mxu0 %v9660_v36  ;;  %8132 = vmatprep.mubr.msk.bf16.mxu0 %vm907_vm0, %v9710_v56  ;;  %v9728_v19 = vpack.c.bf16 %v9722_v16, %v9720_v61  ;;  %v1303_v36 = vpack.c.bf16 %v1292_v18, %v9724_v1  ;;  %v1296_v24 = vld [vmem:[#allocation2 + $0x50] sm:$0xff]  ;;  %v1506_v40 = vld [vmem:[#allocation2 + $0x42] sm:$0xff]  ;;  %v9054_v20 = vld [vmem:[%s10857_s12 + $0x78] sm:$0xff]  }
 0x2d9   : > { %8138 = vmatprep.subr.bf16.mxu0 %v9042_v8  ;;  %v9739_v27 = vpack.c.bf16 %v1296_v24, %v1295_v22  ;;  %v1298_v31 = vld [vmem:[#allocation2 + $0x70] sm:$0xff]  ;;  %v1508_v47 = vld [vmem:[#allocation2 + $0x62] sm:$0xff]  ;;  %v1631_v59 = vpack.c.bf16 %v1297_v30, %v1296_v24 }
 0x2da   : > { %v1503_v34 = vld [vmem:[#allocation2 + $0x12] sm:$0xff]  ;;  %v9750_v35 = vpack.c.bf16 %v1298_v31, %v1297_v30  ;;  %v1623_v60 = vld [vmem:[#allocation2 + $0x80] sm:$0xff] }
 0x2db   : > { %v1515_v37 = vpack.c.bf16 %v1503_v34, %v9748_v33  ;;  %v1505_v39 = vld [vmem:[#allocation2 + $0x32] sm:$0xff]  ;;  %v1632_v49 = vpack.c.bf16 %v1623_v60, %v1298_v31  ;;  %v9051_v51 = vld [vmem:[%s10857_s12 + $0x60] sm:$0xff]   ;;  %v1857_v5 = vpack.c.bf16 %v1504_v38, %v1503_v34 }
 0x2dc   : > { %8139 = vmatpush3.bf16.msra.mxu0 %v9042_v8  ;;  %v1507_v41 = vld [vmem:[#allocation2 + $0x52] sm:$0xff]  ;;  %v9756_v42 = vpack.c.bf16 %v1505_v39, %v1504_v38  ;;  %v1745_v8 = vpack.c.bf16 %v9720_v61, %v9702_v52  ;;  %v1737_v2 = vld [vmem:[#allocation2 + $0x81] sm:$0xff]  ;;  %v1858_v52 = vpack.c.bf16 %v1506_v40, %v1505_v39 }
 0x2dd   : > { %8148 = vmatprep.subr.bf16.mxu0 %v9043_v9  ;;  %v9761_v45 = vpack.c.bf16 %v1507_v41, %v1506_v40  ;;  %v1509_v53 = vld [vmem:[#allocation2 + $0x72] sm:$0xff]  ;;  %v1746_v0 = vpack.c.bf16 %v1737_v2, %v9722_v16  ;;  %v1859_v61 = vpack.c.bf16 %v1508_v47, %v1507_v41  ;;  %v1851_v18 = vld [vmem:[#allocation2 + $0x82] sm:$0xff] }
 0x2de   : > { %v9770_v54 = vpack.c.bf16 %v1509_v53, %v1508_v47  ;;  %v9053_v16 = vld [vmem:[%s10857_s12 + $0x70] sm:$0xff]   ;;  %v9055_v21 = vld [vmem:[%s10857_s12 + $0x80] sm:$0xff]  }
 0x2df   : > { %8133 = vmatmul.mubr.msk.bf16.gmra.mrb[8].mxu0 %vm907_vm0, %v9728_v19  ;;  %v9823_v22 = vld [vmem:[#allocation2 + $0x90] sm:$0xff] }
 0x2e0   : > { %8140 = vmatprep.mubr.msk.bf16.mxu0 %vm907_vm0, %v1303_v36  ;;  %v1860_v36 = vpack.c.bf16 %v1851_v18, %v1509_v53  ;;  %v1975_v24 = vpack.c.bf16 %v9823_v22, %v1623_v60 }
 0x2e7   : > { %8141 = vmatmul.mubr.msk.bf16.vlgmr.msra.gmra.mrb[4].mxu0 %vm907_vm0, %v9734_v25 }
 0x2e8   : > { %8149 = vmatpush3.bf16.msra.mxu0 %v9043_v9  ;;  %8144 = vmatprep.mubr.msk.bf16.mxu0 %vm907_vm0, %v9739_v27  ;;  %v9052_v9 = vld [vmem:[%s10857_s12 + $0x68] sm:$0xff]  }
 0x2e9   : > { %8150 = vmatprep.subr.bf16.mxu0 %v9044_v26 }
 0x2ec   : > { %8151 = vmatpush3.bf16.msra.mxu0 %v9044_v26  ;;  %v9836_v26 = vld [vmem:[#allocation2 + $0x91] sm:$0xff] }
 0x2ed   : > { %8160 = vmatprep.subr.bf16.mxu0 %v9045_v29 }
 0x2ef   : > { %8145 = vmatmul.mubr.msk.bf16.gmra.mrb[8].mxu0 %vm907_vm0, %v9750_v35 }
 0x2f0   : > { %8152 = vmatprep.mubr.msk.bf16.mxu0 %vm907_vm0, %v1515_v37 }
 0x2f7   : > { %8153 = vmatmul.mubr.msk.bf16.vlgmr.msra.gmra.mrb[4].mxu0 %vm907_vm0, %v9756_v42 }
 0x2f8   : > { %8161 = vmatpush3.bf16.msra.mxu0 %v9045_v29  ;;  %8156 = vmatprep.mubr.msk.bf16.mxu0 %vm907_vm0, %v9761_v45 }
 0x2f9   : > { %8162 = vmatprep.subr.bf16.mxu0 %v9046_v43 }
 0x2fc   : > { %8163 = vmatpush3.bf16.msra.mxu0 %v9046_v43 }
 0x2fd   : > { %8172 = vmatprep.subr.bf16.mxu0 %v9047_v46 }
 0x2ff   : > { %8157 = vmatmul.mubr.msk.bf16.gmra.mrb[8].mxu0 %vm907_vm0, %v9770_v54 }
 0x300   : > { %8164 = vmatprep.mubr.msk.bf16.mxu0 %vm907_vm0, %v1629_v55 }
 0x307   : > { %8165 = vmatmul.mubr.msk.bf16.vlgmr.msra.gmra.mrb[4].mxu0 %vm907_vm0, %v1630_v57 }
 0x308   : > { %8173 = vmatpush3.bf16.msra.mxu0 %v9047_v46  ;;  %8168 = vmatprep.mubr.msk.bf16.mxu0 %vm907_vm0, %v1631_v59 }
 0x309   : > { %8174 = vmatprep.subr.bf16.mxu0 %v9048_v58 }
 0x30c   : > { %8175 = vmatpush3.bf16.msra.mxu0 %v9048_v58 }
 0x30d   : > { %8184 = vmatprep.subr.bf16.mxu0 %v9049_v48 }
 0x30f   : > { %8169 = vmatmul.mubr.msk.bf16.gmra.mrb[8].mxu0 %vm907_vm0, %v1632_v49 }
 0x310   : > { %8176 = vmatprep.mubr.msk.bf16.mxu0 %vm907_vm0, %v1743_v62 }
 0x317   : > { %8177 = vmatmul.mubr.msk.bf16.vlgmr.msra.gmra.mrb[4].mxu0 %vm907_vm0, %v1744_v50 }
 0x318   : > { %8185 = vmatpush3.bf16.msra.mxu0 %v9049_v48  ;;  %8180 = vmatprep.mubr.msk.bf16.mxu0 %vm907_vm0, %v1745_v8 }
 0x319   : > { %8186 = vmatprep.subr.bf16.mxu0 %v9050_v4 }
 0x31c   : > { %8187 = vmatpush3.bf16.msra.mxu0 %v9050_v4 }
 0x31d   : > { %8196 = vmatprep.subr.bf16.mxu0 %v9051_v51 }
 0x31f   : > { %8181 = vmatmul.mubr.msk.bf16.gmra.mrb[8].mxu0 %vm907_vm0, %v1746_v0 }
 0x320   : > { %8188 = vmatprep.mubr.msk.bf16.mxu0 %vm907_vm0, %v1857_v5 }
 0x327   : > { %8189 = vmatmul.mubr.msk.bf16.vlgmr.msra.gmra.mrb[4].mxu0 %vm907_vm0, %v1858_v52 }
 0x328   : > { %8197 = vmatpush3.bf16.msra.mxu0 %v9051_v51  ;;  %8192 = vmatprep.mubr.msk.bf16.mxu0 %vm907_vm0, %v1859_v61 }
 0x329   : > { %8198 = vmatprep.subr.bf16.mxu0 %v9052_v9 }
 0x32c   : > { %8199 = vmatpush3.bf16.msra.mxu0 %v9052_v9 }
 0x32d   : > { %8208 = vmatprep.subr.bf16.mxu0 %v9053_v16 }
 0x32f   : > { %8193 = vmatmul.mubr.msk.bf16.gmra.mrb[8].mxu0 %vm907_vm0, %v1860_v36 }
 0x330   : > { %8200 = vmatprep.mubr.msk.bf16.mxu0 %vm907_vm0, %v9734_v25  ;;  %v9056_v25 = vld [vmem:[%s10857_s12 + $0x88] sm:$0xff]  }
 0x337   : > { %8201 = vmatmul.mubr.msk.bf16.vlgmr.msra.gmra.mrb[4].mxu0 %vm907_vm0, %v9739_v27  ;;  %v2089_v27 = vpack.c.bf16 %v9836_v26, %v1737_v2 }
 0x338   : > { %8209 = vmatpush3.bf16.msra.mxu0 %v9053_v16  ;;  %8204 = vmatprep.mubr.msk.bf16.mxu0 %vm907_vm0, %v9750_v35 }
 0x339   : > { %8210 = vmatprep.subr.bf16.mxu0 %v9054_v20 }
 0x33c   : > { %8211 = vmatpush3.bf16.msra.mxu0 %v9054_v20 }
 0x33d   : > { %8220 = vmatprep.subr.bf16.mxu0 %v9055_v21 }
 0x33f   : > { %8205 = vmatmul.mubr.msk.bf16.gmra.mrb[8].mxu0 %vm907_vm0, %v1975_v24 }
 0x340   : > { %8212 = vmatprep.mubr.msk.bf16.mxu0 %vm907_vm0, %v9696_v3  ;;  %v9849_v3 = vld [vmem:[#allocation2 + $0x92] sm:$0xff] }
 0x347   : > { %8213 = vmatmul.mubr.msk.bf16.vlgmr.msra.gmra.mrb[4].mxu0 %vm907_vm0, %v9710_v56  ;;  %v2203_v56 = vpack.c.bf16 %v9849_v3, %v1851_v18 }
 0x348   : > { %8221 = vmatpush3.bf16.msra.mxu0 %v9055_v21  ;;  %8216 = vmatprep.mubr.msk.bf16.mxu0 %vm907_vm0, %v9728_v19  ;;  %v7472_v19 = vld [vmem:[%s10860_s29] ss:$0 sm:$0xff] }
 0x349   : > { %8222 = vmatprep.subr.bf16.mxu0 %v9056_v25 }
 0x34c   : > { %8223 = vmatpush3.bf16.msra.mxu0 %v9056_v25 }
 0x34d   : > { %8722 = vmatprep.subr.bf16.mxu0 %v9300_v7 }
 0x34f   : > { %8217 = vmatmul.mubr.msk.bf16.gmra.mrb[8].mxu0 %vm907_vm0, %v2089_v27 }
 0x350   : > { %8224 = vmatprep.mubr.msk.bf16.mxu0 %vm907_vm0, %v9756_v42 }
 0x357   : > { %8225 = vmatmul.mubr.msk.bf16.vlgmr.msra.gmra.mrb[4].mxu0 %vm907_vm0, %v9761_v45 }
 0x358   : > { %8228 = vmatprep.mubr.msk.bf16.mxu0 %vm907_vm0, %v9770_v54  ;;  %8724 = vmatpush3.bf16.msra.mxu0 %v9483_v6 }
 0x359   : > { %8725 = vmatprep.subr.bf16.mxu0 %v9300_v7 }
 0x35c   : > { %8727 = vmatpush3.bf16.msra.mxu0 %v9497_v10 }
 0x35d   : > { %8728 = vmatprep.subr.bf16.mxu0 %v9300_v7 }
 0x35f   : > { %8229 = vmatmul.mubr.msk.bf16.gmra.mrb[8].mxu0 %vm907_vm0, %v2203_v56 }
 0x360   : > { %8370 = vmatprep.mubr.msk.f32.mxu0 %vm9301_vm1, %v9302_v11 }
 0x42a   : > { %v8226_v29 = vpop.f32.mrb[4].mxu0 }
 0x42b   : > { %v2262_v30 = vpop.f32.mrb[5].mxu0  ;;  %v2309_v37 = vadd.f32 %v8226_v29, %v7472_v19 }
 0x42c   : > { %v2307_v31 = vadd.f32 %v7472_v19, %v2262_v30  ;;  %v8227_v34 = vpop.f32.mrb[6].mxu0 }
 0x42d   : > { %v2265_v35 = vpop.f32.mrb[7].mxu0  ;;  %v2310_v40 = vadd.f32 %v8227_v34, %v7472_v19  ;;  %v2318_v43 = vsel %vm907_vm0, %v2309_v37, 0.0 }
 0x42e   : > { %v2308_v38 = vadd.f32 %v7472_v19, %v2265_v35  ;;  %v2315_v39 = vsel %vm907_vm0, %v2307_v31, 0.0 }
 0x42f   : > { %v2320_v53 = vsel %vm907_vm0, %v2310_v40, 0.0 }
 0x430   : > { %v2316_v41 = vsel %vm907_vm0, %v2308_v38, 0.0 }
 0x431   : > { %v2317_v42 = vadd.f32 %v2316_v41, %v2315_v39 }
 0x432   : > { %v8230_v45 = vpop.f32.mrb[8].mxu0 }
 0x433   : > { %v2319_v46 = vadd.f32 %v2318_v43, %v2317_v42  ;;  %v2278_v47 = vpop.f32.mrb[9].mxu0  ;;  %v2313_v59 = vadd.f32 %v8230_v45, %v7472_v19 }
 0x434   : > { %v2311_v54 = vadd.f32 %v7472_v19, %v2278_v47  ;;  %v8231_v55 = vpop.f32.mrb[10].mxu0 }
 0x435   : > { %v2321_v57 = vadd.f32 %v2320_v53, %v2319_v46  ;;  %v2281_v58 = vpop.f32.mrb[11].mxu0  ;;  %v2314_v62 = vadd.f32 %v8231_v55, %v7472_v19  ;;  %v2326_v8 = vsel %vm907_vm0, %v2313_v59, 0.0 }
 0x436   : > { %v2322_v48 = vsel %vm907_vm0, %v2311_v54, 0.0  ;;  %v2312_v60 = vadd.f32 %v7472_v19, %v2281_v58 }
 0x437   : > { %v2323_v49 = vadd.f32 %v2322_v48, %v2321_v57  ;;  %v2328_v2 = vsel %vm907_vm0, %v2314_v62, 0.0 }
 0x438   : > { %v2324_v50 = vsel %vm907_vm0, %v2312_v60, 0.0 }
 0x439   : > { %v2325_v4 = vadd.f32 %v2324_v50, %v2323_v49 }
 0x43b   : > { %v2327_v51 = vadd.f32 %v2326_v8, %v2325_v4 }
 0x43d   : > { %v2329_v0 = vadd.f32 %v2328_v2, %v2327_v51 }
 0x43f   : > { %v2330_v5 = vrot.slane %v2329_v0, 4 }
 0x441   : > { %v2331_v52 = vadd.f32 %v2330_v5, %v2329_v0 }
 0x443   : > { %v2332_v9 = vrot.slane %v2331_v52, 2 }
 0x445   : > { %v2333_v61 = vadd.f32 %v2332_v9, %v2331_v52 }
 0x447   : > { %v2334_v16 = vrot.slane %v2333_v61, 1 }
 0x449   : > { %v2335_v18 = vadd.f32 %v2334_v16, %v2333_v61  ;;  %v9057_v61 = vld [vmem:[%s10861_s30 + $0x10] sm:$0xff]   ;;  %v9058_v16 = vld [vmem:[%s10861_s30 + $0x18] sm:$0xff]  }
 0x44b   : > { %v2336_v36 = vmul.f32 0.015625, %v2335_v18  ;;  %v9893_v18 = vld [vmem:[%s10861_s30] sm:$0xff]  }
 0x44d   : > { %8241 = vmatmul.mubr.msk.f32.vlgmr.msra.gmra.mrb[2].mxu1 %vm907_vm0, %v2336_v36 }
 0x44e   : > { %8718 = vmatpush3.bf16.msra.mxu1 %v9483_v6  ;;  %8251 = vmatprep.mubr.msk.f32.mxu1 %vm9301_vm1, %v9302_v11 }
 0x44f   : > { %8719 = vmatprep.subr.bf16.mxu1 %v9300_v7 }
 0x452   : > { %8721 = vmatpush3.bf16.msra.mxu1 %v9497_v10 }
 0x453   : > { %8254 = vmatprep.subr.bf16.mxu1 %v9057_v61 }
 0x520   : > { %v2406_v20 = vpop.f32.mrb[2].mxu1 }
 0x521   : > { %v2413_v21 = vrot.slane %v2406_v20, %v9559_v44  ;;  %v8242_v24 = vpop.f32.mrb[3].mxu1 }
 0x523   : > { %v2414_v25 = vsub.f32 %v2307_v31, %v2413_v21  ;;  %v2415_v27 = vsub.f32 %v2308_v38, %v2413_v21  ;;  %v2416_v56 = vsub.f32 %v2309_v37, %v2413_v21  ;;  %v2417_v19 = vsub.f32 %v2310_v40, %v2413_v21 }
 0x524   : > { %v2418_v29 = vsub.f32 %v2311_v54, %v2413_v21  ;;  %v2419_v39 = vsub.f32 %v2312_v60, %v2413_v21  ;;  %v2420_v46 = vsub.f32 %v2313_v59, %v2413_v21  ;;  %v2421_v31 = vsub.f32 %v2314_v62, %v2413_v21 }
 0x525   : > { %v2422_v30 = vmul.f32 %v2414_v25, %v2414_v25  ;;  %v2423_v34 = vmul.f32 %v2415_v27, %v2415_v27  ;;  %v2424_v35 = vmul.f32 %v2416_v56, %v2416_v56  ;;  %v2425_v41 = vmul.f32 %v2417_v19, %v2417_v19 }
 0x526   : > { %v2426_v47 = vmul.f32 %v2418_v29, %v2418_v29  ;;  %v2427_v38 = vmul.f32 %v2419_v39, %v2419_v39  ;;  %v2428_v54 = vmul.f32 %v2420_v46, %v2420_v46  ;;  %v2429_v48 = vmul.f32 %v2421_v31, %v2421_v31 }
 0x527   : > { %v2430_v42 = vsel %vm907_vm0, %v2422_v30, 0.0  ;;  %v2431_v43 = vsel %vm907_vm0, %v2423_v34, 0.0  ;;  %v2433_v53 = vsel %vm907_vm0, %v2424_v35, 0.0  ;;  %v2435_v37 = vsel %vm907_vm0, %v2425_v41, 0.0  ;;  %v7475_v34 = vld [vmem:[%s10862_s10] ss:$0 sm:$0xff] }
 0x528   : > { %v2432_v45 = vadd.f32 %v2431_v43, %v2430_v42  ;;  %v2437_v57 = vsel %vm907_vm0, %v2426_v47, 0.0  ;;  %v2439_v60 = vsel %vm907_vm0, %v2427_v38, 0.0  ;;  %v2441_v50 = vsel %vm907_vm0, %v2428_v54, 0.0  ;;  %s10174_s10 = smov 0  }
 0x529   : > { %v2443_v4 = vsel %vm907_vm0, %v2429_v48, 0.0 }
 0x52a   : > { %v2434_v55 = vadd.f32 %v2433_v53, %v2432_v45  ;;  %v7476_v45 = vld [vmem:[%s10864_s27] ss:$0 sm:$0xff] }
 0x52c   : > { %v2436_v40 = vadd.f32 %v2435_v37, %v2434_v55 }
 0x52e   : > { %v2438_v58 = vadd.f32 %v2437_v57, %v2436_v40 }
 0x530   : > { %v2440_v49 = vadd.f32 %v2439_v60, %v2438_v58 }
 0x532   : > { %v2442_v59 = vadd.f32 %v2441_v50, %v2440_v49 }
 0x534   : > { %v2444_v8 = vadd.f32 %v2443_v4, %v2442_v59 }
 0x536   : > { %v2445_v51 = vrot.slane %v2444_v8, 4 }
 0x538   : > { %v2446_v62 = vadd.f32 %v2445_v51, %v2444_v8 }
 0x53a   : > { %v2447_v2 = vrot.slane %v2446_v62, 2 }
 0x53c   : > { %v2448_v0 = vadd.f32 %v2447_v2, %v2446_v62 }
 0x53e   : > { %v2449_v5 = vrot.slane %v2448_v0, 1 }
 0x540   : > { %v2450_v52 = vadd.f32 %v2449_v5, %v2448_v0 }
 0x542   : > { %v2451_v9 = vmul.f32 0.015625, %v2450_v52 }
 0x544   : > { %8252 = vmatmul.mubr.msk.f32.vlgmr.msra.gmra.mrb[4].mxu1 %vm907_vm0, %v2451_v9 }
 0x545   : > { %8255 = vmatpush3.bf16.msra.mxu1 %v9057_v61 }
 0x546   : > { %8256 = vmatprep.subr.bf16.mxu1 %v9058_v16 }
 0x549   : > { %8257 = vmatpush3.bf16.msra.mxu1 %v9058_v16 }
 0x54a   : > { %8266 = vmatprep.subr.bf16.mxu1 %v9893_v18 }
 0x617   : > { %v2521_v36 = vpop.f32.mrb[4].mxu1 }
 0x618   : > { %v2522_v20 = vadd.f32 1e-05, %v2521_v36  ;;  %v8253_v21 = vpop.f32.mrb[5].mxu1 }
 0x61a   : > { %9109 = vrsqrt.f32 %v2522_v20 }
 0x624   : > { %v9110_v24 = vpop.eup %9109 }
 0x625   : > { %v2529_v30 = vrot.slane %v9110_v24, %v9559_v44 }
 0x627   : > { %v2530_v35 = vmul.f32 %v2529_v30, %v2414_v25  ;;  %v2531_v41 = vmul.f32 %v2529_v30, %v2415_v27  ;;  %v2532_v42 = vmul.f32 %v2529_v30, %v2416_v56  ;;  %v2533_v43 = vmul.f32 %v2529_v30, %v2417_v19  ;;  %v7477_v25 = vld [vmem:[%s887_s3] ss:$0 sm:$0xff] }
 0x628   : > { %v2534_v47 = vmul.f32 %v2529_v30, %v2418_v29  ;;  %v2535_v53 = vmul.f32 %v2529_v30, %v2419_v39  ;;  %v2536_v55 = vmul.f32 %v2529_v30, %v2420_v46  ;;  %v2537_v38 = vmul.f32 %v2529_v30, %v2421_v31  ;;  %v7478_v39 = vld [vmem:[%s890_s9] ss:$0 sm:$0xff] }
 0x629   : > { %v2544_v37 = vmul.f32 %v7475_v34, %v2530_v35  ;;  %v2545_v40 = vmul.f32 %v7475_v34, %v2531_v41  ;;  %v2546_v54 = vmul.f32 %v7475_v34, %v2532_v42  ;;  %v2547_v57 = vmul.f32 %v7475_v34, %v2533_v43 }
 0x62a   : > { %v2548_v27 = vmul.f32 %v7475_v34, %v2534_v47  ;;  %v2549_v56 = vmul.f32 %v7475_v34, %v2535_v53  ;;  %v2550_v19 = vmul.f32 %v7475_v34, %v2536_v55  ;;  %v2551_v58 = vmul.f32 %v7475_v34, %v2537_v38 }
 0x62b   : > { %v2558_v48 = vadd.f32 %v7476_v45, %v2544_v37  ;;  %v2559_v60 = vadd.f32 %v7476_v45, %v2545_v40  ;;  %v2560_v49 = vadd.f32 %v7476_v45, %v2546_v54  ;;  %v2561_v29 = vadd.f32 %v7476_v45, %v2547_v57 }
 0x62c   : > { %v2562_v46 = vadd.f32 %v7476_v45, %v2548_v27  ;;  %v2563_v31 = vadd.f32 %v7476_v45, %v2549_v56  ;;  %v2564_v50 = vadd.f32 %v7476_v45, %v2550_v19  ;;  %v2565_v59 = vadd.f32 %v7476_v45, %v2551_v58 }
 0x62d   : > { %v2572_v4 = vmul.f32 %v7477_v25, %v2558_v48  ;;  %v2573_v8 = vmul.f32 %v7477_v25, %v2559_v60  ;;  %v2574_v51 = vmul.f32 %v7477_v25, %v2560_v49  ;;  %v2575_v62 = vmul.f32 %v7477_v25, %v2561_v29 }
 0x62e   : > { %v2576_v2 = vmul.f32 %v7477_v25, %v2562_v46  ;;  %v2577_v0 = vmul.f32 %v7477_v25, %v2563_v31  ;;  %v2578_v5 = vmul.f32 %v7477_v25, %v2564_v50  ;;  %v2579_v52 = vmul.f32 %v7477_v25, %v2565_v59 }
 0x62f   : > { %v2586_v9 = vadd.f32 %v7478_v39, %v2572_v4  ;;  %v2587_v61 = vadd.f32 %v7478_v39, %v2573_v8  ;;  %v2588_v16 = vadd.f32 %v7478_v39, %v2574_v51  ;;  %v2589_v36 = vadd.f32 %v7478_v39, %v2575_v62 }
 0x630   : > { %v2590_v20 = vadd.f32 %v7478_v39, %v2576_v2  ;;  %v2591_v21 = vadd.f32 %v7478_v39, %v2577_v0  ;;  %v2592_v24 = vadd.f32 %v7478_v39, %v2578_v5  ;;  %v2593_v30 = vadd.f32 %v7478_v39, %v2579_v52 }
 0x631   : > { %v7479_v34 = vmul.f32 -1.442695, %v2586_v9  ;;  %v7480_v35 = vmul.f32 -1.442695, %v2587_v61  ;;  %v7481_v41 = vmul.f32 -1.442695, %v2588_v16 }
 0x632   : > { %v7482_v42 = vmul.f32 -1.442695, %v2589_v36  ;;  %v7483_v43 = vmul.f32 -1.442695, %v2590_v20  ;;  %v7484_v45 = vmul.f32 -1.442695, %v2591_v21 }
 0x633   : > { %9111 = vpow2.f32 %v7479_v34  ;;  %v7485_v47 = vmul.f32 -1.442695, %v2592_v24  ;;  %v7486_v53 = vmul.f32 -1.442695, %v2593_v30 }
 0x634   : > { %9113 = vpow2.f32 %v7480_v35 }
 0x635   : > { %9115 = vpow2.f32 %v7481_v41  ;;  %v9060_v41 = vld [vmem:[%s10861_s30 + $0x8] sm:$0xff]  }
 0x636   : > { %9117 = vpow2.f32 %v7482_v42 }
 0x637   : > { %9119 = vpow2.f32 %v7483_v43  ;;  %v9061_v43 = vld [vmem:[%s10861_s30 + $0x20] sm:$0xff]  }
 0x638   : > { %9121 = vpow2.f32 %v7484_v45 }
 0x639   : > { %9123 = vpow2.f32 %v7485_v47 }
 0x63a   : > { %9125 = vpow2.f32 %v7486_v53 }
 0x63d   : > { %v9112_v55 = vpop.eup %9111 }
 0x63e   : > { %v9114_v38 = vpop.eup %9113  ;;  %v2618_v37 = vadd.f32 1.0, %v9112_v55 }
 0x63f   : > { %v9116_v40 = vpop.eup %9115  ;;  %v2619_v54 = vadd.f32 1.0, %v9114_v38 }
 0x640   : > { %v9118_v57 = vpop.eup %9117  ;;  %v2620_v25 = vadd.f32 1.0, %v9116_v40  ;;  %9127 = vrcp.f32 %v2618_v37 }
 0x641   : > { %v9120_v27 = vpop.eup %9119  ;;  %v2621_v56 = vadd.f32 1.0, %v9118_v57  ;;  %9129 = vrcp.f32 %v2619_v54 }
 0x642   : > { %v9122_v19 = vpop.eup %9121  ;;  %v2622_v58 = vadd.f32 1.0, %v9120_v27  ;;  %9131 = vrcp.f32 %v2620_v25  ;;  %v9062_v25 = vld [vmem:[%s10861_s30 + $0x28] sm:$0xff]  }
 0x643   : > { %v9124_v48 = vpop.eup %9123  ;;  %v2623_v60 = vadd.f32 1.0, %v9122_v19  ;;  %9133 = vrcp.f32 %v2621_v56 }
 0x644   : > { %v9126_v49 = vpop.eup %9125  ;;  %v2624_v29 = vadd.f32 1.0, %v9124_v48  ;;  %9135 = vrcp.f32 %v2622_v58 }
 0x645   : > { %v2625_v39 = vadd.f32 1.0, %v9126_v49  ;;  %9137 = vrcp.f32 %v2623_v60 }
 0x646   : > { %9139 = vrcp.f32 %v2624_v29 }
 0x647   : > { %9141 = vrcp.f32 %v2625_v39 }
 0x64a   : > { %v9128_v46 = vpop.eup %9127 }
 0x64b   : > { %v9130_v31 = vpop.eup %9129  ;;  %v2642_v50 = vmul.f32 %v9128_v46, %v2586_v9 }
 0x64c   : > { %v9132_v59 = vpop.eup %9131  ;;  %v2643_v4 = vmul.f32 %v9130_v31, %v2587_v61 }
 0x64d   : > { %v9134_v8 = vpop.eup %9133  ;;  %v2644_v51 = vmul.f32 %v9132_v59, %v2588_v16  ;;  %2650 = vst.msk [vmem:[#allocation2 + $0x11] sm:$0xff] %vm907_vm0, %v2642_v50  ;;  %v9064_v50 = vld [vmem:[%s10861_s30 + $0x38] sm:$0xff]  }
 0x64e   : > { %v9136_v62 = vpop.eup %9135  ;;  %v2645_v2 = vmul.f32 %v9134_v8, %v2589_v36  ;;  %2651 = vst.msk [vmem:[#allocation2 + $0x21] sm:$0xff] %vm907_vm0, %v2643_v4 }
 0x64f   : > { %v9138_v0 = vpop.eup %9137  ;;  %v2646_v5 = vmul.f32 %v9136_v62, %v2590_v20  ;;  %2652 = vst.msk [vmem:[#allocation2 + $0x31] sm:$0xff] %vm907_vm0, %v2644_v51 }
 0x650   : > { %v9140_v52 = vpop.eup %9139  ;;  %v2647_v34 = vmul.f32 %v9138_v0, %v2591_v21  ;;  %2653 = vst.msk [vmem:[#allocation2 + $0x41] sm:$0xff] %vm907_vm0, %v2645_v2  ;;  %v9066_v0 = vld [vmem:[%s10861_s30 + $0x48] sm:$0xff]  }
 0x651   : > { %v9142_v35 = vpop.eup %9141  ;;  %v2648_v9 = vmul.f32 %v9140_v52, %v2592_v24  ;;  %2654 = vst.msk [vmem:[#allocation2 + $0x51] sm:$0xff] %vm907_vm0, %v2646_v5  ;;  %v9067_v52 = vld [vmem:[%s10861_s30 + $0x50] sm:$0xff]  }
 0x652   : > { %v2649_v61 = vmul.f32 %v9142_v35, %v2593_v30  ;;  %2655 = vst.msk [vmem:[#allocation2 + $0x61] sm:$0xff] %vm907_vm0, %v2647_v34 }
 0x653   : > { %2656 = vst.msk [vmem:[#allocation2 + $0x71] sm:$0xff] %vm907_vm0, %v2648_v9 }
 0x654   : > { %2657 = vst.msk [vmem:[#allocation2 + $0x81] sm:$0xff] %vm907_vm0, %v2649_v61  ;;  %v9919_v16 = vld [vmem:[#allocation2 + $0x11] sm:$0xff] }
 0x655   : > { %v2687_v36 = vpack.c.bf16 %v9919_v16, %v9685_v63  ;;  %v9923_v20 = vld [vmem:[#allocation2 + $0x21] sm:$0xff]  ;;  %v2659_v53 = vld [vmem:[#allocation2 + $0x10] sm:$0xff] }
 0x656   : > { %v9925_v21 = vld [vmem:[#allocation2 + $0x31] sm:$0xff]  ;;  %v2660_v38 = vld [vmem:[#allocation2 + $0x20] sm:$0xff]  ;;  %v3110_v9 = vpack.c.bf16 %v9923_v20, %v9919_v16 }
 0x657   : > { %8258 = vmatprep.mubr.msk.bf16.mxu1 %vm907_vm0, %v2687_v36  ;;  %v9930_v24 = vpack.c.bf16 %v9925_v21, %v9923_v20  ;;  %v9932_v30 = vld [vmem:[#allocation2 + $0x41] sm:$0xff]  ;;  %v2661_v37 = vld [vmem:[#allocation2 + $0x30] sm:$0xff]  ;;  %v2996_v62 = vpack.c.bf16 %v2660_v38, %v2659_v53  ;;  %v9068_v36 = vld [vmem:[%s10861_s30 + $0x58] sm:$0xff]  }
 0x658   : > { %v9937_v42 = vld [vmem:[#allocation2 + $0x51] sm:$0xff]  ;;  %v2662_v40 = vld [vmem:[#allocation2 + $0x40] sm:$0xff]  ;;  %v9963_v57 = vpack.c.bf16 %v2661_v37, %v2660_v38  ;;  %v3111_v61 = vpack.c.bf16 %v9932_v30, %v9925_v21 }
 0x659   : > { %8259 = vmatmul.mubr.msk.bf16.vlgmr.msra.gmra.mrb[8].mxu1 %vm907_vm0, %v9930_v24  ;;  %v9943_v63 = vpack.c.bf16 %v9937_v42, %v9932_v30  ;;  %v9951_v45 = vld [vmem:[#allocation2 + $0x61] sm:$0xff]  ;;  %v2663_v54 = vld [vmem:[#allocation2 + $0x50] sm:$0xff]  ;;  %v2997_v2 = vpack.c.bf16 %v2662_v40, %v2661_v37  ;;  %v9072_v38 = vld [vmem:[%s10861_s30 + $0x78] sm:$0xff]  }
 0x65a   : > { %8267 = vmatpush3.bf16.msra.mxu1 %v9893_v18  ;;  %v9953_v47 = vld [vmem:[#allocation2 + $0x71] sm:$0xff]  ;;  %v2670_v18 = vpack.c.bf16 %v2659_v53, %v9724_v1  ;;  %v9968_v27 = vpack.c.bf16 %v2663_v54, %v2662_v40  ;;  %v2664_v56 = vld [vmem:[#allocation2 + $0x60] sm:$0xff] }
 0x65b   : > { %8262 = vmatprep.mubr.msk.bf16.mxu1 %vm907_vm0, %v9943_v63  ;;  %8268 = vmatprep.subr.bf16.mxu1 %v9060_v41  ;;  %v9957_v55 = vpack.c.bf16 %v9953_v47, %v9951_v45  ;;  %v9063_v1 = vld [vmem:[%s10861_s30 + $0x30] sm:$0xff]   ;;  %v2871_v49 = vld [vmem:[#allocation2 + $0x22] sm:$0xff]  ;;  %v2998_v5 = vpack.c.bf16 %v2664_v56, %v2663_v54 }
 0x65c   : > { %v2665_v19 = vld [vmem:[#allocation2 + $0x70] sm:$0xff]  ;;  %v2873_v39 = vld [vmem:[#allocation2 + $0x42] sm:$0xff] }
 0x65d   : > { %v2870_v58 = vld [vmem:[#allocation2 + $0x12] sm:$0xff]  ;;  %v9977_v48 = vpack.c.bf16 %v2665_v19, %v2664_v56  ;;  %v2875_v4 = vld [vmem:[#allocation2 + $0x62] sm:$0xff] }
 0x65e   : > { %8269 = vmatpush3.bf16.msra.mxu1 %v9060_v41  ;;  %v2882_v60 = vpack.c.bf16 %v2870_v58, %v9748_v33  ;;  %v2872_v29 = vld [vmem:[#allocation2 + $0x32] sm:$0xff]  ;;  %v9065_v33 = vld [vmem:[%s10861_s30 + $0x40] sm:$0xff]   ;;  %v3112_v41 = vpack.c.bf16 %v9951_v45, %v9937_v42  ;;  %v3224_v30 = vpack.c.bf16 %v2871_v49, %v2870_v58  ;;  %v9074_v54 = vld [vmem:[%s10861_s30 + $0x88] sm:$0xff]  }
 0x65f   : > { %8278 = vmatprep.subr.bf16.mxu1 %v9061_v43  ;;  %v2874_v46 = vld [vmem:[#allocation2 + $0x52] sm:$0xff]  ;;  %v9983_v31 = vpack.c.bf16 %v2872_v29, %v2871_v49  ;;  %v2990_v34 = vld [vmem:[#allocation2 + $0x80] sm:$0xff]  ;;  %v3225_v42 = vpack.c.bf16 %v2873_v39, %v2872_v29 }
 0x660   : > { %v9988_v59 = vpack.c.bf16 %v2874_v46, %v2873_v39  ;;  %v2876_v8 = vld [vmem:[#allocation2 + $0x72] sm:$0xff]  ;;  %v2999_v35 = vpack.c.bf16 %v2990_v34, %v2665_v19  ;;  %v9069_v16 = vld [vmem:[%s10861_s30 + $0x60] sm:$0xff]   ;;  %v3226_v45 = vpack.c.bf16 %v2875_v4, %v2874_v46  ;;  %v3341_v40 = vpack.c.bf16 %v9823_v22, %v2990_v34 }
 0x661   : > { %8263 = vmatmul.mubr.msk.bf16.gmra.mrb[12].mxu1 %vm907_vm0, %v9957_v55  ;;  %v9997_v51 = vpack.c.bf16 %v2876_v8, %v2875_v4  ;;  %v3104_v20 = vld [vmem:[#allocation2 + $0x81] sm:$0xff] }
 0x662   : > { %8270 = vmatprep.mubr.msk.bf16.mxu1 %vm907_vm0, %v2670_v18  ;;  %v3113_v21 = vpack.c.bf16 %v3104_v20, %v9953_v47  ;;  %v9071_v47 = vld [vmem:[%s10861_s30 + $0x70] sm:$0xff]   ;;  %v3218_v53 = vld [vmem:[#allocation2 + $0x82] sm:$0xff]  ;;  %v3455_v22 = vpack.c.bf16 %v9836_v26, %v3104_v20  ;;  %v7573_v26 = vld [vmem:[%s10817_s13] ss:$0 sm:$0xff] }
 0x663   : > { %v3227_v18 = vpack.c.bf16 %v3218_v53, %v2876_v8  ;;  %v9073_v37 = vld [vmem:[%s10861_s30 + $0x80] sm:$0xff]  }
 0x669   : > { %8271 = vmatmul.mubr.msk.bf16.vlgmr.msra.gmra.mrb[8].mxu1 %vm907_vm0, %v9963_v57 }
 0x66a   : > { %8279 = vmatpush3.bf16.msra.mxu1 %v9061_v43  ;;  %8274 = vmatprep.mubr.msk.bf16.mxu1 %vm907_vm0, %v9968_v27  ;;  %v9070_v43 = vld [vmem:[%s10861_s30 + $0x68] sm:$0xff]  }
 0x66b   : > { %8280 = vmatprep.subr.bf16.mxu1 %v9062_v25 }
 0x66e   : > { %8281 = vmatpush3.bf16.msra.mxu1 %v9062_v25 }
 0x66f   : > { %8290 = vmatprep.subr.bf16.mxu1 %v9063_v1 }
 0x671   : > { %8275 = vmatmul.mubr.msk.bf16.gmra.mrb[12].mxu1 %vm907_vm0, %v9977_v48 }
 0x672   : > { %8282 = vmatprep.mubr.msk.bf16.mxu1 %vm907_vm0, %v2882_v60 }
 0x679   : > { %8283 = vmatmul.mubr.msk.bf16.vlgmr.msra.gmra.mrb[8].mxu1 %vm907_vm0, %v9983_v31 }
 0x67a   : > { %8291 = vmatpush3.bf16.msra.mxu1 %v9063_v1  ;;  %8286 = vmatprep.mubr.msk.bf16.mxu1 %vm907_vm0, %v9988_v59 }
 0x67b   : > { %8292 = vmatprep.subr.bf16.mxu1 %v9064_v50 }
 0x67e   : > { %8293 = vmatpush3.bf16.msra.mxu1 %v9064_v50 }
 0x67f   : > { %8302 = vmatprep.subr.bf16.mxu1 %v9065_v33 }
 0x681   : > { %8287 = vmatmul.mubr.msk.bf16.gmra.mrb[12].mxu1 %vm907_vm0, %v9997_v51 }
 0x682   : > { %8294 = vmatprep.mubr.msk.bf16.mxu1 %vm907_vm0, %v2996_v62 }
 0x689   : > { %8295 = vmatmul.mubr.msk.bf16.vlgmr.msra.gmra.mrb[8].mxu1 %vm907_vm0, %v2997_v2 }
 0x68a   : > { %8303 = vmatpush3.bf16.msra.mxu1 %v9065_v33  ;;  %8298 = vmatprep.mubr.msk.bf16.mxu1 %vm907_vm0, %v2998_v5 }
 0x68b   : > { %8304 = vmatprep.subr.bf16.mxu1 %v9066_v0 }
 0x68e   : > { %8305 = vmatpush3.bf16.msra.mxu1 %v9066_v0 }
 0x68f   : > { %8314 = vmatprep.subr.bf16.mxu1 %v9067_v52 }
 0x691   : > { %8299 = vmatmul.mubr.msk.bf16.gmra.mrb[12].mxu1 %vm907_vm0, %v2999_v35 }
 0x692   : > { %8306 = vmatprep.mubr.msk.bf16.mxu1 %vm907_vm0, %v3110_v9 }
 0x699   : > { %8307 = vmatmul.mubr.msk.bf16.vlgmr.msra.gmra.mrb[8].mxu1 %vm907_vm0, %v3111_v61 }
 0x69a   : > { %8315 = vmatpush3.bf16.msra.mxu1 %v9067_v52  ;;  %8310 = vmatprep.mubr.msk.bf16.mxu1 %vm907_vm0, %v3112_v41 }
 0x69b   : > { %8316 = vmatprep.subr.bf16.mxu1 %v9068_v36 }
 0x69e   : > { %8317 = vmatpush3.bf16.msra.mxu1 %v9068_v36 }
 0x69f   : > { %8326 = vmatprep.subr.bf16.mxu1 %v9069_v16 }
 0x6a1   : > { %8311 = vmatmul.mubr.msk.bf16.gmra.mrb[12].mxu1 %vm907_vm0, %v3113_v21 }
 0x6a2   : > { %8318 = vmatprep.mubr.msk.bf16.mxu1 %vm907_vm0, %v3224_v30 }
 0x6a9   : > { %8319 = vmatmul.mubr.msk.bf16.vlgmr.msra.gmra.mrb[8].mxu1 %vm907_vm0, %v3225_v42 }
 0x6aa   : > { %8327 = vmatpush3.bf16.msra.mxu1 %v9069_v16  ;;  %8322 = vmatprep.mubr.msk.bf16.mxu1 %vm907_vm0, %v3226_v45 }
 0x6ab   : > { %8328 = vmatprep.subr.bf16.mxu1 %v9070_v43 }
 0x6ae   : > { %8329 = vmatpush3.bf16.msra.mxu1 %v9070_v43 }
 0x6af   : > { %8338 = vmatprep.subr.bf16.mxu1 %v9071_v47 }
 0x6b1   : > { %8323 = vmatmul.mubr.msk.bf16.gmra.mrb[12].mxu1 %vm907_vm0, %v3227_v18 }
 0x6b2   : > { %8330 = vmatprep.mubr.msk.bf16.mxu1 %vm907_vm0, %v9963_v57 }
 0x6b9   : > { %8331 = vmatmul.mubr.msk.bf16.vlgmr.msra.gmra.mrb[8].mxu1 %vm907_vm0, %v9968_v27 }
 0x6ba   : > { %8339 = vmatpush3.bf16.msra.mxu1 %v9071_v47  ;;  %8334 = vmatprep.mubr.msk.bf16.mxu1 %vm907_vm0, %v9977_v48 }
 0x6bb   : > { %8340 = vmatprep.subr.bf16.mxu1 %v9072_v38 }
 0x6be   : > { %8341 = vmatpush3.bf16.msra.mxu1 %v9072_v38 }
 0x6bf   : > { %8350 = vmatprep.subr.bf16.mxu1 %v9073_v37 }
 0x6c1   : > { %8335 = vmatmul.mubr.msk.bf16.gmra.mrb[12].mxu1 %vm907_vm0, %v3341_v40 }
 0x6c2   : > { %8342 = vmatprep.mubr.msk.bf16.mxu1 %vm907_vm0, %v9930_v24  ;;  %v3569_v24 = vpack.c.bf16 %v9849_v3, %v3218_v53 }
 0x6c9   : > { %8343 = vmatmul.mubr.msk.bf16.vlgmr.msra.gmra.mrb[8].mxu1 %vm907_vm0, %v9943_v63  ;;  %v10074_v63 = vld [vmem:[%s10823_s19] ss:$0 sm:$0xff] }
 0x6ca   : > { %8351 = vmatpush3.bf16.msra.mxu1 %v9073_v37  ;;  %8346 = vmatprep.mubr.msk.bf16.mxu1 %vm907_vm0, %v9957_v55 }
 0x6cb   : > { %8352 = vmatprep.subr.bf16.mxu1 %v9074_v54 }
 0x6ce   : > { %8353 = vmatpush3.bf16.msra.mxu1 %v9074_v54 }
 0x6d1   : > { %8347 = vmatmul.mubr.msk.bf16.gmra.mrb[12].mxu1 %vm907_vm0, %v3455_v22 }
 0x6d2   : > { %8354 = vmatprep.mubr.msk.bf16.mxu1 %vm907_vm0, %v9983_v31 }
 0x6d9   : > { %8355 = vmatmul.mubr.msk.bf16.vlgmr.msra.gmra.mrb[8].mxu1 %vm907_vm0, %v9988_v59 }
 0x6da   : > { %8358 = vmatprep.mubr.msk.bf16.mxu1 %vm907_vm0, %v9997_v51 }
 0x6e1   : > { %8359 = vmatmul.mubr.msk.bf16.gmra.mrb[12].mxu1 %vm907_vm0, %v3569_v24 }
 0x7ac   : > { %v8356_v55 = vpop.f32.mrb[8].mxu1 }
 0x7ad   : > { %v3628_v57 = vpop.f32.mrb[9].mxu1  ;;  %v3675_v25 = vadd.f32 %v8356_v55, %v7573_v26 }
 0x7ae   : > { %v3673_v27 = vadd.f32 %v7573_v26, %v3628_v57  ;;  %v8357_v1 = vpop.f32.mrb[10].mxu1 }
 0x7af   : > { %v3631_v56 = vpop.f32.mrb[11].mxu1  ;;  %v3676_v3 = vadd.f32 %v8357_v1, %v7573_v26  ;;  %v10083_v48 = vadd.f32 %v3675_v25, %v9530_v14 }
 0x7b0   : > { %v10080_v19 = vadd.f32 %v3673_v27, %v9526_v12  ;;  %v3674_v58 = vadd.f32 %v7573_v26, %v3631_v56 }
 0x7b1   : > { %v10091_v29 = vadd.f32 %v3676_v3, %v9532_v15  ;;  %v3695_v50 = vsel %vm907_vm0, %v10083_v48, 0.0 }
 0x7b2   : > { %v10086_v60 = vadd.f32 %v3674_v58, %v9528_v13  ;;  %v3692_v49 = vsel %vm907_vm0, %v10080_v19, 0.0 }
 0x7b3   : > { %v3697_v8 = vsel %vm907_vm0, %v10091_v29, 0.0 }
 0x7b4   : > { %v3693_v39 = vsel %vm907_vm0, %v10086_v60, 0.0  ;;  %v8360_v46 = vpop.f32.mrb[12].mxu1 }
 0x7b5   : > { %v3694_v12 = vadd.f32 %v3693_v39, %v3692_v49  ;;  %v3644_v31 = vpop.f32.mrb[13].mxu1  ;;  %v3679_v14 = vadd.f32 %v8360_v46, %v7573_v26 }
 0x7b6   : > { %v3677_v59 = vadd.f32 %v7573_v26, %v3644_v31  ;;  %v8361_v33 = vpop.f32.mrb[14].mxu1 }
 0x7b7   : > { %v3696_v13 = vadd.f32 %v3695_v50, %v3694_v12  ;;  %v3647_v4 = vpop.f32.mrb[15].mxu1  ;;  %v3680_v51 = vadd.f32 %v8361_v33, %v7573_v26  ;;  %v10103_v0 = vadd.f32 %v3679_v14, %v9550_v28 }
 0x7b8   : > { %v10100_v15 = vadd.f32 %v3677_v59, %v9536_v17  ;;  %v3678_v62 = vadd.f32 %v7573_v26, %v3647_v4 }
 0x7b9   : > { %v3698_v2 = vadd.f32 %v3697_v8, %v3696_v13  ;;  %v10111_v35 = vadd.f32 %v3680_v51, %v9554_v32  ;;  %v3703_v61 = vsel %vm907_vm0, %v10103_v0, 0.0 }
 0x7ba   : > { %v3699_v5 = vsel %vm907_vm0, %v10100_v15, 0.0  ;;  %v10108_v52 = vadd.f32 %v3678_v62, %v9544_v23 }
 0x7bb   : > { %v3700_v34 = vadd.f32 %v3699_v5, %v3698_v2  ;;  %v3705_v28 = vsel %vm907_vm0, %v10111_v35, 0.0 }
 0x7bc   : > { %v3701_v17 = vsel %vm907_vm0, %v10108_v52, 0.0 }
 0x7bd   : > { %v3702_v9 = vadd.f32 %v3701_v17, %v3700_v34 }
 0x7bf   : > { %v3704_v36 = vadd.f32 %v3703_v61, %v3702_v9 }
 0x7c1   : > { %v3706_v41 = vadd.f32 %v3705_v28, %v3704_v36 }
 0x7c3   : > { %v3707_v16 = vrot.slane %v3706_v41, 4 }
 0x7c5   : > { %v3708_v20 = vadd.f32 %v3707_v16, %v3706_v41 }
 0x7c7   : > { %v3709_v23 = vrot.slane %v3708_v20, 2 }
 0x7c9   : > { %v3710_v21 = vadd.f32 %v3709_v23, %v3708_v20 }
 0x7cb   : > { %v3711_v30 = vrot.slane %v3710_v21, 1 }
 0x7cd   : > { %v3712_v42 = vadd.f32 %v3711_v30, %v3710_v21  ;;  %v7576_v21 = vld [vmem:[%s10818_s14] ss:$0 sm:$0xff] }
 0x7cf   : > { %v3713_v32 = vmul.f32 0.015625, %v3712_v42 }
 0x7d1   : > { %8371 = vmatmul.mubr.msk.f32.vlgmr.msra.gmra.mrb[2].mxu0 %vm907_vm0, %v3713_v32 }
 0x7d2   : > { %8730 = vmatpush3.bf16.msra.mxu0 %v9483_v6  ;;  %8381 = vmatprep.mubr.msk.f32.mxu0 %vm9301_vm1, %v9302_v11 }
 0x7d3   : > { %8731 = vmatprep.subr.bf16.mxu0 %v9300_v7 }
 0x7d6   : > { %8733 = vmatpush3.bf16.msra.mxu0 %v9497_v10 }
 0x8a4   : > { %v3783_v43 = vpop.f32.mrb[2].mxu0 }
 0x8a5   : > { %v3790_v45 = vrot.slane %v3783_v43, %v9559_v44  ;;  %v8372_v47 = vpop.f32.mrb[3].mxu0 }
 0x8a7   : > { %v3791_v53 = vsub.f32 %v10080_v19, %v3790_v45  ;;  %v3792_v18 = vsub.f32 %v10086_v60, %v3790_v45  ;;  %v3793_v38 = vsub.f32 %v10083_v48, %v3790_v45  ;;  %v3794_v37 = vsub.f32 %v10091_v29, %v3790_v45 }
 0x8a8   : > { %v3795_v40 = vsub.f32 %v10100_v15, %v3790_v45  ;;  %v3796_v26 = vsub.f32 %v10108_v52, %v3790_v45  ;;  %v3797_v1 = vsub.f32 %v10103_v0, %v3790_v45  ;;  %v3798_v49 = vsub.f32 %v10111_v35, %v3790_v45  ;;  %v7577_v45 = vld [vmem:[%s10819_s15] ss:$0 sm:$0xff] }
 0x8a9   : > { %v3799_v54 = vmul.f32 %v3791_v53, %v3791_v53  ;;  %v3800_v22 = vmul.f32 %v3792_v18, %v3792_v18  ;;  %v3801_v24 = vmul.f32 %v3793_v38, %v3793_v38  ;;  %v3802_v55 = vmul.f32 %v3794_v37, %v3794_v37 }
 0x8aa   : > { %v3803_v56 = vmul.f32 %v3795_v40, %v3795_v40  ;;  %v3804_v39 = vmul.f32 %v3796_v26, %v3796_v26  ;;  %v3805_v31 = vmul.f32 %v3797_v1, %v3797_v1  ;;  %v3806_v59 = vmul.f32 %v3798_v49, %v3798_v49 }
 0x8ab   : > { %v3807_v57 = vsel %vm907_vm0, %v3799_v54, 0.0  ;;  %v3808_v25 = vsel %vm907_vm0, %v3800_v22, 0.0  ;;  %v3810_v3 = vsel %vm907_vm0, %v3801_v24, 0.0  ;;  %v3812_v46 = vsel %vm907_vm0, %v3802_v55, 0.0 }
 0x8ac   : > { %v3809_v27 = vadd.f32 %v3808_v25, %v3807_v57  ;;  %v3814_v50 = vsel %vm907_vm0, %v3803_v56, 0.0  ;;  %v3816_v33 = vsel %vm907_vm0, %v3804_v39, 0.0  ;;  %v3818_v4 = vsel %vm907_vm0, %v3805_v31, 0.0 }
 0x8ad   : > { %v3820_v51 = vsel %vm907_vm0, %v3806_v59, 0.0 }
 0x8ae   : > { %v3811_v58 = vadd.f32 %v3810_v3, %v3809_v27 }
 0x8b0   : > { %v3813_v12 = vadd.f32 %v3812_v46, %v3811_v58 }
 0x8b2   : > { %v3815_v14 = vadd.f32 %v3814_v50, %v3813_v12 }
 0x8b4   : > { %v3817_v13 = vadd.f32 %v3816_v33, %v3815_v14 }
 0x8b6   : > { %v3819_v8 = vadd.f32 %v3818_v4, %v3817_v13 }
 0x8b8   : > { %v3821_v62 = vadd.f32 %v3820_v51, %v3819_v8 }
 0x8ba   : > { %v3822_v2 = vrot.slane %v3821_v62, 4 }
 0x8bc   : > { %v3823_v5 = vadd.f32 %v3822_v2, %v3821_v62 }
 0x8be   : > { %v3824_v34 = vrot.slane %v3823_v5, 2 }
 0x8c0   : > { %v3825_v17 = vadd.f32 %v3824_v34, %v3823_v5 }
 0x8c2   : > { %v3826_v9 = vrot.slane %v3825_v17, 1 }
 0x8c4   : > { %v3827_v61 = vadd.f32 %v3826_v9, %v3825_v17 }
 0x8c6   : > { %v3828_v36 = vmul.f32 0.015625, %v3827_v61 }
 0x8c8   : > { %8382 = vmatmul.mubr.msk.f32.vlgmr.msra.gmra.mrb[12].mxu0 %vm907_vm0, %v3828_v36 }
 0x99b   : > { %v3898_v28 = vpop.f32.mrb[12].mxu0 }
 0x99c   : > { %v3899_v41 = vadd.f32 1e-05, %v3898_v28  ;;  %v8383_v16 = vpop.f32.mrb[13].mxu0 }
 0x99e   : > { %9143 = vrsqrt.f32 %v3899_v41 }
 0x9a8   : > { %v9144_v20 = vpop.eup %9143 }
 0x9a9   : > { %v3906_v23 = vrot.slane %v9144_v20, %v9559_v44 }
 0x9ab   : > { %v3907_v30 = vmul.f32 %v3906_v23, %v3791_v53  ;;  %v3908_v42 = vmul.f32 %v3906_v23, %v3792_v18  ;;  %v3909_v32 = vmul.f32 %v3906_v23, %v3793_v38  ;;  %v3910_v43 = vmul.f32 %v3906_v23, %v3794_v37 }
 0x9ac   : > { %v3911_v47 = vmul.f32 %v3906_v23, %v3795_v40  ;;  %v3912_v54 = vmul.f32 %v3906_v23, %v3796_v26  ;;  %v3913_v22 = vmul.f32 %v3906_v23, %v3797_v1  ;;  %v3914_v24 = vmul.f32 %v3906_v23, %v3798_v49 }
 0x9ad   : > { %v3921_v55 = vmul.f32 %v7576_v21, %v3907_v30  ;;  %v3922_v57 = vmul.f32 %v7576_v21, %v3908_v42  ;;  %v3923_v25 = vmul.f32 %v7576_v21, %v3909_v32  ;;  %v3924_v27 = vmul.f32 %v7576_v21, %v3910_v43 }
 0x9ae   : > { %v3925_v56 = vmul.f32 %v7576_v21, %v3911_v47  ;;  %v3926_v3 = vmul.f32 %v7576_v21, %v3912_v54  ;;  %v3927_v58 = vmul.f32 %v7576_v21, %v3913_v22  ;;  %v3928_v39 = vmul.f32 %v7576_v21, %v3914_v24 }
 0x9af   : > { %v10150_v53 = vadd.f32 %v7577_v45, %v3921_v55  ;;  %v10152_v18 = vadd.f32 %v7577_v45, %v3922_v57  ;;  %v10154_v38 = vadd.f32 %v7577_v45, %v3923_v25  ;;  %v10156_v37 = vadd.f32 %v7577_v45, %v3924_v27 }
 0x9b0   : > { %v10158_v40 = vadd.f32 %v7577_v45, %v3925_v56  ;;  %v10160_v26 = vadd.f32 %v7577_v45, %v3926_v3  ;;  %v10162_v1 = vadd.f32 %v7577_v45, %v3927_v58  ;;  %v10164_v49 = vadd.f32 %v7577_v45, %v3928_v39 }
 0x9b1   : > { %v3943_v46 = vpack.c.bf16 %v10152_v18, %v10150_v53  ;;  %v3944_v12 = vpack.c.bf16 %v10156_v37, %v10154_v38 }
 0x9b2   : > { %v3945_v31 = vpack.c.bf16 %v10160_v26, %v10158_v40  ;;  %v3946_v50 = vpack.c.bf16 %v10164_v49, %v10162_v1 }
 0x9b3 LB: >> { %8388 = vmatprep.mubr.msk.bf16.mxu0 %vm907_vm0, %v3943_v46  ;;  %s7807_s29 = sshll.u32 %s9298_s10, 4  ;;  %s3968_s27 = scalar_lea.vmem %s10821_s17, %s9298_s10  ;;  %vm4081_vm4 = vcmask 130048   ;;  %vm4179_vm5 = vcmask 523264   ;;  %s9298_s10 = sphi %s10174_s10, %s3960_s10  }
 0x9b4   : >> { %s3963_s3 = scalar_lea.vmem %s10820_s16, %s7807_s29  ;;  %v7580_v33 = vld [vmem:[%s3968_s27] ss:$0 sm:$0xff]  ;;  %s9303_s8 = smov 112  }
 0x9b5   : >> { %v9145_v14 = vld [vmem:[%s3963_s3] sm:$0xff]   ;;  %v9146_v59 = vld [vmem:[%s3963_s3 + $0x8] sm:$0xff]   ;;  %s9304_s9 = smov 96   ;;  %s7808_s2 = sshll.u32 %s9298_s10, 3 }
 0x9b6   : >> { %8384 = vmatprep.subr.bf16.mxu0 %v9145_v14  ;;  %s10265_s7 = scalar_lea.vmem %s10822_s18, %s7808_s2  ;;  %s3960_s10 = sadd.s32 1, %s9298_s10  }
 0x9b7   : >> { %8385 = vmatpush3.bf16.msra.mxu0 %v9145_v14  ;;  %p3957_p4 = scmp.ge.s32.totalorder %s3960_s10, 2  }
 0x9b8   : >> { %8386 = vmatprep.subr.bf16.mxu0 %v9146_v59  ;;  %s10866_s11 = sld [smem:[#allocation18_spill]] (%p3957_p4) }
 0x9bb   : >> { %8387 = vmatpush3.bf16.msra.mxu0 %v9146_v59 }
 0x9be   : >> { %8389 = vmatmul.mubr.msk.bf16.vlgmr.msra.gmra.mrb[0].mxu0 %vm907_vm0, %v3944_v12 }
 0x9bf   : >> { %8392 = vmatprep.mubr.msk.bf16.mxu0 %vm907_vm0, %v3945_v31 }
 0x9c6   : >> { %8393 = vmatmul.mubr.msk.bf16.gmra.mrb[4].mxu0 %vm907_vm0, %v3946_v50 }
 0xa91   : >> { %v8390_v13 = vpop.f32.mrb[0].mxu0 }
 0xa92   : >> { %v4034_v4 = vpop.f32.mrb[1].mxu0  ;;  %v4043_v51 = vadd.f32 %v8390_v13, %v7580_v33 }
 0xa93   : >> { %v8391_v8 = vpop.f32.mrb[2].mxu0  ;;  %v4035_v5 = vadd.f32 %v7580_v33, %v4034_v4 }
 0xa94   : >> { %v4046_v62 = vadd.f32 %v8391_v8, %v7580_v33  ;;  %v4037_v2 = vpop.f32.mrb[3].mxu0 }
 0xa95   : >> { %v4038_v34 = vadd.f32 %v7580_v33, %v4037_v2 }
 0xa96   : >> { %v10203_v17 = vpack.c.bf16 %v4046_v62, %v4043_v51 }
 0xa97   : >> { %v10205_v9 = vpack.c.bf16 %v4038_v34, %v4035_v5 }
 0xa99   : >> { %4073 = vrot.lane.b32.xlu0 %v10205_v9, %s9303_s8  ;;  %8404 = vmatprep.mubr.msk.bf16.mxu1 %vm4081_vm4, %v10205_v9  ;;  %v8394_v61 = vpop.f32.mrb[4].mxu0 }
 0xa9a   : >> { %v4059_v36 = vadd.f32 %v8394_v61, %v7580_v33  ;;  %v4050_v28 = vpop.f32.mrb[5].mxu0 }
 0xa9b   : >> { %v4051_v41 = vadd.f32 %v7580_v33, %v4050_v28  ;;  %v8395_v16 = vpop.f32.mrb[6].mxu0 }
 0xa9c   : >> { %v4062_v20 = vadd.f32 %v8395_v16, %v7580_v33  ;;  %v4053_v23 = vpop.f32.mrb[7].mxu0 }
 0xa9d   : >> { %v4054_v21 = vadd.f32 %v7580_v33, %v4053_v23  ;;  %4075 = vrot.lane.b32.xlu0 %v10203_v17, %s9303_s8 }
 0xa9e   : >> { %v10211_v30 = vpack.c.bf16 %v4062_v20, %v4059_v36 }
 0xa9f   : >> { %v10213_v42 = vpack.c.bf16 %v4054_v21, %v4051_v41 }
 0xaa1   : >> { %4077 = vrot.lane.b32.xlu1 %v10213_v42, %s9303_s8 }
 0xaa5   : >> { %4079 = vrot.lane.b32.xlu1 %v10211_v30, %s9303_s8  ;;  %s10871_s8 = sld [smem:[#allocation19_spill]] (%p3957_p4) }
 0xb0b   : >> { %v4074_v32 = vpop.permute.xlu0 %4073 }
 0xb0c   : >> { %9014 = vmatprep.subr.msk.bf16.mxu1 %vm4081_vm4, %v4074_v32  ;;  %v4095_v43 = vsel %vm4081_vm4, %v4074_v32, 0 }
 0xb0d   : >> { %8397 = vmatpush3.bf16.xpose.msra.mxu1 %v4095_v43 }
 0xb0f   : >> { %v4076_v45 = vpop.permute.xlu0 %4075 }
 0xb10   : >> { %9015 = vmatprep.subr.msk.bf16.mxu1 %vm4081_vm4, %v4076_v45  ;;  %v4098_v47 = vsel %vm4081_vm4, %v4076_v45, 0 }
 0xb13   : >> { %v4078_v54 = vpop.permute.xlu1 %4077 }
 0xb14   : >> { %v4101_v22 = vsel %vm4081_vm4, %v4078_v54, 0 }
 0xb15   : >> { %8399 = vmatpush3.bf16.xpose.msra.mxu1 %v4098_v47 }
 0xb16   : >> { %9016 = vmatprep.subr.msk.bf16.mxu1 %vm4081_vm4, %v4078_v54 }
 0xb17   : >> { %v4080_v24 = vpop.permute.xlu1 %4079 }
 0xb18   : >> { %v4104_v55 = vsel %vm4081_vm4, %v4080_v24, 0 }
 0xb1d   : >> { %8401 = vmatpush3.bf16.xpose.msra.mxu1 %v4101_v22 }
 0xb1e   : >> { %9017 = vmatprep.subr.msk.bf16.mxu1 %vm4081_vm4, %v4080_v24 }
 0xb25   : >> { %8403 = vmatpush3.bf16.xpose.msra.mxu1 %v4104_v55 }
 0xb26   : > { %8746 = vmatprep.subr.bf16.mxu1 (%p3957_p4), %v9300_v7 }
 0xb2c   : >> { %8405 = vmatmul.mubr.msk.bf16.vlgmr.msra.gmra.mrb[0].mxu1 %vm4081_vm4, %v10203_v17 }
 0xb2d   : >> { %8408 = vmatprep.mubr.msk.bf16.mxu1 %vm4081_vm4, %v10213_v42  ;;  %8748 = vmatpush3.bf16.msra.mxu1 (%p3957_p4), %v9483_v6 }
 0xb2e   : > { %8749 = vmatprep.subr.bf16.mxu1 (%p3957_p4), %v9300_v7 }
 0xb31   : > { %8751 = vmatpush3.bf16.msra.mxu1 (%p3957_p4), %v9497_v10 }
 0xb32   : > { %8752 = vmatprep.subr.bf16.mxu1 (%p3957_p4), %v9300_v7 }
 0xb34   : >> { %8409 = vmatmul.mubr.msk.bf16.gmra.mrb[4].mxu1 %vm4081_vm4, %v10211_v30 }
 0xb35   : > { %8576 = vmatprep.mubr.msk.f32.mxu1 (%p3957_p4), %vm9301_vm1, %v9302_v11 }
 0xbff   : >> { %v8406_v57 = vpop.f32.mrb[0].mxu1 }
 0xc00   : >> { %v4140_v25 = vpop.f32.mrb[1].mxu1  ;;  %v4173_v58 = vmul.f32 0.25, %v8406_v57 }
 0xc01   : >> { %v4171_v27 = vmul.f32 0.25, %v4140_v25  ;;  %v8407_v56 = vpop.f32.mrb[2].mxu1 }
 0xc02   : >> { %v4143_v3 = vpop.f32.mrb[3].mxu1  ;;  %v4174_v33 = vmul.f32 0.25, %v8407_v56  ;;  %v4186_v4 = vsel %vm4179_vm5, %v4173_v58, -inf }
 0xc03   : >> { %v4172_v39 = vmul.f32 0.25, %v4143_v3  ;;  %v4180_v14 = vsel %vm4179_vm5, %v4171_v27, -inf }
 0xc04   : >> { %4181 = vmax.xlane.f32.xlu0 %v4180_v14  ;;  %v4189_v61 = vsel %vm4179_vm5, %v4174_v33, -inf }
 0xc05   : >> { %v4183_v59 = vsel %vm4179_vm5, %v4172_v39, -inf }
 0xc06   : >> { %4184 = vmax.xlane.f32.xlu1 %v4183_v59 }
 0xc07   : >> { %v8410_v13 = vpop.f32.mrb[4].mxu1 }
 0xc08   : >> { %4187 = vmax.xlane.f32.xlu0 %v4186_v4  ;;  %v4156_v8 = vpop.f32.mrb[5].mxu1  ;;  %v4177_v5 = vmul.f32 0.25, %v8410_v13 }
 0xc09   : >> { %v4175_v51 = vmul.f32 0.25, %v4156_v8  ;;  %v8411_v62 = vpop.f32.mrb[6].mxu1 }
 0xc0a   : >> { %v4159_v2 = vpop.f32.mrb[7].mxu1  ;;  %v4178_v28 = vmul.f32 0.25, %v8411_v62  ;;  %v4198_v41 = vsel %vm4179_vm5, %v4177_v5, -inf }
 0xc0b   : >> { %v4176_v34 = vmul.f32 0.25, %v4159_v2  ;;  %v4192_v36 = vsel %vm4179_vm5, %v4175_v51, -inf }
 0xc0c   : >> { %4190 = vmax.xlane.f32.xlu0 %v4189_v61  ;;  %4193 = vmax.xlane.f32.xlu1 %v4192_v36  ;;  %v4201_v20 = vsel %vm4179_vm5, %v4178_v28, -inf }
 0xc0d   : >> { %v4195_v16 = vsel %vm4179_vm5, %v4176_v34, -inf }
 0xc10   : >> { %4199 = vmax.xlane.f32.xlu1 %v4198_v41  ;;  %4196 = vmax.xlane.f32.xlu0 %v4195_v16 }
 0xc14   : >> { %4202 = vmax.xlane.f32.xlu0 %v4201_v20 }
 0xc21   : >> { %4272 = vrot.lane.b32.xlu1 %v10205_v9, %s9304_s9 }
 0xc91   : >> { %v4182_v23 = vpop.xlane.xlu0 %4181 }
 0xc92   : >> { %v4204_v21 = vsub.f32 %v4171_v27, %v4182_v23 }
 0xc93   : >> { %v4185_v32 = vpop.xlane.xlu1 %4184 }
 0xc94   : >> { %v4212_v47 = vmul.f32 1.442695, %v4204_v21  ;;  %v4205_v54 = vsub.f32 %v4172_v39, %v4185_v32 }
 0xc95   : >> { %v4188_v43 = vpop.xlane.xlu0 %4187 }
 0xc96   : >> { %v4206_v45 = vsub.f32 %v4173_v58, %v4188_v43  ;;  %v4214_v25 = vmul.f32 1.442695, %v4205_v54 }
 0xc98   : >> { %v4216_v22 = vmul.f32 1.442695, %v4206_v45 }
 0xc99   : >> { %v4191_v24 = vpop.xlane.xlu0 %4190  ;;  %v4194_v55 = vpop.xlane.xlu1 %4193 }
 0xc9a   : >> { %9148 = vpow2.f32 %v4216_v22  ;;  %v4207_v57 = vsub.f32 %v4174_v33, %v4191_v24  ;;  %v4208_v3 = vsub.f32 %v4175_v51, %v4194_v55 }
 0xc9b   : >> { %9150 = vpow2.f32 %v4212_v47 }
 0xc9c   : >> { %v4218_v56 = vmul.f32 1.442695, %v4207_v57  ;;  %v4220_v27 = vmul.f32 1.442695, %v4208_v3 }
 0xc9d   : >> { %v4200_v14 = vpop.xlane.xlu1 %4199  ;;  %v4197_v59 = vpop.xlane.xlu0 %4196 }
 0xc9e   : >> { %9152 = vpow2.f32 %v4218_v56  ;;  %v4210_v9 = vsub.f32 %v4177_v5, %v4200_v14  ;;  %v4209_v4 = vsub.f32 %v4176_v34, %v4197_v59 }
 0xc9f   : >> { %9154 = vpow2.f32 %v4214_v25 }
 0xca0   : >> { %v4224_v13 = vmul.f32 1.442695, %v4210_v9  ;;  %v4222_v33 = vmul.f32 1.442695, %v4209_v4 }
 0xca1   : >> { %v4273_v58 = vpop.permute.xlu1 %4272  ;;  %v4203_v8 = vpop.xlane.xlu0 %4202 }
 0xca2   : >> { %9156 = vpow2.f32 %v4224_v13  ;;  %v4211_v39 = vsub.f32 %v4178_v28, %v4203_v8  ;;  %8412 = vmatprep.subr.bf16.mxu0 %v4273_v58 }
 0xca3   : >> { %8413 = vmatpush3.bf16.msra.mxu0 %v4273_v58  ;;  %9158 = vpow2.f32 %v4220_v27 }
 0xca4   : >> { %v10241_v62 = vpop.eup %9148  ;;  %v4226_v2 = vmul.f32 1.442695, %v4211_v39 }
 0xca5   : >> { %v4234_v51 = vsel %vm4179_vm5, %v10241_v62, 0.0  ;;  %v9151_v61 = vpop.eup %9150 }
 0xca6   : >> { %9160 = vpow2.f32 %v4226_v2  ;;  %4235 = vadd.xlane.f32.xlu1 %v4234_v51  ;;  %v4228_v34 = vsel %vm4179_vm5, %v9151_v61, 0.0  ;;  %v9147_v2 = vld [vmem:[%s10265_s7] sm:$0xff]   ;;  %s10869_s7 = sld [smem:[#allocation9_spill]] (%p3957_p4) }
 0xca7   : >> { %9162 = vpow2.f32 %v4222_v33 }
 0xca8   : >> { %v9153_v5 = vpop.eup %9152 }
 0xca9   : >> { %v4237_v36 = vsel %vm4179_vm5, %v9153_v5, 0.0  ;;  %v9155_v28 = vpop.eup %9154 }
 0xcaa   : >> { %4229 = vadd.xlane.f32.xlu1 %v4228_v34  ;;  %4238 = vadd.xlane.f32.xlu0 %v4237_v36  ;;  %v4231_v20 = vsel %vm4179_vm5, %v9155_v28, 0.0 }
 0xcac   : >> { %v10247_v41 = vpop.eup %9156  ;;  %s10870_s10 = scalar_lea.vmem (%p3957_p4), %s10869_s7, %s10874_s5 }
 0xcad   : >> { %v4246_v16 = vsel %vm4179_vm5, %v10247_v41, 0.0  ;;  %v9159_v23 = vpop.eup %9158 }
 0xcae   : >> { %4247 = vadd.xlane.f32.xlu1 %v4246_v16  ;;  %4232 = vadd.xlane.f32.xlu0 %v4231_v20  ;;  %v4240_v32 = vsel %vm4179_vm5, %v9159_v23, 0.0 }
 0xcb0   : >> { %v9161_v21 = vpop.eup %9160 }
 0xcb1   : >> { %v4249_v43 = vsel %vm4179_vm5, %v9161_v21, 0.0  ;;  %v9163_v45 = vpop.eup %9162 }
 0xcb2   : >> { %4241 = vadd.xlane.f32.xlu1 %v4240_v32  ;;  %4250 = vadd.xlane.f32.xlu0 %v4249_v43  ;;  %v4243_v47 = vsel %vm4179_vm5, %v9163_v45, 0.0 }
 0xcb6   : >> { %4244 = vadd.xlane.f32.xlu0 %v4243_v47 }
 0xcc3   : >> { %4276 = vrot.lane.b32.xlu1 %v10213_v42, %s9304_s9 }
 0xcc7   : >> { %4278 = vrot.lane.b32.xlu1 %v10211_v30, %s9304_s9 }
 0xccc   : >> { %4274 = vrot.lane.b32.xlu0 %v10203_v17, %s9304_s9  ;;  %s10867_s9 = sld [smem:[#allocation8_spill]] (%p3957_p4) }
 0xcd2   : > { %s10868_s2 = scalar_lea.vmem (%p3957_p4), %s10867_s9, %s10874_s5 }
 0xd33   : >> { %v4236_v54 = vpop.xlane.xlu1 %4235 }
 0xd37   : >> { %v4230_v22 = vpop.xlane.xlu1 %4229  ;;  %v4239_v24 = vpop.xlane.xlu0 %4238 }
 0xd38   : >> { %9164 = vrcp.f32 %v4230_v22 }
 0xd3b   : >> { %v4248_v55 = vpop.xlane.xlu1 %4247  ;;  %v4233_v57 = vpop.xlane.xlu0 %4232 }
 0xd3c   : >> { %9166 = vrcp.f32 %v4233_v57 }
 0xd3d   : >> { %9168 = vrcp.f32 %v4239_v24 }
 0xd3e   : >> { %9170 = vrcp.f32 %v4236_v54 }
 0xd3f   : >> { %v4251_v42 = vpop.xlane.xlu0 %4250  ;;  %v4242_v25 = vpop.xlane.xlu1 %4241 }
 0xd40   : >> { %9172 = vrcp.f32 %v4242_v25 }
 0xd42   : >> { %v9165_v17 = vpop.eup %9164 }
 0xd43   : >> { %v4245_v30 = vpop.xlane.xlu0 %4244  ;;  %v4277_v3 = vpop.permute.xlu1 %4276  ;;  %v4260_v59 = vmul.f32 %v9165_v17, %v9151_v61 }
 0xd44   : >> { %9174 = vrcp.f32 %v4245_v30  ;;  %v4361_v30 = vld [vmem:[#allocation3] sm:$0xff] }
 0xd45   : >> { %9176 = vrcp.f32 %v4251_v42 }
 0xd46   : >> { %v9167_v56 = vpop.eup %9166  ;;  %9178 = vrcp.f32 %v4248_v55 }
 0xd47   : >> { %v4275_v14 = vpop.permute.xlu0 %4274  ;;  %v4261_v9 = vmul.f32 %v9167_v56, %v9155_v28  ;;  %v9169_v13 = vpop.eup %9168  ;;  %v4364_v56 = vld [vmem:[#allocation3 + $0x18] sm:$0xff] }
 0xd48   : >> { %8414 = vmatprep.subr.bf16.mxu0 %v4275_v14  ;;  %v9171_v4 = vpop.eup %9170  ;;  %v4279_v8 = vpop.permute.xlu1 %4278  ;;  %v4263_v33 = vmul.f32 %v9169_v13, %v9153_v5 }
 0xd49   : >> { %8415 = vmatpush3.bf16.msra.mxu0 %v4275_v14  ;;  %v4268_v27 = vpack.c.bf16 %v4261_v9, %v4260_v59  ;;  %v4262_v61 = vmul.f32 %v9171_v4, %v10241_v62  ;;  %v4362_v59 = vld [vmem:[#allocation3 + $0x8] sm:$0xff] }
 0xd4a   : >> { %8416 = vmatprep.subr.bf16.mxu0 %v4277_v3  ;;  %v9173_v58 = vpop.eup %9172 }
 0xd4b   : >> { %8420 = vmatprep.mubr.msk.bf16.mxu0 %vm4179_vm5, %v4268_v27  ;;  %v4264_v34 = vmul.f32 %v9173_v58, %v9159_v23  ;;  %v4269_v36 = vpack.c.bf16 %v4263_v33, %v4262_v61 }
 0xd4d   : >> { %8417 = vmatpush3.bf16.msra.mxu0 %v4277_v3 }
 0xd4e   : >> { %v9175_v39 = vpop.eup %9174  ;;  %8418 = vmatprep.subr.bf16.mxu0 %v4279_v8 }
 0xd4f   : >> { %v4265_v51 = vmul.f32 %v9175_v39, %v9163_v45  ;;  %v9177_v28 = vpop.eup %9176  ;;  %v4365_v39 = vld [vmem:[#allocation3 + $0x20] sm:$0xff] }
 0xd50   : >> { %v9179_v20 = vpop.eup %9178  ;;  %v4267_v32 = vmul.f32 %v9177_v28, %v9161_v21 }
 0xd51   : >> { %8419 = vmatpush3.bf16.msra.mxu0 %v4279_v8  ;;  %v4270_v16 = vpack.c.bf16 %v4265_v51, %v4264_v34  ;;  %v4266_v5 = vmul.f32 %v9179_v20, %v10247_v41  ;;  %v4363_v41 = vld [vmem:[#allocation3 + $0x10] sm:$0xff]  ;;  %v4366_v34 = vld [vmem:[#allocation3 + $0x28] sm:$0xff] }
 0xd52   : >> { %8428 = vmatprep.subr.bf16.mxu0 %v9147_v2  ;;  %v4367_v8 = vld [vmem:[#allocation3 + $0x30] sm:$0xff] }
 0xd53   : >> { %v4271_v43 = vpack.c.bf16 %v4267_v32, %v4266_v5 }
 0xd54   : >> { %8421 = vmatmul.mubr.msk.bf16.vlgmr.msra.gmra.mrb[8].mxu0 %vm4179_vm5, %v4269_v36 }
 0xd55   : >> { %8424 = vmatprep.mubr.msk.bf16.mxu0 %vm4179_vm5, %v4270_v16  ;;  %8429 = vmatpush3.bf16.msra.mxu0 %v9147_v2  ;;  %v4368_v2 = vld [vmem:[#allocation3 + $0x38] sm:$0xff] }
 0xd56   : > { %8734 = vmatprep.subr.bf16.mxu0 (%p3957_p4), %v9300_v7 }
 0xd5c   : >> { %8425 = vmatmul.mubr.msk.bf16.gmra.mrb[12].mxu0 %vm4179_vm5, %v4271_v43 }
 0xe27   : >> { %v8422_v45 = vpop.f32.mrb[8].mxu0 }
 0xe28   : >> { %v4330_v62 = vpop.f32.mrb[9].mxu0 }
 0xe29   : >> { %v8423_v47 = vpop.f32.mrb[10].mxu0 }
 0xe2a   : >> { %v4375_v23 = vpack.c.bf16 %v8423_v47, %v8422_v45  ;;  %v4333_v54 = vpop.f32.mrb[11].mxu0 }
 0xe2b   : >> { %v4374_v22 = vpack.c.bf16 %v4333_v54, %v4330_v62 }
 0xe2d   : >> { %8430 = vmatprep.mubr.msk.bf16.mxu0 %vm4081_vm4, %v4374_v22 }
 0xe2e   : >> { %8431 = vmatmul.mubr.msk.bf16.vlgmr.msra.gmra.mrb[16].mxu0 %vm4081_vm4, %v4375_v23 }
 0xe2f   : >> { %v8426_v24 = vpop.f32.mrb[12].mxu0  ;;  %8736 = vmatpush3.bf16.msra.mxu0 (%p3957_p4), %v9483_v6 }
 0xe30   : >> { %v4346_v55 = vpop.f32.mrb[13].mxu0  ;;  %8737 = vmatprep.subr.bf16.mxu0 (%p3957_p4), %v9300_v7 }
 0xe31   : >> { %v8427_v57 = vpop.f32.mrb[14].mxu0 }
 0xe32   : >> { %v4377_v42 = vpack.c.bf16 %v8427_v57, %v8426_v24  ;;  %v4349_v21 = vpop.f32.mrb[15].mxu0 }
 0xe33   : >> { %v4376_v25 = vpack.c.bf16 %v4349_v21, %v4346_v55  ;;  %8739 = vmatpush3.bf16.msra.mxu0 (%p3957_p4), %v9497_v10 }
 0xe34   : > { %8740 = vmatprep.subr.bf16.mxu0 (%p3957_p4), %v9300_v7 }
 0xe35   : >> { %8434 = vmatprep.mubr.msk.bf16.mxu0 %vm4081_vm4, %v4376_v25 }
 0xe36   : >> { %8435 = vmatmul.mubr.msk.bf16.gmra.mrb[20].mxu0 %vm4081_vm4, %v4377_v42 }
 0xe37   : > { %8446 = vmatprep.mubr.msk.f32.mxu0 (%p3957_p4), %vm9301_vm1, %v9302_v11 }
 0xf01   : >> { %v8432_v17 = vpop.f32.mrb[16].mxu0 }
 0xf02   : >> { %v4463_v3 = vadd.f32 %v8432_v17, %v4363_v41  ;;  %v4430_v14 = vpop.f32.mrb[17].mxu0 }
 0xf03   : >> { %v4461_v9 = vadd.f32 %v4430_v14, %v4361_v30  ;;  %v8433_v27 = vpop.f32.mrb[18].mxu0 }
 0xf04   : >> { %4471 = vst.msk [vmem:[#allocation3 + $0x10] sm:$0xff] %vm907_vm0, %v4463_v3  ;;  %v4464_v13 = vadd.f32 %v8433_v27, %v4364_v56  ;;  %v4433_v4 = vpop.f32.mrb[19].mxu0 }
 0xf05   : >> { %4469 = vst.msk [vmem:[#allocation3] sm:$0xff] %vm907_vm0, %v4461_v9  ;;  %v4462_v58 = vadd.f32 %v4433_v4, %v4362_v59 }
 0xf06   : >> { %4472 = vst.msk [vmem:[#allocation3 + $0x18] sm:$0xff] %vm907_vm0, %v4464_v13 }
 0xf07   : >> { %4470 = vst.msk [vmem:[#allocation3 + $0x8] sm:$0xff] %vm907_vm0, %v4462_v58 }
 0xf09   : >> { %v8436_v33 = vpop.f32.mrb[20].mxu0  ;;  %3959 = sbr.rel (!%p3957_p4) target bundleno = 2483 (0x9b3), region = 219 }
 0xf0a   : >> { %v4467_v51 = vadd.f32 %v8436_v33, %v4367_v8  ;;  %v4446_v61 = vpop.f32.mrb[21].mxu0 }
 0xf0b   : >> { %v4465_v36 = vadd.f32 %v4446_v61, %v4365_v39  ;;  %v8437_v28 = vpop.f32.mrb[22].mxu0  ;;  %v4479_v45 = vld [vmem:[#allocation3 + $0x10] sm:$0xff] (%p3957_p4) }
 0xf0c   : >> { %4475 = vst.msk [vmem:[#allocation3 + $0x30] sm:$0xff] %vm907_vm0, %v4467_v51  ;;  %v4468_v16 = vadd.f32 %v8437_v28, %v4368_v2  ;;  %v4449_v20 = vpop.f32.mrb[23].mxu0  ;;  %v4477_v5 = vld [vmem:[#allocation3] sm:$0xff] (%p3957_p4)  ;;  %v4493_v24 = vadd.f32 (%p3957_p4), %v10074_v63, %v4479_v45 }
 0xf0d   : >> { %4473 = vst.msk [vmem:[#allocation3 + $0x20] sm:$0xff] %vm907_vm0, %v4465_v36  ;;  %v4466_v32 = vadd.f32 %v4449_v20, %v4366_v34  ;;  %v4480_v62 = vld [vmem:[#allocation3 + $0x18] sm:$0xff] (%p3957_p4)  ;;  %v4491_v54 = vadd.f32 (%p3957_p4), %v10074_v63, %v4477_v5 }
 0xf0e   : >> { %4476 = vst.msk [vmem:[#allocation3 + $0x38] sm:$0xff] %vm907_vm0, %v4468_v16  ;;  %v4478_v43 = vld [vmem:[#allocation3 + $0x8] sm:$0xff] (%p3957_p4)  ;;  %v4494_v38 = vadd.f32 (%p3957_p4), %v10074_v63, %v4480_v62  ;;  %v10312_v12 = vadd.f32 (%p3957_p4), %v4493_v24, %v10083_v48 }
 0xf0f   : >> { %4474 = vst.msk [vmem:[#allocation3 + $0x28] sm:$0xff] %vm907_vm0, %v4466_v32  ;;  %v4492_v22 = vadd.f32 (%p3957_p4), %v10074_v63, %v4478_v43  ;;  %v10305_v49 = vadd.f32 (%p3957_p4), %v4491_v54, %v10080_v19 }
 0xf10   : > { %v10315_v31 = vadd.f32 %v4494_v38, %v10091_v29 }
 0xf11   : > { %v10308_v46 = vadd.f32 %v4492_v22, %v10086_v60  ;;  %v4515_v48 = vsel %vm907_vm0, %v10305_v49, 0.0 }
 0xf13   : > { %v4483_v53 = vld [vmem:[#allocation3 + $0x30] sm:$0xff]  ;;  %v4516_v60 = vsel %vm907_vm0, %v10308_v46, 0.0 }
 0xf14   : > { %v4481_v47 = vld [vmem:[#allocation3 + $0x20] sm:$0xff]  ;;  %v4497_v26 = vadd.f32 %v10074_v63, %v4483_v53  ;;  %v4517_v29 = vadd.f32 %v4516_v60, %v4515_v48 }
 0xf15   : > { %v4484_v18 = vld [vmem:[#allocation3 + $0x38] sm:$0xff]  ;;  %v4495_v37 = vadd.f32 %v10074_v63, %v4481_v47 }
 0xf16   : > { %v4482_v23 = vld [vmem:[#allocation3 + $0x28] sm:$0xff]  ;;  %v4498_v1 = vadd.f32 %v10074_v63, %v4484_v18 }
 0xf17   : > { %v4496_v40 = vadd.f32 %v10074_v63, %v4482_v23  ;;  %v10318_v50 = vadd.f32 %v4495_v37, %v10100_v15  ;;  %v10327_v63 = vadd.f32 %v4497_v26, %v10103_v0  ;;  %v4518_v15 = vsel %vm907_vm0, %v10312_v12, 0.0 }
 0xf18   : > { %v10330_v19 = vadd.f32 %v4498_v1, %v10111_v35  ;;  %v4519_v21 = vadd.f32 %v4518_v15, %v4517_v29 }
 0xf19   : > { %v10321_v55 = vadd.f32 %v4496_v40, %v10108_v52  ;;  %v4520_v52 = vsel %vm907_vm0, %v10315_v31, 0.0  ;;  %v4522_v0 = vsel %vm907_vm0, %v10318_v50, 0.0  ;;  %v4526_v57 = vsel %vm907_vm0, %v10327_v63, 0.0 }
 0xf1a   : > { %v4528_v42 = vsel %vm907_vm0, %v10330_v19, 0.0  ;;  %v4521_v25 = vadd.f32 %v4520_v52, %v4519_v21 }
 0xf1b   : > { %v4524_v35 = vsel %vm907_vm0, %v10321_v55, 0.0 }
 0xf1c   : > { %v4523_v41 = vadd.f32 %v4522_v0, %v4521_v25 }
 0xf1e   : > { %v4525_v30 = vadd.f32 %v4524_v35, %v4523_v41 }
 0xf20   : > { %v4527_v17 = vadd.f32 %v4526_v57, %v4525_v30  ;;  %v9180_v30 = vld [vmem:[%s10826_s22 + $0x10] sm:$0xff]  }
 0xf22   : > { %v4529_v56 = vadd.f32 %v4528_v42, %v4527_v17  ;;  %v9181_v17 = vld [vmem:[%s10826_s22 + $0x18] sm:$0xff]  }
 0xf24   : > { %v4530_v3 = vrot.slane %v4529_v56, 4 }
 0xf26   : > { %v4531_v14 = vadd.f32 %v4530_v3, %v4529_v56  ;;  %v10384_v56 = vld [vmem:[%s10826_s22] sm:$0xff]  }
 0xf28   : > { %v4532_v59 = vrot.slane %v4531_v14, 2 }
 0xf2a   : > { %v4533_v9 = vadd.f32 %v4532_v59, %v4531_v14 }
 0xf2c   : > { %v4534_v27 = vrot.slane %v4533_v9, 1 }
 0xf2e   : > { %v4535_v13 = vadd.f32 %v4534_v27, %v4533_v9 }
 0xf30   : > { %v4536_v4 = vmul.f32 0.015625, %v4535_v13  ;;  %v7605_v13 = vld [vmem:[%s10824_s20] ss:$0 sm:$0xff] }
 0xf32   : > { %8447 = vmatmul.mubr.msk.f32.vlgmr.msra.gmra.mrb[0].mxu0 %vm907_vm0, %v4536_v4 }
 0xf33   : > { %8742 = vmatpush3.bf16.msra.mxu0 %v9483_v6  ;;  %8457 = vmatprep.mubr.msk.f32.mxu0 %vm9301_vm1, %v9302_v11 }
 0xf34   : > { %8743 = vmatprep.subr.bf16.mxu0 %v9300_v7 }
 0xf37   : > { %8745 = vmatpush3.bf16.msra.mxu0 %v9497_v10 }
 0xf38   : > { %8460 = vmatprep.subr.bf16.mxu0 %v9180_v30 }
0x1005   : > { %v4606_v58 = vpop.f32.mrb[0].mxu0 }
0x1006   : > { %v4613_v8 = vrot.slane %v4606_v58, %v9559_v44  ;;  %v8448_v39 = vpop.f32.mrb[1].mxu0 }
0x1008   : > { %v4614_v33 = vsub.f32 %v10305_v49, %v4613_v8  ;;  %v4615_v2 = vsub.f32 %v10308_v46, %v4613_v8  ;;  %v4616_v51 = vsub.f32 %v10312_v12, %v4613_v8  ;;  %v4617_v61 = vsub.f32 %v10315_v31, %v4613_v8 }
0x1009   : > { %v4618_v34 = vsub.f32 %v10318_v50, %v4613_v8  ;;  %v4619_v20 = vsub.f32 %v10321_v55, %v4613_v8  ;;  %v4620_v62 = vsub.f32 %v10327_v63, %v4613_v8  ;;  %v4621_v22 = vsub.f32 %v10330_v19, %v4613_v8 }
0x100a   : > { %v4622_v36 = vmul.f32 %v4614_v33, %v4614_v33  ;;  %v4623_v28 = vmul.f32 %v4615_v2, %v4615_v2  ;;  %v4624_v16 = vmul.f32 %v4616_v51, %v4616_v51  ;;  %v4625_v32 = vmul.f32 %v4617_v61, %v4617_v61 }
0x100b   : > { %v4626_v47 = vmul.f32 %v4618_v34, %v4618_v34  ;;  %v4627_v24 = vmul.f32 %v4619_v20, %v4619_v20  ;;  %v4628_v38 = vmul.f32 %v4620_v62, %v4620_v62  ;;  %v4629_v26 = vmul.f32 %v4621_v22, %v4621_v22 }
0x100c   : > { %v4630_v5 = vsel %vm907_vm0, %v4622_v36, 0.0  ;;  %v4631_v43 = vsel %vm907_vm0, %v4623_v28, 0.0  ;;  %v4633_v23 = vsel %vm907_vm0, %v4624_v16, 0.0  ;;  %v4635_v53 = vsel %vm907_vm0, %v4625_v32, 0.0  ;;  %v7606_v36 = vld [vmem:[%s10825_s21] ss:$0 sm:$0xff] }
0x100d   : > { %v4632_v45 = vadd.f32 %v4631_v43, %v4630_v5  ;;  %v4637_v37 = vsel %vm907_vm0, %v4626_v47, 0.0  ;;  %v4639_v1 = vsel %vm907_vm0, %v4627_v24, 0.0  ;;  %v4641_v60 = vsel %vm907_vm0, %v4628_v38, 0.0 }
0x100e   : > { %v4643_v15 = vsel %vm907_vm0, %v4629_v26, 0.0 }
0x100f   : > { %v4634_v54 = vadd.f32 %v4633_v23, %v4632_v45 }
0x1011   : > { %v4636_v18 = vadd.f32 %v4635_v53, %v4634_v54 }
0x1013   : > { %v4638_v40 = vadd.f32 %v4637_v37, %v4636_v18 }
0x1015   : > { %v4640_v48 = vadd.f32 %v4639_v1, %v4638_v40 }
0x1017   : > { %v4642_v29 = vadd.f32 %v4641_v60, %v4640_v48 }
0x1019   : > { %v4644_v52 = vadd.f32 %v4643_v15, %v4642_v29 }
0x101b   : > { %v4645_v0 = vrot.slane %v4644_v52, 4 }
0x101d   : > { %v4646_v35 = vadd.f32 %v4645_v0, %v4644_v52 }
0x101f   : > { %v4647_v57 = vrot.slane %v4646_v35, 2 }
0x1021   : > { %v4648_v42 = vadd.f32 %v4647_v57, %v4646_v35 }
0x1023   : > { %v4649_v21 = vrot.slane %v4648_v42, 1 }
0x1025   : > { %v4650_v25 = vadd.f32 %v4649_v21, %v4648_v42 }
0x1027   : > { %v4651_v41 = vmul.f32 0.015625, %v4650_v25 }
0x1029   : > { %8458 = vmatmul.mubr.msk.f32.vlgmr.msra.gmra.mrb[2].mxu0 %vm907_vm0, %v4651_v41 }
0x102a   : > { %8461 = vmatpush3.bf16.msra.mxu0 %v9180_v30 }
0x102b   : > { %8462 = vmatprep.subr.bf16.mxu0 %v9181_v17 }
0x102e   : > { %8463 = vmatpush3.bf16.msra.mxu0 %v9181_v17 }
0x102f   : > { %8472 = vmatprep.subr.bf16.mxu0 %v10384_v56 }
0x10fc   : > { %v4721_v3 = vpop.f32.mrb[2].mxu0 }
0x10fd   : > { %v4722_v14 = vadd.f32 1e-05, %v4721_v3  ;;  %v8459_v59 = vpop.f32.mrb[3].mxu0 }
0x10ff   : > { %9216 = vrsqrt.f32 %v4722_v14 }
0x1109   : > { %v9217_v9 = vpop.eup %9216 }
0x110a   : > { %v4729_v27 = vrot.slane %v9217_v9, %v9559_v44 }
0x110c   : > { %v4730_v4 = vmul.f32 %v4729_v27, %v4614_v33  ;;  %v4731_v58 = vmul.f32 %v4729_v27, %v4615_v2  ;;  %v4732_v8 = vmul.f32 %v4729_v27, %v4616_v51  ;;  %v4733_v39 = vmul.f32 %v4729_v27, %v4617_v61 }
0x110d   : > { %v4734_v28 = vmul.f32 %v4729_v27, %v4618_v34  ;;  %v4735_v16 = vmul.f32 %v4729_v27, %v4619_v20  ;;  %v4736_v32 = vmul.f32 %v4729_v27, %v4620_v62  ;;  %v4737_v5 = vmul.f32 %v4729_v27, %v4621_v22 }
0x110e   : > { %v4744_v43 = vmul.f32 %v7605_v13, %v4730_v4  ;;  %v4745_v45 = vmul.f32 %v7605_v13, %v4731_v58  ;;  %v4746_v47 = vmul.f32 %v7605_v13, %v4732_v8  ;;  %v4747_v23 = vmul.f32 %v7605_v13, %v4733_v39 }
0x110f   : > { %v4748_v54 = vmul.f32 %v7605_v13, %v4734_v28  ;;  %v4749_v24 = vmul.f32 %v7605_v13, %v4735_v16  ;;  %v4750_v53 = vmul.f32 %v7605_v13, %v4736_v32  ;;  %v4751_v18 = vmul.f32 %v7605_v13, %v4737_v5 }
0x1110   : > { %v4759_v33 = vadd.f32 %v7606_v36, %v4745_v45  ;;  %v4760_v2 = vadd.f32 %v7606_v36, %v4746_v47  ;;  %v4758_v51 = vadd.f32 %v7606_v36, %v4744_v43  ;;  %v4761_v61 = vadd.f32 %v7606_v36, %v4747_v23 }
0x1111   : > { %v4762_v38 = vadd.f32 %v7606_v36, %v4748_v54  ;;  %v4763_v37 = vadd.f32 %v7606_v36, %v4749_v24  ;;  %v4764_v20 = vadd.f32 %v7606_v36, %v4750_v53  ;;  %v4765_v22 = vadd.f32 %v7606_v36, %v4751_v18  ;;  %v10401_v53 = vld [vmem:[#allocation2 + $0x1] sm:$0xff] }
0x1112   : > { %v7608_v40 = vmul.f32 -1.442695, %v4759_v33  ;;  %v7609_v26 = vmul.f32 -1.442695, %v4760_v2  ;;  %v7607_v34 = vmul.f32 -1.442695, %v4758_v51 }
0x1113   : > { %v7610_v62 = vmul.f32 -1.442695, %v4761_v61  ;;  %v7611_v1 = vmul.f32 -1.442695, %v4762_v38  ;;  %v7612_v48 = vmul.f32 -1.442695, %v4763_v37 }
0x1114   : > { %9218 = vpow2.f32 %v7608_v40  ;;  %v7613_v60 = vmul.f32 -1.442695, %v4764_v20  ;;  %v7614_v29 = vmul.f32 -1.442695, %v4765_v22  ;;  %v9183_v40 = vld [vmem:[%s10826_s22 + $0x8] sm:$0xff]  }
0x1115   : > { %9220 = vpow2.f32 %v7609_v26 }
0x1116   : > { %9222 = vpow2.f32 %v7607_v34  ;;  %v9184_v34 = vld [vmem:[%s10826_s22 + $0x20] sm:$0xff]  }
0x1117   : > { %9224 = vpow2.f32 %v7610_v62 }
0x1118   : > { %9226 = vpow2.f32 %v7611_v1 }
0x1119   : > { %9228 = vpow2.f32 %v7612_v48 }
0x111a   : > { %9230 = vpow2.f32 %v7613_v60 }
0x111b   : > { %9232 = vpow2.f32 %v7614_v29 }
0x111e   : > { %v9219_v15 = vpop.eup %9218 }
0x111f   : > { %v9221_v52 = vpop.eup %9220  ;;  %v4791_v0 = vadd.f32 1.0, %v9219_v15 }
0x1120   : > { %v9223_v35 = vpop.eup %9222  ;;  %v4792_v57 = vadd.f32 1.0, %v9221_v52 }
0x1121   : > { %v9225_v42 = vpop.eup %9224  ;;  %9234 = vrcp.f32 %v4791_v0  ;;  %v4790_v21 = vadd.f32 1.0, %v9223_v35  ;;  %v9185_v35 = vld [vmem:[%s10826_s22 + $0x28] sm:$0xff]  }
0x1122   : > { %v9227_v25 = vpop.eup %9226  ;;  %9236 = vrcp.f32 %v4792_v57  ;;  %v4793_v41 = vadd.f32 1.0, %v9225_v42  ;;  %v9186_v42 = vld [vmem:[%s10826_s22 + $0x30] sm:$0xff]  }
0x1123   : > { %v9229_v30 = vpop.eup %9228  ;;  %9238 = vrcp.f32 %v4790_v21  ;;  %v4794_v17 = vadd.f32 1.0, %v9227_v25 }
0x1124   : > { %v9231_v3 = vpop.eup %9230  ;;  %9240 = vrcp.f32 %v4793_v41  ;;  %v4795_v14 = vadd.f32 1.0, %v9229_v30  ;;  %v10464_v41 = vld [vmem:[#allocation2 + $0x2] sm:$0xff] }
0x1125   : > { %v9233_v59 = vpop.eup %9232  ;;  %9242 = vrcp.f32 %v4794_v17  ;;  %v4796_v9 = vadd.f32 1.0, %v9231_v3 }
0x1126   : > { %9244 = vrcp.f32 %v4795_v14  ;;  %v4797_v27 = vadd.f32 1.0, %v9233_v59 }
0x1127   : > { %9246 = vrcp.f32 %v4796_v9 }
0x1128   : > { %9248 = vrcp.f32 %v4797_v27 }
0x112b   : > { %v9235_v13 = vpop.eup %9234 }
0x112c   : > { %v9237_v4 = vpop.eup %9236  ;;  %v4815_v58 = vmul.f32 %v9235_v13, %v4759_v33 }
0x112d   : > { %v9239_v8 = vpop.eup %9238  ;;  %v4816_v39 = vmul.f32 %v9237_v4, %v4760_v2  ;;  %v9187_v4 = vld [vmem:[%s10826_s22 + $0x38] sm:$0xff]  }
0x112e   : > { %v9241_v36 = vpop.eup %9240  ;;  %v4814_v28 = vmul.f32 %v9239_v8, %v4758_v51  ;;  %4823 = vst.msk [vmem:[#allocation2 + $0x21] sm:$0xff] %vm907_vm0, %v4815_v58  ;;  %v9188_v8 = vld [vmem:[%s10826_s22 + $0x40] sm:$0xff]  }
0x112f   : > { %v9243_v16 = vpop.eup %9242  ;;  %4824 = vst.msk [vmem:[#allocation2 + $0x31] sm:$0xff] %vm907_vm0, %v4816_v39  ;;  %v4817_v32 = vmul.f32 %v9241_v36, %v4761_v61 }
0x1130   : > { %v9245_v5 = vpop.eup %9244  ;;  %4822 = vst.msk [vmem:[#allocation2 + $0x11] sm:$0xff] %vm907_vm0, %v4814_v28  ;;  %v4818_v43 = vmul.f32 %v9243_v16, %v4762_v38 }
0x1131   : > { %v9247_v45 = vpop.eup %9246  ;;  %4825 = vst.msk [vmem:[#allocation2 + $0x41] sm:$0xff] %vm907_vm0, %v4817_v32  ;;  %v4819_v47 = vmul.f32 %v9245_v5, %v4763_v37  ;;  %v9189_v5 = vld [vmem:[%s10826_s22 + $0x48] sm:$0xff]  }
0x1132   : > { %v9249_v23 = vpop.eup %9248  ;;  %4826 = vst.msk [vmem:[#allocation2 + $0x51] sm:$0xff] %vm907_vm0, %v4818_v43  ;;  %v4820_v54 = vmul.f32 %v9247_v45, %v4764_v20  ;;  %v9190_v45 = vld [vmem:[%s10826_s22 + $0x50] sm:$0xff]  }
0x1133   : > { %4827 = vst.msk [vmem:[#allocation2 + $0x61] sm:$0xff] %vm907_vm0, %v4819_v47  ;;  %v4821_v24 = vmul.f32 %v9249_v23, %v4765_v22  ;;  %v10440_v22 = vld [vmem:[#allocation2] sm:$0xff] }
0x1134   : > { %4828 = vst.msk [vmem:[#allocation2 + $0x71] sm:$0xff] %vm907_vm0, %v4820_v54 }
0x1135   : > { %v10403_v18 = vld [vmem:[#allocation2 + $0x21] sm:$0xff]  ;;  %4829 = vst.msk [vmem:[#allocation2 + $0x81] sm:$0xff] %vm907_vm0, %v4821_v24 }
0x1136   : > { %v10406_v33 = vld [vmem:[#allocation2 + $0x31] sm:$0xff]  ;;  %v4832_v60 = vld [vmem:[#allocation2 + $0x20] sm:$0xff] }
0x1137   : > { %v10408_v2 = vld [vmem:[#allocation2 + $0x11] sm:$0xff]  ;;  %v10412_v51 = vpack.c.bf16 %v10406_v33, %v10403_v18  ;;  %v5043_v14 = vld [vmem:[#allocation2 + $0x22] sm:$0xff] }
0x1138   : > { %v4859_v61 = vpack.c.bf16 %v10408_v2, %v10401_v53  ;;  %v10416_v38 = vld [vmem:[#allocation2 + $0x41] sm:$0xff]  ;;  %v4831_v1 = vld [vmem:[#allocation2 + $0x10] sm:$0xff]  ;;  %v5282_v54 = vpack.c.bf16 %v10403_v18, %v10408_v2 }
0x1139   : > { %v10418_v37 = vld [vmem:[#allocation2 + $0x51] sm:$0xff]  ;;  %v4834_v15 = vld [vmem:[#allocation2 + $0x40] sm:$0xff]  ;;  %v5168_v16 = vpack.c.bf16 %v4832_v60, %v4831_v1  ;;  %v5283_v24 = vpack.c.bf16 %v10416_v38, %v10406_v33 }
0x113a   : > { %8464 = vmatprep.mubr.msk.bf16.mxu0 %vm907_vm0, %v4859_v61  ;;  %v10426_v26 = vpack.c.bf16 %v10418_v37, %v10416_v38  ;;  %v10436_v20 = vld [vmem:[#allocation2 + $0x61] sm:$0xff]  ;;  %v4833_v29 = vld [vmem:[#allocation2 + $0x30] sm:$0xff]  ;;  %v9191_v61 = vld [vmem:[%s10826_s22 + $0x58] sm:$0xff]  }
0x113b   : > { %8465 = vmatmul.mubr.msk.bf16.vlgmr.msra.gmra.mrb[4].mxu0 %vm907_vm0, %v10412_v51  ;;  %v10438_v62 = vld [vmem:[#allocation2 + $0x71] sm:$0xff]  ;;  %v10450_v0 = vpack.c.bf16 %v4833_v29, %v4832_v60  ;;  %v4836_v21 = vld [vmem:[#allocation2 + $0x60] sm:$0xff]  ;;  %v5169_v32 = vpack.c.bf16 %v4834_v15, %v4833_v29 }
0x113c   : > { %8473 = vmatpush3.bf16.msra.mxu0 %v10384_v56  ;;  %8468 = vmatprep.mubr.msk.bf16.mxu0 %vm907_vm0, %v10426_v26  ;;  %v10444_v48 = vpack.c.bf16 %v10438_v62, %v10436_v20  ;;  %v4842_v56 = vpack.c.bf16 %v4831_v1, %v10440_v22  ;;  %v4835_v52 = vld [vmem:[#allocation2 + $0x50] sm:$0xff]  ;;  %v5045_v9 = vld [vmem:[#allocation2 + $0x42] sm:$0xff]  ;;  %v9195_v60 = vld [vmem:[%s10826_s22 + $0x78] sm:$0xff]  }
0x113d   : > { %8474 = vmatprep.subr.bf16.mxu0 %v9183_v40  ;;  %v10455_v57 = vpack.c.bf16 %v4835_v52, %v4834_v15  ;;  %v4837_v25 = vld [vmem:[#allocation2 + $0x70] sm:$0xff]  ;;  %v5047_v39 = vld [vmem:[#allocation2 + $0x62] sm:$0xff]  ;;  %v5170_v43 = vpack.c.bf16 %v4836_v21, %v4835_v52 }
0x113e   : > { %v5042_v30 = vld [vmem:[#allocation2 + $0x12] sm:$0xff]  ;;  %v10466_v17 = vpack.c.bf16 %v4837_v25, %v4836_v21  ;;  %v5162_v47 = vld [vmem:[#allocation2 + $0x80] sm:$0xff] }
0x113f   : > { %v5054_v3 = vpack.c.bf16 %v5042_v30, %v10464_v41  ;;  %v5044_v59 = vld [vmem:[#allocation2 + $0x32] sm:$0xff]  ;;  %v5171_v23 = vpack.c.bf16 %v5162_v47, %v4837_v25  ;;  %v9192_v18 = vld [vmem:[%s10826_s22 + $0x60] sm:$0xff]   ;;  %v5396_v38 = vpack.c.bf16 %v5043_v14, %v5042_v30 }
0x1140   : > { %8475 = vmatpush3.bf16.msra.mxu0 %v9183_v40  ;;  %v5046_v27 = vld [vmem:[#allocation2 + $0x52] sm:$0xff]  ;;  %v10472_v13 = vpack.c.bf16 %v5044_v59, %v5043_v14  ;;  %v5284_v40 = vpack.c.bf16 %v10436_v20, %v10418_v37  ;;  %v5276_v2 = vld [vmem:[#allocation2 + $0x81] sm:$0xff]  ;;  %v5397_v37 = vpack.c.bf16 %v5045_v9, %v5044_v59 }
0x1141   : > { %8484 = vmatprep.subr.bf16.mxu0 %v9184_v34  ;;  %v10477_v58 = vpack.c.bf16 %v5046_v27, %v5045_v9  ;;  %v5048_v36 = vld [vmem:[#allocation2 + $0x72] sm:$0xff]  ;;  %v5285_v33 = vpack.c.bf16 %v5276_v2, %v10438_v62  ;;  %v5398_v20 = vpack.c.bf16 %v5047_v39, %v5046_v27  ;;  %v5390_v1 = vld [vmem:[#allocation2 + $0x82] sm:$0xff] }
0x1142   : > { %v10486_v28 = vpack.c.bf16 %v5048_v36, %v5047_v39  ;;  %v9194_v62 = vld [vmem:[%s10826_s22 + $0x70] sm:$0xff]   ;;  %v9196_v29 = vld [vmem:[%s10826_s22 + $0x80] sm:$0xff]  }
0x1143   : > { %8469 = vmatmul.mubr.msk.bf16.gmra.mrb[8].mxu0 %vm907_vm0, %v10444_v48  ;;  %v10539_v15 = vld [vmem:[#allocation2 + $0x90] sm:$0xff] }
0x1144   : > { %8476 = vmatprep.mubr.msk.bf16.mxu0 %vm907_vm0, %v4842_v56  ;;  %v5399_v56 = vpack.c.bf16 %v5390_v1, %v5048_v36  ;;  %v5513_v52 = vpack.c.bf16 %v10539_v15, %v5162_v47 }
0x114b   : > { %8477 = vmatmul.mubr.msk.bf16.vlgmr.msra.gmra.mrb[4].mxu0 %vm907_vm0, %v10450_v0 }
0x114c   : > { %8485 = vmatpush3.bf16.msra.mxu0 %v9184_v34  ;;  %8480 = vmatprep.mubr.msk.bf16.mxu0 %vm907_vm0, %v10455_v57  ;;  %v9193_v34 = vld [vmem:[%s10826_s22 + $0x68] sm:$0xff]  }
0x114d   : > { %8486 = vmatprep.subr.bf16.mxu0 %v9185_v35 }
0x1150   : > { %8487 = vmatpush3.bf16.msra.mxu0 %v9185_v35  ;;  %v10552_v35 = vld [vmem:[#allocation2 + $0x91] sm:$0xff] }
0x1151   : > { %8496 = vmatprep.subr.bf16.mxu0 %v9186_v42 }
0x1153   : > { %8481 = vmatmul.mubr.msk.bf16.gmra.mrb[8].mxu0 %vm907_vm0, %v10466_v17 }
0x1154   : > { %8488 = vmatprep.mubr.msk.bf16.mxu0 %vm907_vm0, %v5054_v3 }
0x115b   : > { %8489 = vmatmul.mubr.msk.bf16.vlgmr.msra.gmra.mrb[4].mxu0 %vm907_vm0, %v10472_v13 }
0x115c   : > { %8497 = vmatpush3.bf16.msra.mxu0 %v9186_v42  ;;  %8492 = vmatprep.mubr.msk.bf16.mxu0 %vm907_vm0, %v10477_v58 }
0x115d   : > { %8498 = vmatprep.subr.bf16.mxu0 %v9187_v4 }
0x1160   : > { %8499 = vmatpush3.bf16.msra.mxu0 %v9187_v4 }
0x1161   : > { %8508 = vmatprep.subr.bf16.mxu0 %v9188_v8 }
0x1163   : > { %8493 = vmatmul.mubr.msk.bf16.gmra.mrb[8].mxu0 %vm907_vm0, %v10486_v28 }
0x1164   : > { %8500 = vmatprep.mubr.msk.bf16.mxu0 %vm907_vm0, %v5168_v16 }
0x116b   : > { %8501 = vmatmul.mubr.msk.bf16.vlgmr.msra.gmra.mrb[4].mxu0 %vm907_vm0, %v5169_v32 }
0x116c   : > { %8509 = vmatpush3.bf16.msra.mxu0 %v9188_v8  ;;  %8504 = vmatprep.mubr.msk.bf16.mxu0 %vm907_vm0, %v5170_v43 }
0x116d   : > { %8510 = vmatprep.subr.bf16.mxu0 %v9189_v5 }
0x1170   : > { %8511 = vmatpush3.bf16.msra.mxu0 %v9189_v5 }
0x1171   : > { %8520 = vmatprep.subr.bf16.mxu0 %v9190_v45 }
0x1173   : > { %8505 = vmatmul.mubr.msk.bf16.gmra.mrb[8].mxu0 %vm907_vm0, %v5171_v23 }
0x1174   : > { %8512 = vmatprep.mubr.msk.bf16.mxu0 %vm907_vm0, %v5282_v54 }
0x117b   : > { %8513 = vmatmul.mubr.msk.bf16.vlgmr.msra.gmra.mrb[4].mxu0 %vm907_vm0, %v5283_v24 }
0x117c   : > { %8521 = vmatpush3.bf16.msra.mxu0 %v9190_v45  ;;  %8516 = vmatprep.mubr.msk.bf16.mxu0 %vm907_vm0, %v5284_v40 }
0x117d   : > { %8522 = vmatprep.subr.bf16.mxu0 %v9191_v61 }
0x1180   : > { %8523 = vmatpush3.bf16.msra.mxu0 %v9191_v61 }
0x1181   : > { %8532 = vmatprep.subr.bf16.mxu0 %v9192_v18 }
0x1183   : > { %8517 = vmatmul.mubr.msk.bf16.gmra.mrb[8].mxu0 %vm907_vm0, %v5285_v33 }
0x1184   : > { %8524 = vmatprep.mubr.msk.bf16.mxu0 %vm907_vm0, %v5396_v38 }
0x118b   : > { %8525 = vmatmul.mubr.msk.bf16.vlgmr.msra.gmra.mrb[4].mxu0 %vm907_vm0, %v5397_v37 }
0x118c   : > { %8533 = vmatpush3.bf16.msra.mxu0 %v9192_v18  ;;  %8528 = vmatprep.mubr.msk.bf16.mxu0 %vm907_vm0, %v5398_v20 }
0x118d   : > { %8534 = vmatprep.subr.bf16.mxu0 %v9193_v34 }
0x1190   : > { %8535 = vmatpush3.bf16.msra.mxu0 %v9193_v34 }
0x1191   : > { %8544 = vmatprep.subr.bf16.mxu0 %v9194_v62 }
0x1193   : > { %8529 = vmatmul.mubr.msk.bf16.gmra.mrb[8].mxu0 %vm907_vm0, %v5399_v56 }
0x1194   : > { %8536 = vmatprep.mubr.msk.bf16.mxu0 %vm907_vm0, %v10450_v0  ;;  %v9197_v0 = vld [vmem:[%s10826_s22 + $0x88] sm:$0xff]  }
0x119b   : > { %8537 = vmatmul.mubr.msk.bf16.vlgmr.msra.gmra.mrb[4].mxu0 %vm907_vm0, %v10455_v57  ;;  %v5627_v57 = vpack.c.bf16 %v10552_v35, %v5276_v2 }
0x119c   : > { %8545 = vmatpush3.bf16.msra.mxu0 %v9194_v62  ;;  %8540 = vmatprep.mubr.msk.bf16.mxu0 %vm907_vm0, %v10466_v17 }
0x119d   : > { %8546 = vmatprep.subr.bf16.mxu0 %v9195_v60 }
0x11a0   : > { %8547 = vmatpush3.bf16.msra.mxu0 %v9195_v60 }
0x11a1   : > { %8556 = vmatprep.subr.bf16.mxu0 %v9196_v29 }
0x11a3   : > { %8541 = vmatmul.mubr.msk.bf16.gmra.mrb[8].mxu0 %vm907_vm0, %v5513_v52 }
0x11a4   : > { %8548 = vmatprep.mubr.msk.bf16.mxu0 %vm907_vm0, %v10412_v51  ;;  %v10562_v51 = vld [vmem:[#allocation2 + $0x92] sm:$0xff] }
0x11ab   : > { %8549 = vmatmul.mubr.msk.bf16.vlgmr.msra.gmra.mrb[4].mxu0 %vm907_vm0, %v10426_v26  ;;  %v5741_v26 = vpack.c.bf16 %v10562_v51, %v5390_v1 }
0x11ac   : > { %8557 = vmatpush3.bf16.msra.mxu0 %v9196_v29  ;;  %8552 = vmatprep.mubr.msk.bf16.mxu0 %vm907_vm0, %v10444_v48  ;;  %v7701_v48 = vld [vmem:[%s10827_s23] ss:$0 sm:$0xff] }
0x11ad   : > { %8558 = vmatprep.subr.bf16.mxu0 %v9197_v0 }
0x11b0   : > { %8559 = vmatpush3.bf16.msra.mxu0 %v9197_v0 }
0x11b3   : > { %8553 = vmatmul.mubr.msk.bf16.gmra.mrb[8].mxu0 %vm907_vm0, %v5627_v57 }
0x11b4   : > { %8560 = vmatprep.mubr.msk.bf16.mxu0 %vm907_vm0, %v10472_v13 }
0x11bb   : > { %8561 = vmatmul.mubr.msk.bf16.vlgmr.msra.gmra.mrb[4].mxu0 %vm907_vm0, %v10477_v58 }
0x11bc   : > { %8564 = vmatprep.mubr.msk.bf16.mxu0 %vm907_vm0, %v10486_v28 }
0x11c3   : > { %8565 = vmatmul.mubr.msk.bf16.gmra.mrb[8].mxu0 %vm907_vm0, %v5741_v26 }
0x128e   : > { %v8562_v42 = vpop.f32.mrb[4].mxu0 }
0x128f   : > { %v5800_v21 = vpop.f32.mrb[5].mxu0  ;;  %v5847_v3 = vadd.f32 %v8562_v42, %v7701_v48 }
0x1290   : > { %v5845_v25 = vadd.f32 %v7701_v48, %v5800_v21  ;;  %v8563_v30 = vpop.f32.mrb[6].mxu0 }
0x1291   : > { %v5803_v17 = vpop.f32.mrb[7].mxu0  ;;  %v5848_v9 = vadd.f32 %v8563_v30, %v7701_v48  ;;  %v5856_v4 = vsel %vm907_vm0, %v5847_v3, 0.0 }
0x1292   : > { %v5846_v14 = vadd.f32 %v7701_v48, %v5803_v17  ;;  %v5853_v59 = vsel %vm907_vm0, %v5845_v25, 0.0 }
0x1293   : > { %v5858_v36 = vsel %vm907_vm0, %v5848_v9, 0.0 }
0x1294   : > { %v5854_v27 = vsel %vm907_vm0, %v5846_v14, 0.0 }
0x1295   : > { %v5855_v13 = vadd.f32 %v5854_v27, %v5853_v59 }
0x1296   : > { %v8566_v58 = vpop.f32.mrb[8].mxu0 }
0x1297   : > { %v5857_v8 = vadd.f32 %v5856_v4, %v5855_v13  ;;  %v5816_v39 = vpop.f32.mrb[9].mxu0  ;;  %v5851_v43 = vadd.f32 %v8566_v58, %v7701_v48 }
0x1298   : > { %v5849_v28 = vadd.f32 %v7701_v48, %v5816_v39  ;;  %v8567_v16 = vpop.f32.mrb[10].mxu0 }
0x1299   : > { %v5859_v32 = vadd.f32 %v5858_v36, %v5857_v8  ;;  %v5819_v5 = vpop.f32.mrb[11].mxu0  ;;  %v5852_v54 = vadd.f32 %v8567_v16, %v7701_v48  ;;  %v5864_v40 = vsel %vm907_vm0, %v5851_v43, 0.0 }
0x129a   : > { %v5860_v45 = vsel %vm907_vm0, %v5849_v28, 0.0  ;;  %v5850_v47 = vadd.f32 %v7701_v48, %v5819_v5 }
0x129b   : > { %v5861_v23 = vadd.f32 %v5860_v45, %v5859_v32  ;;  %v5866_v2 = vsel %vm907_vm0, %v5852_v54, 0.0 }
0x129c   : > { %v5862_v24 = vsel %vm907_vm0, %v5850_v47, 0.0 }
0x129d   : > { %v5863_v61 = vadd.f32 %v5862_v24, %v5861_v23 }
0x129f   : > { %v5865_v18 = vadd.f32 %v5864_v40, %v5863_v61 }
0x12a1   : > { %v5867_v33 = vadd.f32 %v5866_v2, %v5865_v18 }
0x12a3   : > { %v5868_v38 = vrot.slane %v5867_v33, 4 }
0x12a5   : > { %v5869_v37 = vadd.f32 %v5868_v38, %v5867_v33  ;;  %v9198_v33 = vld [vmem:[%s10830_s26 + $0x10] sm:$0xff]   ;;  %v9199_v38 = vld [vmem:[%s10830_s26 + $0x18] sm:$0xff]  }
0x12a7   : > { %v5870_v34 = vrot.slane %v5869_v37, 2 }
0x12a9   : > { %v5871_v20 = vadd.f32 %v5870_v34, %v5869_v37  ;;  %v10602_v37 = vld [vmem:[%s10830_s26] sm:$0xff]  }
0x12ab   : > { %v5872_v62 = vrot.slane %v5871_v20, 1 }
0x12ad   : > { %v5873_v1 = vadd.f32 %v5872_v62, %v5871_v20 }
0x12af   : > { %v5874_v56 = vmul.f32 0.015625, %v5873_v1 }
0x12b1   : > { %8577 = vmatmul.mubr.msk.f32.vlgmr.msra.gmra.mrb[0].mxu1 %vm907_vm0, %v5874_v56 }
0x12b2   : > { %8754 = vmatpush3.bf16.msra.mxu1 %v9483_v6  ;;  %8587 = vmatprep.mubr.msk.f32.mxu1 %vm9301_vm1, %v9302_v11 }
0x12b3   : > { %8755 = vmatprep.subr.bf16.mxu1 %v9300_v7 }
0x12b6   : > { %8757 = vmatpush3.bf16.msra.mxu1 %v9497_v10 }
0x12b7   : > { %8590 = vmatprep.subr.bf16.mxu1 %v9198_v33 }
0x1384   : > { %v5944_v60 = vpop.f32.mrb[0].mxu1 }
0x1385   : > { %v5951_v29 = vrot.slane %v5944_v60, %v9559_v44  ;;  %v8578_v52 = vpop.f32.mrb[1].mxu1  ;;  %v7704_v60 = vld [vmem:[%s10828_s24] ss:$0 sm:$0xff] }
0x1387   : > { %v5952_v0 = vsub.f32 %v5845_v25, %v5951_v29  ;;  %v5953_v57 = vsub.f32 %v5846_v14, %v5951_v29  ;;  %v5954_v26 = vsub.f32 %v5847_v3, %v5951_v29  ;;  %v5955_v48 = vsub.f32 %v5848_v9, %v5951_v29 }
0x1388   : > { %v5956_v42 = vsub.f32 %v5849_v28, %v5951_v29  ;;  %v5957_v6 = vsub.f32 %v5850_v47, %v5951_v29  ;;  %v5958_v10 = vsub.f32 %v5851_v43, %v5951_v29  ;;  %v5959_v25 = vsub.f32 %v5852_v54, %v5951_v29 }
0x1389   : > { %v5960_v21 = vmul.f32 %v5952_v0, %v5952_v0  ;;  %v5961_v30 = vmul.f32 %v5953_v57, %v5953_v57  ;;  %v5962_v17 = vmul.f32 %v5954_v26, %v5954_v26  ;;  %v5963_v59 = vmul.f32 %v5955_v48, %v5955_v48 }
0x138a   : > { %v5964_v13 = vmul.f32 %v5956_v42, %v5956_v42  ;;  %v5965_v14 = vmul.f32 %v5957_v6, %v5957_v6  ;;  %v5966_v8 = vmul.f32 %v5958_v10, %v5958_v10  ;;  %v5967_v28 = vmul.f32 %v5959_v25, %v5959_v25 }
0x138b   : > { %v5968_v11 = vsel %vm907_vm0, %v5960_v21, 0.0  ;;  %v5969_v7 = vsel %vm907_vm0, %v5961_v30, 0.0  ;;  %v5971_v4 = vsel %vm907_vm0, %v5962_v17, 0.0  ;;  %v5973_v3 = vsel %vm907_vm0, %v5963_v59, 0.0  ;;  %v7705_v17 = vld [vmem:[%s10866_s11] ss:$0 sm:$0xff] }
0x138c   : > { %v5970_v27 = vadd.f32 %v5969_v7, %v5968_v11  ;;  %v5975_v39 = vsel %vm907_vm0, %v5964_v13, 0.0  ;;  %v5977_v16 = vsel %vm907_vm0, %v5965_v14, 0.0  ;;  %v5979_v5 = vsel %vm907_vm0, %v5966_v8, 0.0 }
0x138d   : > { %v5981_v45 = vsel %vm907_vm0, %v5967_v28, 0.0 }
0x138e   : > { %v5972_v58 = vadd.f32 %v5971_v4, %v5970_v27 }
0x1390   : > { %v5974_v9 = vadd.f32 %v5973_v3, %v5972_v58 }
0x1392   : > { %v5976_v36 = vadd.f32 %v5975_v39, %v5974_v9 }
0x1394   : > { %v5978_v32 = vadd.f32 %v5977_v16, %v5976_v36 }
0x1396   : > { %v5980_v43 = vadd.f32 %v5979_v5, %v5978_v32 }
0x1398   : > { %v5982_v47 = vadd.f32 %v5981_v45, %v5980_v43 }
0x139a   : > { %v5983_v23 = vrot.slane %v5982_v47, 4 }
0x139c   : > { %v5984_v54 = vadd.f32 %v5983_v23, %v5982_v47 }
0x139e   : > { %v5985_v24 = vrot.slane %v5984_v54, 2 }
0x13a0   : > { %v5986_v61 = vadd.f32 %v5985_v24, %v5984_v54 }
0x13a2   : > { %v5987_v40 = vrot.slane %v5986_v61, 1 }
0x13a4   : > { %v5988_v18 = vadd.f32 %v5987_v40, %v5986_v61 }
0x13a6   : > { %v5989_v2 = vmul.f32 0.015625, %v5988_v18 }
0x13a8   : > { %8588 = vmatmul.mubr.msk.f32.vlgmr.msra.gmra.mrb[2].mxu1 %vm907_vm0, %v5989_v2 }
0x13a9   : > { %8591 = vmatpush3.bf16.msra.mxu1 %v9198_v33 }
0x13aa   : > { %8592 = vmatprep.subr.bf16.mxu1 %v9199_v38 }
0x13ad   : > { %8593 = vmatpush3.bf16.msra.mxu1 %v9199_v38 }
0x13ae   : > { %8602 = vmatprep.subr.bf16.mxu1 %v10602_v37 }
0x147b   : > { %v6059_v34 = vpop.f32.mrb[2].mxu1 }
0x147c   : > { %v6060_v20 = vadd.f32 1e-05, %v6059_v34  ;;  %v8589_v62 = vpop.f32.mrb[3].mxu1 }
0x147e   : > { %9250 = vrsqrt.f32 %v6060_v20 }
0x1488   : > { %v9251_v1 = vpop.eup %9250 }
0x1489   : > { %v6067_v56 = vrot.slane %v9251_v1, %v9559_v44 }
0x148b   : > { %v6068_v29 = vmul.f32 %v6067_v56, %v5952_v0  ;;  %v6069_v52 = vmul.f32 %v6067_v56, %v5953_v57  ;;  %v6070_v21 = vmul.f32 %v6067_v56, %v5954_v26  ;;  %v6071_v30 = vmul.f32 %v6067_v56, %v5955_v48  ;;  %v7706_v0 = vld [vmem:[%s10868_s2] ss:$0 sm:$0xff] }
0x148c   : > { %v6072_v59 = vmul.f32 %v6067_v56, %v5956_v42  ;;  %v6073_v11 = vmul.f32 %v6067_v56, %v5957_v6  ;;  %v6074_v7 = vmul.f32 %v6067_v56, %v5958_v10  ;;  %v6075_v27 = vmul.f32 %v6067_v56, %v5959_v25  ;;  %v7707_v10 = vld [vmem:[%s10870_s10] ss:$0 sm:$0xff] }
0x148d   : > { %v6082_v13 = vmul.f32 %v7704_v60, %v6068_v29  ;;  %v6083_v4 = vmul.f32 %v7704_v60, %v6069_v52  ;;  %v6084_v44 = vmul.f32 %v7704_v60, %v6070_v21  ;;  %v6085_v58 = vmul.f32 %v7704_v60, %v6071_v30 }
0x148e   : > { %v6086_v57 = vmul.f32 %v7704_v60, %v6072_v59  ;;  %v6087_v26 = vmul.f32 %v7704_v60, %v6073_v11  ;;  %v6088_v48 = vmul.f32 %v7704_v60, %v6074_v7  ;;  %v6089_v14 = vmul.f32 %v7704_v60, %v6075_v27 }
0x148f   : > { %v6096_v3 = vadd.f32 %v7705_v17, %v6082_v13  ;;  %v6097_v9 = vadd.f32 %v7705_v17, %v6083_v4  ;;  %v6098_v42 = vadd.f32 %v7705_v17, %v6084_v44  ;;  %v6099_v6 = vadd.f32 %v7705_v17, %v6085_v58 }
0x1490   : > { %v6100_v25 = vadd.f32 %v7705_v17, %v6086_v57  ;;  %v6101_v8 = vadd.f32 %v7705_v17, %v6087_v26  ;;  %v6102_v39 = vadd.f32 %v7705_v17, %v6088_v48  ;;  %v6103_v36 = vadd.f32 %v7705_v17, %v6089_v14 }
0x1491   : > { %v6110_v28 = vmul.f32 %v7706_v0, %v6096_v3  ;;  %v6111_v16 = vmul.f32 %v7706_v0, %v6097_v9  ;;  %v6112_v32 = vmul.f32 %v7706_v0, %v6098_v42  ;;  %v6113_v5 = vmul.f32 %v7706_v0, %v6099_v6 }
0x1492   : > { %v6114_v43 = vmul.f32 %v7706_v0, %v6100_v25  ;;  %v6115_v45 = vmul.f32 %v7706_v0, %v6101_v8  ;;  %v6116_v47 = vmul.f32 %v7706_v0, %v6102_v39  ;;  %v6117_v23 = vmul.f32 %v7706_v0, %v6103_v36 }
0x1493   : > { %v6124_v54 = vadd.f32 %v7707_v10, %v6110_v28  ;;  %v6125_v24 = vadd.f32 %v7707_v10, %v6111_v16  ;;  %v6126_v61 = vadd.f32 %v7707_v10, %v6112_v32  ;;  %v6127_v40 = vadd.f32 %v7707_v10, %v6113_v5 }
0x1494   : > { %v6128_v18 = vadd.f32 %v7707_v10, %v6114_v43  ;;  %v6129_v2 = vadd.f32 %v7707_v10, %v6115_v45  ;;  %v6130_v33 = vadd.f32 %v7707_v10, %v6116_v47  ;;  %v6131_v62 = vadd.f32 %v7707_v10, %v6117_v23 }
0x1495   : > { %v7708_v38 = vmul.f32 -1.442695, %v6124_v54  ;;  %v7709_v34 = vmul.f32 -1.442695, %v6125_v24  ;;  %v7710_v20 = vmul.f32 -1.442695, %v6126_v61 }
0x1496   : > { %v7711_v1 = vmul.f32 -1.442695, %v6127_v40  ;;  %v7712_v56 = vmul.f32 -1.442695, %v6128_v18  ;;  %v7713_v60 = vmul.f32 -1.442695, %v6129_v2 }
0x1497   : > { %9252 = vpow2.f32 %v7708_v38  ;;  %v7714_v29 = vmul.f32 -1.442695, %v6130_v33  ;;  %v7715_v52 = vmul.f32 -1.442695, %v6131_v62  ;;  %v9202_v38 = vld [vmem:[%s10830_s26 + $0x20] sm:$0xff]  }
0x1498   : > { %9254 = vpow2.f32 %v7709_v34 }
0x1499   : > { %9256 = vpow2.f32 %v7710_v20 }
0x149a   : > { %9258 = vpow2.f32 %v7711_v1 }
0x149b   : > { %9260 = vpow2.f32 %v7712_v56 }
0x149c   : > { %9262 = vpow2.f32 %v7713_v60 }
0x149d   : > { %9264 = vpow2.f32 %v7714_v29 }
0x149e   : > { %9266 = vpow2.f32 %v7715_v52 }
0x14a1   : > { %v9253_v21 = vpop.eup %9252 }
0x14a2   : > { %v9255_v30 = vpop.eup %9254  ;;  %v6156_v17 = vadd.f32 1.0, %v9253_v21 }
0x14a3   : > { %v9257_v59 = vpop.eup %9256  ;;  %v6157_v11 = vadd.f32 1.0, %v9255_v30  ;;  %v9203_v30 = vld [vmem:[%s10830_s26 + $0x28] sm:$0xff]  }
0x14a4   : > { %v9259_v7 = vpop.eup %9258  ;;  %v6158_v27 = vadd.f32 1.0, %v9257_v59  ;;  %9268 = vrcp.f32 %v6156_v17 }
0x14a5   : > { %v9261_v13 = vpop.eup %9260  ;;  %v6159_v4 = vadd.f32 1.0, %v9259_v7  ;;  %9270 = vrcp.f32 %v6157_v11 }
0x14a6   : > { %v9263_v44 = vpop.eup %9262  ;;  %v6160_v58 = vadd.f32 1.0, %v9261_v13  ;;  %9272 = vrcp.f32 %v6158_v27 }
0x14a7   : > { %v9265_v0 = vpop.eup %9264  ;;  %v6161_v57 = vadd.f32 1.0, %v9263_v44  ;;  %9274 = vrcp.f32 %v6159_v4 }
0x14a8   : > { %v9267_v26 = vpop.eup %9266  ;;  %v6162_v48 = vadd.f32 1.0, %v9265_v0  ;;  %9276 = vrcp.f32 %v6160_v58 }
0x14a9   : > { %v6163_v14 = vadd.f32 1.0, %v9267_v26  ;;  %9278 = vrcp.f32 %v6161_v57  ;;  %v9205_v26 = vld [vmem:[%s10830_s26 + $0x38] sm:$0xff]  }
0x14aa   : > { %9280 = vrcp.f32 %v6162_v48 }
0x14ab   : > { %9282 = vrcp.f32 %v6163_v14 }
0x14ae   : > { %v9269_v3 = vpop.eup %9268 }
0x14af   : > { %v9271_v9 = vpop.eup %9270  ;;  %v6180_v42 = vmul.f32 %v9269_v3, %v6124_v54 }
0x14b0   : > { %v9273_v6 = vpop.eup %9272  ;;  %v6181_v10 = vmul.f32 %v9271_v9, %v6125_v24 }
0x14b1   : > { %v9275_v25 = vpop.eup %9274  ;;  %v6182_v8 = vmul.f32 %v9273_v6, %v6126_v61  ;;  %6188 = vst.msk [vmem:[#allocation2 + $0x11] sm:$0xff] %vm907_vm0, %v6180_v42 }
0x14b2   : > { %v9277_v39 = vpop.eup %9276  ;;  %v6183_v36 = vmul.f32 %v9275_v25, %v6127_v40  ;;  %6189 = vst.msk [vmem:[#allocation2 + $0x21] sm:$0xff] %vm907_vm0, %v6181_v10  ;;  %v9207_v10 = vld [vmem:[%s10830_s26 + $0x48] sm:$0xff]  }
0x14b3   : > { %v9279_v28 = vpop.eup %9278  ;;  %v6184_v16 = vmul.f32 %v9277_v39, %v6128_v18  ;;  %6190 = vst.msk [vmem:[#allocation2 + $0x31] sm:$0xff] %vm907_vm0, %v6182_v8  ;;  %v9208_v8 = vld [vmem:[%s10830_s26 + $0x50] sm:$0xff]  }
0x14b4   : > { %v9281_v32 = vpop.eup %9280  ;;  %v6185_v5 = vmul.f32 %v9279_v28, %v6129_v2  ;;  %6191 = vst.msk [vmem:[#allocation2 + $0x41] sm:$0xff] %vm907_vm0, %v6183_v36  ;;  %v9201_v2 = vld [vmem:[%s10830_s26 + $0x8] sm:$0xff]  }
0x14b5   : > { %v9283_v43 = vpop.eup %9282  ;;  %v6186_v45 = vmul.f32 %v9281_v32, %v6130_v33  ;;  %6192 = vst.msk [vmem:[#allocation2 + $0x51] sm:$0xff] %vm907_vm0, %v6184_v16  ;;  %v9209_v32 = vld [vmem:[%s10830_s26 + $0x58] sm:$0xff]  }
0x14b6   : > { %v6187_v47 = vmul.f32 %v9283_v43, %v6131_v62  ;;  %6193 = vst.msk [vmem:[#allocation2 + $0x61] sm:$0xff] %vm907_vm0, %v6185_v5  ;;  %v9210_v43 = vld [vmem:[%s10830_s26 + $0x60] sm:$0xff]  }
0x14b7   : > { %6194 = vst.msk [vmem:[#allocation2 + $0x71] sm:$0xff] %vm907_vm0, %v6186_v45 }
0x14b8   : > { %6195 = vst.msk [vmem:[#allocation2 + $0x81] sm:$0xff] %vm907_vm0, %v6187_v47  ;;  %v10630_v23 = vld [vmem:[#allocation2 + $0x11] sm:$0xff] }
0x14b9   : > { %v6225_v54 = vpack.c.bf16 %v10630_v23, %v10401_v53  ;;  %v10634_v24 = vld [vmem:[#allocation2 + $0x21] sm:$0xff]  ;;  %v6197_v62 = vld [vmem:[#allocation2 + $0x10] sm:$0xff] }
0x14ba   : > { %v10636_v61 = vld [vmem:[#allocation2 + $0x31] sm:$0xff]  ;;  %v6198_v56 = vld [vmem:[#allocation2 + $0x20] sm:$0xff]  ;;  %v6648_v28 = vpack.c.bf16 %v10634_v24, %v10630_v23 }
0x14bb   : > { %8594 = vmatprep.mubr.msk.bf16.mxu1 %vm907_vm0, %v6225_v54  ;;  %v10641_v40 = vpack.c.bf16 %v10636_v61, %v10634_v24  ;;  %v10643_v18 = vld [vmem:[#allocation2 + $0x41] sm:$0xff]  ;;  %v6199_v60 = vld [vmem:[#allocation2 + $0x30] sm:$0xff]  ;;  %v6534_v42 = vpack.c.bf16 %v6198_v56, %v6197_v62 }
0x14bc   : > { %v10648_v33 = vld [vmem:[#allocation2 + $0x51] sm:$0xff]  ;;  %v6200_v29 = vld [vmem:[#allocation2 + $0x40] sm:$0xff]  ;;  %v10674_v21 = vpack.c.bf16 %v6199_v60, %v6198_v56  ;;  %v6649_v16 = vpack.c.bf16 %v10643_v18, %v10636_v61  ;;  %v9211_v24 = vld [vmem:[%s10830_s26 + $0x68] sm:$0xff]  }
0x14bd   : > { %8595 = vmatmul.mubr.msk.bf16.vlgmr.msra.gmra.mrb[4].mxu1 %vm907_vm0, %v10641_v40  ;;  %v10654_v53 = vpack.c.bf16 %v10648_v33, %v10643_v18  ;;  %v10662_v34 = vld [vmem:[#allocation2 + $0x61] sm:$0xff]  ;;  %v6201_v52 = vld [vmem:[#allocation2 + $0x50] sm:$0xff]  ;;  %v6535_v6 = vpack.c.bf16 %v6200_v29, %v6199_v60 }
0x14be   : > { %8603 = vmatpush3.bf16.msra.mxu1 %v10602_v37  ;;  %v10664_v20 = vld [vmem:[#allocation2 + $0x71] sm:$0xff]  ;;  %v6208_v37 = vpack.c.bf16 %v6197_v62, %v10440_v22  ;;  %v10679_v17 = vpack.c.bf16 %v6201_v52, %v6200_v29  ;;  %v6202_v59 = vld [vmem:[#allocation2 + $0x60] sm:$0xff]  ;;  %v6650_v5 = vpack.c.bf16 %v10662_v34, %v10648_v33  ;;  %v9215_v62 = vld [vmem:[%s10830_s26 + $0x88] sm:$0xff]  }
0x14bf   : > { %8598 = vmatprep.mubr.msk.bf16.mxu1 %vm907_vm0, %v10654_v53  ;;  %8604 = vmatprep.subr.bf16.mxu1 %v9201_v2  ;;  %v10668_v1 = vpack.c.bf16 %v10664_v20, %v10662_v34  ;;  %v9204_v22 = vld [vmem:[%s10830_s26 + $0x30] sm:$0xff]   ;;  %v6409_v4 = vld [vmem:[#allocation2 + $0x22] sm:$0xff]  ;;  %v6536_v25 = vpack.c.bf16 %v6202_v59, %v6201_v52 }
0x14c0   : > { %v6203_v11 = vld [vmem:[#allocation2 + $0x70] sm:$0xff]  ;;  %v6411_v58 = vld [vmem:[#allocation2 + $0x42] sm:$0xff] }
0x14c1   : > { %v6408_v7 = vld [vmem:[#allocation2 + $0x12] sm:$0xff]  ;;  %v10688_v27 = vpack.c.bf16 %v6203_v11, %v6202_v59  ;;  %v6413_v14 = vld [vmem:[#allocation2 + $0x62] sm:$0xff] }
0x14c2   : > { %8605 = vmatpush3.bf16.msra.mxu1 %v9201_v2  ;;  %v6420_v13 = vpack.c.bf16 %v6408_v7, %v10464_v41  ;;  %v6410_v44 = vld [vmem:[#allocation2 + $0x32] sm:$0xff]  ;;  %v9206_v41 = vld [vmem:[%s10830_s26 + $0x40] sm:$0xff]   ;;  %v6762_v23 = vpack.c.bf16 %v6409_v4, %v6408_v7 }
0x14c3   : > { %8614 = vmatprep.subr.bf16.mxu1 %v9202_v38  ;;  %v6412_v0 = vld [vmem:[#allocation2 + $0x52] sm:$0xff]  ;;  %v10694_v57 = vpack.c.bf16 %v6410_v44, %v6409_v4  ;;  %v6528_v39 = vld [vmem:[#allocation2 + $0x80] sm:$0xff]  ;;  %v6763_v54 = vpack.c.bf16 %v6411_v58, %v6410_v44 }
0x14c4   : > { %v10699_v48 = vpack.c.bf16 %v6412_v0, %v6411_v58  ;;  %v6414_v3 = vld [vmem:[#allocation2 + $0x72] sm:$0xff]  ;;  %v6537_v36 = vpack.c.bf16 %v6528_v39, %v6203_v11  ;;  %v6642_v45 = vld [vmem:[#allocation2 + $0x81] sm:$0xff]  ;;  %v6764_v61 = vpack.c.bf16 %v6413_v14, %v6412_v0 }
0x14c5   : > { %8599 = vmatmul.mubr.msk.bf16.gmra.mrb[8].mxu1 %vm907_vm0, %v10668_v1  ;;  %v10708_v9 = vpack.c.bf16 %v6414_v3, %v6413_v14  ;;  %v6651_v47 = vpack.c.bf16 %v6642_v45, %v10664_v20  ;;  %v9212_v18 = vld [vmem:[%s10830_s26 + $0x70] sm:$0xff]   ;;  %v6756_v2 = vld [vmem:[#allocation2 + $0x82] sm:$0xff]  ;;  %v6879_v20 = vpack.c.bf16 %v10539_v15, %v6528_v39  ;;  %v6993_v15 = vpack.c.bf16 %v10552_v35, %v6642_v45 }
0x14c6   : > { %8606 = vmatprep.mubr.msk.bf16.mxu1 %vm907_vm0, %v6208_v37  ;;  %v6765_v33 = vpack.c.bf16 %v6756_v2, %v6414_v3  ;;  %v9214_v34 = vld [vmem:[%s10830_s26 + $0x80] sm:$0xff]  }
0x14cd   : > { %8607 = vmatmul.mubr.msk.bf16.vlgmr.msra.gmra.mrb[4].mxu1 %vm907_vm0, %v10674_v21 }
0x14ce   : > { %8615 = vmatpush3.bf16.msra.mxu1 %v9202_v38  ;;  %8610 = vmatprep.mubr.msk.bf16.mxu1 %vm907_vm0, %v10679_v17  ;;  %v9213_v38 = vld [vmem:[%s10830_s26 + $0x78] sm:$0xff]  }
0x14cf   : > { %8616 = vmatprep.subr.bf16.mxu1 %v9203_v30 }
0x14d2   : > { %8617 = vmatpush3.bf16.msra.mxu1 %v9203_v30 }
0x14d3   : > { %8626 = vmatprep.subr.bf16.mxu1 %v9204_v22 }
0x14d5   : > { %8611 = vmatmul.mubr.msk.bf16.gmra.mrb[8].mxu1 %vm907_vm0, %v10688_v27 }
0x14d6   : > { %8618 = vmatprep.mubr.msk.bf16.mxu1 %vm907_vm0, %v6420_v13 }
0x14dd   : > { %8619 = vmatmul.mubr.msk.bf16.vlgmr.msra.gmra.mrb[4].mxu1 %vm907_vm0, %v10694_v57 }
0x14de   : > { %8627 = vmatpush3.bf16.msra.mxu1 %v9204_v22  ;;  %8622 = vmatprep.mubr.msk.bf16.mxu1 %vm907_vm0, %v10699_v48 }
0x14df   : > { %8628 = vmatprep.subr.bf16.mxu1 %v9205_v26 }
0x14e2   : > { %8629 = vmatpush3.bf16.msra.mxu1 %v9205_v26 }
0x14e3   : > { %8638 = vmatprep.subr.bf16.mxu1 %v9206_v41 }
0x14e5   : > { %8623 = vmatmul.mubr.msk.bf16.gmra.mrb[8].mxu1 %vm907_vm0, %v10708_v9 }
0x14e6   : > { %8630 = vmatprep.mubr.msk.bf16.mxu1 %vm907_vm0, %v6534_v42 }
0x14ed   : > { %8631 = vmatmul.mubr.msk.bf16.vlgmr.msra.gmra.mrb[4].mxu1 %vm907_vm0, %v6535_v6 }
0x14ee   : > { %8639 = vmatpush3.bf16.msra.mxu1 %v9206_v41  ;;  %8634 = vmatprep.mubr.msk.bf16.mxu1 %vm907_vm0, %v6536_v25 }
0x14ef   : > { %8640 = vmatprep.subr.bf16.mxu1 %v9207_v10 }
0x14f2   : > { %8641 = vmatpush3.bf16.msra.mxu1 %v9207_v10 }
0x14f3   : > { %8650 = vmatprep.subr.bf16.mxu1 %v9208_v8 }
0x14f5   : > { %8635 = vmatmul.mubr.msk.bf16.gmra.mrb[8].mxu1 %vm907_vm0, %v6537_v36 }
0x14f6   : > { %8642 = vmatprep.mubr.msk.bf16.mxu1 %vm907_vm0, %v6648_v28 }
0x14fd   : > { %8643 = vmatmul.mubr.msk.bf16.vlgmr.msra.gmra.mrb[4].mxu1 %vm907_vm0, %v6649_v16 }
0x14fe   : > { %8651 = vmatpush3.bf16.msra.mxu1 %v9208_v8  ;;  %8646 = vmatprep.mubr.msk.bf16.mxu1 %vm907_vm0, %v6650_v5 }
0x14ff   : > { %8652 = vmatprep.subr.bf16.mxu1 %v9209_v32 }
0x1502   : > { %8653 = vmatpush3.bf16.msra.mxu1 %v9209_v32 }
0x1503   : > { %8662 = vmatprep.subr.bf16.mxu1 %v9210_v43 }
0x1505   : > { %8647 = vmatmul.mubr.msk.bf16.gmra.mrb[8].mxu1 %vm907_vm0, %v6651_v47 }
0x1506   : > { %8654 = vmatprep.mubr.msk.bf16.mxu1 %vm907_vm0, %v6762_v23 }
0x150d   : > { %8655 = vmatmul.mubr.msk.bf16.vlgmr.msra.gmra.mrb[4].mxu1 %vm907_vm0, %v6763_v54 }
0x150e   : > { %8663 = vmatpush3.bf16.msra.mxu1 %v9210_v43  ;;  %8658 = vmatprep.mubr.msk.bf16.mxu1 %vm907_vm0, %v6764_v61 }
0x150f   : > { %8664 = vmatprep.subr.bf16.mxu1 %v9211_v24 }
0x1512   : > { %8665 = vmatpush3.bf16.msra.mxu1 %v9211_v24 }
0x1513   : > { %8674 = vmatprep.subr.bf16.mxu1 %v9212_v18 }
0x1515   : > { %8659 = vmatmul.mubr.msk.bf16.gmra.mrb[8].mxu1 %vm907_vm0, %v6765_v33 }
0x1516   : > { %8666 = vmatprep.mubr.msk.bf16.mxu1 %vm907_vm0, %v10674_v21 }
0x151d   : > { %8667 = vmatmul.mubr.msk.bf16.vlgmr.msra.gmra.mrb[4].mxu1 %vm907_vm0, %v10679_v17 }
0x151e   : > { %8675 = vmatpush3.bf16.msra.mxu1 %v9212_v18  ;;  %8670 = vmatprep.mubr.msk.bf16.mxu1 %vm907_vm0, %v10688_v27 }
0x151f   : > { %8676 = vmatprep.subr.bf16.mxu1 %v9213_v38 }
0x1522   : > { %8677 = vmatpush3.bf16.msra.mxu1 %v9213_v38 }
0x1523   : > { %8686 = vmatprep.subr.bf16.mxu1 %v9214_v34 }
0x1525   : > { %8671 = vmatmul.mubr.msk.bf16.gmra.mrb[8].mxu1 %vm907_vm0, %v6879_v20 }
0x1526   : > { %8678 = vmatprep.mubr.msk.bf16.mxu1 %vm907_vm0, %v10641_v40  ;;  %v7107_v40 = vpack.c.bf16 %v10562_v51, %v6756_v2 }
0x152d   : > { %8679 = vmatmul.mubr.msk.bf16.vlgmr.msra.gmra.mrb[4].mxu1 %vm907_vm0, %v10654_v53  ;;  %v7802_v53 = vld [vmem:[%s10871_s8] ss:$0 sm:$0xff] }
0x152e   : > { %8687 = vmatpush3.bf16.msra.mxu1 %v9214_v34  ;;  %8682 = vmatprep.mubr.msk.bf16.mxu1 %vm907_vm0, %v10668_v1 }
0x152f   : > { %8688 = vmatprep.subr.bf16.mxu1 %v9215_v62 }
0x1532   : > { %8689 = vmatpush3.bf16.msra.mxu1 %v9215_v62 }
0x1535   : > { %8683 = vmatmul.mubr.msk.bf16.gmra.mrb[8].mxu1 %vm907_vm0, %v6993_v15 }
0x1536   : > { %8690 = vmatprep.mubr.msk.bf16.mxu1 %vm907_vm0, %v10694_v57 }
0x153d   : > { %8691 = vmatmul.mubr.msk.bf16.vlgmr.msra.gmra.mrb[4].mxu1 %vm907_vm0, %v10699_v48 }
0x153e   : > { %8694 = vmatprep.mubr.msk.bf16.mxu1 %vm907_vm0, %v10708_v9 }
0x1545   : > { %8695 = vmatmul.mubr.msk.bf16.gmra.mrb[8].mxu1 %vm907_vm0, %v7107_v40 }
0x1610   : > { %v8692_v35 = vpop.f32.mrb[4].mxu1 }
0x1611   : > { %v7166_v1 = vpop.f32.mrb[5].mxu1  ;;  %v7213_v21 = vadd.f32 %v8692_v35, %v7802_v53 }
0x1612   : > { %v7211_v37 = vadd.f32 %v7802_v53, %v7166_v1  ;;  %v8693_v56 = vpop.f32.mrb[6].mxu1 }
0x1613   : > { %v7169_v60 = vpop.f32.mrb[7].mxu1  ;;  %v7214_v11 = vadd.f32 %v8693_v56, %v7802_v53  ;;  %v7221_v7 = vadd.f32 %v7213_v21, %v10312_v12 }
0x1614   : > { %v7212_v29 = vadd.f32 %v7802_v53, %v7169_v60  ;;  %v7219_v52 = vadd.f32 %v7211_v37, %v10305_v49 }
0x1615   : > { %v7222_v13 = vadd.f32 %v7214_v11, %v10315_v31 }
0x1616   : > { %7227 = vxpose.xlu0.b32.start [1/8] (short) (narrow) %v7219_v52, 32  ;;  %v7220_v17 = vadd.f32 %v7212_v29, %v10308_v46 }
0x1618   : > { %v8696_v30 = vpop.f32.mrb[8].mxu1 }
0x1619   : > { %v7182_v51 = vpop.f32.mrb[9].mxu1  ;;  %v7217_v46 = vadd.f32 %v8696_v30, %v7802_v53 }
0x161a   : > { %7228 = vxpose.xlu0.b32.cont [2/8] (short) (narrow) %v7220_v17, 32  ;;  %v8697_v22 = vpop.f32.mrb[10].mxu1  ;;  %v7215_v27 = vadd.f32 %v7802_v53, %v7182_v51 }
0x161b   : > { %v7185_v59 = vpop.f32.mrb[11].mxu1  ;;  %v7218_v58 = vadd.f32 %v8697_v22, %v7802_v53  ;;  %v7225_v12 = vadd.f32 %v7217_v46, %v10327_v63 }
0x161c   : > { %v7216_v49 = vadd.f32 %v7802_v53, %v7185_v59  ;;  %v7223_v4 = vadd.f32 %v7215_v27, %v10318_v50 }
0x161d   : > { %v7226_v0 = vadd.f32 %v7218_v58, %v10330_v19 }
0x161e   : > { %7229 = vxpose.xlu0.b32.cont [3/8] (short) (narrow) %v7221_v7, 32  ;;  %v7224_v44 = vadd.f32 %v7216_v49, %v10321_v55 }
0x1622   : > { %7230 = vxpose.xlu0.b32.cont [4/8] (short) (narrow) %v7222_v13, 32 }
0x1626   : > { %7231 = vxpose.xlu0.b32.cont [5/8] (short) (narrow) %v7223_v4, 32 }
0x162a   : > { %7232 = vxpose.xlu0.b32.cont [6/8] (short) (narrow) %v7224_v44, 32 }
0x162e   : > { %7233 = vxpose.xlu0.b32.cont [7/8] (short) (narrow) %v7225_v12, 32 }
0x1632   : > { %7234 = vxpose.xlu0.b32.end [8/8] (short) (narrow) %v7226_v0, 32 }
0x1696   : > { %v7243_v31 = vpop.trf.xlu0 }
0x1697   : > { %7260 = vst.msk [vmem:[%s9475_s25] sm:$0xff] %vm4179_vm5, %v7243_v31 }
0x169a   : > { %v7244_v57 = vpop.trf.xlu0 }
0x169b   : > { %7261 = vst.msk [vmem:[%s9475_s25 + $0x8] sm:$0xff] %vm4179_vm5, %v7244_v57 }
0x169e   : > { %v7245_v50 = vpop.trf.xlu0 }
0x169f   : > { %7262 = vst.msk [vmem:[%s9475_s25 + $0x10] sm:$0xff] %vm4179_vm5, %v7245_v50 }
0x16a2   : > { %v7246_v26 = vpop.trf.xlu0 }
0x16a3   : > { %7263 = vst.msk [vmem:[%s9475_s25 + $0x18] sm:$0xff] %vm4179_vm5, %v7246_v26 }
0x16a4 PF: > { %s10872_s9 = sld [smem:[#allocation4_spill]] }
0x16aa   : > { %s38_s8 = sadd.s32 1, %s10872_s9  }
0x16ab   : > { %p35_p5 = scmp.ge.s32.totalorder %s38_s8, 4  }
0x16ad   :  { %37 = sbr.rel (!%p35_p5) target bundleno = 16 (0x10), region = 230 }

// kernel: middle_block.1
= control target key start
LH: loop header
LB: loop body
LE: loop exit
PB: predicated region body
PF: predicated region fallthrough
CT: control target
= control target key end

     0   :  { %s10804_s0 = inlined_call_operand.vmem [shape: f32[2,32,64], index: 0, kind: input, shape index: {}]   ;;  %s10805_s1 = inlined_call_operand.vmem [shape: f32[2,1,32], index: 1, kind: input, shape index: {}]   ;;  %s10806_s2 = inlined_call_operand.vmem [shape: f32[2,1,32], index: 2, kind: input, shape index: {}]   ;;  %s10807_s3 = inlined_call_operand.vmem [shape: f32[2,1,32], index: 3, kind: input, shape index: {}]   ;;  %s10808_s4 = inlined_call_operand.vmem [shape: f32[2,1,32], index: 4, kind: input, shape index: {}]   ;;  %s10809_s5 = inlined_call_operand.vmem [shape: f32[32,32], index: 5, kind: input, shape index: {}]   ;;  %s10810_s6 = inlined_call_operand.vmem [shape: f32[1,32], index: 6, kind: input, shape index: {}]   ;;  %s10811_s7 = inlined_call_operand.vmem [shape: f32[1,32], index: 7, kind: input, shape index: {}]   ;;  %s10812_s8 = inlined_call_operand.vmem [shape: bf16[9,32,32], index: 8, kind: input, shape index: {}]   ;;  %s10813_s9 = inlined_call_operand.vmem [shape: f32[1,32], index: 9, kind: input, shape index: {}]   ;;  %s10814_s10 = inlined_call_operand.vmem [shape: f32[1,32], index: 10, kind: input, shape index: {}]   ;;  %s10815_s11 = inlined_call_operand.vmem [shape: f32[1,32], index: 11, kind: input, shape index: {}]   ;;  %s10816_s12 = inlined_call_operand.vmem [shape: bf16[9,32,32], index: 12, kind: input, shape index: {}]   ;;  %s10817_s13 = inlined_call_operand.vmem [shape: f32[1,32], index: 13, kind: input, shape index: {}]   ;;  %s10818_s14 = inlined_call_operand.vmem [shape: f32[1,32], index: 14, kind: input, shape index: {}]   ;;  %s10819_s15 = inlined_call_operand.vmem [shape: f32[1,32], index: 15, kind: input, shape index: {}]   ;;  %s10820_s16 = inlined_call_operand.vmem [shape: bf16[2,32,48], index: 16, kind: input, shape index: {}]   ;;  %s10821_s17 = inlined_call_operand.vmem [shape: f32[2,1,48], index: 17, kind: input, shape index: {}]   ;;  %s10822_s18 = inlined_call_operand.vmem [shape: bf16[2,16,32], index: 18, kind: input, shape index: {}]   ;;  %s10823_s19 = inlined_call_operand.vmem [shape: f32[1,32], index: 19, kind: input, shape index: {}]   ;;  %s10824_s20 = inlined_call_operand.vmem [shape: f32[1,32], index: 20, kind: input, shape index: {}]   ;;  %s10825_s21 = inlined_call_operand.vmem [shape: f32[1,32], index: 21, kind: input, shape index: {}]   ;;  %s10826_s22 = inlined_call_operand.vmem [shape: bf16[9,32,32], index: 22, kind: input, shape index: {}]   ;;  %s10827_s23 = inlined_call_operand.vmem [shape: f32[1,32], index: 23, kind: input, shape index: {}]   ;;  %s10828_s24 = inlined_call_operand.vmem [shape: f32[1,32], index: 24, kind: input, shape index: {}]   ;;  %s10829_s25 = inlined_call_operand.vmem [shape: f32[1,32], index: 25, kind: input, shape index: {}]   ;;  %s10830_s26 = inlined_call_operand.vmem [shape: bf16[9,32,32], index: 26, kind: input, shape index: {}]   ;;  %s10831_s27 = inlined_call_operand.vmem [shape: f32[1,32], index: 27, kind: input, shape index: {}]   ;;  %s10832_s28 = inlined_call_operand.vmem [shape: f32[2,32,64], index: 28, kind: output, shape index: {}]  }
   0x1   :  { %10837 = sst [smem:[#allocation5_spill]] %s10804_s0 }
   0x2   :  { %10838 = sst [smem:[#allocation6_spill]] %s10805_s1 }
   0x3   :  { %10839 = sst [smem:[#allocation7_spill]] %s10806_s2 }
   0x4   :  { %10840 = sst [smem:[#allocation8_spill]] %s10807_s3 }
   0x5   :  { %10841 = sst [smem:[#allocation9_spill]] %s10808_s4 }
   0x6   :  { %10842 = sst [smem:[#allocation10_spill]] %s10809_s5 }
   0x7   :  { %10843 = sst [smem:[#allocation11_spill]] %s10810_s6 }
   0x8   :  { %10844 = sst [smem:[#allocation12_spill]] %s10811_s7 }
   0x9   :  { %10845 = sst [smem:[#allocation13_spill]] %s10812_s8  ;;  %s9450_s8 = smov 0  }
   0xa   :  { %10846 = sst [smem:[#allocation14_spill]] %s10813_s9 }
   0xb   :  { %10847 = sst [smem:[#allocation15_spill]] %s10814_s10 }
   0xc   :  { %10848 = sst [smem:[#allocation16_spill]] %s10815_s11 }
   0xd   :  { %10849 = sst [smem:[#allocation17_spill]] %s10816_s12 }
   0xe   :  { %10850 = sst [smem:[#allocation18_spill]] %s10829_s25 }
   0xf   :  { %10851 = sst [smem:[#allocation19_spill]] %s10831_s27 }
  0x10 LB: > { %10852 = sst [smem:[#allocation4_spill]] %s9294_s8  ;;  %s7365_s5 = sadd.s32 4294967295, %s9294_s8   ;;  %s9294_s8 = sphi %s9450_s8, %s38_s8  }
  0x11   : > { %p7369_p0 = scmp.ge.s32.totalorder %s9294_s8, 1  ;;  %p794_p1 = scmp.lt.s32.totalorder %s9294_s8, 3 }
  0x13   : > { %p795_p2 = pnand %p7369_p0, %p794_p1 }
  0x14   : > { %p880_p3 = scmp.lt.s32.totalorder (!%p795_p2), %s7365_s5, 1  ;;  %s10853_s6 = sld [smem:[#allocation5_spill]] (!%p795_p2)  ;;  %v9300_v7 = vmov (!%p795_p2), 0.0|0.0   ;;  %vm907_vm0 = vcmask (!%p795_p2), 261120   ;;  %vm9301_vm1 = vmmov (!%p795_p2), 0   ;;  %v9302_v11 = vmov (!%p795_p2), 0.0  }
  0x15   : > { %798 = sbr.rel (%p795_p2) target bundleno = 5796 (0x16a4), region = 132  ;;  %8698 = vmatprep.subr.bf16.mxu0 (!%p795_p2), %v9300_v7  ;;  %8704 = vmatprep.subr.bf16.mxu1 (!%p795_p2), %v9300_v7  ;;  %3947 = vst.msk [vmem:[#allocation3] sm:$0xff] (!%p795_p2), %vm907_vm0, %v9302_v11  ;;  %3948 = vst.msk [vmem:[#allocation3 + $0x8] sm:$0xff] (!%p795_p2), %vm907_vm0, %v9302_v11  ;;  %v1071_v42 = vlaneseq (!%p795_p2)  ;;  %s10857_s12 = sld [smem:[#allocation13_spill]] (!%p795_p2)  ;;  %vm909_vm2 = vcmask (!%p795_p2), 254976   ;;  %vm915_vm3 = vcmask (!%p795_p2), 253952  }
  0x16   : > { %8110 = vmatprep.mubr.msk.f32.mxu0 (!%p795_p2), %vm9301_vm1, %v9302_v11  ;;  %3949 = vst.msk [vmem:[#allocation3 + $0x10] sm:$0xff] (!%p795_p2), %vm907_vm0, %v9302_v11  ;;  %3950 = vst.msk [vmem:[#allocation3 + $0x18] sm:$0xff] (!%p795_p2), %vm907_vm0, %v9302_v11  ;;  %8121 = vmatprep.mubr.msk.f32.mxu1 (!%p795_p2), %vm9301_vm1, %v9302_v11  ;;  %s10858_s8 = sld [smem:[#allocation11_spill]] (!%p795_p2)  ;;  %s10859_s29 = sld [smem:[#allocation12_spill]] (!%p795_p2) }
  0x17   : > { %3951 = vst.msk [vmem:[#allocation3 + $0x20] sm:$0xff] (!%p795_p2), %vm907_vm0, %v9302_v11  ;;  %3952 = vst.msk [vmem:[#allocation3 + $0x28] sm:$0xff] (!%p795_p2), %vm907_vm0, %v9302_v11  ;;  %v1072_v43 = vshrl.u32 (!%p795_p2), %v1071_v42, 7  ;;  %s10861_s30 = sld [smem:[#allocation17_spill]] (!%p795_p2)  ;;  %s10863_s1 = sld [smem:[#allocation6_spill]] (!%p795_p2) }
  0x18   : > { %3953 = vst.msk [vmem:[#allocation3 + $0x30] sm:$0xff] (!%p795_p2), %vm907_vm0, %v9302_v11  ;;  %3954 = vst.msk [vmem:[#allocation3 + $0x38] sm:$0xff] (!%p795_p2), %vm907_vm0, %v9302_v11  ;;  %s10864_s27 = sld [smem:[#allocation16_spill]] (!%p795_p2) }
  0x19   : > { %908 = vst.msk [vmem:[#allocation2] sm:$0xff] (!%p795_p2), %vm907_vm0, %v9302_v11  ;;  %912 = vst.msk [vmem:[#allocation2 + $0x90] sm:$0xff] (!%p795_p2), %vm907_vm0, %v9302_v11  ;;  %v9559_v44 = vsub.s32 (!%p795_p2), 0, %v1072_v43 }
  0x1a   : > { %910 = vst.msk [vmem:[#allocation2 + $0x8] sm:$0x3] (!%p795_p2), %vm909_vm2, %v9302_v11  ;;  %913 = vst.msk [vmem:[#allocation2 + $0x98] sm:$0x3] (!%p795_p2), %vm909_vm2, %v9302_v11 }
  0x1b   : > { %916 = vst.msk [vmem:[#allocation2 + $0x10] sm:$0x1] (!%p795_p2), %vm915_vm3, %v9302_v11  ;;  %917 = vst.msk [vmem:[#allocation2 + $0x20] sm:$0x1] (!%p795_p2), %vm915_vm3, %v9302_v11 }
  0x1c   : > { %s10874_s5 = smov (!%p880_p3, %s7365_s5), 1  ;;  %918 = vst.msk [vmem:[#allocation2 + $0x30] sm:$0x1] %vm915_vm3, %v9302_v11  ;;  %919 = vst.msk [vmem:[#allocation2 + $0x40] sm:$0x1] %vm915_vm3, %v9302_v11 }
  0x1d   : > { %s7805_s9 = sshll.u32 %s10874_s5, 5  ;;  %920 = vst.msk [vmem:[#allocation2 + $0x50] sm:$0x1] %vm915_vm3, %v9302_v11  ;;  %921 = vst.msk [vmem:[#allocation2 + $0x60] sm:$0x1] %vm915_vm3, %v9302_v11  ;;  %s887_s3 = scalar_lea.vmem %s10863_s1, %s10874_s5 }
  0x1e   : > { %s884_s10 = scalar_lea.vmem %s10853_s6, %s7805_s9  ;;  %s9475_s25 = scalar_lea.vmem %s10832_s28, %s7805_s9  ;;  %922 = vst.msk [vmem:[#allocation2 + $0x70] sm:$0x1] %vm915_vm3, %v9302_v11  ;;  %923 = vst.msk [vmem:[#allocation2 + $0x80] sm:$0x1] %vm915_vm3, %v9302_v11  ;;  %v7376_v42 = vld [vmem:[%s10858_s8] ss:$0 sm:$0xff] }
  0x1f   : > { %v932_v0 = vld [vmem:[%s884_s10] sm:$0xff]  ;;  %v933_v1 = vld [vmem:[%s884_s10 + $0x8] sm:$0xff]  ;;  %v934_v2 = vld [vmem:[%s884_s10 + $0x10] sm:$0xff]  ;;  %s10856_s6 = sld [smem:[#allocation10_spill]]  ;;  %924 = vst.msk [vmem:[#allocation2 + $0x19] sm:$0x1] %vm915_vm3, %v9302_v11 }
  0x20   : > { %936 = vxpose.xlu0.b32.start [1/4] (short) (narrow) %v932_v0, 64  ;;  %v935_v3 = vld [vmem:[%s884_s10 + $0x18] sm:$0xff]  ;;  %925 = vst.msk [vmem:[#allocation2 + $0x29] sm:$0x1] %vm915_vm3, %v9302_v11  ;;  %926 = vst.msk [vmem:[#allocation2 + $0x39] sm:$0x1] %vm915_vm3, %v9302_v11 }
  0x21   : > { %927 = vst.msk [vmem:[#allocation2 + $0x49] sm:$0x1] %vm915_vm3, %v9302_v11  ;;  %928 = vst.msk [vmem:[#allocation2 + $0x59] sm:$0x1] %vm915_vm3, %v9302_v11  ;;  %s10862_s10 = sld [smem:[#allocation15_spill]] }
  0x22   : > { %929 = vst.msk [vmem:[#allocation2 + $0x69] sm:$0x1] %vm915_vm3, %v9302_v11  ;;  %930 = vst.msk [vmem:[#allocation2 + $0x79] sm:$0x1] %vm915_vm3, %v9302_v11  ;;  %s10865_s8 = sld [smem:[#allocation7_spill]] }
  0x23   : > { %931 = vst.msk [vmem:[#allocation2 + $0x89] sm:$0x1] %vm915_vm3, %v9302_v11 }
  0x24   : > { %937 = vxpose.xlu0.b32.cont [2/4] (short) (narrow) %v933_v1, 64 }
  0x25   : > { %v903_v4 = vld [vmem:[%s10856_s6] sm:$0xff]  ;;  %v904_v5 = vld [vmem:[%s10856_s6 + $0x8] sm:$0xff]  ;;  %v905_v8 = vld [vmem:[%s10856_s6 + $0x10] sm:$0xff] }
  0x26   : > { %v9483_v6 = vpack.c.bf16 %v904_v5, %v903_v4  ;;  %v906_v9 = vld [vmem:[%s10856_s6 + $0x18] sm:$0xff] }
  0x27   : > { %v9497_v10 = vpack.c.bf16 %v906_v9, %v905_v8 }
  0x28   : > { %938 = vxpose.xlu0.b32.cont [3/4] (short) (narrow) %v934_v2, 64  ;;  %8700 = vmatpush3.bf16.msra.mxu0 %v9483_v6  ;;  %s890_s9 = scalar_lea.vmem %s10865_s8, %s10874_s5 }
  0x29   : > { %8706 = vmatpush3.bf16.msra.mxu1 %v9483_v6  ;;  %8701 = vmatprep.subr.bf16.mxu0 %v9300_v7 }
  0x2a   : > { %8707 = vmatprep.subr.bf16.mxu1 %v9300_v7 }
  0x2c   : > { %939 = vxpose.xlu0.b32.end [4/4] (short) (narrow) %v935_v3, 64  ;;  %8703 = vmatpush3.bf16.msra.mxu0 %v9497_v10 }
  0x2d   : > { %8709 = vmatpush3.bf16.msra.mxu1 %v9497_v10 }
  0x2e   : > { %8710 = vmatprep.subr.bf16.mxu1 %v9300_v7 }
  0xa0   : > { %v9526_v12 = vpop.trf.xlu0 }
  0xa1   : > { %v976_v18 = vsel %vm907_vm0, %v9526_v12, 0.0 }
  0xa4   : > { %v9528_v13 = vpop.trf.xlu0 }
  0xa5   : > { %v977_v16 = vsel %vm907_vm0, %v9528_v13, 0.0 }
  0xa6   : > { %v978_v20 = vadd.f32 %v977_v16, %v976_v18 }
  0xa8   : > { %v9530_v14 = vpop.trf.xlu0 }
  0xa9   : > { %v979_v19 = vsel %vm907_vm0, %v9530_v14, 0.0 }
  0xaa   : > { %v980_v22 = vadd.f32 %v979_v19, %v978_v20 }
  0xac   : > { %v9532_v15 = vpop.trf.xlu0 }
  0xad   : > { %v981_v21 = vsel %vm907_vm0, %v9532_v15, 0.0 }
  0xae   : > { %v982_v25 = vadd.f32 %v981_v21, %v980_v22 }
  0xb0   : > { %v9536_v17 = vpop.trf.xlu0 }
  0xb1   : > { %v983_v24 = vsel %vm907_vm0, %v9536_v17, 0.0 }
  0xb2   : > { %v984_v27 = vadd.f32 %v983_v24, %v982_v25 }
  0xb4   : > { %v9544_v23 = vpop.trf.xlu0 }
  0xb5   : > { %v985_v26 = vsel %vm907_vm0, %v9544_v23, 0.0 }
  0xb6   : > { %v986_v30 = vadd.f32 %v985_v26, %v984_v27 }
  0xb8   : > { %v9550_v28 = vpop.trf.xlu0 }
  0xb9   : > { %v987_v29 = vsel %vm907_vm0, %v9550_v28, 0.0 }
  0xba   : > { %v988_v31 = vadd.f32 %v987_v29, %v986_v30 }
  0xbc   : > { %v9554_v32 = vpop.trf.xlu0 }
  0xbd   : > { %v989_v33 = vsel %vm907_vm0, %v9554_v32, 0.0 }
  0xbe   : > { %v990_v34 = vadd.f32 %v989_v33, %v988_v31 }
  0xc0   : > { %v991_v35 = vrot.slane %v990_v34, 4 }
  0xc2   : > { %v992_v36 = vadd.f32 %v991_v35, %v990_v34  ;;  %v9039_v34 = vld [vmem:[%s10857_s12 + $0x10] sm:$0xff]   ;;  %v9040_v35 = vld [vmem:[%s10857_s12 + $0x18] sm:$0xff]  }
  0xc3   : > { %8124 = vmatprep.subr.bf16.mxu0 %v9039_v34 }
  0xc4   : > { %v993_v37 = vrot.slane %v992_v36, 2 }
  0xc6   : > { %v994_v38 = vadd.f32 %v993_v37, %v992_v36  ;;  %v9660_v36 = vld [vmem:[%s10857_s12] sm:$0xff]  }
  0xc8   : > { %v995_v39 = vrot.slane %v994_v38, 1 }
  0xca   : > { %v996_v40 = vadd.f32 %v995_v39, %v994_v38 }
  0xcc   : > { %v997_v41 = vmul.f32 0.015625, %v996_v40 }
  0xce   : > { %8111 = vmatmul.mubr.msk.f32.vlgmr.msra.gmra.mrb[0].mxu0 %vm907_vm0, %v997_v41 }
  0xcf   : > { %8125 = vmatpush3.bf16.msra.mxu0 %v9039_v34 }
  0xd0   : > { %8126 = vmatprep.subr.bf16.mxu0 %v9040_v35 }
  0xd3   : > { %8127 = vmatpush3.bf16.msra.mxu0 %v9040_v35 }
  0xd4   : > { %8136 = vmatprep.subr.bf16.mxu0 %v9660_v36 }
 0x1a1   : > { %v1067_v45 = vpop.f32.mrb[0].mxu0 }
 0x1a2   : > { %v1074_v46 = vrot.slane %v1067_v45, %v9559_v44  ;;  %v8112_v47 = vpop.f32.mrb[1].mxu0 }
 0x1a4   : > { %v9563_v48 = vsub.f32 %v9526_v12, %v1074_v46  ;;  %v9566_v49 = vsub.f32 %v9528_v13, %v1074_v46  ;;  %v9569_v50 = vsub.f32 %v9530_v14, %v1074_v46  ;;  %v9572_v51 = vsub.f32 %v9532_v15, %v1074_v46 }
 0x1a5   : > { %v9575_v52 = vsub.f32 %v9536_v17, %v1074_v46  ;;  %v9584_v56 = vsub.f32 %v9544_v23, %v1074_v46  ;;  %v9591_v61 = vsub.f32 %v9550_v28, %v1074_v46  ;;  %v9597_v1 = vsub.f32 %v9554_v32, %v1074_v46 }
 0x1a6   : > { %v1083_v53 = vmul.f32 %v9563_v48, %v9563_v48  ;;  %v1084_v54 = vmul.f32 %v9566_v49, %v9566_v49  ;;  %v1085_v55 = vmul.f32 %v9569_v50, %v9569_v50  ;;  %v1086_v57 = vmul.f32 %v9572_v51, %v9572_v51 }
 0x1a7   : > { %v1087_v62 = vmul.f32 %v9575_v52, %v9575_v52  ;;  %v1088_v2 = vmul.f32 %v9584_v56, %v9584_v56  ;;  %v1089_v5 = vmul.f32 %v9591_v61, %v9591_v61  ;;  %v1090_v16 = vmul.f32 %v9597_v1, %v9597_v1 }
 0x1a8   : > { %v1091_v58 = vsel %vm907_vm0, %v1083_v53, 0.0  ;;  %v1092_v59 = vsel %vm907_vm0, %v1084_v54, 0.0  ;;  %v1094_v63 = vsel %vm907_vm0, %v1085_v55, 0.0  ;;  %v1096_v3 = vsel %vm907_vm0, %v1086_v57, 0.0  ;;  %v7377_v53 = vld [vmem:[%s10859_s29] ss:$0 sm:$0xff] }
 0x1a9   : > { %v1093_v60 = vadd.f32 %v1092_v59, %v1091_v58  ;;  %v1098_v8 = vsel %vm907_vm0, %v1087_v62, 0.0  ;;  %v1100_v18 = vsel %vm907_vm0, %v1088_v2, 0.0  ;;  %v1102_v20 = vsel %vm907_vm0, %v1089_v5, 0.0  ;;  %s10860_s29 = sld [smem:[#allocation14_spill]] }
 0x1aa   : > { %v1104_v22 = vsel %vm907_vm0, %v1090_v16, 0.0 }
 0x1ab   : > { %v1095_v0 = vadd.f32 %v1094_v63, %v1093_v60 }
 0x1ad   : > { %v1097_v4 = vadd.f32 %v1096_v3, %v1095_v0 }
 0x1af   : > { %v1099_v9 = vadd.f32 %v1098_v8, %v1097_v4 }
 0x1b1   : > { %v1101_v19 = vadd.f32 %v1100_v18, %v1099_v9 }
 0x1b3   : > { %v1103_v21 = vadd.f32 %v1102_v20, %v1101_v19 }
 0x1b5   : > { %v1105_v24 = vadd.f32 %v1104_v22, %v1103_v21 }
 0x1b7   : > { %v1106_v25 = vrot.slane %v1105_v24, 4 }
 0x1b9   : > { %v1107_v26 = vadd.f32 %v1106_v25, %v1105_v24 }
 0x1bb   : > { %v1108_v27 = vrot.slane %v1107_v26, 2 }
 0x1bd   : > { %v1109_v29 = vadd.f32 %v1108_v27, %v1107_v26 }
 0x1bf   : > { %v1110_v30 = vrot.slane %v1109_v29, 1 }
 0x1c1   : > { %v1111_v31 = vadd.f32 %v1110_v30, %v1109_v29 }
 0x1c3   : > { %v1112_v33 = vmul.f32 0.015625, %v1111_v31 }
 0x1c5   : > { %8122 = vmatmul.mubr.msk.f32.vlgmr.msra.gmra.mrb[0].mxu1 %vm907_vm0, %v1112_v33 }
 0x1c6   : > { %8712 = vmatpush3.bf16.msra.mxu1 %v9483_v6  ;;  %8240 = vmatprep.mubr.msk.f32.mxu1 %vm9301_vm1, %v9302_v11 }
 0x1c7   : > { %8713 = vmatprep.subr.bf16.mxu1 %v9300_v7 }
 0x1ca   : > { %8715 = vmatpush3.bf16.msra.mxu1 %v9497_v10 }
 0x1cb   : > { %8716 = vmatprep.subr.bf16.mxu1 %v9300_v7 }
 0x298   : > { %v1182_v37 = vpop.f32.mrb[0].mxu1 }
 0x299   : > { %v1183_v38 = vadd.f32 1e-05, %v1182_v37  ;;  %v8123_v39 = vpop.f32.mrb[1].mxu1 }
 0x29b   : > { %9075 = vrsqrt.f32 %v1183_v38 }
 0x2a5   : > { %v9076_v40 = vpop.eup %9075 }
 0x2a6   : > { %v1190_v41 = vrot.slane %v9076_v40, %v9559_v44 }
 0x2a8   : > { %v1191_v43 = vmul.f32 %v1190_v41, %v9563_v48  ;;  %v1192_v45 = vmul.f32 %v1190_v41, %v9566_v49  ;;  %v1193_v46 = vmul.f32 %v1190_v41, %v9569_v50  ;;  %v1194_v47 = vmul.f32 %v1190_v41, %v9572_v51 }
 0x2a9   : > { %v1195_v54 = vmul.f32 %v1190_v41, %v9575_v52  ;;  %v1196_v55 = vmul.f32 %v1190_v41, %v9584_v56  ;;  %v1197_v57 = vmul.f32 %v1190_v41, %v9591_v61  ;;  %v1198_v58 = vmul.f32 %v1190_v41, %v9597_v1 }
 0x2aa   : > { %v1205_v59 = vmul.f32 %v7376_v42, %v1191_v43  ;;  %v1206_v48 = vmul.f32 %v7376_v42, %v1192_v45  ;;  %v1207_v60 = vmul.f32 %v7376_v42, %v1193_v46  ;;  %v1208_v49 = vmul.f32 %v7376_v42, %v1194_v47 }
 0x2ab   : > { %v1209_v62 = vmul.f32 %v7376_v42, %v1195_v54  ;;  %v1210_v50 = vmul.f32 %v7376_v42, %v1196_v55  ;;  %v1211_v63 = vmul.f32 %v7376_v42, %v1197_v57  ;;  %v1212_v51 = vmul.f32 %v7376_v42, %v1198_v58 }
 0x2ac   : > { %v1220_v0 = vadd.f32 %v7377_v53, %v1206_v48  ;;  %v1221_v2 = vadd.f32 %v7377_v53, %v1207_v60  ;;  %v1219_v3 = vadd.f32 %v7377_v53, %v1205_v59  ;;  %v1222_v4 = vadd.f32 %v7377_v53, %v1208_v49 }
 0x2ad   : > { %v1223_v5 = vadd.f32 %v7377_v53, %v1209_v62  ;;  %v1224_v52 = vadd.f32 %v7377_v53, %v1210_v50  ;;  %v1225_v61 = vadd.f32 %v7377_v53, %v1211_v63  ;;  %v1226_v1 = vadd.f32 %v7377_v53, %v1212_v51  ;;  %v9685_v63 = vld [vmem:[#allocation2 + $0x1] sm:$0xff] }
 0x2ae   : > { %v7379_v8 = vmul.f32 -1.442695, %v1220_v0  ;;  %v7380_v56 = vmul.f32 -1.442695, %v1221_v2  ;;  %v7378_v9 = vmul.f32 -1.442695, %v1219_v3 }
 0x2af   : > { %v7381_v16 = vmul.f32 -1.442695, %v1222_v4  ;;  %v7382_v18 = vmul.f32 -1.442695, %v1223_v5  ;;  %v7383_v19 = vmul.f32 -1.442695, %v1224_v52 }
 0x2b0   : > { %9077 = vpow2.f32 %v7379_v8  ;;  %v7384_v20 = vmul.f32 -1.442695, %v1225_v61  ;;  %v7385_v21 = vmul.f32 -1.442695, %v1226_v1  ;;  %v9042_v8 = vld [vmem:[%s10857_s12 + $0x8] sm:$0xff]  }
 0x2b1   : > { %9079 = vpow2.f32 %v7380_v56 }
 0x2b2   : > { %9081 = vpow2.f32 %v7378_v9  ;;  %v9043_v9 = vld [vmem:[%s10857_s12 + $0x20] sm:$0xff]  }
 0x2b3   : > { %9083 = vpow2.f32 %v7381_v16 }
 0x2b4   : > { %9085 = vpow2.f32 %v7382_v18 }
 0x2b5   : > { %9087 = vpow2.f32 %v7383_v19 }
 0x2b6   : > { %9089 = vpow2.f32 %v7384_v20 }
 0x2b7   : > { %9091 = vpow2.f32 %v7385_v21 }
 0x2ba   : > { %v9078_v22 = vpop.eup %9077 }
 0x2bb   : > { %v9080_v24 = vpop.eup %9079  ;;  %v1252_v25 = vadd.f32 1.0, %v9078_v22 }
 0x2bc   : > { %v9082_v26 = vpop.eup %9081  ;;  %v1253_v27 = vadd.f32 1.0, %v9080_v24 }
 0x2bd   : > { %v9084_v29 = vpop.eup %9083  ;;  %9093 = vrcp.f32 %v1252_v25  ;;  %v1251_v30 = vadd.f32 1.0, %v9082_v26  ;;  %v9044_v26 = vld [vmem:[%s10857_s12 + $0x28] sm:$0xff]  }
 0x2be   : > { %v9086_v31 = vpop.eup %9085  ;;  %9095 = vrcp.f32 %v1253_v27  ;;  %v1254_v33 = vadd.f32 1.0, %v9084_v29  ;;  %v9045_v29 = vld [vmem:[%s10857_s12 + $0x30] sm:$0xff]  }
 0x2bf   : > { %v9088_v34 = vpop.eup %9087  ;;  %9097 = vrcp.f32 %v1251_v30  ;;  %v1255_v35 = vadd.f32 1.0, %v9086_v31 }
 0x2c0   : > { %v9090_v37 = vpop.eup %9089  ;;  %9099 = vrcp.f32 %v1254_v33  ;;  %v1256_v38 = vadd.f32 1.0, %v9088_v34  ;;  %v9748_v33 = vld [vmem:[#allocation2 + $0x2] sm:$0xff] }
 0x2c1   : > { %v9092_v39 = vpop.eup %9091  ;;  %9101 = vrcp.f32 %v1255_v35  ;;  %v1257_v40 = vadd.f32 1.0, %v9090_v37 }
 0x2c2   : > { %9103 = vrcp.f32 %v1256_v38  ;;  %v1258_v41 = vadd.f32 1.0, %v9092_v39 }
 0x2c3   : > { %9105 = vrcp.f32 %v1257_v40 }
 0x2c4   : > { %9107 = vrcp.f32 %v1258_v41 }
 0x2c7   : > { %v9094_v42 = vpop.eup %9093 }
 0x2c8   : > { %v9096_v43 = vpop.eup %9095  ;;  %v1276_v45 = vmul.f32 %v9094_v42, %v1220_v0 }
 0x2c9   : > { %v9098_v46 = vpop.eup %9097  ;;  %v1277_v47 = vmul.f32 %v9096_v43, %v1221_v2  ;;  %v9046_v43 = vld [vmem:[%s10857_s12 + $0x38] sm:$0xff]  }
 0x2ca   : > { %v9100_v53 = vpop.eup %9099  ;;  %v1275_v54 = vmul.f32 %v9098_v46, %v1219_v3  ;;  %1284 = vst.msk [vmem:[#allocation2 + $0x21] sm:$0xff] %vm907_vm0, %v1276_v45  ;;  %v9047_v46 = vld [vmem:[%s10857_s12 + $0x40] sm:$0xff]  }
 0x2cb   : > { %v9102_v55 = vpop.eup %9101  ;;  %1285 = vst.msk [vmem:[#allocation2 + $0x31] sm:$0xff] %vm907_vm0, %v1277_v47  ;;  %v1278_v57 = vmul.f32 %v9100_v53, %v1222_v4 }
 0x2cc   : > { %v9104_v58 = vpop.eup %9103  ;;  %1283 = vst.msk [vmem:[#allocation2 + $0x11] sm:$0xff] %vm907_vm0, %v1275_v54  ;;  %v1279_v59 = vmul.f32 %v9102_v55, %v1223_v5 }
 0x2cd   : > { %v9106_v48 = vpop.eup %9105  ;;  %1286 = vst.msk [vmem:[#allocation2 + $0x41] sm:$0xff] %vm907_vm0, %v1278_v57  ;;  %v1280_v60 = vmul.f32 %v9104_v58, %v1224_v52  ;;  %v9048_v58 = vld [vmem:[%s10857_s12 + $0x48] sm:$0xff]  }
 0x2ce   : > { %v9108_v49 = vpop.eup %9107  ;;  %1287 = vst.msk [vmem:[#allocation2 + $0x51] sm:$0xff] %vm907_vm0, %v1279_v59  ;;  %v1281_v62 = vmul.f32 %v9106_v48, %v1225_v61  ;;  %v9049_v48 = vld [vmem:[%s10857_s12 + $0x50] sm:$0xff]  }
 0x2cf   : > { %1288 = vst.msk [vmem:[#allocation2 + $0x61] sm:$0xff] %vm907_vm0, %v1280_v60  ;;  %v1282_v50 = vmul.f32 %v9108_v49, %v1226_v1  ;;  %v9724_v1 = vld [vmem:[#allocation2] sm:$0xff] }
 0x2d0   : > { %1289 = vst.msk [vmem:[#allocation2 + $0x71] sm:$0xff] %vm907_vm0, %v1281_v62 }
 0x2d1   : > { %v9687_v51 = vld [vmem:[#allocation2 + $0x21] sm:$0xff]  ;;  %1290 = vst.msk [vmem:[#allocation2 + $0x81] sm:$0xff] %vm907_vm0, %v1282_v50 }
 0x2d2   : > { %v9690_v0 = vld [vmem:[#allocation2 + $0x31] sm:$0xff]  ;;  %v1293_v20 = vld [vmem:[#allocation2 + $0x20] sm:$0xff] }
 0x2d3   : > { %v9692_v2 = vld [vmem:[#allocation2 + $0x11] sm:$0xff]  ;;  %v9696_v3 = vpack.c.bf16 %v9690_v0, %v9687_v51  ;;  %v1504_v38 = vld [vmem:[#allocation2 + $0x22] sm:$0xff] }
 0x2d4   : > { %v1320_v4 = vpack.c.bf16 %v9692_v2, %v9685_v63  ;;  %v9700_v5 = vld [vmem:[#allocation2 + $0x41] sm:$0xff]  ;;  %v1292_v18 = vld [vmem:[#allocation2 + $0x10] sm:$0xff]  ;;  %v1743_v62 = vpack.c.bf16 %v9687_v51, %v9692_v2 }
 0x2d5   : > { %v9702_v52 = vld [vmem:[#allocation2 + $0x51] sm:$0xff]  ;;  %v1295_v22 = vld [vmem:[#allocation2 + $0x40] sm:$0xff]  ;;  %v1629_v55 = vpack.c.bf16 %v1293_v20, %v1292_v18  ;;  %v1744_v50 = vpack.c.bf16 %v9700_v5, %v9690_v0 }
 0x2d6   : > { %8128 = vmatprep.mubr.msk.bf16.mxu0 %vm907_vm0, %v1320_v4  ;;  %v9710_v56 = vpack.c.bf16 %v9702_v52, %v9700_v5  ;;  %v9720_v61 = vld [vmem:[#allocation2 + $0x61] sm:$0xff]  ;;  %v1294_v21 = vld [vmem:[#allocation2 + $0x30] sm:$0xff]  ;;  %v9050_v4 = vld [vmem:[%s10857_s12 + $0x58] sm:$0xff]  }
 0x2d7   : > { %8129 = vmatmul.mubr.msk.bf16.vlgmr.msra.gmra.mrb[4].mxu0 %vm907_vm0, %v9696_v3  ;;  %v9722_v16 = vld [vmem:[#allocation2 + $0x71] sm:$0xff]  ;;  %v9734_v25 = vpack.c.bf16 %v1294_v21, %v1293_v20  ;;  %v1297_v30 = vld [vmem:[#allocation2 + $0x60] sm:$0xff]  ;;  %v1630_v57 = vpack.c.bf16 %v1295_v22, %v1294_v21 }
 0x2d8   : > { %8137 = vmatpush3.bf16.msra.mxu0 %v9660_v36  ;;  %8132 = vmatprep.mubr.msk.bf16.mxu0 %vm907_vm0, %v9710_v56  ;;  %v9728_v19 = vpack.c.bf16 %v9722_v16, %v9720_v61  ;;  %v1303_v36 = vpack.c.bf16 %v1292_v18, %v9724_v1  ;;  %v1296_v24 = vld [vmem:[#allocation2 + $0x50] sm:$0xff]  ;;  %v1506_v40 = vld [vmem:[#allocation2 + $0x42] sm:$0xff]  ;;  %v9054_v20 = vld [vmem:[%s10857_s12 + $0x78] sm:$0xff]  }
 0x2d9   : > { %8138 = vmatprep.subr.bf16.mxu0 %v9042_v8  ;;  %v9739_v27 = vpack.c.bf16 %v1296_v24, %v1295_v22  ;;  %v1298_v31 = vld [vmem:[#allocation2 + $0x70] sm:$0xff]  ;;  %v1508_v47 = vld [vmem:[#allocation2 + $0x62] sm:$0xff]  ;;  %v1631_v59 = vpack.c.bf16 %v1297_v30, %v1296_v24 }
 0x2da   : > { %v1503_v34 = vld [vmem:[#allocation2 + $0x12] sm:$0xff]  ;;  %v9750_v35 = vpack.c.bf16 %v1298_v31, %v1297_v30  ;;  %v1623_v60 = vld [vmem:[#allocation2 + $0x80] sm:$0xff] }
 0x2db   : > { %v1515_v37 = vpack.c.bf16 %v1503_v34, %v9748_v33  ;;  %v1505_v39 = vld [vmem:[#allocation2 + $0x32] sm:$0xff]  ;;  %v1632_v49 = vpack.c.bf16 %v1623_v60, %v1298_v31  ;;  %v9051_v51 = vld [vmem:[%s10857_s12 + $0x60] sm:$0xff]   ;;  %v1857_v5 = vpack.c.bf16 %v1504_v38, %v1503_v34 }
 0x2dc   : > { %8139 = vmatpush3.bf16.msra.mxu0 %v9042_v8  ;;  %v1507_v41 = vld [vmem:[#allocation2 + $0x52] sm:$0xff]  ;;  %v9756_v42 = vpack.c.bf16 %v1505_v39, %v1504_v38  ;;  %v1745_v8 = vpack.c.bf16 %v9720_v61, %v9702_v52  ;;  %v1737_v2 = vld [vmem:[#allocation2 + $0x81] sm:$0xff]  ;;  %v1858_v52 = vpack.c.bf16 %v1506_v40, %v1505_v39 }
 0x2dd   : > { %8148 = vmatprep.subr.bf16.mxu0 %v9043_v9  ;;  %v9761_v45 = vpack.c.bf16 %v1507_v41, %v1506_v40  ;;  %v1509_v53 = vld [vmem:[#allocation2 + $0x72] sm:$0xff]  ;;  %v1746_v0 = vpack.c.bf16 %v1737_v2, %v9722_v16  ;;  %v1859_v61 = vpack.c.bf16 %v1508_v47, %v1507_v41  ;;  %v1851_v18 = vld [vmem:[#allocation2 + $0x82] sm:$0xff] }
 0x2de   : > { %v9770_v54 = vpack.c.bf16 %v1509_v53, %v1508_v47  ;;  %v9053_v16 = vld [vmem:[%s10857_s12 + $0x70] sm:$0xff]   ;;  %v9055_v21 = vld [vmem:[%s10857_s12 + $0x80] sm:$0xff]  }
 0x2df   : > { %8133 = vmatmul.mubr.msk.bf16.gmra.mrb[8].mxu0 %vm907_vm0, %v9728_v19  ;;  %v9823_v22 = vld [vmem:[#allocation2 + $0x90] sm:$0xff] }
 0x2e0   : > { %8140 = vmatprep.mubr.msk.bf16.mxu0 %vm907_vm0, %v1303_v36  ;;  %v1860_v36 = vpack.c.bf16 %v1851_v18, %v1509_v53  ;;  %v1975_v24 = vpack.c.bf16 %v9823_v22, %v1623_v60 }
 0x2e7   : > { %8141 = vmatmul.mubr.msk.bf16.vlgmr.msra.gmra.mrb[4].mxu0 %vm907_vm0, %v9734_v25 }
 0x2e8   : > { %8149 = vmatpush3.bf16.msra.mxu0 %v9043_v9  ;;  %8144 = vmatprep.mubr.msk.bf16.mxu0 %vm907_vm0, %v9739_v27  ;;  %v9052_v9 = vld [vmem:[%s10857_s12 + $0x68] sm:$0xff]  }
 0x2e9   : > { %8150 = vmatprep.subr.bf16.mxu0 %v9044_v26 }
 0x2ec   : > { %8151 = vmatpush3.bf16.msra.mxu0 %v9044_v26  ;;  %v9836_v26 = vld [vmem:[#allocation2 + $0x91] sm:$0xff] }
 0x2ed   : > { %8160 = vmatprep.subr.bf16.mxu0 %v9045_v29 }
 0x2ef   : > { %8145 = vmatmul.mubr.msk.bf16.gmra.mrb[8].mxu0 %vm907_vm0, %v9750_v35 }
 0x2f0   : > { %8152 = vmatprep.mubr.msk.bf16.mxu0 %vm907_vm0, %v1515_v37 }
 0x2f7   : > { %8153 = vmatmul.mubr.msk.bf16.vlgmr.msra.gmra.mrb[4].mxu0 %vm907_vm0, %v9756_v42 }
 0x2f8   : > { %8161 = vmatpush3.bf16.msra.mxu0 %v9045_v29  ;;  %8156 = vmatprep.mubr.msk.bf16.mxu0 %vm907_vm0, %v9761_v45 }
 0x2f9   : > { %8162 = vmatprep.subr.bf16.mxu0 %v9046_v43 }
 0x2fc   : > { %8163 = vmatpush3.bf16.msra.mxu0 %v9046_v43 }
 0x2fd   : > { %8172 = vmatprep.subr.bf16.mxu0 %v9047_v46 }
 0x2ff   : > { %8157 = vmatmul.mubr.msk.bf16.gmra.mrb[8].mxu0 %vm907_vm0, %v9770_v54 }
 0x300   : > { %8164 = vmatprep.mubr.msk.bf16.mxu0 %vm907_vm0, %v1629_v55 }
 0x307   : > { %8165 = vmatmul.mubr.msk.bf16.vlgmr.msra.gmra.mrb[4].mxu0 %vm907_vm0, %v1630_v57 }
 0x308   : > { %8173 = vmatpush3.bf16.msra.mxu0 %v9047_v46  ;;  %8168 = vmatprep.mubr.msk.bf16.mxu0 %vm907_vm0, %v1631_v59 }
 0x309   : > { %8174 = vmatprep.subr.bf16.mxu0 %v9048_v58 }
 0x30c   : > { %8175 = vmatpush3.bf16.msra.mxu0 %v9048_v58 }
 0x30d   : > { %8184 = vmatprep.subr.bf16.mxu0 %v9049_v48 }
 0x30f   : > { %8169 = vmatmul.mubr.msk.bf16.gmra.mrb[8].mxu0 %vm907_vm0, %v1632_v49 }
 0x310   : > { %8176 = vmatprep.mubr.msk.bf16.mxu0 %vm907_vm0, %v1743_v62 }
 0x317   : > { %8177 = vmatmul.mubr.msk.bf16.vlgmr.msra.gmra.mrb[4].mxu0 %vm907_vm0, %v1744_v50 }
 0x318   : > { %8185 = vmatpush3.bf16.msra.mxu0 %v9049_v48  ;;  %8180 = vmatprep.mubr.msk.bf16.mxu0 %vm907_vm0, %v1745_v8 }
 0x319   : > { %8186 = vmatprep.subr.bf16.mxu0 %v9050_v4 }
 0x31c   : > { %8187 = vmatpush3.bf16.msra.mxu0 %v9050_v4 }
 0x31d   : > { %8196 = vmatprep.subr.bf16.mxu0 %v9051_v51 }
 0x31f   : > { %8181 = vmatmul.mubr.msk.bf16.gmra.mrb[8].mxu0 %vm907_vm0, %v1746_v0 }
 0x320   : > { %8188 = vmatprep.mubr.msk.bf16.mxu0 %vm907_vm0, %v1857_v5 }
 0x327   : > { %8189 = vmatmul.mubr.msk.bf16.vlgmr.msra.gmra.mrb[4].mxu0 %vm907_vm0, %v1858_v52 }
 0x328   : > { %8197 = vmatpush3.bf16.msra.mxu0 %v9051_v51  ;;  %8192 = vmatprep.mubr.msk.bf16.mxu0 %vm907_vm0, %v1859_v61 }
 0x329   : > { %8198 = vmatprep.subr.bf16.mxu0 %v9052_v9 }
 0x32c   : > { %8199 = vmatpush3.bf16.msra.mxu0 %v9052_v9 }
 0x32d   : > { %8208 = vmatprep.subr.bf16.mxu0 %v9053_v16 }
 0x32f   : > { %8193 = vmatmul.mubr.msk.bf16.gmra.mrb[8].mxu0 %vm907_vm0, %v1860_v36 }
 0x330   : > { %8200 = vmatprep.mubr.msk.bf16.mxu0 %vm907_vm0, %v9734_v25  ;;  %v9056_v25 = vld [vmem:[%s10857_s12 + $0x88] sm:$0xff]  }
 0x337   : > { %8201 = vmatmul.mubr.msk.bf16.vlgmr.msra.gmra.mrb[4].mxu0 %vm907_vm0, %v9739_v27  ;;  %v2089_v27 = vpack.c.bf16 %v9836_v26, %v1737_v2 }
 0x338   : > { %8209 = vmatpush3.bf16.msra.mxu0 %v9053_v16  ;;  %8204 = vmatprep.mubr.msk.bf16.mxu0 %vm907_vm0, %v9750_v35 }
 0x339   : > { %8210 = vmatprep.subr.bf16.mxu0 %v9054_v20 }
 0x33c   : > { %8211 = vmatpush3.bf16.msra.mxu0 %v9054_v20 }
 0x33d   : > { %8220 = vmatprep.subr.bf16.mxu0 %v9055_v21 }
 0x33f   : > { %8205 = vmatmul.mubr.msk.bf16.gmra.mrb[8].mxu0 %vm907_vm0, %v1975_v24 }
 0x340   : > { %8212 = vmatprep.mubr.msk.bf16.mxu0 %vm907_vm0, %v9696_v3  ;;  %v9849_v3 = vld [vmem:[#allocation2 + $0x92] sm:$0xff] }
 0x347   : > { %8213 = vmatmul.mubr.msk.bf16.vlgmr.msra.gmra.mrb[4].mxu0 %vm907_vm0, %v9710_v56  ;;  %v2203_v56 = vpack.c.bf16 %v9849_v3, %v1851_v18 }
 0x348   : > { %8221 = vmatpush3.bf16.msra.mxu0 %v9055_v21  ;;  %8216 = vmatprep.mubr.msk.bf16.mxu0 %vm907_vm0, %v9728_v19  ;;  %v7472_v19 = vld [vmem:[%s10860_s29] ss:$0 sm:$0xff] }
 0x349   : > { %8222 = vmatprep.subr.bf16.mxu0 %v9056_v25 }
 0x34c   : > { %8223 = vmatpush3.bf16.msra.mxu0 %v9056_v25 }
 0x34d   : > { %8722 = vmatprep.subr.bf16.mxu0 %v9300_v7 }
 0x34f   : > { %8217 = vmatmul.mubr.msk.bf16.gmra.mrb[8].mxu0 %vm907_vm0, %v2089_v27 }
 0x350   : > { %8224 = vmatprep.mubr.msk.bf16.mxu0 %vm907_vm0, %v9756_v42 }
 0x357   : > { %8225 = vmatmul.mubr.msk.bf16.vlgmr.msra.gmra.mrb[4].mxu0 %vm907_vm0, %v9761_v45 }
 0x358   : > { %8228 = vmatprep.mubr.msk.bf16.mxu0 %vm907_vm0, %v9770_v54  ;;  %8724 = vmatpush3.bf16.msra.mxu0 %v9483_v6 }
 0x359   : > { %8725 = vmatprep.subr.bf16.mxu0 %v9300_v7 }
 0x35c   : > { %8727 = vmatpush3.bf16.msra.mxu0 %v9497_v10 }
 0x35d   : > { %8728 = vmatprep.subr.bf16.mxu0 %v9300_v7 }
 0x35f   : > { %8229 = vmatmul.mubr.msk.bf16.gmra.mrb[8].mxu0 %vm907_vm0, %v2203_v56 }
 0x360   : > { %8370 = vmatprep.mubr.msk.f32.mxu0 %vm9301_vm1, %v9302_v11 }
 0x42a   : > { %v8226_v29 = vpop.f32.mrb[4].mxu0 }
 0x42b   : > { %v2262_v30 = vpop.f32.mrb[5].mxu0  ;;  %v2309_v37 = vadd.f32 %v8226_v29, %v7472_v19 }
 0x42c   : > { %v2307_v31 = vadd.f32 %v7472_v19, %v2262_v30  ;;  %v8227_v34 = vpop.f32.mrb[6].mxu0 }
 0x42d   : > { %v2265_v35 = vpop.f32.mrb[7].mxu0  ;;  %v2310_v40 = vadd.f32 %v8227_v34, %v7472_v19  ;;  %v2318_v43 = vsel %vm907_vm0, %v2309_v37, 0.0 }
 0x42e   : > { %v2308_v38 = vadd.f32 %v7472_v19, %v2265_v35  ;;  %v2315_v39 = vsel %vm907_vm0, %v2307_v31, 0.0 }
 0x42f   : > { %v2320_v53 = vsel %vm907_vm0, %v2310_v40, 0.0 }
 0x430   : > { %v2316_v41 = vsel %vm907_vm0, %v2308_v38, 0.0 }
 0x431   : > { %v2317_v42 = vadd.f32 %v2316_v41, %v2315_v39 }
 0x432   : > { %v8230_v45 = vpop.f32.mrb[8].mxu0 }
 0x433   : > { %v2319_v46 = vadd.f32 %v2318_v43, %v2317_v42  ;;  %v2278_v47 = vpop.f32.mrb[9].mxu0  ;;  %v2313_v59 = vadd.f32 %v8230_v45, %v7472_v19 }
 0x434   : > { %v2311_v54 = vadd.f32 %v7472_v19, %v2278_v47  ;;  %v8231_v55 = vpop.f32.mrb[10].mxu0 }
 0x435   : > { %v2321_v57 = vadd.f32 %v2320_v53, %v2319_v46  ;;  %v2281_v58 = vpop.f32.mrb[11].mxu0  ;;  %v2314_v62 = vadd.f32 %v8231_v55, %v7472_v19  ;;  %v2326_v8 = vsel %vm907_vm0, %v2313_v59, 0.0 }
 0x436   : > { %v2322_v48 = vsel %vm907_vm0, %v2311_v54, 0.0  ;;  %v2312_v60 = vadd.f32 %v7472_v19, %v2281_v58 }
 0x437   : > { %v2323_v49 = vadd.f32 %v2322_v48, %v2321_v57  ;;  %v2328_v2 = vsel %vm907_vm0, %v2314_v62, 0.0 }
 0x438   : > { %v2324_v50 = vsel %vm907_vm0, %v2312_v60, 0.0 }
 0x439   : > { %v2325_v4 = vadd.f32 %v2324_v50, %v2323_v49 }
 0x43b   : > { %v2327_v51 = vadd.f32 %v2326_v8, %v2325_v4 }
 0x43d   : > { %v2329_v0 = vadd.f32 %v2328_v2, %v2327_v51 }
 0x43f   : > { %v2330_v5 = vrot.slane %v2329_v0, 4 }
 0x441   : > { %v2331_v52 = vadd.f32 %v2330_v5, %v2329_v0 }
 0x443   : > { %v2332_v9 = vrot.slane %v2331_v52, 2 }
 0x445   : > { %v2333_v61 = vadd.f32 %v2332_v9, %v2331_v52 }
 0x447   : > { %v2334_v16 = vrot.slane %v2333_v61, 1 }
 0x449   : > { %v2335_v18 = vadd.f32 %v2334_v16, %v2333_v61  ;;  %v9057_v61 = vld [vmem:[%s10861_s30 + $0x10] sm:$0xff]   ;;  %v9058_v16 = vld [vmem:[%s10861_s30 + $0x18] sm:$0xff]  }
 0x44b   : > { %v2336_v36 = vmul.f32 0.015625, %v2335_v18  ;;  %v9893_v18 = vld [vmem:[%s10861_s30] sm:$0xff]  }
 0x44d   : > { %8241 = vmatmul.mubr.msk.f32.vlgmr.msra.gmra.mrb[2].mxu1 %vm907_vm0, %v2336_v36 }
 0x44e   : > { %8718 = vmatpush3.bf16.msra.mxu1 %v9483_v6  ;;  %8251 = vmatprep.mubr.msk.f32.mxu1 %vm9301_vm1, %v9302_v11 }
 0x44f   : > { %8719 = vmatprep.subr.bf16.mxu1 %v9300_v7 }
 0x452   : > { %8721 = vmatpush3.bf16.msra.mxu1 %v9497_v10 }
 0x453   : > { %8254 = vmatprep.subr.bf16.mxu1 %v9057_v61 }
 0x520   : > { %v2406_v20 = vpop.f32.mrb[2].mxu1 }
 0x521   : > { %v2413_v21 = vrot.slane %v2406_v20, %v9559_v44  ;;  %v8242_v24 = vpop.f32.mrb[3].mxu1 }
 0x523   : > { %v2414_v25 = vsub.f32 %v2307_v31, %v2413_v21  ;;  %v2415_v27 = vsub.f32 %v2308_v38, %v2413_v21  ;;  %v2416_v56 = vsub.f32 %v2309_v37, %v2413_v21  ;;  %v2417_v19 = vsub.f32 %v2310_v40, %v2413_v21 }
 0x524   : > { %v2418_v29 = vsub.f32 %v2311_v54, %v2413_v21  ;;  %v2419_v39 = vsub.f32 %v2312_v60, %v2413_v21  ;;  %v2420_v46 = vsub.f32 %v2313_v59, %v2413_v21  ;;  %v2421_v31 = vsub.f32 %v2314_v62, %v2413_v21 }
 0x525   : > { %v2422_v30 = vmul.f32 %v2414_v25, %v2414_v25  ;;  %v2423_v34 = vmul.f32 %v2415_v27, %v2415_v27  ;;  %v2424_v35 = vmul.f32 %v2416_v56, %v2416_v56  ;;  %v2425_v41 = vmul.f32 %v2417_v19, %v2417_v19 }
 0x526   : > { %v2426_v47 = vmul.f32 %v2418_v29, %v2418_v29  ;;  %v2427_v38 = vmul.f32 %v2419_v39, %v2419_v39  ;;  %v2428_v54 = vmul.f32 %v2420_v46, %v2420_v46  ;;  %v2429_v48 = vmul.f32 %v2421_v31, %v2421_v31 }
 0x527   : > { %v2430_v42 = vsel %vm907_vm0, %v2422_v30, 0.0  ;;  %v2431_v43 = vsel %vm907_vm0, %v2423_v34, 0.0  ;;  %v2433_v53 = vsel %vm907_vm0, %v2424_v35, 0.0  ;;  %v2435_v37 = vsel %vm907_vm0, %v2425_v41, 0.0  ;;  %v7475_v34 = vld [vmem:[%s10862_s10] ss:$0 sm:$0xff] }
 0x528   : > { %v2432_v45 = vadd.f32 %v2431_v43, %v2430_v42  ;;  %v2437_v57 = vsel %vm907_vm0, %v2426_v47, 0.0  ;;  %v2439_v60 = vsel %vm907_vm0, %v2427_v38, 0.0  ;;  %v2441_v50 = vsel %vm907_vm0, %v2428_v54, 0.0  ;;  %s10174_s10 = smov 0  }
 0x529   : > { %v2443_v4 = vsel %vm907_vm0, %v2429_v48, 0.0 }
 0x52a   : > { %v2434_v55 = vadd.f32 %v2433_v53, %v2432_v45  ;;  %v7476_v45 = vld [vmem:[%s10864_s27] ss:$0 sm:$0xff] }
 0x52c   : > { %v2436_v40 = vadd.f32 %v2435_v37, %v2434_v55 }
 0x52e   : > { %v2438_v58 = vadd.f32 %v2437_v57, %v2436_v40 }
 0x530   : > { %v2440_v49 = vadd.f32 %v2439_v60, %v2438_v58 }
 0x532   : > { %v2442_v59 = vadd.f32 %v2441_v50, %v2440_v49 }
 0x534   : > { %v2444_v8 = vadd.f32 %v2443_v4, %v2442_v59 }
 0x536   : > { %v2445_v51 = vrot.slane %v2444_v8, 4 }
 0x538   : > { %v2446_v62 = vadd.f32 %v2445_v51, %v2444_v8 }
 0x53a   : > { %v2447_v2 = vrot.slane %v2446_v62, 2 }
 0x53c   : > { %v2448_v0 = vadd.f32 %v2447_v2, %v2446_v62 }
 0x53e   : > { %v2449_v5 = vrot.slane %v2448_v0, 1 }
 0x540   : > { %v2450_v52 = vadd.f32 %v2449_v5, %v2448_v0 }
 0x542   : > { %v2451_v9 = vmul.f32 0.015625, %v2450_v52 }
 0x544   : > { %8252 = vmatmul.mubr.msk.f32.vlgmr.msra.gmra.mrb[4].mxu1 %vm907_vm0, %v2451_v9 }
 0x545   : > { %8255 = vmatpush3.bf16.msra.mxu1 %v9057_v61 }
 0x546   : > { %8256 = vmatprep.subr.bf16.mxu1 %v9058_v16 }
 0x549   : > { %8257 = vmatpush3.bf16.msra.mxu1 %v9058_v16 }
 0x54a   : > { %8266 = vmatprep.subr.bf16.mxu1 %v9893_v18 }
 0x617   : > { %v2521_v36 = vpop.f32.mrb[4].mxu1 }
 0x618   : > { %v2522_v20 = vadd.f32 1e-05, %v2521_v36  ;;  %v8253_v21 = vpop.f32.mrb[5].mxu1 }
 0x61a   : > { %9109 = vrsqrt.f32 %v2522_v20 }
 0x624   : > { %v9110_v24 = vpop.eup %9109 }
 0x625   : > { %v2529_v30 = vrot.slane %v9110_v24, %v9559_v44 }
 0x627   : > { %v2530_v35 = vmul.f32 %v2529_v30, %v2414_v25  ;;  %v2531_v41 = vmul.f32 %v2529_v30, %v2415_v27  ;;  %v2532_v42 = vmul.f32 %v2529_v30, %v2416_v56  ;;  %v2533_v43 = vmul.f32 %v2529_v30, %v2417_v19  ;;  %v7477_v25 = vld [vmem:[%s887_s3] ss:$0 sm:$0xff] }
 0x628   : > { %v2534_v47 = vmul.f32 %v2529_v30, %v2418_v29  ;;  %v2535_v53 = vmul.f32 %v2529_v30, %v2419_v39  ;;  %v2536_v55 = vmul.f32 %v2529_v30, %v2420_v46  ;;  %v2537_v38 = vmul.f32 %v2529_v30, %v2421_v31  ;;  %v7478_v39 = vld [vmem:[%s890_s9] ss:$0 sm:$0xff] }
 0x629   : > { %v2544_v37 = vmul.f32 %v7475_v34, %v2530_v35  ;;  %v2545_v40 = vmul.f32 %v7475_v34, %v2531_v41  ;;  %v2546_v54 = vmul.f32 %v7475_v34, %v2532_v42  ;;  %v2547_v57 = vmul.f32 %v7475_v34, %v2533_v43 }
 0x62a   : > { %v2548_v27 = vmul.f32 %v7475_v34, %v2534_v47  ;;  %v2549_v56 = vmul.f32 %v7475_v34, %v2535_v53  ;;  %v2550_v19 = vmul.f32 %v7475_v34, %v2536_v55  ;;  %v2551_v58 = vmul.f32 %v7475_v34, %v2537_v38 }
 0x62b   : > { %v2558_v48 = vadd.f32 %v7476_v45, %v2544_v37  ;;  %v2559_v60 = vadd.f32 %v7476_v45, %v2545_v40  ;;  %v2560_v49 = vadd.f32 %v7476_v45, %v2546_v54  ;;  %v2561_v29 = vadd.f32 %v7476_v45, %v2547_v57 }
 0x62c   : > { %v2562_v46 = vadd.f32 %v7476_v45, %v2548_v27  ;;  %v2563_v31 = vadd.f32 %v7476_v45, %v2549_v56  ;;  %v2564_v50 = vadd.f32 %v7476_v45, %v2550_v19  ;;  %v2565_v59 = vadd.f32 %v7476_v45, %v2551_v58 }
 0x62d   : > { %v2572_v4 = vmul.f32 %v7477_v25, %v2558_v48  ;;  %v2573_v8 = vmul.f32 %v7477_v25, %v2559_v60  ;;  %v2574_v51 = vmul.f32 %v7477_v25, %v2560_v49  ;;  %v2575_v62 = vmul.f32 %v7477_v25, %v2561_v29 }
 0x62e   : > { %v2576_v2 = vmul.f32 %v7477_v25, %v2562_v46  ;;  %v2577_v0 = vmul.f32 %v7477_v25, %v2563_v31  ;;  %v2578_v5 = vmul.f32 %v7477_v25, %v2564_v50  ;;  %v2579_v52 = vmul.f32 %v7477_v25, %v2565_v59 }
 0x62f   : > { %v2586_v9 = vadd.f32 %v7478_v39, %v2572_v4  ;;  %v2587_v61 = vadd.f32 %v7478_v39, %v2573_v8  ;;  %v2588_v16 = vadd.f32 %v7478_v39, %v2574_v51  ;;  %v2589_v36 = vadd.f32 %v7478_v39, %v2575_v62 }
 0x630   : > { %v2590_v20 = vadd.f32 %v7478_v39, %v2576_v2  ;;  %v2591_v21 = vadd.f32 %v7478_v39, %v2577_v0  ;;  %v2592_v24 = vadd.f32 %v7478_v39, %v2578_v5  ;;  %v2593_v30 = vadd.f32 %v7478_v39, %v2579_v52 }
 0x631   : > { %v7479_v34 = vmul.f32 -1.442695, %v2586_v9  ;;  %v7480_v35 = vmul.f32 -1.442695, %v2587_v61  ;;  %v7481_v41 = vmul.f32 -1.442695, %v2588_v16 }
 0x632   : > { %v7482_v42 = vmul.f32 -1.442695, %v2589_v36  ;;  %v7483_v43 = vmul.f32 -1.442695, %v2590_v20  ;;  %v7484_v45 = vmul.f32 -1.442695, %v2591_v21 }
 0x633   : > { %9111 = vpow2.f32 %v7479_v34  ;;  %v7485_v47 = vmul.f32 -1.442695, %v2592_v24  ;;  %v7486_v53 = vmul.f32 -1.442695, %v2593_v30 }
 0x634   : > { %9113 = vpow2.f32 %v7480_v35 }
 0x635   : > { %9115 = vpow2.f32 %v7481_v41  ;;  %v9060_v41 = vld [vmem:[%s10861_s30 + $0x8] sm:$0xff]  }
 0x636   : > { %9117 = vpow2.f32 %v7482_v42 }
 0x637   : > { %9119 = vpow2.f32 %v7483_v43  ;;  %v9061_v43 = vld [vmem:[%s10861_s30 + $0x20] sm:$0xff]  }
 0x638   : > { %9121 = vpow2.f32 %v7484_v45 }
 0x639   : > { %9123 = vpow2.f32 %v7485_v47 }
 0x63a   : > { %9125 = vpow2.f32 %v7486_v53 }
 0x63d   : > { %v9112_v55 = vpop.eup %9111 }
 0x63e   : > { %v9114_v38 = vpop.eup %9113  ;;  %v2618_v37 = vadd.f32 1.0, %v9112_v55 }
 0x63f   : > { %v9116_v40 = vpop.eup %9115  ;;  %v2619_v54 = vadd.f32 1.0, %v9114_v38 }
 0x640   : > { %v9118_v57 = vpop.eup %9117  ;;  %v2620_v25 = vadd.f32 1.0, %v9116_v40  ;;  %9127 = vrcp.f32 %v2618_v37 }
 0x641   : > { %v9120_v27 = vpop.eup %9119  ;;  %v2621_v56 = vadd.f32 1.0, %v9118_v57  ;;  %9129 = vrcp.f32 %v2619_v54 }
 0x642   : > { %v9122_v19 = vpop.eup %9121  ;;  %v2622_v58 = vadd.f32 1.0, %v9120_v27  ;;  %9131 = vrcp.f32 %v2620_v25  ;;  %v9062_v25 = vld [vmem:[%s10861_s30 + $0x28] sm:$0xff]  }
 0x643   : > { %v9124_v48 = vpop.eup %9123  ;;  %v2623_v60 = vadd.f32 1.0, %v9122_v19  ;;  %9133 = vrcp.f32 %v2621_v56 }
 0x644   : > { %v9126_v49 = vpop.eup %9125  ;;  %v2624_v29 = vadd.f32 1.0, %v9124_v48  ;;  %9135 = vrcp.f32 %v2622_v58 }
 0x645   : > { %v2625_v39 = vadd.f32 1.0, %v9126_v49  ;;  %9137 = vrcp.f32 %v2623_v60 }
 0x646   : > { %9139 = vrcp.f32 %v2624_v29 }
 0x647   : > { %9141 = vrcp.f32 %v2625_v39 }
 0x64a   : > { %v9128_v46 = vpop.eup %9127 }
 0x64b   : > { %v9130_v31 = vpop.eup %9129  ;;  %v2642_v50 = vmul.f32 %v9128_v46, %v2586_v9 }
 0x64c   : > { %v9132_v59 = vpop.eup %9131  ;;  %v2643_v4 = vmul.f32 %v9130_v31, %v2587_v61 }
 0x64d   : > { %v9134_v8 = vpop.eup %9133  ;;  %v2644_v51 = vmul.f32 %v9132_v59, %v2588_v16  ;;  %2650 = vst.msk [vmem:[#allocation2 + $0x11] sm:$0xff] %vm907_vm0, %v2642_v50  ;;  %v9064_v50 = vld [vmem:[%s10861_s30 + $0x38] sm:$0xff]  }
 0x64e   : > { %v9136_v62 = vpop.eup %9135  ;;  %v2645_v2 = vmul.f32 %v9134_v8, %v2589_v36  ;;  %2651 = vst.msk [vmem:[#allocation2 + $0x21] sm:$0xff] %vm907_vm0, %v2643_v4 }
 0x64f   : > { %v9138_v0 = vpop.eup %9137  ;;  %v2646_v5 = vmul.f32 %v9136_v62, %v2590_v20  ;;  %2652 = vst.msk [vmem:[#allocation2 + $0x31] sm:$0xff] %vm907_vm0, %v2644_v51 }
 0x650   : > { %v9140_v52 = vpop.eup %9139  ;;  %v2647_v34 = vmul.f32 %v9138_v0, %v2591_v21  ;;  %2653 = vst.msk [vmem:[#allocation2 + $0x41] sm:$0xff] %vm907_vm0, %v2645_v2  ;;  %v9066_v0 = vld [vmem:[%s10861_s30 + $0x48] sm:$0xff]  }
 0x651   : > { %v9142_v35 = vpop.eup %9141  ;;  %v2648_v9 = vmul.f32 %v9140_v52, %v2592_v24  ;;  %2654 = vst.msk [vmem:[#allocation2 + $0x51] sm:$0xff] %vm907_vm0, %v2646_v5  ;;  %v9067_v52 = vld [vmem:[%s10861_s30 + $0x50] sm:$0xff]  }
 0x652   : > { %v2649_v61 = vmul.f32 %v9142_v35, %v2593_v30  ;;  %2655 = vst.msk [vmem:[#allocation2 + $0x61] sm:$0xff] %vm907_vm0, %v2647_v34 }
 0x653   : > { %2656 = vst.msk [vmem:[#allocation2 + $0x71] sm:$0xff] %vm907_vm0, %v2648_v9 }
 0x654   : > { %2657 = vst.msk [vmem:[#allocation2 + $0x81] sm:$0xff] %vm907_vm0, %v2649_v61  ;;  %v9919_v16 = vld [vmem:[#allocation2 + $0x11] sm:$0xff] }
 0x655   : > { %v2687_v36 = vpack.c.bf16 %v9919_v16, %v9685_v63  ;;  %v9923_v20 = vld [vmem:[#allocation2 + $0x21] sm:$0xff]  ;;  %v2659_v53 = vld [vmem:[#allocation2 + $0x10] sm:$0xff] }
 0x656   : > { %v9925_v21 = vld [vmem:[#allocation2 + $0x31] sm:$0xff]  ;;  %v2660_v38 = vld [vmem:[#allocation2 + $0x20] sm:$0xff]  ;;  %v3110_v9 = vpack.c.bf16 %v9923_v20, %v9919_v16 }
 0x657   : > { %8258 = vmatprep.mubr.msk.bf16.mxu1 %vm907_vm0, %v2687_v36  ;;  %v9930_v24 = vpack.c.bf16 %v9925_v21, %v9923_v20  ;;  %v9932_v30 = vld [vmem:[#allocation2 + $0x41] sm:$0xff]  ;;  %v2661_v37 = vld [vmem:[#allocation2 + $0x30] sm:$0xff]  ;;  %v2996_v62 = vpack.c.bf16 %v2660_v38, %v2659_v53  ;;  %v9068_v36 = vld [vmem:[%s10861_s30 + $0x58] sm:$0xff]  }
 0x658   : > { %v9937_v42 = vld [vmem:[#allocation2 + $0x51] sm:$0xff]  ;;  %v2662_v40 = vld [vmem:[#allocation2 + $0x40] sm:$0xff]  ;;  %v9963_v57 = vpack.c.bf16 %v2661_v37, %v2660_v38  ;;  %v3111_v61 = vpack.c.bf16 %v9932_v30, %v9925_v21 }
 0x659   : > { %8259 = vmatmul.mubr.msk.bf16.vlgmr.msra.gmra.mrb[8].mxu1 %vm907_vm0, %v9930_v24  ;;  %v9943_v63 = vpack.c.bf16 %v9937_v42, %v9932_v30  ;;  %v9951_v45 = vld [vmem:[#allocation2 + $0x61] sm:$0xff]  ;;  %v2663_v54 = vld [vmem:[#allocation2 + $0x50] sm:$0xff]  ;;  %v2997_v2 = vpack.c.bf16 %v2662_v40, %v2661_v37  ;;  %v9072_v38 = vld [vmem:[%s10861_s30 + $0x78] sm:$0xff]  }
 0x65a   : > { %8267 = vmatpush3.bf16.msra.mxu1 %v9893_v18  ;;  %v9953_v47 = vld [vmem:[#allocation2 + $0x71] sm:$0xff]  ;;  %v2670_v18 = vpack.c.bf16 %v2659_v53, %v9724_v1  ;;  %v9968_v27 = vpack.c.bf16 %v2663_v54, %v2662_v40  ;;  %v2664_v56 = vld [vmem:[#allocation2 + $0x60] sm:$0xff] }
 0x65b   : > { %8262 = vmatprep.mubr.msk.bf16.mxu1 %vm907_vm0, %v9943_v63  ;;  %8268 = vmatprep.subr.bf16.mxu1 %v9060_v41  ;;  %v9957_v55 = vpack.c.bf16 %v9953_v47, %v9951_v45  ;;  %v9063_v1 = vld [vmem:[%s10861_s30 + $0x30] sm:$0xff]   ;;  %v2871_v49 = vld [vmem:[#allocation2 + $0x22] sm:$0xff]  ;;  %v2998_v5 = vpack.c.bf16 %v2664_v56, %v2663_v54 }
 0x65c   : > { %v2665_v19 = vld [vmem:[#allocation2 + $0x70] sm:$0xff]  ;;  %v2873_v39 = vld [vmem:[#allocation2 + $0x42] sm:$0xff] }
 0x65d   : > { %v2870_v58 = vld [vmem:[#allocation2 + $0x12] sm:$0xff]  ;;  %v9977_v48 = vpack.c.bf16 %v2665_v19, %v2664_v56  ;;  %v2875_v4 = vld [vmem:[#allocation2 + $0x62] sm:$0xff] }
 0x65e   : > { %8269 = vmatpush3.bf16.msra.mxu1 %v9060_v41  ;;  %v2882_v60 = vpack.c.bf16 %v2870_v58, %v9748_v33  ;;  %v2872_v29 = vld [vmem:[#allocation2 + $0x32] sm:$0xff]  ;;  %v9065_v33 = vld [vmem:[%s10861_s30 + $0x40] sm:$0xff]   ;;  %v3112_v41 = vpack.c.bf16 %v9951_v45, %v9937_v42  ;;  %v3224_v30 = vpack.c.bf16 %v2871_v49, %v2870_v58  ;;  %v9074_v54 = vld [vmem:[%s10861_s30 + $0x88] sm:$0xff]  }
 0x65f   : > { %8278 = vmatprep.subr.bf16.mxu1 %v9061_v43  ;;  %v2874_v46 = vld [vmem:[#allocation2 + $0x52] sm:$0xff]  ;;  %v9983_v31 = vpack.c.bf16 %v2872_v29, %v2871_v49  ;;  %v2990_v34 = vld [vmem:[#allocation2 + $0x80] sm:$0xff]  ;;  %v3225_v42 = vpack.c.bf16 %v2873_v39, %v2872_v29 }
 0x660   : > { %v9988_v59 = vpack.c.bf16 %v2874_v46, %v2873_v39  ;;  %v2876_v8 = vld [vmem:[#allocation2 + $0x72] sm:$0xff]  ;;  %v2999_v35 = vpack.c.bf16 %v2990_v34, %v2665_v19  ;;  %v9069_v16 = vld [vmem:[%s10861_s30 + $0x60] sm:$0xff]   ;;  %v3226_v45 = vpack.c.bf16 %v2875_v4, %v2874_v46  ;;  %v3341_v40 = vpack.c.bf16 %v9823_v22, %v2990_v34 }
 0x661   : > { %8263 = vmatmul.mubr.msk.bf16.gmra.mrb[12].mxu1 %vm907_vm0, %v9957_v55  ;;  %v9997_v51 = vpack.c.bf16 %v2876_v8, %v2875_v4  ;;  %v3104_v20 = vld [vmem:[#allocation2 + $0x81] sm:$0xff] }
 0x662   : > { %8270 = vmatprep.mubr.msk.bf16.mxu1 %vm907_vm0, %v2670_v18  ;;  %v3113_v21 = vpack.c.bf16 %v3104_v20, %v9953_v47  ;;  %v9071_v47 = vld [vmem:[%s10861_s30 + $0x70] sm:$0xff]   ;;  %v3218_v53 = vld [vmem:[#allocation2 + $0x82] sm:$0xff]  ;;  %v3455_v22 = vpack.c.bf16 %v9836_v26, %v3104_v20  ;;  %v7573_v26 = vld [vmem:[%s10817_s13] ss:$0 sm:$0xff] }
 0x663   : > { %v3227_v18 = vpack.c.bf16 %v3218_v53, %v2876_v8  ;;  %v9073_v37 = vld [vmem:[%s10861_s30 + $0x80] sm:$0xff]  }
 0x669   : > { %8271 = vmatmul.mubr.msk.bf16.vlgmr.msra.gmra.mrb[8].mxu1 %vm907_vm0, %v9963_v57 }
 0x66a   : > { %8279 = vmatpush3.bf16.msra.mxu1 %v9061_v43  ;;  %8274 = vmatprep.mubr.msk.bf16.mxu1 %vm907_vm0, %v9968_v27  ;;  %v9070_v43 = vld [vmem:[%s10861_s30 + $0x68] sm:$0xff]  }
 0x66b   : > { %8280 = vmatprep.subr.bf16.mxu1 %v9062_v25 }
 0x66e   : > { %8281 = vmatpush3.bf16.msra.mxu1 %v9062_v25 }
 0x66f   : > { %8290 = vmatprep.subr.bf16.mxu1 %v9063_v1 }
 0x671   : > { %8275 = vmatmul.mubr.msk.bf16.gmra.mrb[12].mxu1 %vm907_vm0, %v9977_v48 }
 0x672   : > { %8282 = vmatprep.mubr.msk.bf16.mxu1 %vm907_vm0, %v2882_v60 }
 0x679   : > { %8283 = vmatmul.mubr.msk.bf16.vlgmr.msra.gmra.mrb[8].mxu1 %vm907_vm0, %v9983_v31 }
 0x67a   : > { %8291 = vmatpush3.bf16.msra.mxu1 %v9063_v1  ;;  %8286 = vmatprep.mubr.msk.bf16.mxu1 %vm907_vm0, %v9988_v59 }
 0x67b   : > { %8292 = vmatprep.subr.bf16.mxu1 %v9064_v50 }
 0x67e   : > { %8293 = vmatpush3.bf16.msra.mxu1 %v9064_v50 }
 0x67f   : > { %8302 = vmatprep.subr.bf16.mxu1 %v9065_v33 }
 0x681   : > { %8287 = vmatmul.mubr.msk.bf16.gmra.mrb[12].mxu1 %vm907_vm0, %v9997_v51 }
 0x682   : > { %8294 = vmatprep.mubr.msk.bf16.mxu1 %vm907_vm0, %v2996_v62 }
 0x689   : > { %8295 = vmatmul.mubr.msk.bf16.vlgmr.msra.gmra.mrb[8].mxu1 %vm907_vm0, %v2997_v2 }
 0x68a   : > { %8303 = vmatpush3.bf16.msra.mxu1 %v9065_v33  ;;  %8298 = vmatprep.mubr.msk.bf16.mxu1 %vm907_vm0, %v2998_v5 }
 0x68b   : > { %8304 = vmatprep.subr.bf16.mxu1 %v9066_v0 }
 0x68e   : > { %8305 = vmatpush3.bf16.msra.mxu1 %v9066_v0 }
 0x68f   : > { %8314 = vmatprep.subr.bf16.mxu1 %v9067_v52 }
 0x691   : > { %8299 = vmatmul.mubr.msk.bf16.gmra.mrb[12].mxu1 %vm907_vm0, %v2999_v35 }
 0x692   : > { %8306 = vmatprep.mubr.msk.bf16.mxu1 %vm907_vm0, %v3110_v9 }
 0x699   : > { %8307 = vmatmul.mubr.msk.bf16.vlgmr.msra.gmra.mrb[8].mxu1 %vm907_vm0, %v3111_v61 }
 0x69a   : > { %8315 = vmatpush3.bf16.msra.mxu1 %v9067_v52  ;;  %8310 = vmatprep.mubr.msk.bf16.mxu1 %vm907_vm0, %v3112_v41 }
 0x69b   : > { %8316 = vmatprep.subr.bf16.mxu1 %v9068_v36 }
 0x69e   : > { %8317 = vmatpush3.bf16.msra.mxu1 %v9068_v36 }
 0x69f   : > { %8326 = vmatprep.subr.bf16.mxu1 %v9069_v16 }
 0x6a1   : > { %8311 = vmatmul.mubr.msk.bf16.gmra.mrb[12].mxu1 %vm907_vm0, %v3113_v21 }
 0x6a2   : > { %8318 = vmatprep.mubr.msk.bf16.mxu1 %vm907_vm0, %v3224_v30 }
 0x6a9   : > { %8319 = vmatmul.mubr.msk.bf16.vlgmr.msra.gmra.mrb[8].mxu1 %vm907_vm0, %v3225_v42 }
 0x6aa   : > { %8327 = vmatpush3.bf16.msra.mxu1 %v9069_v16  ;;  %8322 = vmatprep.mubr.msk.bf16.mxu1 %vm907_vm0, %v3226_v45 }
 0x6ab   : > { %8328 = vmatprep.subr.bf16.mxu1 %v9070_v43 }
 0x6ae   : > { %8329 = vmatpush3.bf16.msra.mxu1 %v9070_v43 }
 0x6af   : > { %8338 = vmatprep.subr.bf16.mxu1 %v9071_v47 }
 0x6b1   : > { %8323 = vmatmul.mubr.msk.bf16.gmra.mrb[12].mxu1 %vm907_vm0, %v3227_v18 }
 0x6b2   : > { %8330 = vmatprep.mubr.msk.bf16.mxu1 %vm907_vm0, %v9963_v57 }
 0x6b9   : > { %8331 = vmatmul.mubr.msk.bf16.vlgmr.msra.gmra.mrb[8].mxu1 %vm907_vm0, %v9968_v27 }
 0x6ba   : > { %8339 = vmatpush3.bf16.msra.mxu1 %v9071_v47  ;;  %8334 = vmatprep.mubr.msk.bf16.mxu1 %vm907_vm0, %v9977_v48 }
 0x6bb   : > { %8340 = vmatprep.subr.bf16.mxu1 %v9072_v38 }
 0x6be   : > { %8341 = vmatpush3.bf16.msra.mxu1 %v9072_v38 }
 0x6bf   : > { %8350 = vmatprep.subr.bf16.mxu1 %v9073_v37 }
 0x6c1   : > { %8335 = vmatmul.mubr.msk.bf16.gmra.mrb[12].mxu1 %vm907_vm0, %v3341_v40 }
 0x6c2   : > { %8342 = vmatprep.mubr.msk.bf16.mxu1 %vm907_vm0, %v9930_v24  ;;  %v3569_v24 = vpack.c.bf16 %v9849_v3, %v3218_v53 }
 0x6c9   : > { %8343 = vmatmul.mubr.msk.bf16.vlgmr.msra.gmra.mrb[8].mxu1 %vm907_vm0, %v9943_v63  ;;  %v10074_v63 = vld [vmem:[%s10823_s19] ss:$0 sm:$0xff] }
 0x6ca   : > { %8351 = vmatpush3.bf16.msra.mxu1 %v9073_v37  ;;  %8346 = vmatprep.mubr.msk.bf16.mxu1 %vm907_vm0, %v9957_v55 }
 0x6cb   : > { %8352 = vmatprep.subr.bf16.mxu1 %v9074_v54 }
 0x6ce   : > { %8353 = vmatpush3.bf16.msra.mxu1 %v9074_v54 }
 0x6d1   : > { %8347 = vmatmul.mubr.msk.bf16.gmra.mrb[12].mxu1 %vm907_vm0, %v3455_v22 }
 0x6d2   : > { %8354 = vmatprep.mubr.msk.bf16.mxu1 %vm907_vm0, %v9983_v31 }
 0x6d9   : > { %8355 = vmatmul.mubr.msk.bf16.vlgmr.msra.gmra.mrb[8].mxu1 %vm907_vm0, %v9988_v59 }
 0x6da   : > { %8358 = vmatprep.mubr.msk.bf16.mxu1 %vm907_vm0, %v9997_v51 }
 0x6e1   : > { %8359 = vmatmul.mubr.msk.bf16.gmra.mrb[12].mxu1 %vm907_vm0, %v3569_v24 }
 0x7ac   : > { %v8356_v55 = vpop.f32.mrb[8].mxu1 }
 0x7ad   : > { %v3628_v57 = vpop.f32.mrb[9].mxu1  ;;  %v3675_v25 = vadd.f32 %v8356_v55, %v7573_v26 }
 0x7ae   : > { %v3673_v27 = vadd.f32 %v7573_v26, %v3628_v57  ;;  %v8357_v1 = vpop.f32.mrb[10].mxu1 }
 0x7af   : > { %v3631_v56 = vpop.f32.mrb[11].mxu1  ;;  %v3676_v3 = vadd.f32 %v8357_v1, %v7573_v26  ;;  %v10083_v48 = vadd.f32 %v3675_v25, %v9530_v14 }
 0x7b0   : > { %v10080_v19 = vadd.f32 %v3673_v27, %v9526_v12  ;;  %v3674_v58 = vadd.f32 %v7573_v26, %v3631_v56 }
 0x7b1   : > { %v10091_v29 = vadd.f32 %v3676_v3, %v9532_v15  ;;  %v3695_v50 = vsel %vm907_vm0, %v10083_v48, 0.0 }
 0x7b2   : > { %v10086_v60 = vadd.f32 %v3674_v58, %v9528_v13  ;;  %v3692_v49 = vsel %vm907_vm0, %v10080_v19, 0.0 }
 0x7b3   : > { %v3697_v8 = vsel %vm907_vm0, %v10091_v29, 0.0 }
 0x7b4   : > { %v3693_v39 = vsel %vm907_vm0, %v10086_v60, 0.0  ;;  %v8360_v46 = vpop.f32.mrb[12].mxu1 }
 0x7b5   : > { %v3694_v12 = vadd.f32 %v3693_v39, %v3692_v49  ;;  %v3644_v31 = vpop.f32.mrb[13].mxu1  ;;  %v3679_v14 = vadd.f32 %v8360_v46, %v7573_v26 }
 0x7b6   : > { %v3677_v59 = vadd.f32 %v7573_v26, %v3644_v31  ;;  %v8361_v33 = vpop.f32.mrb[14].mxu1 }
 0x7b7   : > { %v3696_v13 = vadd.f32 %v3695_v50, %v3694_v12  ;;  %v3647_v4 = vpop.f32.mrb[15].mxu1  ;;  %v3680_v51 = vadd.f32 %v8361_v33, %v7573_v26  ;;  %v10103_v0 = vadd.f32 %v3679_v14, %v9550_v28 }
 0x7b8   : > { %v10100_v15 = vadd.f32 %v3677_v59, %v9536_v17  ;;  %v3678_v62 = vadd.f32 %v7573_v26, %v3647_v4 }
 0x7b9   : > { %v3698_v2 = vadd.f32 %v3697_v8, %v3696_v13  ;;  %v10111_v35 = vadd.f32 %v3680_v51, %v9554_v32  ;;  %v3703_v61 = vsel %vm907_vm0, %v10103_v0, 0.0 }
 0x7ba   : > { %v3699_v5 = vsel %vm907_vm0, %v10100_v15, 0.0  ;;  %v10108_v52 = vadd.f32 %v3678_v62, %v9544_v23 }
 0x7bb   : > { %v3700_v34 = vadd.f32 %v3699_v5, %v3698_v2  ;;  %v3705_v28 = vsel %vm907_vm0, %v10111_v35, 0.0 }
 0x7bc   : > { %v3701_v17 = vsel %vm907_vm0, %v10108_v52, 0.0 }
 0x7bd   : > { %v3702_v9 = vadd.f32 %v3701_v17, %v3700_v34 }
 0x7bf   : > { %v3704_v36 = vadd.f32 %v3703_v61, %v3702_v9 }
 0x7c1   : > { %v3706_v41 = vadd.f32 %v3705_v28, %v3704_v36 }
 0x7c3   : > { %v3707_v16 = vrot.slane %v3706_v41, 4 }
 0x7c5   : > { %v3708_v20 = vadd.f32 %v3707_v16, %v3706_v41 }
 0x7c7   : > { %v3709_v23 = vrot.slane %v3708_v20, 2 }
 0x7c9   : > { %v3710_v21 = vadd.f32 %v3709_v23, %v3708_v20 }
 0x7cb   : > { %v3711_v30 = vrot.slane %v3710_v21, 1 }
 0x7cd   : > { %v3712_v42 = vadd.f32 %v3711_v30, %v3710_v21  ;;  %v7576_v21 = vld [vmem:[%s10818_s14] ss:$0 sm:$0xff] }
 0x7cf   : > { %v3713_v32 = vmul.f32 0.015625, %v3712_v42 }
 0x7d1   : > { %8371 = vmatmul.mubr.msk.f32.vlgmr.msra.gmra.mrb[2].mxu0 %vm907_vm0, %v3713_v32 }
 0x7d2   : > { %8730 = vmatpush3.bf16.msra.mxu0 %v9483_v6  ;;  %8381 = vmatprep.mubr.msk.f32.mxu0 %vm9301_vm1, %v9302_v11 }
 0x7d3   : > { %8731 = vmatprep.subr.bf16.mxu0 %v9300_v7 }
 0x7d6   : > { %8733 = vmatpush3.bf16.msra.mxu0 %v9497_v10 }
 0x8a4   : > { %v3783_v43 = vpop.f32.mrb[2].mxu0 }
 0x8a5   : > { %v3790_v45 = vrot.slane %v3783_v43, %v9559_v44  ;;  %v8372_v47 = vpop.f32.mrb[3].mxu0 }
 0x8a7   : > { %v3791_v53 = vsub.f32 %v10080_v19, %v3790_v45  ;;  %v3792_v18 = vsub.f32 %v10086_v60, %v3790_v45  ;;  %v3793_v38 = vsub.f32 %v10083_v48, %v3790_v45  ;;  %v3794_v37 = vsub.f32 %v10091_v29, %v3790_v45 }
 0x8a8   : > { %v3795_v40 = vsub.f32 %v10100_v15, %v3790_v45  ;;  %v3796_v26 = vsub.f32 %v10108_v52, %v3790_v45  ;;  %v3797_v1 = vsub.f32 %v10103_v0, %v3790_v45  ;;  %v3798_v49 = vsub.f32 %v10111_v35, %v3790_v45  ;;  %v7577_v45 = vld [vmem:[%s10819_s15] ss:$0 sm:$0xff] }
 0x8a9   : > { %v3799_v54 = vmul.f32 %v3791_v53, %v3791_v53  ;;  %v3800_v22 = vmul.f32 %v3792_v18, %v3792_v18  ;;  %v3801_v24 = vmul.f32 %v3793_v38, %v3793_v38  ;;  %v3802_v55 = vmul.f32 %v3794_v37, %v3794_v37 }
 0x8aa   : > { %v3803_v56 = vmul.f32 %v3795_v40, %v3795_v40  ;;  %v3804_v39 = vmul.f32 %v3796_v26, %v3796_v26  ;;  %v3805_v31 = vmul.f32 %v3797_v1, %v3797_v1  ;;  %v3806_v59 = vmul.f32 %v3798_v49, %v3798_v49 }
 0x8ab   : > { %v3807_v57 = vsel %vm907_vm0, %v3799_v54, 0.0  ;;  %v3808_v25 = vsel %vm907_vm0, %v3800_v22, 0.0  ;;  %v3810_v3 = vsel %vm907_vm0, %v3801_v24, 0.0  ;;  %v3812_v46 = vsel %vm907_vm0, %v3802_v55, 0.0 }
 0x8ac   : > { %v3809_v27 = vadd.f32 %v3808_v25, %v3807_v57  ;;  %v3814_v50 = vsel %vm907_vm0, %v3803_v56, 0.0  ;;  %v3816_v33 = vsel %vm907_vm0, %v3804_v39, 0.0  ;;  %v3818_v4 = vsel %vm907_vm0, %v3805_v31, 0.0 }
 0x8ad   : > { %v3820_v51 = vsel %vm907_vm0, %v3806_v59, 0.0 }
 0x8ae   : > { %v3811_v58 = vadd.f32 %v3810_v3, %v3809_v27 }
 0x8b0   : > { %v3813_v12 = vadd.f32 %v3812_v46, %v3811_v58 }
 0x8b2   : > { %v3815_v14 = vadd.f32 %v3814_v50, %v3813_v12 }
 0x8b4   : > { %v3817_v13 = vadd.f32 %v3816_v33, %v3815_v14 }
 0x8b6   : > { %v3819_v8 = vadd.f32 %v3818_v4, %v3817_v13 }
 0x8b8   : > { %v3821_v62 = vadd.f32 %v3820_v51, %v3819_v8 }
 0x8ba   : > { %v3822_v2 = vrot.slane %v3821_v62, 4 }
 0x8bc   : > { %v3823_v5 = vadd.f32 %v3822_v2, %v3821_v62 }
 0x8be   : > { %v3824_v34 = vrot.slane %v3823_v5, 2 }
 0x8c0   : > { %v3825_v17 = vadd.f32 %v3824_v34, %v3823_v5 }
 0x8c2   : > { %v3826_v9 = vrot.slane %v3825_v17, 1 }
 0x8c4   : > { %v3827_v61 = vadd.f32 %v3826_v9, %v3825_v17 }
 0x8c6   : > { %v3828_v36 = vmul.f32 0.015625, %v3827_v61 }
 0x8c8   : > { %8382 = vmatmul.mubr.msk.f32.vlgmr.msra.gmra.mrb[12].mxu0 %vm907_vm0, %v3828_v36 }
 0x99b   : > { %v3898_v28 = vpop.f32.mrb[12].mxu0 }
 0x99c   : > { %v3899_v41 = vadd.f32 1e-05, %v3898_v28  ;;  %v8383_v16 = vpop.f32.mrb[13].mxu0 }
 0x99e   : > { %9143 = vrsqrt.f32 %v3899_v41 }
 0x9a8   : > { %v9144_v20 = vpop.eup %9143 }
 0x9a9   : > { %v3906_v23 = vrot.slane %v9144_v20, %v9559_v44 }
 0x9ab   : > { %v3907_v30 = vmul.f32 %v3906_v23, %v3791_v53  ;;  %v3908_v42 = vmul.f32 %v3906_v23, %v3792_v18  ;;  %v3909_v32 = vmul.f32 %v3906_v23, %v3793_v38  ;;  %v3910_v43 = vmul.f32 %v3906_v23, %v3794_v37 }
 0x9ac   : > { %v3911_v47 = vmul.f32 %v3906_v23, %v3795_v40  ;;  %v3912_v54 = vmul.f32 %v3906_v23, %v3796_v26  ;;  %v3913_v22 = vmul.f32 %v3906_v23, %v3797_v1  ;;  %v3914_v24 = vmul.f32 %v3906_v23, %v3798_v49 }
 0x9ad   : > { %v3921_v55 = vmul.f32 %v7576_v21, %v3907_v30  ;;  %v3922_v57 = vmul.f32 %v7576_v21, %v3908_v42  ;;  %v3923_v25 = vmul.f32 %v7576_v21, %v3909_v32  ;;  %v3924_v27 = vmul.f32 %v7576_v21, %v3910_v43 }
 0x9ae   : > { %v3925_v56 = vmul.f32 %v7576_v21, %v3911_v47  ;;  %v3926_v3 = vmul.f32 %v7576_v21, %v3912_v54  ;;  %v3927_v58 = vmul.f32 %v7576_v21, %v3913_v22  ;;  %v3928_v39 = vmul.f32 %v7576_v21, %v3914_v24 }
 0x9af   : > { %v10150_v53 = vadd.f32 %v7577_v45, %v3921_v55  ;;  %v10152_v18 = vadd.f32 %v7577_v45, %v3922_v57  ;;  %v10154_v38 = vadd.f32 %v7577_v45, %v3923_v25  ;;  %v10156_v37 = vadd.f32 %v7577_v45, %v3924_v27 }
 0x9b0   : > { %v10158_v40 = vadd.f32 %v7577_v45, %v3925_v56  ;;  %v10160_v26 = vadd.f32 %v7577_v45, %v3926_v3  ;;  %v10162_v1 = vadd.f32 %v7577_v45, %v3927_v58  ;;  %v10164_v49 = vadd.f32 %v7577_v45, %v3928_v39 }
 0x9b1   : > { %v3943_v46 = vpack.c.bf16 %v10152_v18, %v10150_v53  ;;  %v3944_v12 = vpack.c.bf16 %v10156_v37, %v10154_v38 }
 0x9b2   : > { %v3945_v31 = vpack.c.bf16 %v10160_v26, %v10158_v40  ;;  %v3946_v50 = vpack.c.bf16 %v10164_v49, %v10162_v1 }
 0x9b3 LB: >> { %8388 = vmatprep.mubr.msk.bf16.mxu0 %vm907_vm0, %v3943_v46  ;;  %s7807_s29 = sshll.u32 %s9298_s10, 4  ;;  %s3968_s27 = scalar_lea.vmem %s10821_s17, %s9298_s10  ;;  %vm4081_vm4 = vcmask 130048   ;;  %vm4179_vm5 = vcmask 523264   ;;  %s9298_s10 = sphi %s10174_s10, %s3960_s10  }
 0x9b4   : >> { %s3963_s3 = scalar_lea.vmem %s10820_s16, %s7807_s29  ;;  %v7580_v33 = vld [vmem:[%s3968_s27] ss:$0 sm:$0xff]  ;;  %s9303_s8 = smov 112  }
 0x9b5   : >> { %v9145_v14 = vld [vmem:[%s3963_s3] sm:$0xff]   ;;  %v9146_v59 = vld [vmem:[%s3963_s3 + $0x8] sm:$0xff]   ;;  %s9304_s9 = smov 96   ;;  %s7808_s2 = sshll.u32 %s9298_s10, 3 }
 0x9b6   : >> { %8384 = vmatprep.subr.bf16.mxu0 %v9145_v14  ;;  %s10265_s7 = scalar_lea.vmem %s10822_s18, %s7808_s2  ;;  %s3960_s10 = sadd.s32 1, %s9298_s10  }
 0x9b7   : >> { %8385 = vmatpush3.bf16.msra.mxu0 %v9145_v14  ;;  %p3957_p4 = scmp.ge.s32.totalorder %s3960_s10, 2  }
 0x9b8   : >> { %8386 = vmatprep.subr.bf16.mxu0 %v9146_v59  ;;  %s10866_s11 = sld [smem:[#allocation18_spill]] (%p3957_p4) }
 0x9bb   : >> { %8387 = vmatpush3.bf16.msra.mxu0 %v9146_v59 }
 0x9be   : >> { %8389 = vmatmul.mubr.msk.bf16.vlgmr.msra.gmra.mrb[0].mxu0 %vm907_vm0, %v3944_v12 }
 0x9bf   : >> { %8392 = vmatprep.mubr.msk.bf16.mxu0 %vm907_vm0, %v3945_v31 }
 0x9c6   : >> { %8393 = vmatmul.mubr.msk.bf16.gmra.mrb[4].mxu0 %vm907_vm0, %v3946_v50 }
 0xa91   : >> { %v8390_v13 = vpop.f32.mrb[0].mxu0 }
 0xa92   : >> { %v4034_v4 = vpop.f32.mrb[1].mxu0  ;;  %v4043_v51 = vadd.f32 %v8390_v13, %v7580_v33 }
 0xa93   : >> { %v8391_v8 = vpop.f32.mrb[2].mxu0  ;;  %v4035_v5 = vadd.f32 %v7580_v33, %v4034_v4 }
 0xa94   : >> { %v4046_v62 = vadd.f32 %v8391_v8, %v7580_v33  ;;  %v4037_v2 = vpop.f32.mrb[3].mxu0 }
 0xa95   : >> { %v4038_v34 = vadd.f32 %v7580_v33, %v4037_v2 }
 0xa96   : >> { %v10203_v17 = vpack.c.bf16 %v4046_v62, %v4043_v51 }
 0xa97   : >> { %v10205_v9 = vpack.c.bf16 %v4038_v34, %v4035_v5 }
 0xa99   : >> { %4073 = vrot.lane.b32.xlu0 %v10205_v9, %s9303_s8  ;;  %8404 = vmatprep.mubr.msk.bf16.mxu1 %vm4081_vm4, %v10205_v9  ;;  %v8394_v61 = vpop.f32.mrb[4].mxu0 }
 0xa9a   : >> { %v4059_v36 = vadd.f32 %v8394_v61, %v7580_v33  ;;  %v4050_v28 = vpop.f32.mrb[5].mxu0 }
 0xa9b   : >> { %v4051_v41 = vadd.f32 %v7580_v33, %v4050_v28  ;;  %v8395_v16 = vpop.f32.mrb[6].mxu0 }
 0xa9c   : >> { %v4062_v20 = vadd.f32 %v8395_v16, %v7580_v33  ;;  %v4053_v23 = vpop.f32.mrb[7].mxu0 }
 0xa9d   : >> { %v4054_v21 = vadd.f32 %v7580_v33, %v4053_v23  ;;  %4075 = vrot.lane.b32.xlu0 %v10203_v17, %s9303_s8 }
 0xa9e   : >> { %v10211_v30 = vpack.c.bf16 %v4062_v20, %v4059_v36 }
 0xa9f   : >> { %v10213_v42 = vpack.c.bf16 %v4054_v21, %v4051_v41 }
 0xaa1   : >> { %4077 = vrot.lane.b32.xlu1 %v10213_v42, %s9303_s8 }
 0xaa5   : >> { %4079 = vrot.lane.b32.xlu1 %v10211_v30, %s9303_s8  ;;  %s10871_s8 = sld [smem:[#allocation19_spill]] (%p3957_p4) }
 0xb0b   : >> { %v4074_v32 = vpop.permute.xlu0 %4073 }
 0xb0c   : >> { %9014 = vmatprep.subr.msk.bf16.mxu1 %vm4081_vm4, %v4074_v32  ;;  %v4095_v43 = vsel %vm4081_vm4, %v4074_v32, 0 }
 0xb0d   : >> { %8397 = vmatpush3.bf16.xpose.msra.mxu1 %v4095_v43 }
 0xb0f   : >> { %v4076_v45 = vpop.permute.xlu0 %4075 }
 0xb10   : >> { %9015 = vmatprep.subr.msk.bf16.mxu1 %vm4081_vm4, %v4076_v45  ;;  %v4098_v47 = vsel %vm4081_vm4, %v4076_v45, 0 }
 0xb13   : >> { %v4078_v54 = vpop.permute.xlu1 %4077 }
 0xb14   : >> { %v4101_v22 = vsel %vm4081_vm4, %v4078_v54, 0 }
 0xb15   : >> { %8399 = vmatpush3.bf16.xpose.msra.mxu1 %v4098_v47 }
 0xb16   : >> { %9016 = vmatprep.subr.msk.bf16.mxu1 %vm4081_vm4, %v4078_v54 }
 0xb17   : >> { %v4080_v24 = vpop.permute.xlu1 %4079 }
 0xb18   : >> { %v4104_v55 = vsel %vm4081_vm4, %v4080_v24, 0 }
 0xb1d   : >> { %8401 = vmatpush3.bf16.xpose.msra.mxu1 %v4101_v22 }
 0xb1e   : >> { %9017 = vmatprep.subr.msk.bf16.mxu1 %vm4081_vm4, %v4080_v24 }
 0xb25   : >> { %8403 = vmatpush3.bf16.xpose.msra.mxu1 %v4104_v55 }
 0xb26   : > { %8746 = vmatprep.subr.bf16.mxu1 (%p3957_p4), %v9300_v7 }
 0xb2c   : >> { %8405 = vmatmul.mubr.msk.bf16.vlgmr.msra.gmra.mrb[0].mxu1 %vm4081_vm4, %v10203_v17 }
 0xb2d   : >> { %8408 = vmatprep.mubr.msk.bf16.mxu1 %vm4081_vm4, %v10213_v42  ;;  %8748 = vmatpush3.bf16.msra.mxu1 (%p3957_p4), %v9483_v6 }
 0xb2e   : > { %8749 = vmatprep.subr.bf16.mxu1 (%p3957_p4), %v9300_v7 }
 0xb31   : > { %8751 = vmatpush3.bf16.msra.mxu1 (%p3957_p4), %v9497_v10 }
 0xb32   : > { %8752 = vmatprep.subr.bf16.mxu1 (%p3957_p4), %v9300_v7 }
 0xb34   : >> { %8409 = vmatmul.mubr.msk.bf16.gmra.mrb[4].mxu1 %vm4081_vm4, %v10211_v30 }
 0xb35   : > { %8576 = vmatprep.mubr.msk.f32.mxu1 (%p3957_p4), %vm9301_vm1, %v9302_v11 }
 0xbff   : >> { %v8406_v57 = vpop.f32.mrb[0].mxu1 }
 0xc00   : >> { %v4140_v25 = vpop.f32.mrb[1].mxu1  ;;  %v4173_v58 = vmul.f32 0.25, %v8406_v57 }
 0xc01   : >> { %v4171_v27 = vmul.f32 0.25, %v4140_v25  ;;  %v8407_v56 = vpop.f32.mrb[2].mxu1 }
 0xc02   : >> { %v4143_v3 = vpop.f32.mrb[3].mxu1  ;;  %v4174_v33 = vmul.f32 0.25, %v8407_v56  ;;  %v4186_v4 = vsel %vm4179_vm5, %v4173_v58, -inf }
 0xc03   : >> { %v4172_v39 = vmul.f32 0.25, %v4143_v3  ;;  %v4180_v14 = vsel %vm4179_vm5, %v4171_v27, -inf }
 0xc04   : >> { %4181 = vmax.xlane.f32.xlu0 %v4180_v14  ;;  %v4189_v61 = vsel %vm4179_vm5, %v4174_v33, -inf }
 0xc05   : >> { %v4183_v59 = vsel %vm4179_vm5, %v4172_v39, -inf }
 0xc06   : >> { %4184 = vmax.xlane.f32.xlu1 %v4183_v59 }
 0xc07   : >> { %v8410_v13 = vpop.f32.mrb[4].mxu1 }
 0xc08   : >> { %4187 = vmax.xlane.f32.xlu0 %v4186_v4  ;;  %v4156_v8 = vpop.f32.mrb[5].mxu1  ;;  %v4177_v5 = vmul.f32 0.25, %v8410_v13 }
 0xc09   : >> { %v4175_v51 = vmul.f32 0.25, %v4156_v8  ;;  %v8411_v62 = vpop.f32.mrb[6].mxu1 }
 0xc0a   : >> { %v4159_v2 = vpop.f32.mrb[7].mxu1  ;;  %v4178_v28 = vmul.f32 0.25, %v8411_v62  ;;  %v4198_v41 = vsel %vm4179_vm5, %v4177_v5, -inf }
 0xc0b   : >> { %v4176_v34 = vmul.f32 0.25, %v4159_v2  ;;  %v4192_v36 = vsel %vm4179_vm5, %v4175_v51, -inf }
 0xc0c   : >> { %4190 = vmax.xlane.f32.xlu0 %v4189_v61  ;;  %4193 = vmax.xlane.f32.xlu1 %v4192_v36  ;;  %v4201_v20 = vsel %vm4179_vm5, %v4178_v28, -inf }
 0xc0d   : >> { %v4195_v16 = vsel %vm4179_vm5, %v4176_v34, -inf }
 0xc10   : >> { %4199 = vmax.xlane.f32.xlu1 %v4198_v41  ;;  %4196 = vmax.xlane.f32.xlu0 %v4195_v16 }
 0xc14   : >> { %4202 = vmax.xlane.f32.xlu0 %v4201_v20 }
 0xc21   : >> { %4272 = vrot.lane.b32.xlu1 %v10205_v9, %s9304_s9 }
 0xc91   : >> { %v4182_v23 = vpop.xlane.xlu0 %4181 }
 0xc92   : >> { %v4204_v21 = vsub.f32 %v4171_v27, %v4182_v23 }
 0xc93   : >> { %v4185_v32 = vpop.xlane.xlu1 %4184 }
 0xc94   : >> { %v4212_v47 = vmul.f32 1.442695, %v4204_v21  ;;  %v4205_v54 = vsub.f32 %v4172_v39, %v4185_v32 }
 0xc95   : >> { %v4188_v43 = vpop.xlane.xlu0 %4187 }
 0xc96   : >> { %v4206_v45 = vsub.f32 %v4173_v58, %v4188_v43  ;;  %v4214_v25 = vmul.f32 1.442695, %v4205_v54 }
 0xc98   : >> { %v4216_v22 = vmul.f32 1.442695, %v4206_v45 }
 0xc99   : >> { %v4191_v24 = vpop.xlane.xlu0 %4190  ;;  %v4194_v55 = vpop.xlane.xlu1 %4193 }
 0xc9a   : >> { %9148 = vpow2.f32 %v4216_v22  ;;  %v4207_v57 = vsub.f32 %v4174_v33, %v4191_v24  ;;  %v4208_v3 = vsub.f32 %v4175_v51, %v4194_v55 }
 0xc9b   : >> { %9150 = vpow2.f32 %v4212_v47 }
 0xc9c   : >> { %v4218_v56 = vmul.f32 1.442695, %v4207_v57  ;;  %v4220_v27 = vmul.f32 1.442695, %v4208_v3 }
 0xc9d   : >> { %v4200_v14 = vpop.xlane.xlu1 %4199  ;;  %v4197_v59 = vpop.xlane.xlu0 %4196 }
 0xc9e   : >> { %9152 = vpow2.f32 %v4218_v56  ;;  %v4210_v9 = vsub.f32 %v4177_v5, %v4200_v14  ;;  %v4209_v4 = vsub.f32 %v4176_v34, %v4197_v59 }
 0xc9f   : >> { %9154 = vpow2.f32 %v4214_v25 }
 0xca0   : >> { %v4224_v13 = vmul.f32 1.442695, %v4210_v9  ;;  %v4222_v33 = vmul.f32 1.442695, %v4209_v4 }
 0xca1   : >> { %v4273_v58 = vpop.permute.xlu1 %4272  ;;  %v4203_v8 = vpop.xlane.xlu0 %4202 }
 0xca2   : >> { %9156 = vpow2.f32 %v4224_v13  ;;  %v4211_v39 = vsub.f32 %v4178_v28, %v4203_v8  ;;  %8412 = vmatprep.subr.bf16.mxu0 %v4273_v58 }
 0xca3   : >> { %8413 = vmatpush3.bf16.msra.mxu0 %v4273_v58  ;;  %9158 = vpow2.f32 %v4220_v27 }
 0xca4   : >> { %v10241_v62 = vpop.eup %9148  ;;  %v4226_v2 = vmul.f32 1.442695, %v4211_v39 }
 0xca5   : >> { %v4234_v51 = vsel %vm4179_vm5, %v10241_v62, 0.0  ;;  %v9151_v61 = vpop.eup %9150 }
 0xca6   : >> { %9160 = vpow2.f32 %v4226_v2  ;;  %4235 = vadd.xlane.f32.xlu1 %v4234_v51  ;;  %v4228_v34 = vsel %vm4179_vm5, %v9151_v61, 0.0  ;;  %v9147_v2 = vld [vmem:[%s10265_s7] sm:$0xff]   ;;  %s10869_s7 = sld [smem:[#allocation9_spill]] (%p3957_p4) }
 0xca7   : >> { %9162 = vpow2.f32 %v4222_v33 }
 0xca8   : >> { %v9153_v5 = vpop.eup %9152 }
 0xca9   : >> { %v4237_v36 = vsel %vm4179_vm5, %v9153_v5, 0.0  ;;  %v9155_v28 = vpop.eup %9154 }
 0xcaa   : >> { %4229 = vadd.xlane.f32.xlu1 %v4228_v34  ;;  %4238 = vadd.xlane.f32.xlu0 %v4237_v36  ;;  %v4231_v20 = vsel %vm4179_vm5, %v9155_v28, 0.0 }
 0xcac   : >> { %v10247_v41 = vpop.eup %9156  ;;  %s10870_s10 = scalar_lea.vmem (%p3957_p4), %s10869_s7, %s10874_s5 }
 0xcad   : >> { %v4246_v16 = vsel %vm4179_vm5, %v10247_v41, 0.0  ;;  %v9159_v23 = vpop.eup %9158 }
 0xcae   : >> { %4247 = vadd.xlane.f32.xlu1 %v4246_v16  ;;  %4232 = vadd.xlane.f32.xlu0 %v4231_v20  ;;  %v4240_v32 = vsel %vm4179_vm5, %v9159_v23, 0.0 }
 0xcb0   : >> { %v9161_v21 = vpop.eup %9160 }
 0xcb1   : >> { %v4249_v43 = vsel %vm4179_vm5, %v9161_v21, 0.0  ;;  %v9163_v45 = vpop.eup %9162 }
 0xcb2   : >> { %4241 = vadd.xlane.f32.xlu1 %v4240_v32  ;;  %4250 = vadd.xlane.f32.xlu0 %v4249_v43  ;;  %v4243_v47 = vsel %vm4179_vm5, %v9163_v45, 0.0 }
 0xcb6   : >> { %4244 = vadd.xlane.f32.xlu0 %v4243_v47 }
 0xcc3   : >> { %4276 = vrot.lane.b32.xlu1 %v10213_v42, %s9304_s9 }
 0xcc7   : >> { %4278 = vrot.lane.b32.xlu1 %v10211_v30, %s9304_s9 }
 0xccc   : >> { %4274 = vrot.lane.b32.xlu0 %v10203_v17, %s9304_s9  ;;  %s10867_s9 = sld [smem:[#allocation8_spill]] (%p3957_p4) }
 0xcd2   : > { %s10868_s2 = scalar_lea.vmem (%p3957_p4), %s10867_s9, %s10874_s5 }
 0xd33   : >> { %v4236_v54 = vpop.xlane.xlu1 %4235 }
 0xd37   : >> { %v4230_v22 = vpop.xlane.xlu1 %4229  ;;  %v4239_v24 = vpop.xlane.xlu0 %4238 }
 0xd38   : >> { %9164 = vrcp.f32 %v4230_v22 }
 0xd3b   : >> { %v4248_v55 = vpop.xlane.xlu1 %4247  ;;  %v4233_v57 = vpop.xlane.xlu0 %4232 }
 0xd3c   : >> { %9166 = vrcp.f32 %v4233_v57 }
 0xd3d   : >> { %9168 = vrcp.f32 %v4239_v24 }
 0xd3e   : >> { %9170 = vrcp.f32 %v4236_v54 }
 0xd3f   : >> { %v4251_v42 = vpop.xlane.xlu0 %4250  ;;  %v4242_v25 = vpop.xlane.xlu1 %4241 }
 0xd40   : >> { %9172 = vrcp.f32 %v4242_v25 }
 0xd42   : >> { %v9165_v17 = vpop.eup %9164 }
 0xd43   : >> { %v4245_v30 = vpop.xlane.xlu0 %4244  ;;  %v4277_v3 = vpop.permute.xlu1 %4276  ;;  %v4260_v59 = vmul.f32 %v9165_v17, %v9151_v61 }
 0xd44   : >> { %9174 = vrcp.f32 %v4245_v30  ;;  %v4361_v30 = vld [vmem:[#allocation3] sm:$0xff] }
 0xd45   : >> { %9176 = vrcp.f32 %v4251_v42 }
 0xd46   : >> { %v9167_v56 = vpop.eup %9166  ;;  %9178 = vrcp.f32 %v4248_v55 }
 0xd47   : >> { %v4275_v14 = vpop.permute.xlu0 %4274  ;;  %v4261_v9 = vmul.f32 %v9167_v56, %v9155_v28  ;;  %v9169_v13 = vpop.eup %9168  ;;  %v4364_v56 = vld [vmem:[#allocation3 + $0x18] sm:$0xff] }
 0xd48   : >> { %8414 = vmatprep.subr.bf16.mxu0 %v4275_v14  ;;  %v9171_v4 = vpop.eup %9170  ;;  %v4279_v8 = vpop.permute.xlu1 %4278  ;;  %v4263_v33 = vmul.f32 %v9169_v13, %v9153_v5 }
 0xd49   : >> { %8415 = vmatpush3.bf16.msra.mxu0 %v4275_v14  ;;  %v4268_v27 = vpack.c.bf16 %v4261_v9, %v4260_v59  ;;  %v4262_v61 = vmul.f32 %v9171_v4, %v10241_v62  ;;  %v4362_v59 = vld [vmem:[#allocation3 + $0x8] sm:$0xff] }
 0xd4a   : >> { %8416 = vmatprep.subr.bf16.mxu0 %v4277_v3  ;;  %v9173_v58 = vpop.eup %9172 }
 0xd4b   : >> { %8420 = vmatprep.mubr.msk.bf16.mxu0 %vm4179_vm5, %v4268_v27  ;;  %v4264_v34 = vmul.f32 %v9173_v58, %v9159_v23  ;;  %v4269_v36 = vpack.c.bf16 %v4263_v33, %v4262_v61 }
 0xd4d   : >> { %8417 = vmatpush3.bf16.msra.mxu0 %v4277_v3 }
 0xd4e   : >> { %v9175_v39 = vpop.eup %9174  ;;  %8418 = vmatprep.subr.bf16.mxu0 %v4279_v8 }
 0xd4f   : >> { %v4265_v51 = vmul.f32 %v9175_v39, %v9163_v45  ;;  %v9177_v28 = vpop.eup %9176  ;;  %v4365_v39 = vld [vmem:[#allocation3 + $0x20] sm:$0xff] }
 0xd50   : >> { %v9179_v20 = vpop.eup %9178  ;;  %v4267_v32 = vmul.f32 %v9177_v28, %v9161_v21 }
 0xd51   : >> { %8419 = vmatpush3.bf16.msra.mxu0 %v4279_v8  ;;  %v4270_v16 = vpack.c.bf16 %v4265_v51, %v4264_v34  ;;  %v4266_v5 = vmul.f32 %v9179_v20, %v10247_v41  ;;  %v4363_v41 = vld [vmem:[#allocation3 + $0x10] sm:$0xff]  ;;  %v4366_v34 = vld [vmem:[#allocation3 + $0x28] sm:$0xff] }
 0xd52   : >> { %8428 = vmatprep.subr.bf16.mxu0 %v9147_v2  ;;  %v4367_v8 = vld [vmem:[#allocation3 + $0x30] sm:$0xff] }
 0xd53   : >> { %v4271_v43 = vpack.c.bf16 %v4267_v32, %v4266_v5 }
 0xd54   : >> { %8421 = vmatmul.mubr.msk.bf16.vlgmr.msra.gmra.mrb[8].mxu0 %vm4179_vm5, %v4269_v36 }
 0xd55   : >> { %8424 = vmatprep.mubr.msk.bf16.mxu0 %vm4179_vm5, %v4270_v16  ;;  %8429 = vmatpush3.bf16.msra.mxu0 %v9147_v2  ;;  %v4368_v2 = vld [vmem:[#allocation3 + $0x38] sm:$0xff] }
 0xd56   : > { %8734 = vmatprep.subr.bf16.mxu0 (%p3957_p4), %v9300_v7 }
 0xd5c   : >> { %8425 = vmatmul.mubr.msk.bf16.gmra.mrb[12].mxu0 %vm4179_vm5, %v4271_v43 }
 0xe27   : >> { %v8422_v45 = vpop.f32.mrb[8].mxu0 }
 0xe28   : >> { %v4330_v62 = vpop.f32.mrb[9].mxu0 }
 0xe29   : >> { %v8423_v47 = vpop.f32.mrb[10].mxu0 }
 0xe2a   : >> { %v4375_v23 = vpack.c.bf16 %v8423_v47, %v8422_v45  ;;  %v4333_v54 = vpop.f32.mrb[11].mxu0 }
 0xe2b   : >> { %v4374_v22 = vpack.c.bf16 %v4333_v54, %v4330_v62 }
 0xe2d   : >> { %8430 = vmatprep.mubr.msk.bf16.mxu0 %vm4081_vm4, %v4374_v22 }
 0xe2e   : >> { %8431 = vmatmul.mubr.msk.bf16.vlgmr.msra.gmra.mrb[16].mxu0 %vm4081_vm4, %v4375_v23 }
 0xe2f   : >> { %v8426_v24 = vpop.f32.mrb[12].mxu0  ;;  %8736 = vmatpush3.bf16.msra.mxu0 (%p3957_p4), %v9483_v6 }
 0xe30   : >> { %v4346_v55 = vpop.f32.mrb[13].mxu0  ;;  %8737 = vmatprep.subr.bf16.mxu0 (%p3957_p4), %v9300_v7 }
 0xe31   : >> { %v8427_v57 = vpop.f32.mrb[14].mxu0 }
 0xe32   : >> { %v4377_v42 = vpack.c.bf16 %v8427_v57, %v8426_v24  ;;  %v4349_v21 = vpop.f32.mrb[15].mxu0 }
 0xe33   : >> { %v4376_v25 = vpack.c.bf16 %v4349_v21, %v4346_v55  ;;  %8739 = vmatpush3.bf16.msra.mxu0 (%p3957_p4), %v9497_v10 }
 0xe34   : > { %8740 = vmatprep.subr.bf16.mxu0 (%p3957_p4), %v9300_v7 }
 0xe35   : >> { %8434 = vmatprep.mubr.msk.bf16.mxu0 %vm4081_vm4, %v4376_v25 }
 0xe36   : >> { %8435 = vmatmul.mubr.msk.bf16.gmra.mrb[20].mxu0 %vm4081_vm4, %v4377_v42 }
 0xe37   : > { %8446 = vmatprep.mubr.msk.f32.mxu0 (%p3957_p4), %vm9301_vm1, %v9302_v11 }
 0xf01   : >> { %v8432_v17 = vpop.f32.mrb[16].mxu0 }
 0xf02   : >> { %v4463_v3 = vadd.f32 %v8432_v17, %v4363_v41  ;;  %v4430_v14 = vpop.f32.mrb[17].mxu0 }
 0xf03   : >> { %v4461_v9 = vadd.f32 %v4430_v14, %v4361_v30  ;;  %v8433_v27 = vpop.f32.mrb[18].mxu0 }
 0xf04   : >> { %4471 = vst.msk [vmem:[#allocation3 + $0x10] sm:$0xff] %vm907_vm0, %v4463_v3  ;;  %v4464_v13 = vadd.f32 %v8433_v27, %v4364_v56  ;;  %v4433_v4 = vpop.f32.mrb[19].mxu0 }
 0xf05   : >> { %4469 = vst.msk [vmem:[#allocation3] sm:$0xff] %vm907_vm0, %v4461_v9  ;;  %v4462_v58 = vadd.f32 %v4433_v4, %v4362_v59 }
 0xf06   : >> { %4472 = vst.msk [vmem:[#allocation3 + $0x18] sm:$0xff] %vm907_vm0, %v4464_v13 }
 0xf07   : >> { %4470 = vst.msk [vmem:[#allocation3 + $0x8] sm:$0xff] %vm907_vm0, %v4462_v58 }
 0xf09   : >> { %v8436_v33 = vpop.f32.mrb[20].mxu0  ;;  %3959 = sbr.rel (!%p3957_p4) target bundleno = 2483 (0x9b3), region = 219 }
 0xf0a   : >> { %v4467_v51 = vadd.f32 %v8436_v33, %v4367_v8  ;;  %v4446_v61 = vpop.f32.mrb[21].mxu0 }
 0xf0b   : >> { %v4465_v36 = vadd.f32 %v4446_v61, %v4365_v39  ;;  %v8437_v28 = vpop.f32.mrb[22].mxu0  ;;  %v4479_v45 = vld [vmem:[#allocation3 + $0x10] sm:$0xff] (%p3957_p4) }
 0xf0c   : >> { %4475 = vst.msk [vmem:[#allocation3 + $0x30] sm:$0xff] %vm907_vm0, %v4467_v51  ;;  %v4468_v16 = vadd.f32 %v8437_v28, %v4368_v2  ;;  %v4449_v20 = vpop.f32.mrb[23].mxu0  ;;  %v4477_v5 = vld [vmem:[#allocation3] sm:$0xff] (%p3957_p4)  ;;  %v4493_v24 = vadd.f32 (%p3957_p4), %v10074_v63, %v4479_v45 }
 0xf0d   : >> { %4473 = vst.msk [vmem:[#allocation3 + $0x20] sm:$0xff] %vm907_vm0, %v4465_v36  ;;  %v4466_v32 = vadd.f32 %v4449_v20, %v4366_v34  ;;  %v4480_v62 = vld [vmem:[#allocation3 + $0x18] sm:$0xff] (%p3957_p4)  ;;  %v4491_v54 = vadd.f32 (%p3957_p4), %v10074_v63, %v4477_v5 }
 0xf0e   : >> { %4476 = vst.msk [vmem:[#allocation3 + $0x38] sm:$0xff] %vm907_vm0, %v4468_v16  ;;  %v4478_v43 = vld [vmem:[#allocation3 + $0x8] sm:$0xff] (%p3957_p4)  ;;  %v4494_v38 = vadd.f32 (%p3957_p4), %v10074_v63, %v4480_v62  ;;  %v10312_v12 = vadd.f32 (%p3957_p4), %v4493_v24, %v10083_v48 }
 0xf0f   : >> { %4474 = vst.msk [vmem:[#allocation3 + $0x28] sm:$0xff] %vm907_vm0, %v4466_v32  ;;  %v4492_v22 = vadd.f32 (%p3957_p4), %v10074_v63, %v4478_v43  ;;  %v10305_v49 = vadd.f32 (%p3957_p4), %v4491_v54, %v10080_v19 }
 0xf10   : > { %v10315_v31 = vadd.f32 %v4494_v38, %v10091_v29 }
 0xf11   : > { %v10308_v46 = vadd.f32 %v4492_v22, %v10086_v60  ;;  %v4515_v48 = vsel %vm907_vm0, %v10305_v49, 0.0 }
 0xf13   : > { %v4483_v53 = vld [vmem:[#allocation3 + $0x30] sm:$0xff]  ;;  %v4516_v60 = vsel %vm907_vm0, %v10308_v46, 0.0 }
 0xf14   : > { %v4481_v47 = vld [vmem:[#allocation3 + $0x20] sm:$0xff]  ;;  %v4497_v26 = vadd.f32 %v10074_v63, %v4483_v53  ;;  %v4517_v29 = vadd.f32 %v4516_v60, %v4515_v48 }
 0xf15   : > { %v4484_v18 = vld [vmem:[#allocation3 + $0x38] sm:$0xff]  ;;  %v4495_v37 = vadd.f32 %v10074_v63, %v4481_v47 }
 0xf16   : > { %v4482_v23 = vld [vmem:[#allocation3 + $0x28] sm:$0xff]  ;;  %v4498_v1 = vadd.f32 %v10074_v63, %v4484_v18 }
 0xf17   : > { %v4496_v40 = vadd.f32 %v10074_v63, %v4482_v23  ;;  %v10318_v50 = vadd.f32 %v4495_v37, %v10100_v15  ;;  %v10327_v63 = vadd.f32 %v4497_v26, %v10103_v0  ;;  %v4518_v15 = vsel %vm907_vm0, %v10312_v12, 0.0 }
 0xf18   : > { %v10330_v19 = vadd.f32 %v4498_v1, %v10111_v35  ;;  %v4519_v21 = vadd.f32 %v4518_v15, %v4517_v29 }
 0xf19   : > { %v10321_v55 = vadd.f32 %v4496_v40, %v10108_v52  ;;  %v4520_v52 = vsel %vm907_vm0, %v10315_v31, 0.0  ;;  %v4522_v0 = vsel %vm907_vm0, %v10318_v50, 0.0  ;;  %v4526_v57 = vsel %vm907_vm0, %v10327_v63, 0.0 }
 0xf1a   : > { %v4528_v42 = vsel %vm907_vm0, %v10330_v19, 0.0  ;;  %v4521_v25 = vadd.f32 %v4520_v52, %v4519_v21 }
 0xf1b   : > { %v4524_v35 = vsel %vm907_vm0, %v10321_v55, 0.0 }
 0xf1c   : > { %v4523_v41 = vadd.f32 %v4522_v0, %v4521_v25 }
 0xf1e   : > { %v4525_v30 = vadd.f32 %v4524_v35, %v4523_v41 }
 0xf20   : > { %v4527_v17 = vadd.f32 %v4526_v57, %v4525_v30  ;;  %v9180_v30 = vld [vmem:[%s10826_s22 + $0x10] sm:$0xff]  }
 0xf22   : > { %v4529_v56 = vadd.f32 %v4528_v42, %v4527_v17  ;;  %v9181_v17 = vld [vmem:[%s10826_s22 + $0x18] sm:$0xff]  }
 0xf24   : > { %v4530_v3 = vrot.slane %v4529_v56, 4 }
 0xf26   : > { %v4531_v14 = vadd.f32 %v4530_v3, %v4529_v56  ;;  %v10384_v56 = vld [vmem:[%s10826_s22] sm:$0xff]  }
 0xf28   : > { %v4532_v59 = vrot.slane %v4531_v14, 2 }
 0xf2a   : > { %v4533_v9 = vadd.f32 %v4532_v59, %v4531_v14 }
 0xf2c   : > { %v4534_v27 = vrot.slane %v4533_v9, 1 }
 0xf2e   : > { %v4535_v13 = vadd.f32 %v4534_v27, %v4533_v9 }
 0xf30   : > { %v4536_v4 = vmul.f32 0.015625, %v4535_v13  ;;  %v7605_v13 = vld [vmem:[%s10824_s20] ss:$0 sm:$0xff] }
 0xf32   : > { %8447 = vmatmul.mubr.msk.f32.vlgmr.msra.gmra.mrb[0].mxu0 %vm907_vm0, %v4536_v4 }
 0xf33   : > { %8742 = vmatpush3.bf16.msra.mxu0 %v9483_v6  ;;  %8457 = vmatprep.mubr.msk.f32.mxu0 %vm9301_vm1, %v9302_v11 }
 0xf34   : > { %8743 = vmatprep.subr.bf16.mxu0 %v9300_v7 }
 0xf37   : > { %8745 = vmatpush3.bf16.msra.mxu0 %v9497_v10 }
 0xf38   : > { %8460 = vmatprep.subr.bf16.mxu0 %v9180_v30 }
0x1005   : > { %v4606_v58 = vpop.f32.mrb[0].mxu0 }
0x1006   : > { %v4613_v8 = vrot.slane %v4606_v58, %v9559_v44  ;;  %v8448_v39 = vpop.f32.mrb[1].mxu0 }
0x1008   : > { %v4614_v33 = vsub.f32 %v10305_v49, %v4613_v8  ;;  %v4615_v2 = vsub.f32 %v10308_v46, %v4613_v8  ;;  %v4616_v51 = vsub.f32 %v10312_v12, %v4613_v8  ;;  %v4617_v61 = vsub.f32 %v10315_v31, %v4613_v8 }
0x1009   : > { %v4618_v34 = vsub.f32 %v10318_v50, %v4613_v8  ;;  %v4619_v20 = vsub.f32 %v10321_v55, %v4613_v8  ;;  %v4620_v62 = vsub.f32 %v10327_v63, %v4613_v8  ;;  %v4621_v22 = vsub.f32 %v10330_v19, %v4613_v8 }
0x100a   : > { %v4622_v36 = vmul.f32 %v4614_v33, %v4614_v33  ;;  %v4623_v28 = vmul.f32 %v4615_v2, %v4615_v2  ;;  %v4624_v16 = vmul.f32 %v4616_v51, %v4616_v51  ;;  %v4625_v32 = vmul.f32 %v4617_v61, %v4617_v61 }
0x100b   : > { %v4626_v47 = vmul.f32 %v4618_v34, %v4618_v34  ;;  %v4627_v24 = vmul.f32 %v4619_v20, %v4619_v20  ;;  %v4628_v38 = vmul.f32 %v4620_v62, %v4620_v62  ;;  %v4629_v26 = vmul.f32 %v4621_v22, %v4621_v22 }
0x100c   : > { %v4630_v5 = vsel %vm907_vm0, %v4622_v36, 0.0  ;;  %v4631_v43 = vsel %vm907_vm0, %v4623_v28, 0.0  ;;  %v4633_v23 = vsel %vm907_vm0, %v4624_v16, 0.0  ;;  %v4635_v53 = vsel %vm907_vm0, %v4625_v32, 0.0  ;;  %v7606_v36 = vld [vmem:[%s10825_s21] ss:$0 sm:$0xff] }
0x100d   : > { %v4632_v45 = vadd.f32 %v4631_v43, %v4630_v5  ;;  %v4637_v37 = vsel %vm907_vm0, %v4626_v47, 0.0  ;;  %v4639_v1 = vsel %vm907_vm0, %v4627_v24, 0.0  ;;  %v4641_v60 = vsel %vm907_vm0, %v4628_v38, 0.0 }
0x100e   : > { %v4643_v15 = vsel %vm907_vm0, %v4629_v26, 0.0 }
0x100f   : > { %v4634_v54 = vadd.f32 %v4633_v23, %v4632_v45 }
0x1011   : > { %v4636_v18 = vadd.f32 %v4635_v53, %v4634_v54 }
0x1013   : > { %v4638_v40 = vadd.f32 %v4637_v37, %v4636_v18 }
0x1015   : > { %v4640_v48 = vadd.f32 %v4639_v1, %v4638_v40 }
0x1017   : > { %v4642_v29 = vadd.f32 %v4641_v60, %v4640_v48 }
0x1019   : > { %v4644_v52 = vadd.f32 %v4643_v15, %v4642_v29 }
0x101b   : > { %v4645_v0 = vrot.slane %v4644_v52, 4 }
0x101d   : > { %v4646_v35 = vadd.f32 %v4645_v0, %v4644_v52 }
0x101f   : > { %v4647_v57 = vrot.slane %v4646_v35, 2 }
0x1021   : > { %v4648_v42 = vadd.f32 %v4647_v57, %v4646_v35 }
0x1023   : > { %v4649_v21 = vrot.slane %v4648_v42, 1 }
0x1025   : > { %v4650_v25 = vadd.f32 %v4649_v21, %v4648_v42 }
0x1027   : > { %v4651_v41 = vmul.f32 0.015625, %v4650_v25 }
0x1029   : > { %8458 = vmatmul.mubr.msk.f32.vlgmr.msra.gmra.mrb[2].mxu0 %vm907_vm0, %v4651_v41 }
0x102a   : > { %8461 = vmatpush3.bf16.msra.mxu0 %v9180_v30 }
0x102b   : > { %8462 = vmatprep.subr.bf16.mxu0 %v9181_v17 }
0x102e   : > { %8463 = vmatpush3.bf16.msra.mxu0 %v9181_v17 }
0x102f   : > { %8472 = vmatprep.subr.bf16.mxu0 %v10384_v56 }
0x10fc   : > { %v4721_v3 = vpop.f32.mrb[2].mxu0 }
0x10fd   : > { %v4722_v14 = vadd.f32 1e-05, %v4721_v3  ;;  %v8459_v59 = vpop.f32.mrb[3].mxu0 }
0x10ff   : > { %9216 = vrsqrt.f32 %v4722_v14 }
0x1109   : > { %v9217_v9 = vpop.eup %9216 }
0x110a   : > { %v4729_v27 = vrot.slane %v9217_v9, %v9559_v44 }
0x110c   : > { %v4730_v4 = vmul.f32 %v4729_v27, %v4614_v33  ;;  %v4731_v58 = vmul.f32 %v4729_v27, %v4615_v2  ;;  %v4732_v8 = vmul.f32 %v4729_v27, %v4616_v51  ;;  %v4733_v39 = vmul.f32 %v4729_v27, %v4617_v61 }
0x110d   : > { %v4734_v28 = vmul.f32 %v4729_v27, %v4618_v34  ;;  %v4735_v16 = vmul.f32 %v4729_v27, %v4619_v20  ;;  %v4736_v32 = vmul.f32 %v4729_v27, %v4620_v62  ;;  %v4737_v5 = vmul.f32 %v4729_v27, %v4621_v22 }
0x110e   : > { %v4744_v43 = vmul.f32 %v7605_v13, %v4730_v4  ;;  %v4745_v45 = vmul.f32 %v7605_v13, %v4731_v58  ;;  %v4746_v47 = vmul.f32 %v7605_v13, %v4732_v8  ;;  %v4747_v23 = vmul.f32 %v7605_v13, %v4733_v39 }
0x110f   : > { %v4748_v54 = vmul.f32 %v7605_v13, %v4734_v28  ;;  %v4749_v24 = vmul.f32 %v7605_v13, %v4735_v16  ;;  %v4750_v53 = vmul.f32 %v7605_v13, %v4736_v32  ;;  %v4751_v18 = vmul.f32 %v7605_v13, %v4737_v5 }
0x1110   : > { %v4759_v33 = vadd.f32 %v7606_v36, %v4745_v45  ;;  %v4760_v2 = vadd.f32 %v7606_v36, %v4746_v47  ;;  %v4758_v51 = vadd.f32 %v7606_v36, %v4744_v43  ;;  %v4761_v61 = vadd.f32 %v7606_v36, %v4747_v23 }
0x1111   : > { %v4762_v38 = vadd.f32 %v7606_v36, %v4748_v54  ;;  %v4763_v37 = vadd.f32 %v7606_v36, %v4749_v24  ;;  %v4764_v20 = vadd.f32 %v7606_v36, %v4750_v53  ;;  %v4765_v22 = vadd.f32 %v7606_v36, %v4751_v18  ;;  %v10401_v53 = vld [vmem:[#allocation2 + $0x1] sm:$0xff] }
0x1112   : > { %v7608_v40 = vmul.f32 -1.442695, %v4759_v33  ;;  %v7609_v26 = vmul.f32 -1.442695, %v4760_v2  ;;  %v7607_v34 = vmul.f32 -1.442695, %v4758_v51 }
0x1113   : > { %v7610_v62 = vmul.f32 -1.442695, %v4761_v61  ;;  %v7611_v1 = vmul.f32 -1.442695, %v4762_v38  ;;  %v7612_v48 = vmul.f32 -1.442695, %v4763_v37 }
0x1114   : > { %9218 = vpow2.f32 %v7608_v40  ;;  %v7613_v60 = vmul.f32 -1.442695, %v4764_v20  ;;  %v7614_v29 = vmul.f32 -1.442695, %v4765_v22  ;;  %v9183_v40 = vld [vmem:[%s10826_s22 + $0x8] sm:$0xff]  }
0x1115   : > { %9220 = vpow2.f32 %v7609_v26 }
0x1116   : > { %9222 = vpow2.f32 %v7607_v34  ;;  %v9184_v34 = vld [vmem:[%s10826_s22 + $0x20] sm:$0xff]  }
0x1117   : > { %9224 = vpow2.f32 %v7610_v62 }
0x1118   : > { %9226 = vpow2.f32 %v7611_v1 }
0x1119   : > { %9228 = vpow2.f32 %v7612_v48 }
0x111a   : > { %9230 = vpow2.f32 %v7613_v60 }
0x111b   : > { %9232 = vpow2.f32 %v7614_v29 }
0x111e   : > { %v9219_v15 = vpop.eup %9218 }
0x111f   : > { %v9221_v52 = vpop.eup %9220  ;;  %v4791_v0 = vadd.f32 1.0, %v9219_v15 }
0x1120   : > { %v9223_v35 = vpop.eup %9222  ;;  %v4792_v57 = vadd.f32 1.0, %v9221_v52 }
0x1121   : > { %v9225_v42 = vpop.eup %9224  ;;  %9234 = vrcp.f32 %v4791_v0  ;;  %v4790_v21 = vadd.f32 1.0, %v9223_v35  ;;  %v9185_v35 = vld [vmem:[%s10826_s22 + $0x28] sm:$0xff]  }
0x1122   : > { %v9227_v25 = vpop.eup %9226  ;;  %9236 = vrcp.f32 %v4792_v57  ;;  %v4793_v41 = vadd.f32 1.0, %v9225_v42  ;;  %v9186_v42 = vld [vmem:[%s10826_s22 + $0x30] sm:$0xff]  }
0x1123   : > { %v9229_v30 = vpop.eup %9228  ;;  %9238 = vrcp.f32 %v4790_v21  ;;  %v4794_v17 = vadd.f32 1.0, %v9227_v25 }
0x1124   : > { %v9231_v3 = vpop.eup %9230  ;;  %9240 = vrcp.f32 %v4793_v41  ;;  %v4795_v14 = vadd.f32 1.0, %v9229_v30  ;;  %v10464_v41 = vld [vmem:[#allocation2 + $0x2] sm:$0xff] }
0x1125   : > { %v9233_v59 = vpop.eup %9232  ;;  %9242 = vrcp.f32 %v4794_v17  ;;  %v4796_v9 = vadd.f32 1.0, %v9231_v3 }
0x1126   : > { %9244 = vrcp.f32 %v4795_v14  ;;  %v4797_v27 = vadd.f32 1.0, %v9233_v59 }
0x1127   : > { %9246 = vrcp.f32 %v4796_v9 }
0x1128   : > { %9248 = vrcp.f32 %v4797_v27 }
0x112b   : > { %v9235_v13 = vpop.eup %9234 }
0x112c   : > { %v9237_v4 = vpop.eup %9236  ;;  %v4815_v58 = vmul.f32 %v9235_v13, %v4759_v33 }
0x112d   : > { %v9239_v8 = vpop.eup %9238  ;;  %v4816_v39 = vmul.f32 %v9237_v4, %v4760_v2  ;;  %v9187_v4 = vld [vmem:[%s10826_s22 + $0x38] sm:$0xff]  }
0x112e   : > { %v9241_v36 = vpop.eup %9240  ;;  %v4814_v28 = vmul.f32 %v9239_v8, %v4758_v51  ;;  %4823 = vst.msk [vmem:[#allocation2 + $0x21] sm:$0xff] %vm907_vm0, %v4815_v58  ;;  %v9188_v8 = vld [vmem:[%s10826_s22 + $0x40] sm:$0xff]  }
0x112f   : > { %v9243_v16 = vpop.eup %9242  ;;  %4824 = vst.msk [vmem:[#allocation2 + $0x31] sm:$0xff] %vm907_vm0, %v4816_v39  ;;  %v4817_v32 = vmul.f32 %v9241_v36, %v4761_v61 }
0x1130   : > { %v9245_v5 = vpop.eup %9244  ;;  %4822 = vst.msk [vmem:[#allocation2 + $0x11] sm:$0xff] %vm907_vm0, %v4814_v28  ;;  %v4818_v43 = vmul.f32 %v9243_v16, %v4762_v38 }
0x1131   : > { %v9247_v45 = vpop.eup %9246  ;;  %4825 = vst.msk [vmem:[#allocation2 + $0x41] sm:$0xff] %vm907_vm0, %v4817_v32  ;;  %v4819_v47 = vmul.f32 %v9245_v5, %v4763_v37  ;;  %v9189_v5 = vld [vmem:[%s10826_s22 + $0x48] sm:$0xff]  }
0x1132   : > { %v9249_v23 = vpop.eup %9248  ;;  %4826 = vst.msk [vmem:[#allocation2 + $0x51] sm:$0xff] %vm907_vm0, %v4818_v43  ;;  %v4820_v54 = vmul.f32 %v9247_v45, %v4764_v20  ;;  %v9190_v45 = vld [vmem:[%s10826_s22 + $0x50] sm:$0xff]  }
0x1133   : > { %4827 = vst.msk [vmem:[#allocation2 + $0x61] sm:$0xff] %vm907_vm0, %v4819_v47  ;;  %v4821_v24 = vmul.f32 %v9249_v23, %v4765_v22  ;;  %v10440_v22 = vld [vmem:[#allocation2] sm:$0xff] }
0x1134   : > { %4828 = vst.msk [vmem:[#allocation2 + $0x71] sm:$0xff] %vm907_vm0, %v4820_v54 }
0x1135   : > { %v10403_v18 = vld [vmem:[#allocation2 + $0x21] sm:$0xff]  ;;  %4829 = vst.msk [vmem:[#allocation2 + $0x81] sm:$0xff] %vm907_vm0, %v4821_v24 }
0x1136   : > { %v10406_v33 = vld [vmem:[#allocation2 + $0x31] sm:$0xff]  ;;  %v4832_v60 = vld [vmem:[#allocation2 + $0x20] sm:$0xff] }
0x1137   : > { %v10408_v2 = vld [vmem:[#allocation2 + $0x11] sm:$0xff]  ;;  %v10412_v51 = vpack.c.bf16 %v10406_v33, %v10403_v18  ;;  %v5043_v14 = vld [vmem:[#allocation2 + $0x22] sm:$0xff] }
0x1138   : > { %v4859_v61 = vpack.c.bf16 %v10408_v2, %v10401_v53  ;;  %v10416_v38 = vld [vmem:[#allocation2 + $0x41] sm:$0xff]  ;;  %v4831_v1 = vld [vmem:[#allocation2 + $0x10] sm:$0xff]  ;;  %v5282_v54 = vpack.c.bf16 %v10403_v18, %v10408_v2 }
0x1139   : > { %v10418_v37 = vld [vmem:[#allocation2 + $0x51] sm:$0xff]  ;;  %v4834_v15 = vld [vmem:[#allocation2 + $0x40] sm:$0xff]  ;;  %v5168_v16 = vpack.c.bf16 %v4832_v60, %v4831_v1  ;;  %v5283_v24 = vpack.c.bf16 %v10416_v38, %v10406_v33 }
0x113a   : > { %8464 = vmatprep.mubr.msk.bf16.mxu0 %vm907_vm0, %v4859_v61  ;;  %v10426_v26 = vpack.c.bf16 %v10418_v37, %v10416_v38  ;;  %v10436_v20 = vld [vmem:[#allocation2 + $0x61] sm:$0xff]  ;;  %v4833_v29 = vld [vmem:[#allocation2 + $0x30] sm:$0xff]  ;;  %v9191_v61 = vld [vmem:[%s10826_s22 + $0x58] sm:$0xff]  }
0x113b   : > { %8465 = vmatmul.mubr.msk.bf16.vlgmr.msra.gmra.mrb[4].mxu0 %vm907_vm0, %v10412_v51  ;;  %v10438_v62 = vld [vmem:[#allocation2 + $0x71] sm:$0xff]  ;;  %v10450_v0 = vpack.c.bf16 %v4833_v29, %v4832_v60  ;;  %v4836_v21 = vld [vmem:[#allocation2 + $0x60] sm:$0xff]  ;;  %v5169_v32 = vpack.c.bf16 %v4834_v15, %v4833_v29 }
0x113c   : > { %8473 = vmatpush3.bf16.msra.mxu0 %v10384_v56  ;;  %8468 = vmatprep.mubr.msk.bf16.mxu0 %vm907_vm0, %v10426_v26  ;;  %v10444_v48 = vpack.c.bf16 %v10438_v62, %v10436_v20  ;;  %v4842_v56 = vpack.c.bf16 %v4831_v1, %v10440_v22  ;;  %v4835_v52 = vld [vmem:[#allocation2 + $0x50] sm:$0xff]  ;;  %v5045_v9 = vld [vmem:[#allocation2 + $0x42] sm:$0xff]  ;;  %v9195_v60 = vld [vmem:[%s10826_s22 + $0x78] sm:$0xff]  }
0x113d   : > { %8474 = vmatprep.subr.bf16.mxu0 %v9183_v40  ;;  %v10455_v57 = vpack.c.bf16 %v4835_v52, %v4834_v15  ;;  %v4837_v25 = vld [vmem:[#allocation2 + $0x70] sm:$0xff]  ;;  %v5047_v39 = vld [vmem:[#allocation2 + $0x62] sm:$0xff]  ;;  %v5170_v43 = vpack.c.bf16 %v4836_v21, %v4835_v52 }
0x113e   : > { %v5042_v30 = vld [vmem:[#allocation2 + $0x12] sm:$0xff]  ;;  %v10466_v17 = vpack.c.bf16 %v4837_v25, %v4836_v21  ;;  %v5162_v47 = vld [vmem:[#allocation2 + $0x80] sm:$0xff] }
0x113f   : > { %v5054_v3 = vpack.c.bf16 %v5042_v30, %v10464_v41  ;;  %v5044_v59 = vld [vmem:[#allocation2 + $0x32] sm:$0xff]  ;;  %v5171_v23 = vpack.c.bf16 %v5162_v47, %v4837_v25  ;;  %v9192_v18 = vld [vmem:[%s10826_s22 + $0x60] sm:$0xff]   ;;  %v5396_v38 = vpack.c.bf16 %v5043_v14, %v5042_v30 }
0x1140   : > { %8475 = vmatpush3.bf16.msra.mxu0 %v9183_v40  ;;  %v5046_v27 = vld [vmem:[#allocation2 + $0x52] sm:$0xff]  ;;  %v10472_v13 = vpack.c.bf16 %v5044_v59, %v5043_v14  ;;  %v5284_v40 = vpack.c.bf16 %v10436_v20, %v10418_v37  ;;  %v5276_v2 = vld [vmem:[#allocation2 + $0x81] sm:$0xff]  ;;  %v5397_v37 = vpack.c.bf16 %v5045_v9, %v5044_v59 }
0x1141   : > { %8484 = vmatprep.subr.bf16.mxu0 %v9184_v34  ;;  %v10477_v58 = vpack.c.bf16 %v5046_v27, %v5045_v9  ;;  %v5048_v36 = vld [vmem:[#allocation2 + $0x72] sm:$0xff]  ;;  %v5285_v33 = vpack.c.bf16 %v5276_v2, %v10438_v62  ;;  %v5398_v20 = vpack.c.bf16 %v5047_v39, %v5046_v27  ;;  %v5390_v1 = vld [vmem:[#allocation2 + $0x82] sm:$0xff] }
0x1142   : > { %v10486_v28 = vpack.c.bf16 %v5048_v36, %v5047_v39  ;;  %v9194_v62 = vld [vmem:[%s10826_s22 + $0x70] sm:$0xff]   ;;  %v9196_v29 = vld [vmem:[%s10826_s22 + $0x80] sm:$0xff]  }
0x1143   : > { %8469 = vmatmul.mubr.msk.bf16.gmra.mrb[8].mxu0 %vm907_vm0, %v10444_v48  ;;  %v10539_v15 = vld [vmem:[#allocation2 + $0x90] sm:$0xff] }
0x1144   : > { %8476 = vmatprep.mubr.msk.bf16.mxu0 %vm907_vm0, %v4842_v56  ;;  %v5399_v56 = vpack.c.bf16 %v5390_v1, %v5048_v36  ;;  %v5513_v52 = vpack.c.bf16 %v10539_v15, %v5162_v47 }
0x114b   : > { %8477 = vmatmul.mubr.msk.bf16.vlgmr.msra.gmra.mrb[4].mxu0 %vm907_vm0, %v10450_v0 }
0x114c   : > { %8485 = vmatpush3.bf16.msra.mxu0 %v9184_v34  ;;  %8480 = vmatprep.mubr.msk.bf16.mxu0 %vm907_vm0, %v10455_v57  ;;  %v9193_v34 = vld [vmem:[%s10826_s22 + $0x68] sm:$0xff]  }
0x114d   : > { %8486 = vmatprep.subr.bf16.mxu0 %v9185_v35 }
0x1150   : > { %8487 = vmatpush3.bf16.msra.mxu0 %v9185_v35  ;;  %v10552_v35 = vld [vmem:[#allocation2 + $0x91] sm:$0xff] }
0x1151   : > { %8496 = vmatprep.subr.bf16.mxu0 %v9186_v42 }
0x1153   : > { %8481 = vmatmul.mubr.msk.bf16.gmra.mrb[8].mxu0 %vm907_vm0, %v10466_v17 }
0x1154   : > { %8488 = vmatprep.mubr.msk.bf16.mxu0 %vm907_vm0, %v5054_v3 }
0x115b   : > { %8489 = vmatmul.mubr.msk.bf16.vlgmr.msra.gmra.mrb[4].mxu0 %vm907_vm0, %v10472_v13 }
0x115c   : > { %8497 = vmatpush3.bf16.msra.mxu0 %v9186_v42  ;;  %8492 = vmatprep.mubr.msk.bf16.mxu0 %vm907_vm0, %v10477_v58 }
0x115d   : > { %8498 = vmatprep.subr.bf16.mxu0 %v9187_v4 }
0x1160   : > { %8499 = vmatpush3.bf16.msra.mxu0 %v9187_v4 }
0x1161   : > { %8508 = vmatprep.subr.bf16.mxu0 %v9188_v8 }
0x1163   : > { %8493 = vmatmul.mubr.msk.bf16.gmra.mrb[8].mxu0 %vm907_vm0, %v10486_v28 }
0x1164   : > { %8500 = vmatprep.mubr.msk.bf16.mxu0 %vm907_vm0, %v5168_v16 }
0x116b   : > { %8501 = vmatmul.mubr.msk.bf16.vlgmr.msra.gmra.mrb[4].mxu0 %vm907_vm0, %v5169_v32 }
0x116c   : > { %8509 = vmatpush3.bf16.msra.mxu0 %v9188_v8  ;;  %8504 = vmatprep.mubr.msk.bf16.mxu0 %vm907_vm0, %v5170_v43 }
0x116d   : > { %8510 = vmatprep.subr.bf16.mxu0 %v9189_v5 }
0x1170   : > { %8511 = vmatpush3.bf16.msra.mxu0 %v9189_v5 }
0x1171   : > { %8520 = vmatprep.subr.bf16.mxu0 %v9190_v45 }
0x1173   : > { %8505 = vmatmul.mubr.msk.bf16.gmra.mrb[8].mxu0 %vm907_vm0, %v5171_v23 }
0x1174   : > { %8512 = vmatprep.mubr.msk.bf16.mxu0 %vm907_vm0, %v5282_v54 }
0x117b   : > { %8513 = vmatmul.mubr.msk.bf16.vlgmr.msra.gmra.mrb[4].mxu0 %vm907_vm0, %v5283_v24 }
0x117c   : > { %8521 = vmatpush3.bf16.msra.mxu0 %v9190_v45  ;;  %8516 = vmatprep.mubr.msk.bf16.mxu0 %vm907_vm0, %v5284_v40 }
0x117d   : > { %8522 = vmatprep.subr.bf16.mxu0 %v9191_v61 }
0x1180   : > { %8523 = vmatpush3.bf16.msra.mxu0 %v9191_v61 }
0x1181   : > { %8532 = vmatprep.subr.bf16.mxu0 %v9192_v18 }
0x1183   : > { %8517 = vmatmul.mubr.msk.bf16.gmra.mrb[8].mxu0 %vm907_vm0, %v5285_v33 }
0x1184   : > { %8524 = vmatprep.mubr.msk.bf16.mxu0 %vm907_vm0, %v5396_v38 }
0x118b   : > { %8525 = vmatmul.mubr.msk.bf16.vlgmr.msra.gmra.mrb[4].mxu0 %vm907_vm0, %v5397_v37 }
0x118c   : > { %8533 = vmatpush3.bf16.msra.mxu0 %v9192_v18  ;;  %8528 = vmatprep.mubr.msk.bf16.mxu0 %vm907_vm0, %v5398_v20 }
0x118d   : > { %8534 = vmatprep.subr.bf16.mxu0 %v9193_v34 }
0x1190   : > { %8535 = vmatpush3.bf16.msra.mxu0 %v9193_v34 }
0x1191   : > { %8544 = vmatprep.subr.bf16.mxu0 %v9194_v62 }
0x1193   : > { %8529 = vmatmul.mubr.msk.bf16.gmra.mrb[8].mxu0 %vm907_vm0, %v5399_v56 }
0x1194   : > { %8536 = vmatprep.mubr.msk.bf16.mxu0 %vm907_vm0, %v10450_v0  ;;  %v9197_v0 = vld [vmem:[%s10826_s22 + $0x88] sm:$0xff]  }
0x119b   : > { %8537 = vmatmul.mubr.msk.bf16.vlgmr.msra.gmra.mrb[4].mxu0 %vm907_vm0, %v10455_v57  ;;  %v5627_v57 = vpack.c.bf16 %v10552_v35, %v5276_v2 }
0x119c   : > { %8545 = vmatpush3.bf16.msra.mxu0 %v9194_v62  ;;  %8540 = vmatprep.mubr.msk.bf16.mxu0 %vm907_vm0, %v10466_v17 }
0x119d   : > { %8546 = vmatprep.subr.bf16.mxu0 %v9195_v60 }
0x11a0   : > { %8547 = vmatpush3.bf16.msra.mxu0 %v9195_v60 }
0x11a1   : > { %8556 = vmatprep.subr.bf16.mxu0 %v9196_v29 }
0x11a3   : > { %8541 = vmatmul.mubr.msk.bf16.gmra.mrb[8].mxu0 %vm907_vm0, %v5513_v52 }
0x11a4   : > { %8548 = vmatprep.mubr.msk.bf16.mxu0 %vm907_vm0, %v10412_v51  ;;  %v10562_v51 = vld [vmem:[#allocation2 + $0x92] sm:$0xff] }
0x11ab   : > { %8549 = vmatmul.mubr.msk.bf16.vlgmr.msra.gmra.mrb[4].mxu0 %vm907_vm0, %v10426_v26  ;;  %v5741_v26 = vpack.c.bf16 %v10562_v51, %v5390_v1 }
0x11ac   : > { %8557 = vmatpush3.bf16.msra.mxu0 %v9196_v29  ;;  %8552 = vmatprep.mubr.msk.bf16.mxu0 %vm907_vm0, %v10444_v48  ;;  %v7701_v48 = vld [vmem:[%s10827_s23] ss:$0 sm:$0xff] }
0x11ad   : > { %8558 = vmatprep.subr.bf16.mxu0 %v9197_v0 }
0x11b0   : > { %8559 = vmatpush3.bf16.msra.mxu0 %v9197_v0 }
0x11b3   : > { %8553 = vmatmul.mubr.msk.bf16.gmra.mrb[8].mxu0 %vm907_vm0, %v5627_v57 }
0x11b4   : > { %8560 = vmatprep.mubr.msk.bf16.mxu0 %vm907_vm0, %v10472_v13 }
0x11bb   : > { %8561 = vmatmul.mubr.msk.bf16.vlgmr.msra.gmra.mrb[4].mxu0 %vm907_vm0, %v10477_v58 }
0x11bc   : > { %8564 = vmatprep.mubr.msk.bf16.mxu0 %vm907_vm0, %v10486_v28 }
0x11c3   : > { %8565 = vmatmul.mubr.msk.bf16.gmra.mrb[8].mxu0 %vm907_vm0, %v5741_v26 }
0x128e   : > { %v8562_v42 = vpop.f32.mrb[4].mxu0 }
0x128f   : > { %v5800_v21 = vpop.f32.mrb[5].mxu0  ;;  %v5847_v3 = vadd.f32 %v8562_v42, %v7701_v48 }
0x1290   : > { %v5845_v25 = vadd.f32 %v7701_v48, %v5800_v21  ;;  %v8563_v30 = vpop.f32.mrb[6].mxu0 }
0x1291   : > { %v5803_v17 = vpop.f32.mrb[7].mxu0  ;;  %v5848_v9 = vadd.f32 %v8563_v30, %v7701_v48  ;;  %v5856_v4 = vsel %vm907_vm0, %v5847_v3, 0.0 }
0x1292   : > { %v5846_v14 = vadd.f32 %v7701_v48, %v5803_v17  ;;  %v5853_v59 = vsel %vm907_vm0, %v5845_v25, 0.0 }
0x1293   : > { %v5858_v36 = vsel %vm907_vm0, %v5848_v9, 0.0 }
0x1294   : > { %v5854_v27 = vsel %vm907_vm0, %v5846_v14, 0.0 }
0x1295   : > { %v5855_v13 = vadd.f32 %v5854_v27, %v5853_v59 }
0x1296   : > { %v8566_v58 = vpop.f32.mrb[8].mxu0 }
0x1297   : > { %v5857_v8 = vadd.f32 %v5856_v4, %v5855_v13  ;;  %v5816_v39 = vpop.f32.mrb[9].mxu0  ;;  %v5851_v43 = vadd.f32 %v8566_v58, %v7701_v48 }
0x1298   : > { %v5849_v28 = vadd.f32 %v7701_v48, %v5816_v39  ;;  %v8567_v16 = vpop.f32.mrb[10].mxu0 }
0x1299   : > { %v5859_v32 = vadd.f32 %v5858_v36, %v5857_v8  ;;  %v5819_v5 = vpop.f32.mrb[11].mxu0  ;;  %v5852_v54 = vadd.f32 %v8567_v16, %v7701_v48  ;;  %v5864_v40 = vsel %vm907_vm0, %v5851_v43, 0.0 }
0x129a   : > { %v5860_v45 = vsel %vm907_vm0, %v5849_v28, 0.0  ;;  %v5850_v47 = vadd.f32 %v7701_v48, %v5819_v5 }
0x129b   : > { %v5861_v23 = vadd.f32 %v5860_v45, %v5859_v32  ;;  %v5866_v2 = vsel %vm907_vm0, %v5852_v54, 0.0 }
0x129c   : > { %v5862_v24 = vsel %vm907_vm0, %v5850_v47, 0.0 }
0x129d   : > { %v5863_v61 = vadd.f32 %v5862_v24, %v5861_v23 }
0x129f   : > { %v5865_v18 = vadd.f32 %v5864_v40, %v5863_v61 }
0x12a1   : > { %v5867_v33 = vadd.f32 %v5866_v2, %v5865_v18 }
0x12a3   : > { %v5868_v38 = vrot.slane %v5867_v33, 4 }
0x12a5   : > { %v5869_v37 = vadd.f32 %v5868_v38, %v5867_v33  ;;  %v9198_v33 = vld [vmem:[%s10830_s26 + $0x10] sm:$0xff]   ;;  %v9199_v38 = vld [vmem:[%s10830_s26 + $0x18] sm:$0xff]  }
0x12a7   : > { %v5870_v34 = vrot.slane %v5869_v37, 2 }
0x12a9   : > { %v5871_v20 = vadd.f32 %v5870_v34, %v5869_v37  ;;  %v10602_v37 = vld [vmem:[%s10830_s26] sm:$0xff]  }
0x12ab   : > { %v5872_v62 = vrot.slane %v5871_v20, 1 }
0x12ad   : > { %v5873_v1 = vadd.f32 %v5872_v62, %v5871_v20 }
0x12af   : > { %v5874_v56 = vmul.f32 0.015625, %v5873_v1 }
0x12b1   : > { %8577 = vmatmul.mubr.msk.f32.vlgmr.msra.gmra.mrb[0].mxu1 %vm907_vm0, %v5874_v56 }
0x12b2   : > { %8754 = vmatpush3.bf16.msra.mxu1 %v9483_v6  ;;  %8587 = vmatprep.mubr.msk.f32.mxu1 %vm9301_vm1, %v9302_v11 }
0x12b3   : > { %8755 = vmatprep.subr.bf16.mxu1 %v9300_v7 }
0x12b6   : > { %8757 = vmatpush3.bf16.msra.mxu1 %v9497_v10 }
0x12b7   : > { %8590 = vmatprep.subr.bf16.mxu1 %v9198_v33 }
0x1384   : > { %v5944_v60 = vpop.f32.mrb[0].mxu1 }
0x1385   : > { %v5951_v29 = vrot.slane %v5944_v60, %v9559_v44  ;;  %v8578_v52 = vpop.f32.mrb[1].mxu1  ;;  %v7704_v60 = vld [vmem:[%s10828_s24] ss:$0 sm:$0xff] }
0x1387   : > { %v5952_v0 = vsub.f32 %v5845_v25, %v5951_v29  ;;  %v5953_v57 = vsub.f32 %v5846_v14, %v5951_v29  ;;  %v5954_v26 = vsub.f32 %v5847_v3, %v5951_v29  ;;  %v5955_v48 = vsub.f32 %v5848_v9, %v5951_v29 }
0x1388   : > { %v5956_v42 = vsub.f32 %v5849_v28, %v5951_v29  ;;  %v5957_v6 = vsub.f32 %v5850_v47, %v5951_v29  ;;  %v5958_v10 = vsub.f32 %v5851_v43, %v5951_v29  ;;  %v5959_v25 = vsub.f32 %v5852_v54, %v5951_v29 }
0x1389   : > { %v5960_v21 = vmul.f32 %v5952_v0, %v5952_v0  ;;  %v5961_v30 = vmul.f32 %v5953_v57, %v5953_v57  ;;  %v5962_v17 = vmul.f32 %v5954_v26, %v5954_v26  ;;  %v5963_v59 = vmul.f32 %v5955_v48, %v5955_v48 }
0x138a   : > { %v5964_v13 = vmul.f32 %v5956_v42, %v5956_v42  ;;  %v5965_v14 = vmul.f32 %v5957_v6, %v5957_v6  ;;  %v5966_v8 = vmul.f32 %v5958_v10, %v5958_v10  ;;  %v5967_v28 = vmul.f32 %v5959_v25, %v5959_v25 }
0x138b   : > { %v5968_v11 = vsel %vm907_vm0, %v5960_v21, 0.0  ;;  %v5969_v7 = vsel %vm907_vm0, %v5961_v30, 0.0  ;;  %v5971_v4 = vsel %vm907_vm0, %v5962_v17, 0.0  ;;  %v5973_v3 = vsel %vm907_vm0, %v5963_v59, 0.0  ;;  %v7705_v17 = vld [vmem:[%s10866_s11] ss:$0 sm:$0xff] }
0x138c   : > { %v5970_v27 = vadd.f32 %v5969_v7, %v5968_v11  ;;  %v5975_v39 = vsel %vm907_vm0, %v5964_v13, 0.0  ;;  %v5977_v16 = vsel %vm907_vm0, %v5965_v14, 0.0  ;;  %v5979_v5 = vsel %vm907_vm0, %v5966_v8, 0.0 }
0x138d   : > { %v5981_v45 = vsel %vm907_vm0, %v5967_v28, 0.0 }
0x138e   : > { %v5972_v58 = vadd.f32 %v5971_v4, %v5970_v27 }
0x1390   : > { %v5974_v9 = vadd.f32 %v5973_v3, %v5972_v58 }
0x1392   : > { %v5976_v36 = vadd.f32 %v5975_v39, %v5974_v9 }
0x1394   : > { %v5978_v32 = vadd.f32 %v5977_v16, %v5976_v36 }
0x1396   : > { %v5980_v43 = vadd.f32 %v5979_v5, %v5978_v32 }
0x1398   : > { %v5982_v47 = vadd.f32 %v5981_v45, %v5980_v43 }
0x139a   : > { %v5983_v23 = vrot.slane %v5982_v47, 4 }
0x139c   : > { %v5984_v54 = vadd.f32 %v5983_v23, %v5982_v47 }
0x139e   : > { %v5985_v24 = vrot.slane %v5984_v54, 2 }
0x13a0   : > { %v5986_v61 = vadd.f32 %v5985_v24, %v5984_v54 }
0x13a2   : > { %v5987_v40 = vrot.slane %v5986_v61, 1 }
0x13a4   : > { %v5988_v18 = vadd.f32 %v5987_v40, %v5986_v61 }
0x13a6   : > { %v5989_v2 = vmul.f32 0.015625, %v5988_v18 }
0x13a8   : > { %8588 = vmatmul.mubr.msk.f32.vlgmr.msra.gmra.mrb[2].mxu1 %vm907_vm0, %v5989_v2 }
0x13a9   : > { %8591 = vmatpush3.bf16.msra.mxu1 %v9198_v33 }
0x13aa   : > { %8592 = vmatprep.subr.bf16.mxu1 %v9199_v38 }
0x13ad   : > { %8593 = vmatpush3.bf16.msra.mxu1 %v9199_v38 }
0x13ae   : > { %8602 = vmatprep.subr.bf16.mxu1 %v10602_v37 }
0x147b   : > { %v6059_v34 = vpop.f32.mrb[2].mxu1 }
0x147c   : > { %v6060_v20 = vadd.f32 1e-05, %v6059_v34  ;;  %v8589_v62 = vpop.f32.mrb[3].mxu1 }
0x147e   : > { %9250 = vrsqrt.f32 %v6060_v20 }
0x1488   : > { %v9251_v1 = vpop.eup %9250 }
0x1489   : > { %v6067_v56 = vrot.slane %v9251_v1, %v9559_v44 }
0x148b   : > { %v6068_v29 = vmul.f32 %v6067_v56, %v5952_v0  ;;  %v6069_v52 = vmul.f32 %v6067_v56, %v5953_v57  ;;  %v6070_v21 = vmul.f32 %v6067_v56, %v5954_v26  ;;  %v6071_v30 = vmul.f32 %v6067_v56, %v5955_v48  ;;  %v7706_v0 = vld [vmem:[%s10868_s2] ss:$0 sm:$0xff] }
0x148c   : > { %v6072_v59 = vmul.f32 %v6067_v56, %v5956_v42  ;;  %v6073_v11 = vmul.f32 %v6067_v56, %v5957_v6  ;;  %v6074_v7 = vmul.f32 %v6067_v56, %v5958_v10  ;;  %v6075_v27 = vmul.f32 %v6067_v56, %v5959_v25  ;;  %v7707_v10 = vld [vmem:[%s10870_s10] ss:$0 sm:$0xff] }
0x148d   : > { %v6082_v13 = vmul.f32 %v7704_v60, %v6068_v29  ;;  %v6083_v4 = vmul.f32 %v7704_v60, %v6069_v52  ;;  %v6084_v44 = vmul.f32 %v7704_v60, %v6070_v21  ;;  %v6085_v58 = vmul.f32 %v7704_v60, %v6071_v30 }
0x148e   : > { %v6086_v57 = vmul.f32 %v7704_v60, %v6072_v59  ;;  %v6087_v26 = vmul.f32 %v7704_v60, %v6073_v11  ;;  %v6088_v48 = vmul.f32 %v7704_v60, %v6074_v7  ;;  %v6089_v14 = vmul.f32 %v7704_v60, %v6075_v27 }
0x148f   : > { %v6096_v3 = vadd.f32 %v7705_v17, %v6082_v13  ;;  %v6097_v9 = vadd.f32 %v7705_v17, %v6083_v4  ;;  %v6098_v42 = vadd.f32 %v7705_v17, %v6084_v44  ;;  %v6099_v6 = vadd.f32 %v7705_v17, %v6085_v58 }
0x1490   : > { %v6100_v25 = vadd.f32 %v7705_v17, %v6086_v57  ;;  %v6101_v8 = vadd.f32 %v7705_v17, %v6087_v26  ;;  %v6102_v39 = vadd.f32 %v7705_v17, %v6088_v48  ;;  %v6103_v36 = vadd.f32 %v7705_v17, %v6089_v14 }
0x1491   : > { %v6110_v28 = vmul.f32 %v7706_v0, %v6096_v3  ;;  %v6111_v16 = vmul.f32 %v7706_v0, %v6097_v9  ;;  %v6112_v32 = vmul.f32 %v7706_v0, %v6098_v42  ;;  %v6113_v5 = vmul.f32 %v7706_v0, %v6099_v6 }
0x1492   : > { %v6114_v43 = vmul.f32 %v7706_v0, %v6100_v25  ;;  %v6115_v45 = vmul.f32 %v7706_v0, %v6101_v8  ;;  %v6116_v47 = vmul.f32 %v7706_v0, %v6102_v39  ;;  %v6117_v23 = vmul.f32 %v7706_v0, %v6103_v36 }
0x1493   : > { %v6124_v54 = vadd.f32 %v7707_v10, %v6110_v28  ;;  %v6125_v24 = vadd.f32 %v7707_v10, %v6111_v16  ;;  %v6126_v61 = vadd.f32 %v7707_v10, %v6112_v32  ;;  %v6127_v40 = vadd.f32 %v7707_v10, %v6113_v5 }
0x1494   : > { %v6128_v18 = vadd.f32 %v7707_v10, %v6114_v43  ;;  %v6129_v2 = vadd.f32 %v7707_v10, %v6115_v45  ;;  %v6130_v33 = vadd.f32 %v7707_v10, %v6116_v47  ;;  %v6131_v62 = vadd.f32 %v7707_v10, %v6117_v23 }
0x1495   : > { %v7708_v38 = vmul.f32 -1.442695, %v6124_v54  ;;  %v7709_v34 = vmul.f32 -1.442695, %v6125_v24  ;;  %v7710_v20 = vmul.f32 -1.442695, %v6126_v61 }
0x1496   : > { %v7711_v1 = vmul.f32 -1.442695, %v6127_v40  ;;  %v7712_v56 = vmul.f32 -1.442695, %v6128_v18  ;;  %v7713_v60 = vmul.f32 -1.442695, %v6129_v2 }
0x1497   : > { %9252 = vpow2.f32 %v7708_v38  ;;  %v7714_v29 = vmul.f32 -1.442695, %v6130_v33  ;;  %v7715_v52 = vmul.f32 -1.442695, %v6131_v62  ;;  %v9202_v38 = vld [vmem:[%s10830_s26 + $0x20] sm:$0xff]  }
0x1498   : > { %9254 = vpow2.f32 %v7709_v34 }
0x1499   : > { %9256 = vpow2.f32 %v7710_v20 }
0x149a   : > { %9258 = vpow2.f32 %v7711_v1 }
0x149b   : > { %9260 = vpow2.f32 %v7712_v56 }
0x149c   : > { %9262 = vpow2.f32 %v7713_v60 }
0x149d   : > { %9264 = vpow2.f32 %v7714_v29 }
0x149e   : > { %9266 = vpow2.f32 %v7715_v52 }
0x14a1   : > { %v9253_v21 = vpop.eup %9252 }
0x14a2   : > { %v9255_v30 = vpop.eup %9254  ;;  %v6156_v17 = vadd.f32 1.0, %v9253_v21 }
0x14a3   : > { %v9257_v59 = vpop.eup %9256  ;;  %v6157_v11 = vadd.f32 1.0, %v9255_v30  ;;  %v9203_v30 = vld [vmem:[%s10830_s26 + $0x28] sm:$0xff]  }
0x14a4   : > { %v9259_v7 = vpop.eup %9258  ;;  %v6158_v27 = vadd.f32 1.0, %v9257_v59  ;;  %9268 = vrcp.f32 %v6156_v17 }
0x14a5   : > { %v9261_v13 = vpop.eup %9260  ;;  %v6159_v4 = vadd.f32 1.0, %v9259_v7  ;;  %9270 = vrcp.f32 %v6157_v11 }
0x14a6   : > { %v9263_v44 = vpop.eup %9262  ;;  %v6160_v58 = vadd.f32 1.0, %v9261_v13  ;;  %9272 = vrcp.f32 %v6158_v27 }
0x14a7   : > { %v9265_v0 = vpop.eup %9264  ;;  %v6161_v57 = vadd.f32 1.0, %v9263_v44  ;;  %9274 = vrcp.f32 %v6159_v4 }
0x14a8   : > { %v9267_v26 = vpop.eup %9266  ;;  %v6162_v48 = vadd.f32 1.0, %v9265_v0  ;;  %9276 = vrcp.f32 %v6160_v58 }
0x14a9   : > { %v6163_v14 = vadd.f32 1.0, %v9267_v26  ;;  %9278 = vrcp.f32 %v6161_v57  ;;  %v9205_v26 = vld [vmem:[%s10830_s26 + $0x38] sm:$0xff]  }
0x14aa   : > { %9280 = vrcp.f32 %v6162_v48 }
0x14ab   : > { %9282 = vrcp.f32 %v6163_v14 }
0x14ae   : > { %v9269_v3 = vpop.eup %9268 }
0x14af   : > { %v9271_v9 = vpop.eup %9270  ;;  %v6180_v42 = vmul.f32 %v9269_v3, %v6124_v54 }
0x14b0   : > { %v9273_v6 = vpop.eup %9272  ;;  %v6181_v10 = vmul.f32 %v9271_v9, %v6125_v24 }
0x14b1   : > { %v9275_v25 = vpop.eup %9274  ;;  %v6182_v8 = vmul.f32 %v9273_v6, %v6126_v61  ;;  %6188 = vst.msk [vmem:[#allocation2 + $0x11] sm:$0xff] %vm907_vm0, %v6180_v42 }
0x14b2   : > { %v9277_v39 = vpop.eup %9276  ;;  %v6183_v36 = vmul.f32 %v9275_v25, %v6127_v40  ;;  %6189 = vst.msk [vmem:[#allocation2 + $0x21] sm:$0xff] %vm907_vm0, %v6181_v10  ;;  %v9207_v10 = vld [vmem:[%s10830_s26 + $0x48] sm:$0xff]  }
0x14b3   : > { %v9279_v28 = vpop.eup %9278  ;;  %v6184_v16 = vmul.f32 %v9277_v39, %v6128_v18  ;;  %6190 = vst.msk [vmem:[#allocation2 + $0x31] sm:$0xff] %vm907_vm0, %v6182_v8  ;;  %v9208_v8 = vld [vmem:[%s10830_s26 + $0x50] sm:$0xff]  }
0x14b4   : > { %v9281_v32 = vpop.eup %9280  ;;  %v6185_v5 = vmul.f32 %v9279_v28, %v6129_v2  ;;  %6191 = vst.msk [vmem:[#allocation2 + $0x41] sm:$0xff] %vm907_vm0, %v6183_v36  ;;  %v9201_v2 = vld [vmem:[%s10830_s26 + $0x8] sm:$0xff]  }
0x14b5   : > { %v9283_v43 = vpop.eup %9282  ;;  %v6186_v45 = vmul.f32 %v9281_v32, %v6130_v33  ;;  %6192 = vst.msk [vmem:[#allocation2 + $0x51] sm:$0xff] %vm907_vm0, %v6184_v16  ;;  %v9209_v32 = vld [vmem:[%s10830_s26 + $0x58] sm:$0xff]  }
0x14b6   : > { %v6187_v47 = vmul.f32 %v9283_v43, %v6131_v62  ;;  %6193 = vst.msk [vmem:[#allocation2 + $0x61] sm:$0xff] %vm907_vm0, %v6185_v5  ;;  %v9210_v43 = vld [vmem:[%s10830_s26 + $0x60] sm:$0xff]  }
0x14b7   : > { %6194 = vst.msk [vmem:[#allocation2 + $0x71] sm:$0xff] %vm907_vm0, %v6186_v45 }
0x14b8   : > { %6195 = vst.msk [vmem:[#allocation2 + $0x81] sm:$0xff] %vm907_vm0, %v6187_v47  ;;  %v10630_v23 = vld [vmem:[#allocation2 + $0x11] sm:$0xff] }
0x14b9   : > { %v6225_v54 = vpack.c.bf16 %v10630_v23, %v10401_v53  ;;  %v10634_v24 = vld [vmem:[#allocation2 + $0x21] sm:$0xff]  ;;  %v6197_v62 = vld [vmem:[#allocation2 + $0x10] sm:$0xff] }
0x14ba   : > { %v10636_v61 = vld [vmem:[#allocation2 + $0x31] sm:$0xff]  ;;  %v6198_v56 = vld [vmem:[#allocation2 + $0x20] sm:$0xff]  ;;  %v6648_v28 = vpack.c.bf16 %v10634_v24, %v10630_v23 }
0x14bb   : > { %8594 = vmatprep.mubr.msk.bf16.mxu1 %vm907_vm0, %v6225_v54  ;;  %v10641_v40 = vpack.c.bf16 %v10636_v61, %v10634_v24  ;;  %v10643_v18 = vld [vmem:[#allocation2 + $0x41] sm:$0xff]  ;;  %v6199_v60 = vld [vmem:[#allocation2 + $0x30] sm:$0xff]  ;;  %v6534_v42 = vpack.c.bf16 %v6198_v56, %v6197_v62 }
0x14bc   : > { %v10648_v33 = vld [vmem:[#allocation2 + $0x51] sm:$0xff]  ;;  %v6200_v29 = vld [vmem:[#allocation2 + $0x40] sm:$0xff]  ;;  %v10674_v21 = vpack.c.bf16 %v6199_v60, %v6198_v56  ;;  %v6649_v16 = vpack.c.bf16 %v10643_v18, %v10636_v61  ;;  %v9211_v24 = vld [vmem:[%s10830_s26 + $0x68] sm:$0xff]  }
0x14bd   : > { %8595 = vmatmul.mubr.msk.bf16.vlgmr.msra.gmra.mrb[4].mxu1 %vm907_vm0, %v10641_v40  ;;  %v10654_v53 = vpack.c.bf16 %v10648_v33, %v10643_v18  ;;  %v10662_v34 = vld [vmem:[#allocation2 + $0x61] sm:$0xff]  ;;  %v6201_v52 = vld [vmem:[#allocation2 + $0x50] sm:$0xff]  ;;  %v6535_v6 = vpack.c.bf16 %v6200_v29, %v6199_v60 }
0x14be   : > { %8603 = vmatpush3.bf16.msra.mxu1 %v10602_v37  ;;  %v10664_v20 = vld [vmem:[#allocation2 + $0x71] sm:$0xff]  ;;  %v6208_v37 = vpack.c.bf16 %v6197_v62, %v10440_v22  ;;  %v10679_v17 = vpack.c.bf16 %v6201_v52, %v6200_v29  ;;  %v6202_v59 = vld [vmem:[#allocation2 + $0x60] sm:$0xff]  ;;  %v6650_v5 = vpack.c.bf16 %v10662_v34, %v10648_v33  ;;  %v9215_v62 = vld [vmem:[%s10830_s26 + $0x88] sm:$0xff]  }
0x14bf   : > { %8598 = vmatprep.mubr.msk.bf16.mxu1 %vm907_vm0, %v10654_v53  ;;  %8604 = vmatprep.subr.bf16.mxu1 %v9201_v2  ;;  %v10668_v1 = vpack.c.bf16 %v10664_v20, %v10662_v34  ;;  %v9204_v22 = vld [vmem:[%s10830_s26 + $0x30] sm:$0xff]   ;;  %v6409_v4 = vld [vmem:[#allocation2 + $0x22] sm:$0xff]  ;;  %v6536_v25 = vpack.c.bf16 %v6202_v59, %v6201_v52 }
0x14c0   : > { %v6203_v11 = vld [vmem:[#allocation2 + $0x70] sm:$0xff]  ;;  %v6411_v58 = vld [vmem:[#allocation2 + $0x42] sm:$0xff] }
0x14c1   : > { %v6408_v7 = vld [vmem:[#allocation2 + $0x12] sm:$0xff]  ;;  %v10688_v27 = vpack.c.bf16 %v6203_v11, %v6202_v59  ;;  %v6413_v14 = vld [vmem:[#allocation2 + $0x62] sm:$0xff] }
0x14c2   : > { %8605 = vmatpush3.bf16.msra.mxu1 %v9201_v2  ;;  %v6420_v13 = vpack.c.bf16 %v6408_v7, %v10464_v41  ;;  %v6410_v44 = vld [vmem:[#allocation2 + $0x32] sm:$0xff]  ;;  %v9206_v41 = vld [vmem:[%s10830_s26 + $0x40] sm:$0xff]   ;;  %v6762_v23 = vpack.c.bf16 %v6409_v4, %v6408_v7 }
0x14c3   : > { %8614 = vmatprep.subr.bf16.mxu1 %v9202_v38  ;;  %v6412_v0 = vld [vmem:[#allocation2 + $0x52] sm:$0xff]  ;;  %v10694_v57 = vpack.c.bf16 %v6410_v44, %v6409_v4  ;;  %v6528_v39 = vld [vmem:[#allocation2 + $0x80] sm:$0xff]  ;;  %v6763_v54 = vpack.c.bf16 %v6411_v58, %v6410_v44 }
0x14c4   : > { %v10699_v48 = vpack.c.bf16 %v6412_v0, %v6411_v58  ;;  %v6414_v3 = vld [vmem:[#allocation2 + $0x72] sm:$0xff]  ;;  %v6537_v36 = vpack.c.bf16 %v6528_v39, %v6203_v11  ;;  %v6642_v45 = vld [vmem:[#allocation2 + $0x81] sm:$0xff]  ;;  %v6764_v61 = vpack.c.bf16 %v6413_v14, %v6412_v0 }
0x14c5   : > { %8599 = vmatmul.mubr.msk.bf16.gmra.mrb[8].mxu1 %vm907_vm0, %v10668_v1  ;;  %v10708_v9 = vpack.c.bf16 %v6414_v3, %v6413_v14  ;;  %v6651_v47 = vpack.c.bf16 %v6642_v45, %v10664_v20  ;;  %v9212_v18 = vld [vmem:[%s10830_s26 + $0x70] sm:$0xff]   ;;  %v6756_v2 = vld [vmem:[#allocation2 + $0x82] sm:$0xff]  ;;  %v6879_v20 = vpack.c.bf16 %v10539_v15, %v6528_v39  ;;  %v6993_v15 = vpack.c.bf16 %v10552_v35, %v6642_v45 }
0x14c6   : > { %8606 = vmatprep.mubr.msk.bf16.mxu1 %vm907_vm0, %v6208_v37  ;;  %v6765_v33 = vpack.c.bf16 %v6756_v2, %v6414_v3  ;;  %v9214_v34 = vld [vmem:[%s10830_s26 + $0x80] sm:$0xff]  }
0x14cd   : > { %8607 = vmatmul.mubr.msk.bf16.vlgmr.msra.gmra.mrb[4].mxu1 %vm907_vm0, %v10674_v21 }
0x14ce   : > { %8615 = vmatpush3.bf16.msra.mxu1 %v9202_v38  ;;  %8610 = vmatprep.mubr.msk.bf16.mxu1 %vm907_vm0, %v10679_v17  ;;  %v9213_v38 = vld [vmem:[%s10830_s26 + $0x78] sm:$0xff]  }
0x14cf   : > { %8616 = vmatprep.subr.bf16.mxu1 %v9203_v30 }
0x14d2   : > { %8617 = vmatpush3.bf16.msra.mxu1 %v9203_v30 }
0x14d3   : > { %8626 = vmatprep.subr.bf16.mxu1 %v9204_v22 }
0x14d5   : > { %8611 = vmatmul.mubr.msk.bf16.gmra.mrb[8].mxu1 %vm907_vm0, %v10688_v27 }
0x14d6   : > { %8618 = vmatprep.mubr.msk.bf16.mxu1 %vm907_vm0, %v6420_v13 }
0x14dd   : > { %8619 = vmatmul.mubr.msk.bf16.vlgmr.msra.gmra.mrb[4].mxu1 %vm907_vm0, %v10694_v57 }
0x14de   : > { %8627 = vmatpush3.bf16.msra.mxu1 %v9204_v22  ;;  %8622 = vmatprep.mubr.msk.bf16.mxu1 %vm907_vm0, %v10699_v48 }
0x14df   : > { %8628 = vmatprep.subr.bf16.mxu1 %v9205_v26 }
0x14e2   : > { %8629 = vmatpush3.bf16.msra.mxu1 %v9205_v26 }
0x14e3   : > { %8638 = vmatprep.subr.bf16.mxu1 %v9206_v41 }
0x14e5   : > { %8623 = vmatmul.mubr.msk.bf16.gmra.mrb[8].mxu1 %vm907_vm0, %v10708_v9 }
0x14e6   : > { %8630 = vmatprep.mubr.msk.bf16.mxu1 %vm907_vm0, %v6534_v42 }
0x14ed   : > { %8631 = vmatmul.mubr.msk.bf16.vlgmr.msra.gmra.mrb[4].mxu1 %vm907_vm0, %v6535_v6 }
0x14ee   : > { %8639 = vmatpush3.bf16.msra.mxu1 %v9206_v41  ;;  %8634 = vmatprep.mubr.msk.bf16.mxu1 %vm907_vm0, %v6536_v25 }
0x14ef   : > { %8640 = vmatprep.subr.bf16.mxu1 %v9207_v10 }
0x14f2   : > { %8641 = vmatpush3.bf16.msra.mxu1 %v9207_v10 }
0x14f3   : > { %8650 = vmatprep.subr.bf16.mxu1 %v9208_v8 }
0x14f5   : > { %8635 = vmatmul.mubr.msk.bf16.gmra.mrb[8].mxu1 %vm907_vm0, %v6537_v36 }
0x14f6   : > { %8642 = vmatprep.mubr.msk.bf16.mxu1 %vm907_vm0, %v6648_v28 }
0x14fd   : > { %8643 = vmatmul.mubr.msk.bf16.vlgmr.msra.gmra.mrb[4].mxu1 %vm907_vm0, %v6649_v16 }
0x14fe   : > { %8651 = vmatpush3.bf16.msra.mxu1 %v9208_v8  ;;  %8646 = vmatprep.mubr.msk.bf16.mxu1 %vm907_vm0, %v6650_v5 }
0x14ff   : > { %8652 = vmatprep.subr.bf16.mxu1 %v9209_v32 }
0x1502   : > { %8653 = vmatpush3.bf16.msra.mxu1 %v9209_v32 }
0x1503   : > { %8662 = vmatprep.subr.bf16.mxu1 %v9210_v43 }
0x1505   : > { %8647 = vmatmul.mubr.msk.bf16.gmra.mrb[8].mxu1 %vm907_vm0, %v6651_v47 }
0x1506   : > { %8654 = vmatprep.mubr.msk.bf16.mxu1 %vm907_vm0, %v6762_v23 }
0x150d   : > { %8655 = vmatmul.mubr.msk.bf16.vlgmr.msra.gmra.mrb[4].mxu1 %vm907_vm0, %v6763_v54 }
0x150e   : > { %8663 = vmatpush3.bf16.msra.mxu1 %v9210_v43  ;;  %8658 = vmatprep.mubr.msk.bf16.mxu1 %vm907_vm0, %v6764_v61 }
0x150f   : > { %8664 = vmatprep.subr.bf16.mxu1 %v9211_v24 }
0x1512   : > { %8665 = vmatpush3.bf16.msra.mxu1 %v9211_v24 }
0x1513   : > { %8674 = vmatprep.subr.bf16.mxu1 %v9212_v18 }
0x1515   : > { %8659 = vmatmul.mubr.msk.bf16.gmra.mrb[8].mxu1 %vm907_vm0, %v6765_v33 }
0x1516   : > { %8666 = vmatprep.mubr.msk.bf16.mxu1 %vm907_vm0, %v10674_v21 }
0x151d   : > { %8667 = vmatmul.mubr.msk.bf16.vlgmr.msra.gmra.mrb[4].mxu1 %vm907_vm0, %v10679_v17 }
0x151e   : > { %8675 = vmatpush3.bf16.msra.mxu1 %v9212_v18  ;;  %8670 = vmatprep.mubr.msk.bf16.mxu1 %vm907_vm0, %v10688_v27 }
0x151f   : > { %8676 = vmatprep.subr.bf16.mxu1 %v9213_v38 }
0x1522   : > { %8677 = vmatpush3.bf16.msra.mxu1 %v9213_v38 }
0x1523   : > { %8686 = vmatprep.subr.bf16.mxu1 %v9214_v34 }
0x1525   : > { %8671 = vmatmul.mubr.msk.bf16.gmra.mrb[8].mxu1 %vm907_vm0, %v6879_v20 }
0x1526   : > { %8678 = vmatprep.mubr.msk.bf16.mxu1 %vm907_vm0, %v10641_v40  ;;  %v7107_v40 = vpack.c.bf16 %v10562_v51, %v6756_v2 }
0x152d   : > { %8679 = vmatmul.mubr.msk.bf16.vlgmr.msra.gmra.mrb[4].mxu1 %vm907_vm0, %v10654_v53  ;;  %v7802_v53 = vld [vmem:[%s10871_s8] ss:$0 sm:$0xff] }
0x152e   : > { %8687 = vmatpush3.bf16.msra.mxu1 %v9214_v34  ;;  %8682 = vmatprep.mubr.msk.bf16.mxu1 %vm907_vm0, %v10668_v1 }
0x152f   : > { %8688 = vmatprep.subr.bf16.mxu1 %v9215_v62 }
0x1532   : > { %8689 = vmatpush3.bf16.msra.mxu1 %v9215_v62 }
0x1535   : > { %8683 = vmatmul.mubr.msk.bf16.gmra.mrb[8].mxu1 %vm907_vm0, %v6993_v15 }
0x1536   : > { %8690 = vmatprep.mubr.msk.bf16.mxu1 %vm907_vm0, %v10694_v57 }
0x153d   : > { %8691 = vmatmul.mubr.msk.bf16.vlgmr.msra.gmra.mrb[4].mxu1 %vm907_vm0, %v10699_v48 }
0x153e   : > { %8694 = vmatprep.mubr.msk.bf16.mxu1 %vm907_vm0, %v10708_v9 }
0x1545   : > { %8695 = vmatmul.mubr.msk.bf16.gmra.mrb[8].mxu1 %vm907_vm0, %v7107_v40 }
0x1610   : > { %v8692_v35 = vpop.f32.mrb[4].mxu1 }
0x1611   : > { %v7166_v1 = vpop.f32.mrb[5].mxu1  ;;  %v7213_v21 = vadd.f32 %v8692_v35, %v7802_v53 }
0x1612   : > { %v7211_v37 = vadd.f32 %v7802_v53, %v7166_v1  ;;  %v8693_v56 = vpop.f32.mrb[6].mxu1 }
0x1613   : > { %v7169_v60 = vpop.f32.mrb[7].mxu1  ;;  %v7214_v11 = vadd.f32 %v8693_v56, %v7802_v53  ;;  %v7221_v7 = vadd.f32 %v7213_v21, %v10312_v12 }
0x1614   : > { %v7212_v29 = vadd.f32 %v7802_v53, %v7169_v60  ;;  %v7219_v52 = vadd.f32 %v7211_v37, %v10305_v49 }
0x1615   : > { %v7222_v13 = vadd.f32 %v7214_v11, %v10315_v31 }
0x1616   : > { %7227 = vxpose.xlu0.b32.start [1/8] (short) (narrow) %v7219_v52, 32  ;;  %v7220_v17 = vadd.f32 %v7212_v29, %v10308_v46 }
0x1618   : > { %v8696_v30 = vpop.f32.mrb[8].mxu1 }
0x1619   : > { %v7182_v51 = vpop.f32.mrb[9].mxu1  ;;  %v7217_v46 = vadd.f32 %v8696_v30, %v7802_v53 }
0x161a   : > { %7228 = vxpose.xlu0.b32.cont [2/8] (short) (narrow) %v7220_v17, 32  ;;  %v8697_v22 = vpop.f32.mrb[10].mxu1  ;;  %v7215_v27 = vadd.f32 %v7802_v53, %v7182_v51 }
0x161b   : > { %v7185_v59 = vpop.f32.mrb[11].mxu1  ;;  %v7218_v58 = vadd.f32 %v8697_v22, %v7802_v53  ;;  %v7225_v12 = vadd.f32 %v7217_v46, %v10327_v63 }
0x161c   : > { %v7216_v49 = vadd.f32 %v7802_v53, %v7185_v59  ;;  %v7223_v4 = vadd.f32 %v7215_v27, %v10318_v50 }
0x161d   : > { %v7226_v0 = vadd.f32 %v7218_v58, %v10330_v19 }
0x161e   : > { %7229 = vxpose.xlu0.b32.cont [3/8] (short) (narrow) %v7221_v7, 32  ;;  %v7224_v44 = vadd.f32 %v7216_v49, %v10321_v55 }
0x1622   : > { %7230 = vxpose.xlu0.b32.cont [4/8] (short) (narrow) %v7222_v13, 32 }
0x1626   : > { %7231 = vxpose.xlu0.b32.cont [5/8] (short) (narrow) %v7223_v4, 32 }
0x162a   : > { %7232 = vxpose.xlu0.b32.cont [6/8] (short) (narrow) %v7224_v44, 32 }
0x162e   : > { %7233 = vxpose.xlu0.b32.cont [7/8] (short) (narrow) %v7225_v12, 32 }
0x1632   : > { %7234 = vxpose.xlu0.b32.end [8/8] (short) (narrow) %v7226_v0, 32 }
0x1696   : > { %v7243_v31 = vpop.trf.xlu0 }
0x1697   : > { %7260 = vst.msk [vmem:[%s9475_s25] sm:$0xff] %vm4179_vm5, %v7243_v31 }
0x169a   : > { %v7244_v57 = vpop.trf.xlu0 }
0x169b   : > { %7261 = vst.msk [vmem:[%s9475_s25 + $0x8] sm:$0xff] %vm4179_vm5, %v7244_v57 }
0x169e   : > { %v7245_v50 = vpop.trf.xlu0 }
0x169f   : > { %7262 = vst.msk [vmem:[%s9475_s25 + $0x10] sm:$0xff] %vm4179_vm5, %v7245_v50 }
0x16a2   : > { %v7246_v26 = vpop.trf.xlu0 }
0x16a3   : > { %7263 = vst.msk [vmem:[%s9475_s25 + $0x18] sm:$0xff] %vm4179_vm5, %v7246_v26 }
0x16a4 PF: > { %s10872_s9 = sld [smem:[#allocation4_spill]] }
0x16aa   : > { %s38_s8 = sadd.s32 1, %s10872_s9  }
0x16ab   : > { %p35_p5 = scmp.ge.s32.totalorder %s38_s8, 4  }
0x16ad   :  { %37 = sbr.rel (!%p35_p5) target bundleno = 16 (0x10), region = 230 }

</bundles_post_ra>
